<compile_context>
chip_gen: v7x
topology: tpu7x:2x2x1
jax: 0.10.0
libtpu: 0.0.40
codegen_flags: <defaults>
</compile_context>

<pallas_src>
import functools
import itertools
import math

import numpy as np

import jax
import jax.numpy as jnp
from jax.experimental import pallas as pl
from jax.experimental.pallas import tpu as pltpu

try:  # prefer scipy's exact solver when present
    from scipy.optimize import linear_sum_assignment as _scipy_lsa
except Exception:  # pragma: no cover
    _scipy_lsa = None


_G_BLOCK = 8    # targets per grid step (output sublane block)
_CHUNK = 8      # sample-axis rows per VPU accumulation step


# ----------------------------------------------------------------------------- helpers (glue)

def _round_up(x, m):
    return ((x + m - 1) // m) * m


def _choose_m_tiling(m):
    """Pad M to a multiple of 512 and pick the M-tile (lane) width.

    Prefer larger tiles to amortize the ~0.35us/step grid overhead, but keep >= 2 steps
    along the "parallel" M axis whenever possible (v7x megacore) and cap the tile at
    1024 lanes so the per-chunk vreg working set stays spill-free.
    """
    m_pad = _round_up(max(m, 1), 512)
    for tm in (1024, 512):
        if m_pad % tm == 0 and m_pad // tm >= 2:
            return m_pad, tm
    return m_pad, min(m_pad, 512)


def bernstein_matrix(num_sample_points, order=3):
    """(S, order+1) cubic Bernstein basis evaluated on linspace(0, 1, S)."""
    t = np.linspace(0.0, 1.0, num_sample_points, dtype=np.float64)
    cols = [math.comb(order, k) * t**k * (1.0 - t) ** (order - k) for k in range(order + 1)]
    return np.stack(cols, axis=-1).astype(np.float32)


def get_valid_points(points):
    # points: (..., N, 2) -> bool (..., N); a point is valid iff strictly inside (0, 1)^2
    return ((points[..., 0] > 0) & (points[..., 0] < 1)
            & (points[..., 1] > 0) & (points[..., 1] < 1))


def cubic_bezier_curve_segment(control_points, sample_points):
    """Cut cubic Bezier curves to their in-image segment [t0, t1] (De Casteljau blossom).

    control_points: (G, 4, 2), sample_points: (G, N, 2) -> new control points (G, 4, 2).
    """
    if control_points.size == 0 or sample_points.size == 0:
        return control_points
    G, N = sample_points.shape[:2]
    valid = get_valid_points(sample_points).astype(jnp.int32)       # (G, N)
    t = jnp.linspace(0.0, 1.0, N, dtype=jnp.float32)
    idx = jnp.arange(N, dtype=jnp.int32)
    first_idx = jnp.argmax(valid + jnp.flip(idx) * valid, axis=-1)  # first valid sample
    last_idx = jnp.argmax(valid + idx * valid, axis=-1)             # last valid sample
    t0 = t[first_idx]
    t1 = t[last_idx]
    u0 = 1.0 - t0
    u1 = 1.0 - t1
    # Blossom of the cubic: new P_i = b(t0..t0, t1..t1)
    row0 = jnp.stack([u0**3, 3 * u0**2 * t0, 3 * u0 * t0**2, t0**3], axis=-1)
    row1 = jnp.stack([u0**2 * u1,
                      2 * u0 * u1 * t0 + u0**2 * t1,
                      t0**2 * u1 + 2 * u0 * t0 * t1,
                      t0**2 * t1], axis=-1)
    row2 = jnp.stack([u0 * u1**2,
                      t0 * u1**2 + 2 * u0 * u1 * t1,
                      2 * t0 * u1 * t1 + u0 * t1**2,
                      t0 * t1**2], axis=-1)
    row3 = jnp.stack([u1**3, 3 * u1**2 * t1, 3 * u1 * t1**2, t1**3], axis=-1)
    M = jnp.stack([row0, row1, row2, row3], axis=-2)                # (G, 4, 4)
    return jnp.einsum('gij,gjc->gic', M, control_points)


def local_maxima_mask(logits, k):
    """Replicates max_pool1d(prob, k, stride=1, pad=(k-1)//2, return_indices) == arange.

    sigmoid is strictly monotonic, so local maxima of logits == local maxima of prob.
    """
    # TODO(synk): PyTorch max_pool1d(return_indices) breaks exact ties by picking a single
    #             index; this mask marks all tied maxima (differs only on exact logit ties).
    B, Q = logits.shape
    pad = (k - 1) // 2
    neg = jnp.full((B, pad), -jnp.inf, logits.dtype)
    padded = jnp.concatenate([neg, logits, neg], axis=1)             # (B, Q + 2*pad)
    win = jnp.stack([padded[:, d:d + Q] for d in range(k)], axis=0)  # (k, B, Q)
    wmax = jnp.max(win, axis=0)
    return (logits >= wmax).astype(jnp.float32)


# ----------------------------------------------------------------------------- Pallas kernel

def _lane_tile(x, reps):
    """Widen a (rows, 128) tile to (rows, 128*reps) via vreg copies (no lane-broadcast)."""
    if reps == 1:
        return x
    return jnp.concatenate([x] * reps, axis=1)


def _make_cost_kernel(alpha, num_sample_points):
    inv_s = 1.0 / float(num_sample_points)
    one_minus_alpha = 1.0 - float(alpha)
    alpha = float(alpha)

    def kernel(logits_ref, mask_ref, cpt_ref, ts_ref, b2t_ref, c_ref, ps_ref):
        # logits_ref, mask_ref : (1, TM)        lane-dense prediction rows
        # cpt_ref              : (8, TM)        [x0..x3, y0..y3] control coords, preds on lanes
        # ts_ref               : (8, 2S, 128)   target sample points, lane-replicated to 128
        # b2t_ref              : (2S, 8)        block-diagonal Bernstein basis (transposed)
        # c_ref                : (8, TM)        negated cost block (targets x preds)
        # ps_ref               : (2S, TM)       VMEM scratch: predicted sample points
        g_block, two_s, _ = ts_ref.shape
        tm = cpt_ref.shape[1]
        lane_reps = tm // 128
        n_chunks = two_s // _CHUNK
        ps_rows = 16 if two_s % 16 == 0 else 8
        n_ps_chunks = two_s // ps_rows

        # (a) Predicted Bezier sample points for this M-tile, kept in VMEM scratch and
        #     recomputed only once per M-tile (target axis is the inner grid dim).
        #     Chunked stores keep the MXU result out of the vreg budget.
        @pl.when(pl.program_id(1) == 0)
        def _():
            for c in range(n_ps_chunks):
                lo = c * ps_rows
                ps_ref[lo:lo + ps_rows, :] = jnp.dot(
                    b2t_ref[lo:lo + ps_rows, :], cpt_ref[...],
                    preferred_element_type=jnp.float32)

        # (b) -mask * sigmoid(logits)^(1-alpha): numerically stable sigmoid, EUP exp +
        #     approximate EUP reciprocal (no VALU divide, no inf intermediates).
        x = logits_ref[...]
        z = jnp.exp(-jnp.abs(x))
        r = pl.reciprocal(1.0 + z, approx=True)
        prob = jnp.where(x >= 0.0, r, z * r)
        neg_weight = -(mask_ref[...] * prob ** one_minus_alpha)          # (1, TM)

        # (c) Per-target L1 over the 2S sample axis, accumulated on the VPU in 8-sublane
        #     chunks (no MXU reduction, no (M, G, S) broadcast).  Targets arrive
        #     lane-replicated to 128 lanes and are widened to TM by plain vreg copies.
        rows = []
        for g in range(g_block):
            acc = None
            for c in range(n_chunks):
                lo = c * _CHUNK
                ps_c = ps_ref[lo:lo + _CHUNK, :]                          # (8, TM)
                ts_c = _lane_tile(ts_ref[g, lo:lo + _CHUNK, :], lane_reps)
                d = jnp.abs(ps_c - ts_c)
                acc = d if acc is None else acc + d
            rows.append(jnp.sum(acc, axis=0, keepdims=True))             # (1, TM)
        l1 = jnp.concatenate(rows, axis=0)                                # (8, TM)

        # (d) Dense epilogue on the whole (8, TM) block + one dense lane-aligned store.
        cost_curve = jnp.clip(1.0 - l1 * inv_s, 0.0, 1.0)
        c_ref[...] = neg_weight * cost_curve ** alpha

    return kernel


@functools.partial(jax.jit, static_argnames=("alpha", "num_sample_points", "tm"))
def _cost_matrix_pallas(logits_row, mask_row, cp_t, ts_rep, b2_t, *, alpha,
                        num_sample_points, tm):
    _, m_pad = logits_row.shape
    g_pad, two_s, _ = ts_rep.shape
    kernel = _make_cost_kernel(alpha, num_sample_points)
    return pl.pallas_call(
        kernel,
        out_shape=jax.ShapeDtypeStruct((g_pad, m_pad), jnp.float32),
        grid=(m_pad // tm, g_pad // _G_BLOCK),
        in_specs=[
            pl.BlockSpec((1, tm), lambda i, j: (0, i)),              # logits (lane-dense)
            pl.BlockSpec((1, tm), lambda i, j: (0, i)),              # local-maxima mask
            pl.BlockSpec((8, tm), lambda i, j: (0, i)),              # pred control points (x;y)
            pl.BlockSpec((_G_BLOCK, two_s, 128), lambda i, j: (j, 0, 0)),  # targets (lane-rep)
            pl.BlockSpec((two_s, 8), lambda i, j: (0, 0)),           # Bernstein basis
        ],
        out_specs=pl.BlockSpec((_G_BLOCK, tm), lambda i, j: (j, i)),  # C^T block
        scratch_shapes=[pltpu.VMEM((two_s, tm), jnp.float32)],        # predicted samples
        compiler_params=pltpu.CompilerParams(
            dimension_semantics=("parallel", "arbitrary"),
            vmem_limit_bytes=32 * 1024 * 1024,
        ),
    )(logits_row, mask_row, cp_t, ts_rep, b2_t)


# ----------------------------------------------------------------------------- host-side LSA

def _lsa_jv(cost):
    """Jonker-Volgenant (shortest augmenting path) min-cost assignment, pure numpy.

    cost: (R, C). Returns (row_ind, col_ind) of length min(R, C), sorted by row_ind.
    """
    cost = np.asarray(cost, dtype=np.float64)
    transposed = cost.shape[1] > cost.shape[0]
    if transposed:
        cost = cost.T
    a = cost.T                                        # (n, m) with n <= m: assign every row
    n, m = a.shape
    if n == 0:
        return np.zeros((0,), np.int64), np.zeros((0,), np.int64)
    u = np.zeros(n + 1)
    v = np.zeros(m + 1)
    p = np.zeros(m + 1, dtype=np.int64)               # p[j]: 1-based row assigned to col j
    way = np.zeros(m + 1, dtype=np.int64)
    for i in range(1, n + 1):
        p[0] = i
        j0 = 0
        minv = np.full(m + 1, np.inf)
        used = np.zeros(m + 1, dtype=bool)
        while True:
            used[j0] = True
            i0 = p[j0]
            free = np.nonzero(~used[1:])[0] + 1
            cur = a[i0 - 1, free - 1] - u[i0] - v[free]
            better = cur < minv[free]
            minv[free] = np.where(better, cur, minv[free])
            way[free[better]] = j0
            k = int(np.argmin(minv[free]))
            delta = minv[free][k]
            j1 = int(free[k])
            u[p[used]] += delta
            v[used] -= delta
            minv[free] -= delta
            j0 = j1
            if p[j0] == 0:
                break
        while j0 != 0:
            j1 = int(way[j0])
            p[j0] = p[j1]
            j0 = j1
    cols_assigned = np.nonzero(p[1:])[0]              # 0-based "big side" indices
    rows_assigned = p[1:][cols_assigned] - 1          # 0-based "small side" indices
    if transposed:
        row_ind, col_ind = rows_assigned, cols_assigned
    else:
        row_ind, col_ind = cols_assigned, rows_assigned
    order = np.argsort(row_ind)
    return row_ind[order].astype(np.int64), col_ind[order].astype(np.int64)


def _linear_sum_assignment(cost):
    # TODO(synk): scipy-style linear_sum_assignment is a sequential, data-dependent
    #             algorithm with no Pallas equivalent; solved on host (scipy if available,
    #             otherwise the numpy Jonker-Volgenant solver above).
    cost = np.asarray(cost, dtype=np.float64)
    if cost.shape[1] == 0:
        return np.zeros((0,), np.int64), np.zeros((0,), np.int64)
    if _scipy_lsa is not None:
        row, col = _scipy_lsa(cost)
        row = np.asarray(row, np.int64)
        col = np.asarray(col, np.int64)
        order = np.argsort(row)
        return row[order], col[order]
    return _lsa_jv(cost)


# ----------------------------------------------------------------------------- matcher module

class HungarianMatcherPallas:
    def __init__(self, alpha=0.8, bezier_order=3, num_sample_points=100, k=7):
        assert bezier_order == 3, "BezierSampler coefficients are hard-coded for cubic curves"
        self.alpha = float(alpha)
        self.k = int(k)
        self.num_sample_points = int(num_sample_points)
        s_pad = _round_up(num_sample_points, 8)       # sublane-pad only (8), not 128
        bern = bernstein_matrix(num_sample_points, order=bezier_order)  # (S, 4)
        bern_pad = np.zeros((s_pad, 4), np.float32)
        bern_pad[:num_sample_points] = bern           # zero rows => zero L1 contribution
        b2_t = np.zeros((2 * s_pad, 8), np.float32)   # block-diag [[bern, 0], [0, bern]]
        b2_t[:s_pad, :4] = bern_pad
        b2_t[s_pad:, 4:] = bern_pad
        self.s_pad = s_pad
        self.b2_t = jnp.asarray(b2_t)                 # (2*S_pad, 8)

    def cost_matrix(self, outputs, targets):
        """Negated POTO cost matrix, shape (B, Q, G), as a numpy array."""
        B, Q = outputs['logits'].shape
        M = B * Q
        sizes = [int(t['keypoints'].shape[0]) for t in targets]
        G = sum(sizes)
        if G == 0:
            return np.zeros((B, Q, 0), np.float32)

        logits = jnp.asarray(outputs['logits'], jnp.float32)            # (B, Q)
        curves = jnp.asarray(outputs['curves'], jnp.float32)            # (B, Q, 4, 2)
        tgt_kp = jnp.concatenate([jnp.asarray(t['keypoints'], jnp.float32)
                                  for t in targets], axis=0)            # (G, 4, 2)
        tgt_sp = jnp.concatenate([jnp.asarray(t['sample_points'], jnp.float32)
                                  for t in targets], axis=0)            # (G, N, 2)
        tgt_kp = cubic_bezier_curve_segment(tgt_kp, tgt_sp)             # (G, 4, 2)

        # ---- glue / layout plumbing (plain JAX): lane-pad M, fuse x/y, replicate targets ----
        mask = local_maxima_mask(logits, self.k)                        # (B, Q)
        m_pad, tm = _choose_m_tiling(M)
        g_pad = _round_up(G, _G_BLOCK)
        two_s = 2 * self.s_pad

        logits_row = jnp.zeros((1, m_pad), jnp.float32).at[0, :M].set(logits.reshape(-1))
        mask_row = jnp.zeros((1, m_pad), jnp.float32).at[0, :M].set(mask.reshape(-1))

        cp = curves.reshape(M, 4, 2)
        cp8 = jnp.concatenate([cp[..., 0], cp[..., 1]], axis=1)         # (M, 8) = [x | y]
        cp_t = jnp.zeros((m_pad, 8), jnp.float32).at[:M].set(cp8).T     # (8, M_pad)

        tgt8 = jnp.concatenate([tgt_kp[..., 0], tgt_kp[..., 1]], axis=1)  # (G, 8)
        # Target Bezier sampling hoisted out of the kernel (computed once, tiny matmul),
        # then lane-replicated to 128 so the kernel never lane-broadcasts per target.
        ts = jnp.dot(self.b2_t, tgt8.T).T                               # (G, 2*S_pad)
        ts_pad = jnp.zeros((g_pad, two_s), jnp.float32).at[:G].set(ts)
        ts_rep = jnp.broadcast_to(ts_pad[:, :, None], (g_pad, two_s, 128))

        c_t = _cost_matrix_pallas(logits_row, mask_row, cp_t, ts_rep, self.b2_t,
                                  alpha=self.alpha,
                                  num_sample_points=self.num_sample_points,
                                  tm=tm)
        c_t = jax.block_until_ready(c_t)                                # (G_pad, M_pad)
        return np.asarray(c_t)[:G, :M].T.reshape(B, Q, G)

    def __call__(self, outputs, targets):
        sizes = [int(t['keypoints'].shape[0]) for t in targets]
        c = self.cost_matrix(outputs, targets)                          # (B, Q, G) numpy
        out, start = [], 0
        for i, n in enumerate(sizes):
            row, col = _linear_sum_assignment(c[i, :, start:start + n])  # (Q, n) per image
            out.append((row, col))
            start += n
        return out


# ----------------------------------------------------------------------------- references / demo

def reference_cost(outputs, targets, *, alpha, num_sample_points, k):
    """Pure-JAX (non-Pallas) reference of the negated cost matrix, shape (B, Q, G)."""
    logits = jnp.asarray(outputs['logits'], jnp.float32)
    curves = jnp.asarray(outputs['curves'], jnp.float32)
    B, Q = logits.shape
    M = B * Q
    tgt_kp = jnp.concatenate([jnp.asarray(t['keypoints'], jnp.float32) for t in targets], 0)
    tgt_sp = jnp.concatenate([jnp.asarray(t['sample_points'], jnp.float32) for t in targets], 0)
    tgt_kp = cubic_bezier_curve_segment(tgt_kp, tgt_sp)
    bern = jnp.asarray(bernstein_matrix(num_sample_points), jnp.float32)       # (S, 4)
    tgt_samples = jnp.einsum('sk,gkc->gsc', bern, tgt_kp)                      # (G, S, 2)
    pred_samples = jnp.einsum('sk,mkc->msc', bern, curves.reshape(M, 4, 2))    # (M, S, 2)
    prob = jax.nn.sigmoid(logits).reshape(M)
    mask = local_maxima_mask(logits, k).reshape(M)
    l1 = jnp.abs(pred_samples[:, None] - tgt_samples[None]).sum((-2, -1))      # (M, G)
    cost_curve = jnp.clip(1.0 - l1 / num_sample_points, 0.0, 1.0)
    C = -(mask[:, None] * prob[:, None] ** (1.0 - alpha) * cost_curve ** alpha)
    return np.asarray(C).reshape(B, Q, -1)


def _bruteforce_min_cost(cost):
    R, C = cost.shape
    if C == 0:
        return 0.0
    best = np.inf
    cols = np.arange(C)
    for rows in itertools.permutations(range(R), C):
        best = min(best, float(cost[np.asarray(rows), cols].sum()))
    return best


if __name__ == "__main__":
    key = jax.random.PRNGKey(0)
    B, Q = 2, 8
    num_sample_points = 100
    sizes = [2, 3]

    k_logits, k_curves, k_t = jax.random.split(key, 3)
    logits = jax.random.normal(k_logits, (B, Q), dtype=jnp.float32)
    curves = jax.random.uniform(k_curves, (B, Q, 4, 2), dtype=jnp.float32)

    bern = jnp.asarray(bernstein_matrix(num_sample_points), jnp.float32)       # (S, 4)
    targets = []
    kk = k_t
    for n in sizes:
        kk, ka = jax.random.split(kk)
        kp = jax.random.uniform(ka, (n, 4, 2), dtype=jnp.float32,
                                minval=-0.1, maxval=1.1)
        # GT sample points on the curve (some fall outside (0,1) -> exercises segment cut)
        sp = jnp.einsum('sk,nkc->nsc', bern, kp)
        targets.append({'keypoints': kp, 'sample_points': sp})

    outputs = {'logits': logits, 'curves': curves}
    matcher = HungarianMatcherPallas(alpha=0.8, bezier_order=3,
                                     num_sample_points=num_sample_points, k=7)

    # 1) Pallas cost matrix vs. pure-JAX reference.  Tolerance covers the approximate
    #    EUP reciprocal used for the in-kernel sigmoid and MXU f32 accumulation.
    C = matcher.cost_matrix(outputs, targets)                                  # (B, Q, G)
    C_ref = reference_cost(outputs, targets, alpha=0.8,
                           num_sample_points=num_sample_points, k=7)
    np.testing.assert_allclose(C, C_ref, rtol=5e-3, atol=5e-3)

    # 2) Full matcher forward (Pallas cost + host assignment).
    indices = matcher(outputs, targets)

    # 3) Sanity + optimality checks (brute force is fine at these tiny sizes).
    assert len(indices) == B
    start = 0
    for i, ((row, col), n) in enumerate(zip(indices, sizes)):
        assert row.dtype == np.int64 and col.dtype == np.int64
        assert row.shape == (n,) and col.shape == (n,)
        assert len(set(row.tolist())) == n
        assert np.all(row >= 0) and np.all(row < Q)
        c_img = C[i, :, start:start + n]
        chosen = float(c_img[row, col].sum())
        best = _bruteforce_min_cost(c_img)
        assert abs(chosen - best) < 1e-5, (chosen, best)
        start += n

    print("KERNEL_OK")
</pallas_src>

<mosaic_0001>
module attributes {stable_mosaic.version = 11 : i64} {
  func.func @kernel(%arg0: i32, %arg1: i32, %arg2: memref<1x512xf32, #tpu.memory_space<vmem>>, %arg3: memref<1x512xf32, #tpu.memory_space<vmem>>, %arg4: memref<8x512xf32, #tpu.memory_space<vmem>>, %arg5: memref<8x208x128xf32, #tpu.memory_space<vmem>>, %arg6: memref<208x8xf32, #tpu.memory_space<vmem>>, %arg7: memref<8x512xf32, #tpu.memory_space<vmem>>, %arg8: memref<208x512xf32, #tpu.memory_space<vmem>>) attributes {dimension_semantics = [#tpu.dimension_semantics<parallel>, #tpu.dimension_semantics<arbitrary>], iteration_bounds = array<i64: 1, 1>, scalar_prefetch = 0 : i64, scratch_operands = 1 : i64, tpu.core_type = #tpu.core_type<tc>, window_params = [{transform_indices = @transform_0, window_bounds = array<i64: 1, 512>}, {transform_indices = @transform_1, window_bounds = array<i64: 1, 512>}, {transform_indices = @transform_2, window_bounds = array<i64: 8, 512>}, {transform_indices = @transform_3, window_bounds = array<i64: 8, 208, 128>}, {pipeline_mode = #tpu.pipeline_mode<synchronous>, transform_indices = @transform_4, window_bounds = array<i64: 208, 8>}, {transform_indices = @transform_5, window_bounds = array<i64: 8, 512>}]} {
    %c0_i32 = arith.constant 0 : i32
    %0 = arith.cmpi eq, %arg1, %c0_i32 : i32
    %1 = arith.extui %0 : i1 to i32
    %c0_i32_0 = arith.constant 0 : i32
    %2 = arith.cmpi ne, %1, %c0_i32_0 : i32
    scf.if %2 {
      %c0_1031 = arith.constant 0 : index
      %c0_1032 = arith.constant 0 : index
      %1499 = vector.load %arg6[%c0_1031, %c0_1032] : memref<208x8xf32, #tpu.memory_space<vmem>>, vector<16x8xf32>
      %c0_1033 = arith.constant 0 : index
      %c0_1034 = arith.constant 0 : index
      %1500 = vector.load %arg4[%c0_1033, %c0_1034] : memref<8x512xf32, #tpu.memory_space<vmem>>, vector<8x512xf32>
      %cst_1035 = arith.constant dense<0.000000e+00> : vector<16x512xf32>
      %1501 = tpu.matmul %1499, %1500, %cst_1035 {dimension_numbers = #tpu.dot_dimension_numbers<[1], [0], [0], [1], [0, 0, 1, 1], [], []>} : vector<16x8xf32>, vector<8x512xf32>, vector<16x512xf32> -> vector<16x512xf32>
      %c0_1036 = arith.constant 0 : index
      %c0_1037 = arith.constant 0 : index
      %1502 = vector.load %arg8[%c0_1036, %c0_1037] : memref<208x512xf32, #tpu.memory_space<vmem>>, vector<16x512xf32>
      tpu.vector_store %arg8[%c0_1036, %c0_1037], %1501 {strides = array<i32>} : memref<208x512xf32, #tpu.memory_space<vmem>>, vector<16x512xf32>,
      %c16_1038 = arith.constant 16 : index
      %c0_1039 = arith.constant 0 : index
      %1503 = vector.load %arg6[%c16_1038, %c0_1039] : memref<208x8xf32, #tpu.memory_space<vmem>>, vector<16x8xf32>
      %c0_1040 = arith.constant 0 : index
      %c0_1041 = arith.constant 0 : index
      %1504 = vector.load %arg4[%c0_1040, %c0_1041] : memref<8x512xf32, #tpu.memory_space<vmem>>, vector<8x512xf32>
      %cst_1042 = arith.constant dense<0.000000e+00> : vector<16x512xf32>
      %1505 = tpu.matmul %1503, %1504, %cst_1042 {dimension_numbers = #tpu.dot_dimension_numbers<[1], [0], [0], [1], [0, 0, 1, 1], [], []>} : vector<16x8xf32>, vector<8x512xf32>, vector<16x512xf32> -> vector<16x512xf32>
      %c16_1043 = arith.constant 16 : index
      %c0_1044 = arith.constant 0 : index
      %1506 = vector.load %arg8[%c16_1043, %c0_1044] : memref<208x512xf32, #tpu.memory_space<vmem>>, vector<16x512xf32>
      tpu.vector_store %arg8[%c16_1043, %c0_1044], %1505 {strides = array<i32>} : memref<208x512xf32, #tpu.memory_space<vmem>>, vector<16x512xf32>,
      %c32_1045 = arith.constant 32 : index
      %c0_1046 = arith.constant 0 : index
      %1507 = vector.load %arg6[%c32_1045, %c0_1046] : memref<208x8xf32, #tpu.memory_space<vmem>>, vector<16x8xf32>
      %c0_1047 = arith.constant 0 : index
      %c0_1048 = arith.constant 0 : index
      %1508 = vector.load %arg4[%c0_1047, %c0_1048] : memref<8x512xf32, #tpu.memory_space<vmem>>, vector<8x512xf32>
      %cst_1049 = arith.constant dense<0.000000e+00> : vector<16x512xf32>
      %1509 = tpu.matmul %1507, %1508, %cst_1049 {dimension_numbers = #tpu.dot_dimension_numbers<[1], [0], [0], [1], [0, 0, 1, 1], [], []>} : vector<16x8xf32>, vector<8x512xf32>, vector<16x512xf32> -> vector<16x512xf32>
      %c32_1050 = arith.constant 32 : index
      %c0_1051 = arith.constant 0 : index
      %1510 = vector.load %arg8[%c32_1050, %c0_1051] : memref<208x512xf32, #tpu.memory_space<vmem>>, vector<16x512xf32>
      tpu.vector_store %arg8[%c32_1050, %c0_1051], %1509 {strides = array<i32>} : memref<208x512xf32, #tpu.memory_space<vmem>>, vector<16x512xf32>,
      %c48_1052 = arith.constant 48 : index
      %c0_1053 = arith.constant 0 : index
      %1511 = vector.load %arg6[%c48_1052, %c0_1053] : memref<208x8xf32, #tpu.memory_space<vmem>>, vector<16x8xf32>
      %c0_1054 = arith.constant 0 : index
      %c0_1055 = arith.constant 0 : index
      %1512 = vector.load %arg4[%c0_1054, %c0_1055] : memref<8x512xf32, #tpu.memory_space<vmem>>, vector<8x512xf32>
      %cst_1056 = arith.constant dense<0.000000e+00> : vector<16x512xf32>
      %1513 = tpu.matmul %1511, %1512, %cst_1056 {dimension_numbers = #tpu.dot_dimension_numbers<[1], [0], [0], [1], [0, 0, 1, 1], [], []>} : vector<16x8xf32>, vector<8x512xf32>, vector<16x512xf32> -> vector<16x512xf32>
      %c48_1057 = arith.constant 48 : index
      %c0_1058 = arith.constant 0 : index
      %1514 = vector.load %arg8[%c48_1057, %c0_1058] : memref<208x512xf32, #tpu.memory_space<vmem>>, vector<16x512xf32>
      tpu.vector_store %arg8[%c48_1057, %c0_1058], %1513 {strides = array<i32>} : memref<208x512xf32, #tpu.memory_space<vmem>>, vector<16x512xf32>,
      %c64_1059 = arith.constant 64 : index
      %c0_1060 = arith.constant 0 : index
      %1515 = vector.load %arg6[%c64_1059, %c0_1060] : memref<208x8xf32, #tpu.memory_space<vmem>>, vector<16x8xf32>
      %c0_1061 = arith.constant 0 : index
      %c0_1062 = arith.constant 0 : index
      %1516 = vector.load %arg4[%c0_1061, %c0_1062] : memref<8x512xf32, #tpu.memory_space<vmem>>, vector<8x512xf32>
      %cst_1063 = arith.constant dense<0.000000e+00> : vector<16x512xf32>
      %1517 = tpu.matmul %1515, %1516, %cst_1063 {dimension_numbers = #tpu.dot_dimension_numbers<[1], [0], [0], [1], [0, 0, 1, 1], [], []>} : vector<16x8xf32>, vector<8x512xf32>, vector<16x512xf32> -> vector<16x512xf32>
      %c64_1064 = arith.constant 64 : index
      %c0_1065 = arith.constant 0 : index
      %1518 = vector.load %arg8[%c64_1064, %c0_1065] : memref<208x512xf32, #tpu.memory_space<vmem>>, vector<16x512xf32>
      tpu.vector_store %arg8[%c64_1064, %c0_1065], %1517 {strides = array<i32>} : memref<208x512xf32, #tpu.memory_space<vmem>>, vector<16x512xf32>,
      %c80_1066 = arith.constant 80 : index
      %c0_1067 = arith.constant 0 : index
      %1519 = vector.load %arg6[%c80_1066, %c0_1067] : memref<208x8xf32, #tpu.memory_space<vmem>>, vector<16x8xf32>
      %c0_1068 = arith.constant 0 : index
      %c0_1069 = arith.constant 0 : index
      %1520 = vector.load %arg4[%c0_1068, %c0_1069] : memref<8x512xf32, #tpu.memory_space<vmem>>, vector<8x512xf32>
      %cst_1070 = arith.constant dense<0.000000e+00> : vector<16x512xf32>
      %1521 = tpu.matmul %1519, %1520, %cst_1070 {dimension_numbers = #tpu.dot_dimension_numbers<[1], [0], [0], [1], [0, 0, 1, 1], [], []>} : vector<16x8xf32>, vector<8x512xf32>, vector<16x512xf32> -> vector<16x512xf32>
      %c80_1071 = arith.constant 80 : index
      %c0_1072 = arith.constant 0 : index
      %1522 = vector.load %arg8[%c80_1071, %c0_1072] : memref<208x512xf32, #tpu.memory_space<vmem>>, vector<16x512xf32>
      tpu.vector_store %arg8[%c80_1071, %c0_1072], %1521 {strides = array<i32>} : memref<208x512xf32, #tpu.memory_space<vmem>>, vector<16x512xf32>,
      %c96_1073 = arith.constant 96 : index
      %c0_1074 = arith.constant 0 : index
      %1523 = vector.load %arg6[%c96_1073, %c0_1074] : memref<208x8xf32, #tpu.memory_space<vmem>>, vector<16x8xf32>
      %c0_1075 = arith.constant 0 : index
      %c0_1076 = arith.constant 0 : index
      %1524 = vector.load %arg4[%c0_1075, %c0_1076] : memref<8x512xf32, #tpu.memory_space<vmem>>, vector<8x512xf32>
      %cst_1077 = arith.constant dense<0.000000e+00> : vector<16x512xf32>
      %1525 = tpu.matmul %1523, %1524, %cst_1077 {dimension_numbers = #tpu.dot_dimension_numbers<[1], [0], [0], [1], [0, 0, 1, 1], [], []>} : vector<16x8xf32>, vector<8x512xf32>, vector<16x512xf32> -> vector<16x512xf32>
      %c96_1078 = arith.constant 96 : index
      %c0_1079 = arith.constant 0 : index
      %1526 = vector.load %arg8[%c96_1078, %c0_1079] : memref<208x512xf32, #tpu.memory_space<vmem>>, vector<16x512xf32>
      tpu.vector_store %arg8[%c96_1078, %c0_1079], %1525 {strides = array<i32>} : memref<208x512xf32, #tpu.memory_space<vmem>>, vector<16x512xf32>,
      %c112_1080 = arith.constant 112 : index
      %c0_1081 = arith.constant 0 : index
      %1527 = vector.load %arg6[%c112_1080, %c0_1081] : memref<208x8xf32, #tpu.memory_space<vmem>>, vector<16x8xf32>
      %c0_1082 = arith.constant 0 : index
      %c0_1083 = arith.constant 0 : index
      %1528 = vector.load %arg4[%c0_1082, %c0_1083] : memref<8x512xf32, #tpu.memory_space<vmem>>, vector<8x512xf32>
      %cst_1084 = arith.constant dense<0.000000e+00> : vector<16x512xf32>
      %1529 = tpu.matmul %1527, %1528, %cst_1084 {dimension_numbers = #tpu.dot_dimension_numbers<[1], [0], [0], [1], [0, 0, 1, 1], [], []>} : vector<16x8xf32>, vector<8x512xf32>, vector<16x512xf32> -> vector<16x512xf32>
      %c112_1085 = arith.constant 112 : index
      %c0_1086 = arith.constant 0 : index
      %1530 = vector.load %arg8[%c112_1085, %c0_1086] : memref<208x512xf32, #tpu.memory_space<vmem>>, vector<16x512xf32>
      tpu.vector_store %arg8[%c112_1085, %c0_1086], %1529 {strides = array<i32>} : memref<208x512xf32, #tpu.memory_space<vmem>>, vector<16x512xf32>,
      %c128_1087 = arith.constant 128 : index
      %c0_1088 = arith.constant 0 : index
      %1531 = vector.load %arg6[%c128_1087, %c0_1088] : memref<208x8xf32, #tpu.memory_space<vmem>>, vector<16x8xf32>
      %c0_1089 = arith.constant 0 : index
      %c0_1090 = arith.constant 0 : index
      %1532 = vector.load %arg4[%c0_1089, %c0_1090] : memref<8x512xf32, #tpu.memory_space<vmem>>, vector<8x512xf32>
      %cst_1091 = arith.constant dense<0.000000e+00> : vector<16x512xf32>
      %1533 = tpu.matmul %1531, %1532, %cst_1091 {dimension_numbers = #tpu.dot_dimension_numbers<[1], [0], [0], [1], [0, 0, 1, 1], [], []>} : vector<16x8xf32>, vector<8x512xf32>, vector<16x512xf32> -> vector<16x512xf32>
      %c128_1092 = arith.constant 128 : index
      %c0_1093 = arith.constant 0 : index
      %1534 = vector.load %arg8[%c128_1092, %c0_1093] : memref<208x512xf32, #tpu.memory_space<vmem>>, vector<16x512xf32>
      tpu.vector_store %arg8[%c128_1092, %c0_1093], %1533 {strides = array<i32>} : memref<208x512xf32, #tpu.memory_space<vmem>>, vector<16x512xf32>,
      %c144_1094 = arith.constant 144 : index
      %c0_1095 = arith.constant 0 : index
      %1535 = vector.load %arg6[%c144_1094, %c0_1095] : memref<208x8xf32, #tpu.memory_space<vmem>>, vector<16x8xf32>
      %c0_1096 = arith.constant 0 : index
      %c0_1097 = arith.constant 0 : index
      %1536 = vector.load %arg4[%c0_1096, %c0_1097] : memref<8x512xf32, #tpu.memory_space<vmem>>, vector<8x512xf32>
      %cst_1098 = arith.constant dense<0.000000e+00> : vector<16x512xf32>
      %1537 = tpu.matmul %1535, %1536, %cst_1098 {dimension_numbers = #tpu.dot_dimension_numbers<[1], [0], [0], [1], [0, 0, 1, 1], [], []>} : vector<16x8xf32>, vector<8x512xf32>, vector<16x512xf32> -> vector<16x512xf32>
      %c144_1099 = arith.constant 144 : index
      %c0_1100 = arith.constant 0 : index
      %1538 = vector.load %arg8[%c144_1099, %c0_1100] : memref<208x512xf32, #tpu.memory_space<vmem>>, vector<16x512xf32>
      tpu.vector_store %arg8[%c144_1099, %c0_1100], %1537 {strides = array<i32>} : memref<208x512xf32, #tpu.memory_space<vmem>>, vector<16x512xf32>,
      %c160_1101 = arith.constant 160 : index
      %c0_1102 = arith.constant 0 : index
      %1539 = vector.load %arg6[%c160_1101, %c0_1102] : memref<208x8xf32, #tpu.memory_space<vmem>>, vector<16x8xf32>
      %c0_1103 = arith.constant 0 : index
      %c0_1104 = arith.constant 0 : index
      %1540 = vector.load %arg4[%c0_1103, %c0_1104] : memref<8x512xf32, #tpu.memory_space<vmem>>, vector<8x512xf32>
      %cst_1105 = arith.constant dense<0.000000e+00> : vector<16x512xf32>
      %1541 = tpu.matmul %1539, %1540, %cst_1105 {dimension_numbers = #tpu.dot_dimension_numbers<[1], [0], [0], [1], [0, 0, 1, 1], [], []>} : vector<16x8xf32>, vector<8x512xf32>, vector<16x512xf32> -> vector<16x512xf32>
      %c160_1106 = arith.constant 160 : index
      %c0_1107 = arith.constant 0 : index
      %1542 = vector.load %arg8[%c160_1106, %c0_1107] : memref<208x512xf32, #tpu.memory_space<vmem>>, vector<16x512xf32>
      tpu.vector_store %arg8[%c160_1106, %c0_1107], %1541 {strides = array<i32>} : memref<208x512xf32, #tpu.memory_space<vmem>>, vector<16x512xf32>,
      %c176_1108 = arith.constant 176 : index
      %c0_1109 = arith.constant 0 : index
      %1543 = vector.load %arg6[%c176_1108, %c0_1109] : memref<208x8xf32, #tpu.memory_space<vmem>>, vector<16x8xf32>
      %c0_1110 = arith.constant 0 : index
      %c0_1111 = arith.constant 0 : index
      %1544 = vector.load %arg4[%c0_1110, %c0_1111] : memref<8x512xf32, #tpu.memory_space<vmem>>, vector<8x512xf32>
      %cst_1112 = arith.constant dense<0.000000e+00> : vector<16x512xf32>
      %1545 = tpu.matmul %1543, %1544, %cst_1112 {dimension_numbers = #tpu.dot_dimension_numbers<[1], [0], [0], [1], [0, 0, 1, 1], [], []>} : vector<16x8xf32>, vector<8x512xf32>, vector<16x512xf32> -> vector<16x512xf32>
      %c176_1113 = arith.constant 176 : index
      %c0_1114 = arith.constant 0 : index
      %1546 = vector.load %arg8[%c176_1113, %c0_1114] : memref<208x512xf32, #tpu.memory_space<vmem>>, vector<16x512xf32>
      tpu.vector_store %arg8[%c176_1113, %c0_1114], %1545 {strides = array<i32>} : memref<208x512xf32, #tpu.memory_space<vmem>>, vector<16x512xf32>,
      %c192_1115 = arith.constant 192 : index
      %c0_1116 = arith.constant 0 : index
      %1547 = vector.load %arg6[%c192_1115, %c0_1116] : memref<208x8xf32, #tpu.memory_space<vmem>>, vector<16x8xf32>
      %c0_1117 = arith.constant 0 : index
      %c0_1118 = arith.constant 0 : index
      %1548 = vector.load %arg4[%c0_1117, %c0_1118] : memref<8x512xf32, #tpu.memory_space<vmem>>, vector<8x512xf32>
      %cst_1119 = arith.constant dense<0.000000e+00> : vector<16x512xf32>
      %1549 = tpu.matmul %1547, %1548, %cst_1119 {dimension_numbers = #tpu.dot_dimension_numbers<[1], [0], [0], [1], [0, 0, 1, 1], [], []>} : vector<16x8xf32>, vector<8x512xf32>, vector<16x512xf32> -> vector<16x512xf32>
      %c192_1120 = arith.constant 192 : index
      %c0_1121 = arith.constant 0 : index
      %1550 = vector.load %arg8[%c192_1120, %c0_1121] : memref<208x512xf32, #tpu.memory_space<vmem>>, vector<16x512xf32>
      tpu.vector_store %arg8[%c192_1120, %c0_1121], %1549 {strides = array<i32>} : memref<208x512xf32, #tpu.memory_space<vmem>>, vector<16x512xf32>,
    } else {
    }
    %c0 = arith.constant 0 : index
    %c0_1 = arith.constant 0 : index
    %3 = vector.load %arg2[%c0, %c0_1] : memref<1x512xf32, #tpu.memory_space<vmem>>, vector<1x512xf32>
    %4 = math.absf %3 : vector<1x512xf32>
    %cst = arith.constant 0.000000e+00 : f32
    %5 = vector.broadcast %cst : f32 to vector<1x512xf32>
    %6 = arith.subf %5, %4 : vector<1x512xf32>
    %7 = math.exp %6 : vector<1x512xf32>
    %cst_2 = arith.constant 1.000000e+00 : f32
    %8 = vector.broadcast %cst_2 : f32 to vector<1x512xf32>
    %9 = arith.addf %8, %7 : vector<1x512xf32>
    %10 = tpu.reciprocal %9 {approx = true} : vector<1x512xf32> -> vector<1x512xf32>
    %cst_3 = arith.constant 0.000000e+00 : f32
    %11 = vector.broadcast %cst_3 : f32 to vector<1x512xf32>
    %12 = arith.cmpf oge, %3, %11 : vector<1x512xf32>
    %13 = arith.mulf %7, %10 : vector<1x512xf32>
    %14 = arith.select %12, %10, %13 : vector<1x512xi1>, vector<1x512xf32>
    %c0_4 = arith.constant 0 : index
    %c0_5 = arith.constant 0 : index
    %15 = vector.load %arg3[%c0_4, %c0_5] : memref<1x512xf32, #tpu.memory_space<vmem>>, vector<1x512xf32>
    %cst_6 = arith.constant 2.000000e-01 : f32
    %16 = vector.broadcast %cst_6 : f32 to vector<1x512xf32>
    %17 = math.powf %14, %16 : vector<1x512xf32>
    %18 = arith.mulf %15, %17 : vector<1x512xf32>
    %cst_7 = arith.constant 0.000000e+00 : f32
    %19 = vector.broadcast %cst_7 : f32 to vector<1x512xf32>
    %20 = arith.subf %19, %18 : vector<1x512xf32>
    %c0_8 = arith.constant 0 : index
    %c0_9 = arith.constant 0 : index
    %21 = vector.load %arg8[%c0_8, %c0_9] : memref<208x512xf32, #tpu.memory_space<vmem>>, vector<8x512xf32>
    %c0_10 = arith.constant 0 : index
    %c0_11 = arith.constant 0 : index
    %c0_12 = arith.constant 0 : index
    %22 = vector.load %arg5[%c0_10, %c0_11, %c0_12] : memref<8x208x128xf32, #tpu.memory_space<vmem>>, vector<1x8x128xf32>
    %23 = vector.shape_cast %22 : vector<1x8x128xf32> to vector<8x128xf32>
    %24 = tpu.concatenate %23, %23, %23, %23 in 1 : vector<8x128xf32>, vector<8x128xf32>, vector<8x128xf32>, vector<8x128xf32> -> vector<8x512xf32>
    %25 = arith.subf %21, %24 : vector<8x512xf32>
    %26 = math.absf %25 : vector<8x512xf32>
    %c8 = arith.constant 8 : index
    %c0_13 = arith.constant 0 : index
    %27 = vector.load %arg8[%c8, %c0_13] : memref<208x512xf32, #tpu.memory_space<vmem>>, vector<8x512xf32>
    %c0_14 = arith.constant 0 : index
    %c8_15 = arith.constant 8 : index
    %c0_16 = arith.constant 0 : index
    %28 = vector.load %arg5[%c0_14, %c8_15, %c0_16] : memref<8x208x128xf32, #tpu.memory_space<vmem>>, vector<1x8x128xf32>
    %29 = vector.shape_cast %28 : vector<1x8x128xf32> to vector<8x128xf32>
    %30 = tpu.concatenate %29, %29, %29, %29 in 1 : vector<8x128xf32>, vector<8x128xf32>, vector<8x128xf32>, vector<8x128xf32> -> vector<8x512xf32>
    %31 = arith.subf %27, %30 : vector<8x512xf32>
    %32 = math.absf %31 : vector<8x512xf32>
    %33 = arith.addf %26, %32 : vector<8x512xf32>
    %c16 = arith.constant 16 : index
    %c0_17 = arith.constant 0 : index
    %34 = vector.load %arg8[%c16, %c0_17] : memref<208x512xf32, #tpu.memory_space<vmem>>, vector<8x512xf32>
    %c0_18 = arith.constant 0 : index
    %c16_19 = arith.constant 16 : index
    %c0_20 = arith.constant 0 : index
    %35 = vector.load %arg5[%c0_18, %c16_19, %c0_20] : memref<8x208x128xf32, #tpu.memory_space<vmem>>, vector<1x8x128xf32>
    %36 = vector.shape_cast %35 : vector<1x8x128xf32> to vector<8x128xf32>
    %37 = tpu.concatenate %36, %36, %36, %36 in 1 : vector<8x128xf32>, vector<8x128xf32>, vector<8x128xf32>, vector<8x128xf32> -> vector<8x512xf32>
    %38 = arith.subf %34, %37 : vector<8x512xf32>
    %39 = math.absf %38 : vector<8x512xf32>
    %40 = arith.addf %33, %39 : vector<8x512xf32>
    %c24 = arith.constant 24 : index
    %c0_21 = arith.constant 0 : index
    %41 = vector.load %arg8[%c24, %c0_21] : memref<208x512xf32, #tpu.memory_space<vmem>>, vector<8x512xf32>
    %c0_22 = arith.constant 0 : index
    %c24_23 = arith.constant 24 : index
    %c0_24 = arith.constant 0 : index
    %42 = vector.load %arg5[%c0_22, %c24_23, %c0_24] : memref<8x208x128xf32, #tpu.memory_space<vmem>>, vector<1x8x128xf32>
    %43 = vector.shape_cast %42 : vector<1x8x128xf32> to vector<8x128xf32>
    %44 = tpu.concatenate %43, %43, %43, %43 in 1 : vector<8x128xf32>, vector<8x128xf32>, vector<8x128xf32>, vector<8x128xf32> -> vector<8x512xf32>
    %45 = arith.subf %41, %44 : vector<8x512xf32>
    %46 = math.absf %45 : vector<8x512xf32>
    %47 = arith.addf %40, %46 : vector<8x512xf32>
    %c32 = arith.constant 32 : index
    %c0_25 = arith.constant 0 : index
    %48 = vector.load %arg8[%c32, %c0_25] : memref<208x512xf32, #tpu.memory_space<vmem>>, vector<8x512xf32>
    %c0_26 = arith.constant 0 : index
    %c32_27 = arith.constant 32 : index
    %c0_28 = arith.constant 0 : index
    %49 = vector.load %arg5[%c0_26, %c32_27, %c0_28] : memref<8x208x128xf32, #tpu.memory_space<vmem>>, vector<1x8x128xf32>
    %50 = vector.shape_cast %49 : vector<1x8x128xf32> to vector<8x128xf32>
    %51 = tpu.concatenate %50, %50, %50, %50 in 1 : vector<8x128xf32>, vector<8x128xf32>, vector<8x128xf32>, vector<8x128xf32> -> vector<8x512xf32>
    %52 = arith.subf %48, %51 : vector<8x512xf32>
    %53 = math.absf %52 : vector<8x512xf32>
    %54 = arith.addf %47, %53 : vector<8x512xf32>
    %c40 = arith.constant 40 : index
    %c0_29 = arith.constant 0 : index
    %55 = vector.load %arg8[%c40, %c0_29] : memref<208x512xf32, #tpu.memory_space<vmem>>, vector<8x512xf32>
    %c0_30 = arith.constant 0 : index
    %c40_31 = arith.constant 40 : index
    %c0_32 = arith.constant 0 : index
    %56 = vector.load %arg5[%c0_30, %c40_31, %c0_32] : memref<8x208x128xf32, #tpu.memory_space<vmem>>, vector<1x8x128xf32>
    %57 = vector.shape_cast %56 : vector<1x8x128xf32> to vector<8x128xf32>
    %58 = tpu.concatenate %57, %57, %57, %57 in 1 : vector<8x128xf32>, vector<8x128xf32>, vector<8x128xf32>, vector<8x128xf32> -> vector<8x512xf32>
    %59 = arith.subf %55, %58 : vector<8x512xf32>
    %60 = math.absf %59 : vector<8x512xf32>
    %61 = arith.addf %54, %60 : vector<8x512xf32>
    %c48 = arith.constant 48 : index
    %c0_33 = arith.constant 0 : index
    %62 = vector.load %arg8[%c48, %c0_33] : memref<208x512xf32, #tpu.memory_space<vmem>>, vector<8x512xf32>
    %c0_34 = arith.constant 0 : index
    %c48_35 = arith.constant 48 : index
    %c0_36 = arith.constant 0 : index
    %63 = vector.load %arg5[%c0_34, %c48_35, %c0_36] : memref<8x208x128xf32, #tpu.memory_space<vmem>>, vector<1x8x128xf32>
    %64 = vector.shape_cast %63 : vector<1x8x128xf32> to vector<8x128xf32>
    %65 = tpu.concatenate %64, %64, %64, %64 in 1 : vector<8x128xf32>, vector<8x128xf32>, vector<8x128xf32>, vector<8x128xf32> -> vector<8x512xf32>
    %66 = arith.subf %62, %65 : vector<8x512xf32>
    %67 = math.absf %66 : vector<8x512xf32>
    %68 = arith.addf %61, %67 : vector<8x512xf32>
    %c56 = arith.constant 56 : index
    %c0_37 = arith.constant 0 : index
    %69 = vector.load %arg8[%c56, %c0_37] : memref<208x512xf32, #tpu.memory_space<vmem>>, vector<8x512xf32>
    %c0_38 = arith.constant 0 : index
    %c56_39 = arith.constant 56 : index
    %c0_40 = arith.constant 0 : index
    %70 = vector.load %arg5[%c0_38, %c56_39, %c0_40] : memref<8x208x128xf32, #tpu.memory_space<vmem>>, vector<1x8x128xf32>
    %71 = vector.shape_cast %70 : vector<1x8x128xf32> to vector<8x128xf32>
    %72 = tpu.concatenate %71, %71, %71, %71 in 1 : vector<8x128xf32>, vector<8x128xf32>, vector<8x128xf32>, vector<8x128xf32> -> vector<8x512xf32>
    %73 = arith.subf %69, %72 : vector<8x512xf32>
    %74 = math.absf %73 : vector<8x512xf32>
    %75 = arith.addf %68, %74 : vector<8x512xf32>
    %c64 = arith.constant 64 : index
    %c0_41 = arith.constant 0 : index
    %76 = vector.load %arg8[%c64, %c0_41] : memref<208x512xf32, #tpu.memory_space<vmem>>, vector<8x512xf32>
    %c0_42 = arith.constant 0 : index
    %c64_43 = arith.constant 64 : index
    %c0_44 = arith.constant 0 : index
    %77 = vector.load %arg5[%c0_42, %c64_43, %c0_44] : memref<8x208x128xf32, #tpu.memory_space<vmem>>, vector<1x8x128xf32>
    %78 = vector.shape_cast %77 : vector<1x8x128xf32> to vector<8x128xf32>
    %79 = tpu.concatenate %78, %78, %78, %78 in 1 : vector<8x128xf32>, vector<8x128xf32>, vector<8x128xf32>, vector<8x128xf32> -> vector<8x512xf32>
    %80 = arith.subf %76, %79 : vector<8x512xf32>
    %81 = math.absf %80 : vector<8x512xf32>
    %82 = arith.addf %75, %81 : vector<8x512xf32>
    %c72 = arith.constant 72 : index
    %c0_45 = arith.constant 0 : index
    %83 = vector.load %arg8[%c72, %c0_45] : memref<208x512xf32, #tpu.memory_space<vmem>>, vector<8x512xf32>
    %c0_46 = arith.constant 0 : index
    %c72_47 = arith.constant 72 : index
    %c0_48 = arith.constant 0 : index
    %84 = vector.load %arg5[%c0_46, %c72_47, %c0_48] : memref<8x208x128xf32, #tpu.memory_space<vmem>>, vector<1x8x128xf32>
    %85 = vector.shape_cast %84 : vector<1x8x128xf32> to vector<8x128xf32>
    %86 = tpu.concatenate %85, %85, %85, %85 in 1 : vector<8x128xf32>, vector<8x128xf32>, vector<8x128xf32>, vector<8x128xf32> -> vector<8x512xf32>
    %87 = arith.subf %83, %86 : vector<8x512xf32>
    %88 = math.absf %87 : vector<8x512xf32>
    %89 = arith.addf %82, %88 : vector<8x512xf32>
    %c80 = arith.constant 80 : index
    %c0_49 = arith.constant 0 : index
    %90 = vector.load %arg8[%c80, %c0_49] : memref<208x512xf32, #tpu.memory_space<vmem>>, vector<8x512xf32>
    %c0_50 = arith.constant 0 : index
    %c80_51 = arith.constant 80 : index
    %c0_52 = arith.constant 0 : index
    %91 = vector.load %arg5[%c0_50, %c80_51, %c0_52] : memref<8x208x128xf32, #tpu.memory_space<vmem>>, vector<1x8x128xf32>
    %92 = vector.shape_cast %91 : vector<1x8x128xf32> to vector<8x128xf32>
    %93 = tpu.concatenate %92, %92, %92, %92 in 1 : vector<8x128xf32>, vector<8x128xf32>, vector<8x128xf32>, vector<8x128xf32> -> vector<8x512xf32>
    %94 = arith.subf %90, %93 : vector<8x512xf32>
    %95 = math.absf %94 : vector<8x512xf32>
    %96 = arith.addf %89, %95 : vector<8x512xf32>
    %c88 = arith.constant 88 : index
    %c0_53 = arith.constant 0 : index
    %97 = vector.load %arg8[%c88, %c0_53] : memref<208x512xf32, #tpu.memory_space<vmem>>, vector<8x512xf32>
    %c0_54 = arith.constant 0 : index
    %c88_55 = arith.constant 88 : index
    %c0_56 = arith.constant 0 : index
    %98 = vector.load %arg5[%c0_54, %c88_55, %c0_56] : memref<8x208x128xf32, #tpu.memory_space<vmem>>, vector<1x8x128xf32>
    %99 = vector.shape_cast %98 : vector<1x8x128xf32> to vector<8x128xf32>
    %100 = tpu.concatenate %99, %99, %99, %99 in 1 : vector<8x128xf32>, vector<8x128xf32>, vector<8x128xf32>, vector<8x128xf32> -> vector<8x512xf32>
    %101 = arith.subf %97, %100 : vector<8x512xf32>
    %102 = math.absf %101 : vector<8x512xf32>
    %103 = arith.addf %96, %102 : vector<8x512xf32>
    %c96 = arith.constant 96 : index
    %c0_57 = arith.constant 0 : index
    %104 = vector.load %arg8[%c96, %c0_57] : memref<208x512xf32, #tpu.memory_space<vmem>>, vector<8x512xf32>
    %c0_58 = arith.constant 0 : index
    %c96_59 = arith.constant 96 : index
    %c0_60 = arith.constant 0 : index
    %105 = vector.load %arg5[%c0_58, %c96_59, %c0_60] : memref<8x208x128xf32, #tpu.memory_space<vmem>>, vector<1x8x128xf32>
    %106 = vector.shape_cast %105 : vector<1x8x128xf32> to vector<8x128xf32>
    %107 = tpu.concatenate %106, %106, %106, %106 in 1 : vector<8x128xf32>, vector<8x128xf32>, vector<8x128xf32>, vector<8x128xf32> -> vector<8x512xf32>
    %108 = arith.subf %104, %107 : vector<8x512xf32>
    %109 = math.absf %108 : vector<8x512xf32>
    %110 = arith.addf %103, %109 : vector<8x512xf32>
    %c104 = arith.constant 104 : index
    %c0_61 = arith.constant 0 : index
    %111 = vector.load %arg8[%c104, %c0_61] : memref<208x512xf32, #tpu.memory_space<vmem>>, vector<8x512xf32>
    %c0_62 = arith.constant 0 : index
    %c104_63 = arith.constant 104 : index
    %c0_64 = arith.constant 0 : index
    %112 = vector.load %arg5[%c0_62, %c104_63, %c0_64] : memref<8x208x128xf32, #tpu.memory_space<vmem>>, vector<1x8x128xf32>
    %113 = vector.shape_cast %112 : vector<1x8x128xf32> to vector<8x128xf32>
    %114 = tpu.concatenate %113, %113, %113, %113 in 1 : vector<8x128xf32>, vector<8x128xf32>, vector<8x128xf32>, vector<8x128xf32> -> vector<8x512xf32>
    %115 = arith.subf %111, %114 : vector<8x512xf32>
    %116 = math.absf %115 : vector<8x512xf32>
    %117 = arith.addf %110, %116 : vector<8x512xf32>
    %c112 = arith.constant 112 : index
    %c0_65 = arith.constant 0 : index
    %118 = vector.load %arg8[%c112, %c0_65] : memref<208x512xf32, #tpu.memory_space<vmem>>, vector<8x512xf32>
    %c0_66 = arith.constant 0 : index
    %c112_67 = arith.constant 112 : index
    %c0_68 = arith.constant 0 : index
    %119 = vector.load %arg5[%c0_66, %c112_67, %c0_68] : memref<8x208x128xf32, #tpu.memory_space<vmem>>, vector<1x8x128xf32>
    %120 = vector.shape_cast %119 : vector<1x8x128xf32> to vector<8x128xf32>
    %121 = tpu.concatenate %120, %120, %120, %120 in 1 : vector<8x128xf32>, vector<8x128xf32>, vector<8x128xf32>, vector<8x128xf32> -> vector<8x512xf32>
    %122 = arith.subf %118, %121 : vector<8x512xf32>
    %123 = math.absf %122 : vector<8x512xf32>
    %124 = arith.addf %117, %123 : vector<8x512xf32>
    %c120 = arith.constant 120 : index
    %c0_69 = arith.constant 0 : index
    %125 = vector.load %arg8[%c120, %c0_69] : memref<208x512xf32, #tpu.memory_space<vmem>>, vector<8x512xf32>
    %c0_70 = arith.constant 0 : index
    %c120_71 = arith.constant 120 : index
    %c0_72 = arith.constant 0 : index
    %126 = vector.load %arg5[%c0_70, %c120_71, %c0_72] : memref<8x208x128xf32, #tpu.memory_space<vmem>>, vector<1x8x128xf32>
    %127 = vector.shape_cast %126 : vector<1x8x128xf32> to vector<8x128xf32>
    %128 = tpu.concatenate %127, %127, %127, %127 in 1 : vector<8x128xf32>, vector<8x128xf32>, vector<8x128xf32>, vector<8x128xf32> -> vector<8x512xf32>
    %129 = arith.subf %125, %128 : vector<8x512xf32>
    %130 = math.absf %129 : vector<8x512xf32>
    %131 = arith.addf %124, %130 : vector<8x512xf32>
    %c128 = arith.constant 128 : index
    %c0_73 = arith.constant 0 : index
    %132 = vector.load %arg8[%c128, %c0_73] : memref<208x512xf32, #tpu.memory_space<vmem>>, vector<8x512xf32>
    %c0_74 = arith.constant 0 : index
    %c128_75 = arith.constant 128 : index
    %c0_76 = arith.constant 0 : index
    %133 = vector.load %arg5[%c0_74, %c128_75, %c0_76] : memref<8x208x128xf32, #tpu.memory_space<vmem>>, vector<1x8x128xf32>
    %134 = vector.shape_cast %133 : vector<1x8x128xf32> to vector<8x128xf32>
    %135 = tpu.concatenate %134, %134, %134, %134 in 1 : vector<8x128xf32>, vector<8x128xf32>, vector<8x128xf32>, vector<8x128xf32> -> vector<8x512xf32>
    %136 = arith.subf %132, %135 : vector<8x512xf32>
    %137 = math.absf %136 : vector<8x512xf32>
    %138 = arith.addf %131, %137 : vector<8x512xf32>
    %c136 = arith.constant 136 : index
    %c0_77 = arith.constant 0 : index
    %139 = vector.load %arg8[%c136, %c0_77] : memref<208x512xf32, #tpu.memory_space<vmem>>, vector<8x512xf32>
    %c0_78 = arith.constant 0 : index
    %c136_79 = arith.constant 136 : index
    %c0_80 = arith.constant 0 : index
    %140 = vector.load %arg5[%c0_78, %c136_79, %c0_80] : memref<8x208x128xf32, #tpu.memory_space<vmem>>, vector<1x8x128xf32>
    %141 = vector.shape_cast %140 : vector<1x8x128xf32> to vector<8x128xf32>
    %142 = tpu.concatenate %141, %141, %141, %141 in 1 : vector<8x128xf32>, vector<8x128xf32>, vector<8x128xf32>, vector<8x128xf32> -> vector<8x512xf32>
    %143 = arith.subf %139, %142 : vector<8x512xf32>
    %144 = math.absf %143 : vector<8x512xf32>
    %145 = arith.addf %138, %144 : vector<8x512xf32>
    %c144 = arith.constant 144 : index
    %c0_81 = arith.constant 0 : index
    %146 = vector.load %arg8[%c144, %c0_81] : memref<208x512xf32, #tpu.memory_space<vmem>>, vector<8x512xf32>
    %c0_82 = arith.constant 0 : index
    %c144_83 = arith.constant 144 : index
    %c0_84 = arith.constant 0 : index
    %147 = vector.load %arg5[%c0_82, %c144_83, %c0_84] : memref<8x208x128xf32, #tpu.memory_space<vmem>>, vector<1x8x128xf32>
    %148 = vector.shape_cast %147 : vector<1x8x128xf32> to vector<8x128xf32>
    %149 = tpu.concatenate %148, %148, %148, %148 in 1 : vector<8x128xf32>, vector<8x128xf32>, vector<8x128xf32>, vector<8x128xf32> -> vector<8x512xf32>
    %150 = arith.subf %146, %149 : vector<8x512xf32>
    %151 = math.absf %150 : vector<8x512xf32>
    %152 = arith.addf %145, %151 : vector<8x512xf32>
    %c152 = arith.constant 152 : index
    %c0_85 = arith.constant 0 : index
    %153 = vector.load %arg8[%c152, %c0_85] : memref<208x512xf32, #tpu.memory_space<vmem>>, vector<8x512xf32>
    %c0_86 = arith.constant 0 : index
    %c152_87 = arith.constant 152 : index
    %c0_88 = arith.constant 0 : index
    %154 = vector.load %arg5[%c0_86, %c152_87, %c0_88] : memref<8x208x128xf32, #tpu.memory_space<vmem>>, vector<1x8x128xf32>
    %155 = vector.shape_cast %154 : vector<1x8x128xf32> to vector<8x128xf32>
    %156 = tpu.concatenate %155, %155, %155, %155 in 1 : vector<8x128xf32>, vector<8x128xf32>, vector<8x128xf32>, vector<8x128xf32> -> vector<8x512xf32>
    %157 = arith.subf %153, %156 : vector<8x512xf32>
    %158 = math.absf %157 : vector<8x512xf32>
    %159 = arith.addf %152, %158 : vector<8x512xf32>
    %c160 = arith.constant 160 : index
    %c0_89 = arith.constant 0 : index
    %160 = vector.load %arg8[%c160, %c0_89] : memref<208x512xf32, #tpu.memory_space<vmem>>, vector<8x512xf32>
    %c0_90 = arith.constant 0 : index
    %c160_91 = arith.constant 160 : index
    %c0_92 = arith.constant 0 : index
    %161 = vector.load %arg5[%c0_90, %c160_91, %c0_92] : memref<8x208x128xf32, #tpu.memory_space<vmem>>, vector<1x8x128xf32>
    %162 = vector.shape_cast %161 : vector<1x8x128xf32> to vector<8x128xf32>
    %163 = tpu.concatenate %162, %162, %162, %162 in 1 : vector<8x128xf32>, vector<8x128xf32>, vector<8x128xf32>, vector<8x128xf32> -> vector<8x512xf32>
    %164 = arith.subf %160, %163 : vector<8x512xf32>
    %165 = math.absf %164 : vector<8x512xf32>
    %166 = arith.addf %159, %165 : vector<8x512xf32>
    %c168 = arith.constant 168 : index
    %c0_93 = arith.constant 0 : index
    %167 = vector.load %arg8[%c168, %c0_93] : memref<208x512xf32, #tpu.memory_space<vmem>>, vector<8x512xf32>
    %c0_94 = arith.constant 0 : index
    %c168_95 = arith.constant 168 : index
    %c0_96 = arith.constant 0 : index
    %168 = vector.load %arg5[%c0_94, %c168_95, %c0_96] : memref<8x208x128xf32, #tpu.memory_space<vmem>>, vector<1x8x128xf32>
    %169 = vector.shape_cast %168 : vector<1x8x128xf32> to vector<8x128xf32>
    %170 = tpu.concatenate %169, %169, %169, %169 in 1 : vector<8x128xf32>, vector<8x128xf32>, vector<8x128xf32>, vector<8x128xf32> -> vector<8x512xf32>
    %171 = arith.subf %167, %170 : vector<8x512xf32>
    %172 = math.absf %171 : vector<8x512xf32>
    %173 = arith.addf %166, %172 : vector<8x512xf32>
    %c176 = arith.constant 176 : index
    %c0_97 = arith.constant 0 : index
    %174 = vector.load %arg8[%c176, %c0_97] : memref<208x512xf32, #tpu.memory_space<vmem>>, vector<8x512xf32>
    %c0_98 = arith.constant 0 : index
    %c176_99 = arith.constant 176 : index
    %c0_100 = arith.constant 0 : index
    %175 = vector.load %arg5[%c0_98, %c176_99, %c0_100] : memref<8x208x128xf32, #tpu.memory_space<vmem>>, vector<1x8x128xf32>
    %176 = vector.shape_cast %175 : vector<1x8x128xf32> to vector<8x128xf32>
    %177 = tpu.concatenate %176, %176, %176, %176 in 1 : vector<8x128xf32>, vector<8x128xf32>, vector<8x128xf32>, vector<8x128xf32> -> vector<8x512xf32>
    %178 = arith.subf %174, %177 : vector<8x512xf32>
    %179 = math.absf %178 : vector<8x512xf32>
    %180 = arith.addf %173, %179 : vector<8x512xf32>
    %c184 = arith.constant 184 : index
    %c0_101 = arith.constant 0 : index
    %181 = vector.load %arg8[%c184, %c0_101] : memref<208x512xf32, #tpu.memory_space<vmem>>, vector<8x512xf32>
    %c0_102 = arith.constant 0 : index
    %c184_103 = arith.constant 184 : index
    %c0_104 = arith.constant 0 : index
    %182 = vector.load %arg5[%c0_102, %c184_103, %c0_104] : memref<8x208x128xf32, #tpu.memory_space<vmem>>, vector<1x8x128xf32>
    %183 = vector.shape_cast %182 : vector<1x8x128xf32> to vector<8x128xf32>
    %184 = tpu.concatenate %183, %183, %183, %183 in 1 : vector<8x128xf32>, vector<8x128xf32>, vector<8x128xf32>, vector<8x128xf32> -> vector<8x512xf32>
    %185 = arith.subf %181, %184 : vector<8x512xf32>
    %186 = math.absf %185 : vector<8x512xf32>
    %187 = arith.addf %180, %186 : vector<8x512xf32>
    %c192 = arith.constant 192 : index
    %c0_105 = arith.constant 0 : index
    %188 = vector.load %arg8[%c192, %c0_105] : memref<208x512xf32, #tpu.memory_space<vmem>>, vector<8x512xf32>
    %c0_106 = arith.constant 0 : index
    %c192_107 = arith.constant 192 : index
    %c0_108 = arith.constant 0 : index
    %189 = vector.load %arg5[%c0_106, %c192_107, %c0_108] : memref<8x208x128xf32, #tpu.memory_space<vmem>>, vector<1x8x128xf32>
    %190 = vector.shape_cast %189 : vector<1x8x128xf32> to vector<8x128xf32>
    %191 = tpu.concatenate %190, %190, %190, %190 in 1 : vector<8x128xf32>, vector<8x128xf32>, vector<8x128xf32>, vector<8x128xf32> -> vector<8x512xf32>
    %192 = arith.subf %188, %191 : vector<8x512xf32>
    %193 = math.absf %192 : vector<8x512xf32>
    %194 = arith.addf %187, %193 : vector<8x512xf32>
    %c200 = arith.constant 200 : index
    %c0_109 = arith.constant 0 : index
    %195 = vector.load %arg8[%c200, %c0_109] : memref<208x512xf32, #tpu.memory_space<vmem>>, vector<8x512xf32>
    %c0_110 = arith.constant 0 : index
    %c200_111 = arith.constant 200 : index
    %c0_112 = arith.constant 0 : index
    %196 = vector.load %arg5[%c0_110, %c200_111, %c0_112] : memref<8x208x128xf32, #tpu.memory_space<vmem>>, vector<1x8x128xf32>
    %197 = vector.shape_cast %196 : vector<1x8x128xf32> to vector<8x128xf32>
    %198 = tpu.concatenate %197, %197, %197, %197 in 1 : vector<8x128xf32>, vector<8x128xf32>, vector<8x128xf32>, vector<8x128xf32> -> vector<8x512xf32>
    %199 = arith.subf %195, %198 : vector<8x512xf32>
    %200 = math.absf %199 : vector<8x512xf32>
    %201 = arith.addf %194, %200 : vector<8x512xf32>
    %cst_113 = arith.constant dense<0.000000e+00> : vector<512xf32>
    %202 = vector.multi_reduction <add>, %201, %cst_113 [0] : vector<8x512xf32> to vector<512xf32>
    %203 = vector.shape_cast %202 : vector<512xf32> to vector<1x512xf32>
    %c0_114 = arith.constant 0 : index
    %c0_115 = arith.constant 0 : index
    %204 = vector.load %arg8[%c0_114, %c0_115] : memref<208x512xf32, #tpu.memory_space<vmem>>, vector<8x512xf32>
    %c1 = arith.constant 1 : index
    %c0_116 = arith.constant 0 : index
    %c0_117 = arith.constant 0 : index
    %205 = vector.load %arg5[%c1, %c0_116, %c0_117] : memref<8x208x128xf32, #tpu.memory_space<vmem>>, vector<1x8x128xf32>
    %206 = vector.shape_cast %205 : vector<1x8x128xf32> to vector<8x128xf32>
    %207 = tpu.concatenate %206, %206, %206, %206 in 1 : vector<8x128xf32>, vector<8x128xf32>, vector<8x128xf32>, vector<8x128xf32> -> vector<8x512xf32>
    %208 = arith.subf %204, %207 : vector<8x512xf32>
    %209 = math.absf %208 : vector<8x512xf32>
    %c8_118 = arith.constant 8 : index
    %c0_119 = arith.constant 0 : index
    %210 = vector.load %arg8[%c8_118, %c0_119] : memref<208x512xf32, #tpu.memory_space<vmem>>, vector<8x512xf32>
    %c1_120 = arith.constant 1 : index
    %c8_121 = arith.constant 8 : index
    %c0_122 = arith.constant 0 : index
    %211 = vector.load %arg5[%c1_120, %c8_121, %c0_122] : memref<8x208x128xf32, #tpu.memory_space<vmem>>, vector<1x8x128xf32>
    %212 = vector.shape_cast %211 : vector<1x8x128xf32> to vector<8x128xf32>
    %213 = tpu.concatenate %212, %212, %212, %212 in 1 : vector<8x128xf32>, vector<8x128xf32>, vector<8x128xf32>, vector<8x128xf32> -> vector<8x512xf32>
    %214 = arith.subf %210, %213 : vector<8x512xf32>
    %215 = math.absf %214 : vector<8x512xf32>
    %216 = arith.addf %209, %215 : vector<8x512xf32>
    %c16_123 = arith.constant 16 : index
    %c0_124 = arith.constant 0 : index
    %217 = vector.load %arg8[%c16_123, %c0_124] : memref<208x512xf32, #tpu.memory_space<vmem>>, vector<8x512xf32>
    %c1_125 = arith.constant 1 : index
    %c16_126 = arith.constant 16 : index
    %c0_127 = arith.constant 0 : index
    %218 = vector.load %arg5[%c1_125, %c16_126, %c0_127] : memref<8x208x128xf32, #tpu.memory_space<vmem>>, vector<1x8x128xf32>
    %219 = vector.shape_cast %218 : vector<1x8x128xf32> to vector<8x128xf32>
    %220 = tpu.concatenate %219, %219, %219, %219 in 1 : vector<8x128xf32>, vector<8x128xf32>, vector<8x128xf32>, vector<8x128xf32> -> vector<8x512xf32>
    %221 = arith.subf %217, %220 : vector<8x512xf32>
    %222 = math.absf %221 : vector<8x512xf32>
    %223 = arith.addf %216, %222 : vector<8x512xf32>
    %c24_128 = arith.constant 24 : index
    %c0_129 = arith.constant 0 : index
    %224 = vector.load %arg8[%c24_128, %c0_129] : memref<208x512xf32, #tpu.memory_space<vmem>>, vector<8x512xf32>
    %c1_130 = arith.constant 1 : index
    %c24_131 = arith.constant 24 : index
    %c0_132 = arith.constant 0 : index
    %225 = vector.load %arg5[%c1_130, %c24_131, %c0_132] : memref<8x208x128xf32, #tpu.memory_space<vmem>>, vector<1x8x128xf32>
    %226 = vector.shape_cast %225 : vector<1x8x128xf32> to vector<8x128xf32>
    %227 = tpu.concatenate %226, %226, %226, %226 in 1 : vector<8x128xf32>, vector<8x128xf32>, vector<8x128xf32>, vector<8x128xf32> -> vector<8x512xf32>
    %228 = arith.subf %224, %227 : vector<8x512xf32>
    %229 = math.absf %228 : vector<8x512xf32>
    %230 = arith.addf %223, %229 : vector<8x512xf32>
    %c32_133 = arith.constant 32 : index
    %c0_134 = arith.constant 0 : index
    %231 = vector.load %arg8[%c32_133, %c0_134] : memref<208x512xf32, #tpu.memory_space<vmem>>, vector<8x512xf32>
    %c1_135 = arith.constant 1 : index
    %c32_136 = arith.constant 32 : index
    %c0_137 = arith.constant 0 : index
    %232 = vector.load %arg5[%c1_135, %c32_136, %c0_137] : memref<8x208x128xf32, #tpu.memory_space<vmem>>, vector<1x8x128xf32>
    %233 = vector.shape_cast %232 : vector<1x8x128xf32> to vector<8x128xf32>
    %234 = tpu.concatenate %233, %233, %233, %233 in 1 : vector<8x128xf32>, vector<8x128xf32>, vector<8x128xf32>, vector<8x128xf32> -> vector<8x512xf32>
    %235 = arith.subf %231, %234 : vector<8x512xf32>
    %236 = math.absf %235 : vector<8x512xf32>
    %237 = arith.addf %230, %236 : vector<8x512xf32>
    %c40_138 = arith.constant 40 : index
    %c0_139 = arith.constant 0 : index
    %238 = vector.load %arg8[%c40_138, %c0_139] : memref<208x512xf32, #tpu.memory_space<vmem>>, vector<8x512xf32>
    %c1_140 = arith.constant 1 : index
    %c40_141 = arith.constant 40 : index
    %c0_142 = arith.constant 0 : index
    %239 = vector.load %arg5[%c1_140, %c40_141, %c0_142] : memref<8x208x128xf32, #tpu.memory_space<vmem>>, vector<1x8x128xf32>
    %240 = vector.shape_cast %239 : vector<1x8x128xf32> to vector<8x128xf32>
    %241 = tpu.concatenate %240, %240, %240, %240 in 1 : vector<8x128xf32>, vector<8x128xf32>, vector<8x128xf32>, vector<8x128xf32> -> vector<8x512xf32>
    %242 = arith.subf %238, %241 : vector<8x512xf32>
    %243 = math.absf %242 : vector<8x512xf32>
    %244 = arith.addf %237, %243 : vector<8x512xf32>
    %c48_143 = arith.constant 48 : index
    %c0_144 = arith.constant 0 : index
    %245 = vector.load %arg8[%c48_143, %c0_144] : memref<208x512xf32, #tpu.memory_space<vmem>>, vector<8x512xf32>
    %c1_145 = arith.constant 1 : index
    %c48_146 = arith.constant 48 : index
    %c0_147 = arith.constant 0 : index
    %246 = vector.load %arg5[%c1_145, %c48_146, %c0_147] : memref<8x208x128xf32, #tpu.memory_space<vmem>>, vector<1x8x128xf32>
    %247 = vector.shape_cast %246 : vector<1x8x128xf32> to vector<8x128xf32>
    %248 = tpu.concatenate %247, %247, %247, %247 in 1 : vector<8x128xf32>, vector<8x128xf32>, vector<8x128xf32>, vector<8x128xf32> -> vector<8x512xf32>
    %249 = arith.subf %245, %248 : vector<8x512xf32>
    %250 = math.absf %249 : vector<8x512xf32>
    %251 = arith.addf %244, %250 : vector<8x512xf32>
    %c56_148 = arith.constant 56 : index
    %c0_149 = arith.constant 0 : index
    %252 = vector.load %arg8[%c56_148, %c0_149] : memref<208x512xf32, #tpu.memory_space<vmem>>, vector<8x512xf32>
    %c1_150 = arith.constant 1 : index
    %c56_151 = arith.constant 56 : index
    %c0_152 = arith.constant 0 : index
    %253 = vector.load %arg5[%c1_150, %c56_151, %c0_152] : memref<8x208x128xf32, #tpu.memory_space<vmem>>, vector<1x8x128xf32>
    %254 = vector.shape_cast %253 : vector<1x8x128xf32> to vector<8x128xf32>
    %255 = tpu.concatenate %254, %254, %254, %254 in 1 : vector<8x128xf32>, vector<8x128xf32>, vector<8x128xf32>, vector<8x128xf32> -> vector<8x512xf32>
    %256 = arith.subf %252, %255 : vector<8x512xf32>
    %257 = math.absf %256 : vector<8x512xf32>
    %258 = arith.addf %251, %257 : vector<8x512xf32>
    %c64_153 = arith.constant 64 : index
    %c0_154 = arith.constant 0 : index
    %259 = vector.load %arg8[%c64_153, %c0_154] : memref<208x512xf32, #tpu.memory_space<vmem>>, vector<8x512xf32>
    %c1_155 = arith.constant 1 : index
    %c64_156 = arith.constant 64 : index
    %c0_157 = arith.constant 0 : index
    %260 = vector.load %arg5[%c1_155, %c64_156, %c0_157] : memref<8x208x128xf32, #tpu.memory_space<vmem>>, vector<1x8x128xf32>
    %261 = vector.shape_cast %260 : vector<1x8x128xf32> to vector<8x128xf32>
    %262 = tpu.concatenate %261, %261, %261, %261 in 1 : vector<8x128xf32>, vector<8x128xf32>, vector<8x128xf32>, vector<8x128xf32> -> vector<8x512xf32>
    %263 = arith.subf %259, %262 : vector<8x512xf32>
    %264 = math.absf %263 : vector<8x512xf32>
    %265 = arith.addf %258, %264 : vector<8x512xf32>
    %c72_158 = arith.constant 72 : index
    %c0_159 = arith.constant 0 : index
    %266 = vector.load %arg8[%c72_158, %c0_159] : memref<208x512xf32, #tpu.memory_space<vmem>>, vector<8x512xf32>
    %c1_160 = arith.constant 1 : index
    %c72_161 = arith.constant 72 : index
    %c0_162 = arith.constant 0 : index
    %267 = vector.load %arg5[%c1_160, %c72_161, %c0_162] : memref<8x208x128xf32, #tpu.memory_space<vmem>>, vector<1x8x128xf32>
    %268 = vector.shape_cast %267 : vector<1x8x128xf32> to vector<8x128xf32>
    %269 = tpu.concatenate %268, %268, %268, %268 in 1 : vector<8x128xf32>, vector<8x128xf32>, vector<8x128xf32>, vector<8x128xf32> -> vector<8x512xf32>
    %270 = arith.subf %266, %269 : vector<8x512xf32>
    %271 = math.absf %270 : vector<8x512xf32>
    %272 = arith.addf %265, %271 : vector<8x512xf32>
    %c80_163 = arith.constant 80 : index
    %c0_164 = arith.constant 0 : index
    %273 = vector.load %arg8[%c80_163, %c0_164] : memref<208x512xf32, #tpu.memory_space<vmem>>, vector<8x512xf32>
    %c1_165 = arith.constant 1 : index
    %c80_166 = arith.constant 80 : index
    %c0_167 = arith.constant 0 : index
    %274 = vector.load %arg5[%c1_165, %c80_166, %c0_167] : memref<8x208x128xf32, #tpu.memory_space<vmem>>, vector<1x8x128xf32>
    %275 = vector.shape_cast %274 : vector<1x8x128xf32> to vector<8x128xf32>
    %276 = tpu.concatenate %275, %275, %275, %275 in 1 : vector<8x128xf32>, vector<8x128xf32>, vector<8x128xf32>, vector<8x128xf32> -> vector<8x512xf32>
    %277 = arith.subf %273, %276 : vector<8x512xf32>
    %278 = math.absf %277 : vector<8x512xf32>
    %279 = arith.addf %272, %278 : vector<8x512xf32>
    %c88_168 = arith.constant 88 : index
    %c0_169 = arith.constant 0 : index
    %280 = vector.load %arg8[%c88_168, %c0_169] : memref<208x512xf32, #tpu.memory_space<vmem>>, vector<8x512xf32>
    %c1_170 = arith.constant 1 : index
    %c88_171 = arith.constant 88 : index
    %c0_172 = arith.constant 0 : index
    %281 = vector.load %arg5[%c1_170, %c88_171, %c0_172] : memref<8x208x128xf32, #tpu.memory_space<vmem>>, vector<1x8x128xf32>
    %282 = vector.shape_cast %281 : vector<1x8x128xf32> to vector<8x128xf32>
    %283 = tpu.concatenate %282, %282, %282, %282 in 1 : vector<8x128xf32>, vector<8x128xf32>, vector<8x128xf32>, vector<8x128xf32> -> vector<8x512xf32>
    %284 = arith.subf %280, %283 : vector<8x512xf32>
    %285 = math.absf %284 : vector<8x512xf32>
    %286 = arith.addf %279, %285 : vector<8x512xf32>
    %c96_173 = arith.constant 96 : index
    %c0_174 = arith.constant 0 : index
    %287 = vector.load %arg8[%c96_173, %c0_174] : memref<208x512xf32, #tpu.memory_space<vmem>>, vector<8x512xf32>
    %c1_175 = arith.constant 1 : index
    %c96_176 = arith.constant 96 : index
    %c0_177 = arith.constant 0 : index
    %288 = vector.load %arg5[%c1_175, %c96_176, %c0_177] : memref<8x208x128xf32, #tpu.memory_space<vmem>>, vector<1x8x128xf32>
    %289 = vector.shape_cast %288 : vector<1x8x128xf32> to vector<8x128xf32>
    %290 = tpu.concatenate %289, %289, %289, %289 in 1 : vector<8x128xf32>, vector<8x128xf32>, vector<8x128xf32>, vector<8x128xf32> -> vector<8x512xf32>
    %291 = arith.subf %287, %290 : vector<8x512xf32>
    %292 = math.absf %291 : vector<8x512xf32>
    %293 = arith.addf %286, %292 : vector<8x512xf32>
    %c104_178 = arith.constant 104 : index
    %c0_179 = arith.constant 0 : index
    %294 = vector.load %arg8[%c104_178, %c0_179] : memref<208x512xf32, #tpu.memory_space<vmem>>, vector<8x512xf32>
    %c1_180 = arith.constant 1 : index
    %c104_181 = arith.constant 104 : index
    %c0_182 = arith.constant 0 : index
    %295 = vector.load %arg5[%c1_180, %c104_181, %c0_182] : memref<8x208x128xf32, #tpu.memory_space<vmem>>, vector<1x8x128xf32>
    %296 = vector.shape_cast %295 : vector<1x8x128xf32> to vector<8x128xf32>
    %297 = tpu.concatenate %296, %296, %296, %296 in 1 : vector<8x128xf32>, vector<8x128xf32>, vector<8x128xf32>, vector<8x128xf32> -> vector<8x512xf32>
    %298 = arith.subf %294, %297 : vector<8x512xf32>
    %299 = math.absf %298 : vector<8x512xf32>
    %300 = arith.addf %293, %299 : vector<8x512xf32>
    %c112_183 = arith.constant 112 : index
    %c0_184 = arith.constant 0 : index
    %301 = vector.load %arg8[%c112_183, %c0_184] : memref<208x512xf32, #tpu.memory_space<vmem>>, vector<8x512xf32>
    %c1_185 = arith.constant 1 : index
    %c112_186 = arith.constant 112 : index
    %c0_187 = arith.constant 0 : index
    %302 = vector.load %arg5[%c1_185, %c112_186, %c0_187] : memref<8x208x128xf32, #tpu.memory_space<vmem>>, vector<1x8x128xf32>
    %303 = vector.shape_cast %302 : vector<1x8x128xf32> to vector<8x128xf32>
    %304 = tpu.concatenate %303, %303, %303, %303 in 1 : vector<8x128xf32>, vector<8x128xf32>, vector<8x128xf32>, vector<8x128xf32> -> vector<8x512xf32>
    %305 = arith.subf %301, %304 : vector<8x512xf32>
    %306 = math.absf %305 : vector<8x512xf32>
    %307 = arith.addf %300, %306 : vector<8x512xf32>
    %c120_188 = arith.constant 120 : index
    %c0_189 = arith.constant 0 : index
    %308 = vector.load %arg8[%c120_188, %c0_189] : memref<208x512xf32, #tpu.memory_space<vmem>>, vector<8x512xf32>
    %c1_190 = arith.constant 1 : index
    %c120_191 = arith.constant 120 : index
    %c0_192 = arith.constant 0 : index
    %309 = vector.load %arg5[%c1_190, %c120_191, %c0_192] : memref<8x208x128xf32, #tpu.memory_space<vmem>>, vector<1x8x128xf32>
    %310 = vector.shape_cast %309 : vector<1x8x128xf32> to vector<8x128xf32>
    %311 = tpu.concatenate %310, %310, %310, %310 in 1 : vector<8x128xf32>, vector<8x128xf32>, vector<8x128xf32>, vector<8x128xf32> -> vector<8x512xf32>
    %312 = arith.subf %308, %311 : vector<8x512xf32>
    %313 = math.absf %312 : vector<8x512xf32>
    %314 = arith.addf %307, %313 : vector<8x512xf32>
    %c128_193 = arith.constant 128 : index
    %c0_194 = arith.constant 0 : index
    %315 = vector.load %arg8[%c128_193, %c0_194] : memref<208x512xf32, #tpu.memory_space<vmem>>, vector<8x512xf32>
    %c1_195 = arith.constant 1 : index
    %c128_196 = arith.constant 128 : index
    %c0_197 = arith.constant 0 : index
    %316 = vector.load %arg5[%c1_195, %c128_196, %c0_197] : memref<8x208x128xf32, #tpu.memory_space<vmem>>, vector<1x8x128xf32>
    %317 = vector.shape_cast %316 : vector<1x8x128xf32> to vector<8x128xf32>
    %318 = tpu.concatenate %317, %317, %317, %317 in 1 : vector<8x128xf32>, vector<8x128xf32>, vector<8x128xf32>, vector<8x128xf32> -> vector<8x512xf32>
    %319 = arith.subf %315, %318 : vector<8x512xf32>
    %320 = math.absf %319 : vector<8x512xf32>
    %321 = arith.addf %314, %320 : vector<8x512xf32>
    %c136_198 = arith.constant 136 : index
    %c0_199 = arith.constant 0 : index
    %322 = vector.load %arg8[%c136_198, %c0_199] : memref<208x512xf32, #tpu.memory_space<vmem>>, vector<8x512xf32>
    %c1_200 = arith.constant 1 : index
    %c136_201 = arith.constant 136 : index
    %c0_202 = arith.constant 0 : index
    %323 = vector.load %arg5[%c1_200, %c136_201, %c0_202] : memref<8x208x128xf32, #tpu.memory_space<vmem>>, vector<1x8x128xf32>
    %324 = vector.shape_cast %323 : vector<1x8x128xf32> to vector<8x128xf32>
    %325 = tpu.concatenate %324, %324, %324, %324 in 1 : vector<8x128xf32>, vector<8x128xf32>, vector<8x128xf32>, vector<8x128xf32> -> vector<8x512xf32>
    %326 = arith.subf %322, %325 : vector<8x512xf32>
    %327 = math.absf %326 : vector<8x512xf32>
    %328 = arith.addf %321, %327 : vector<8x512xf32>
    %c144_203 = arith.constant 144 : index
    %c0_204 = arith.constant 0 : index
    %329 = vector.load %arg8[%c144_203, %c0_204] : memref<208x512xf32, #tpu.memory_space<vmem>>, vector<8x512xf32>
    %c1_205 = arith.constant 1 : index
    %c144_206 = arith.constant 144 : index
    %c0_207 = arith.constant 0 : index
    %330 = vector.load %arg5[%c1_205, %c144_206, %c0_207] : memref<8x208x128xf32, #tpu.memory_space<vmem>>, vector<1x8x128xf32>
    %331 = vector.shape_cast %330 : vector<1x8x128xf32> to vector<8x128xf32>
    %332 = tpu.concatenate %331, %331, %331, %331 in 1 : vector<8x128xf32>, vector<8x128xf32>, vector<8x128xf32>, vector<8x128xf32> -> vector<8x512xf32>
    %333 = arith.subf %329, %332 : vector<8x512xf32>
    %334 = math.absf %333 : vector<8x512xf32>
    %335 = arith.addf %328, %334 : vector<8x512xf32>
    %c152_208 = arith.constant 152 : index
    %c0_209 = arith.constant 0 : index
    %336 = vector.load %arg8[%c152_208, %c0_209] : memref<208x512xf32, #tpu.memory_space<vmem>>, vector<8x512xf32>
    %c1_210 = arith.constant 1 : index
    %c152_211 = arith.constant 152 : index
    %c0_212 = arith.constant 0 : index
    %337 = vector.load %arg5[%c1_210, %c152_211, %c0_212] : memref<8x208x128xf32, #tpu.memory_space<vmem>>, vector<1x8x128xf32>
    %338 = vector.shape_cast %337 : vector<1x8x128xf32> to vector<8x128xf32>
    %339 = tpu.concatenate %338, %338, %338, %338 in 1 : vector<8x128xf32>, vector<8x128xf32>, vector<8x128xf32>, vector<8x128xf32> -> vector<8x512xf32>
    %340 = arith.subf %336, %339 : vector<8x512xf32>
    %341 = math.absf %340 : vector<8x512xf32>
    %342 = arith.addf %335, %341 : vector<8x512xf32>
    %c160_213 = arith.constant 160 : index
    %c0_214 = arith.constant 0 : index
    %343 = vector.load %arg8[%c160_213, %c0_214] : memref<208x512xf32, #tpu.memory_space<vmem>>, vector<8x512xf32>
    %c1_215 = arith.constant 1 : index
    %c160_216 = arith.constant 160 : index
    %c0_217 = arith.constant 0 : index
    %344 = vector.load %arg5[%c1_215, %c160_216, %c0_217] : memref<8x208x128xf32, #tpu.memory_space<vmem>>, vector<1x8x128xf32>
    %345 = vector.shape_cast %344 : vector<1x8x128xf32> to vector<8x128xf32>
    %346 = tpu.concatenate %345, %345, %345, %345 in 1 : vector<8x128xf32>, vector<8x128xf32>, vector<8x128xf32>, vector<8x128xf32> -> vector<8x512xf32>
    %347 = arith.subf %343, %346 : vector<8x512xf32>
    %348 = math.absf %347 : vector<8x512xf32>
    %349 = arith.addf %342, %348 : vector<8x512xf32>
    %c168_218 = arith.constant 168 : index
    %c0_219 = arith.constant 0 : index
    %350 = vector.load %arg8[%c168_218, %c0_219] : memref<208x512xf32, #tpu.memory_space<vmem>>, vector<8x512xf32>
    %c1_220 = arith.constant 1 : index
    %c168_221 = arith.constant 168 : index
    %c0_222 = arith.constant 0 : index
    %351 = vector.load %arg5[%c1_220, %c168_221, %c0_222] : memref<8x208x128xf32, #tpu.memory_space<vmem>>, vector<1x8x128xf32>
    %352 = vector.shape_cast %351 : vector<1x8x128xf32> to vector<8x128xf32>
    %353 = tpu.concatenate %352, %352, %352, %352 in 1 : vector<8x128xf32>, vector<8x128xf32>, vector<8x128xf32>, vector<8x128xf32> -> vector<8x512xf32>
    %354 = arith.subf %350, %353 : vector<8x512xf32>
    %355 = math.absf %354 : vector<8x512xf32>
    %356 = arith.addf %349, %355 : vector<8x512xf32>
    %c176_223 = arith.constant 176 : index
    %c0_224 = arith.constant 0 : index
    %357 = vector.load %arg8[%c176_223, %c0_224] : memref<208x512xf32, #tpu.memory_space<vmem>>, vector<8x512xf32>
    %c1_225 = arith.constant 1 : index
    %c176_226 = arith.constant 176 : index
    %c0_227 = arith.constant 0 : index
    %358 = vector.load %arg5[%c1_225, %c176_226, %c0_227] : memref<8x208x128xf32, #tpu.memory_space<vmem>>, vector<1x8x128xf32>
    %359 = vector.shape_cast %358 : vector<1x8x128xf32> to vector<8x128xf32>
    %360 = tpu.concatenate %359, %359, %359, %359 in 1 : vector<8x128xf32>, vector<8x128xf32>, vector<8x128xf32>, vector<8x128xf32> -> vector<8x512xf32>
    %361 = arith.subf %357, %360 : vector<8x512xf32>
    %362 = math.absf %361 : vector<8x512xf32>
    %363 = arith.addf %356, %362 : vector<8x512xf32>
    %c184_228 = arith.constant 184 : index
    %c0_229 = arith.constant 0 : index
    %364 = vector.load %arg8[%c184_228, %c0_229] : memref<208x512xf32, #tpu.memory_space<vmem>>, vector<8x512xf32>
    %c1_230 = arith.constant 1 : index
    %c184_231 = arith.constant 184 : index
    %c0_232 = arith.constant 0 : index
    %365 = vector.load %arg5[%c1_230, %c184_231, %c0_232] : memref<8x208x128xf32, #tpu.memory_space<vmem>>, vector<1x8x128xf32>
    %366 = vector.shape_cast %365 : vector<1x8x128xf32> to vector<8x128xf32>
    %367 = tpu.concatenate %366, %366, %366, %366 in 1 : vector<8x128xf32>, vector<8x128xf32>, vector<8x128xf32>, vector<8x128xf32> -> vector<8x512xf32>
    %368 = arith.subf %364, %367 : vector<8x512xf32>
    %369 = math.absf %368 : vector<8x512xf32>
    %370 = arith.addf %363, %369 : vector<8x512xf32>
    %c192_233 = arith.constant 192 : index
    %c0_234 = arith.constant 0 : index
    %371 = vector.load %arg8[%c192_233, %c0_234] : memref<208x512xf32, #tpu.memory_space<vmem>>, vector<8x512xf32>
    %c1_235 = arith.constant 1 : index
    %c192_236 = arith.constant 192 : index
    %c0_237 = arith.constant 0 : index
    %372 = vector.load %arg5[%c1_235, %c192_236, %c0_237] : memref<8x208x128xf32, #tpu.memory_space<vmem>>, vector<1x8x128xf32>
    %373 = vector.shape_cast %372 : vector<1x8x128xf32> to vector<8x128xf32>
    %374 = tpu.concatenate %373, %373, %373, %373 in 1 : vector<8x128xf32>, vector<8x128xf32>, vector<8x128xf32>, vector<8x128xf32> -> vector<8x512xf32>
    %375 = arith.subf %371, %374 : vector<8x512xf32>
    %376 = math.absf %375 : vector<8x512xf32>
    %377 = arith.addf %370, %376 : vector<8x512xf32>
    %c200_238 = arith.constant 200 : index
    %c0_239 = arith.constant 0 : index
    %378 = vector.load %arg8[%c200_238, %c0_239] : memref<208x512xf32, #tpu.memory_space<vmem>>, vector<8x512xf32>
    %c1_240 = arith.constant 1 : index
    %c200_241 = arith.constant 200 : index
    %c0_242 = arith.constant 0 : index
    %379 = vector.load %arg5[%c1_240, %c200_241, %c0_242] : memref<8x208x128xf32, #tpu.memory_space<vmem>>, vector<1x8x128xf32>
    %380 = vector.shape_cast %379 : vector<1x8x128xf32> to vector<8x128xf32>
    %381 = tpu.concatenate %380, %380, %380, %380 in 1 : vector<8x128xf32>, vector<8x128xf32>, vector<8x128xf32>, vector<8x128xf32> -> vector<8x512xf32>
    %382 = arith.subf %378, %381 : vector<8x512xf32>
    %383 = math.absf %382 : vector<8x512xf32>
    %384 = arith.addf %377, %383 : vector<8x512xf32>
    %cst_243 = arith.constant dense<0.000000e+00> : vector<512xf32>
    %385 = vector.multi_reduction <add>, %384, %cst_243 [0] : vector<8x512xf32> to vector<512xf32>
    %386 = vector.shape_cast %385 : vector<512xf32> to vector<1x512xf32>
    %c0_244 = arith.constant 0 : index
    %c0_245 = arith.constant 0 : index
    %387 = vector.load %arg8[%c0_244, %c0_245] : memref<208x512xf32, #tpu.memory_space<vmem>>, vector<8x512xf32>
    %c2 = arith.constant 2 : index
    %c0_246 = arith.constant 0 : index
    %c0_247 = arith.constant 0 : index
    %388 = vector.load %arg5[%c2, %c0_246, %c0_247] : memref<8x208x128xf32, #tpu.memory_space<vmem>>, vector<1x8x128xf32>
    %389 = vector.shape_cast %388 : vector<1x8x128xf32> to vector<8x128xf32>
    %390 = tpu.concatenate %389, %389, %389, %389 in 1 : vector<8x128xf32>, vector<8x128xf32>, vector<8x128xf32>, vector<8x128xf32> -> vector<8x512xf32>
    %391 = arith.subf %387, %390 : vector<8x512xf32>
    %392 = math.absf %391 : vector<8x512xf32>
    %c8_248 = arith.constant 8 : index
    %c0_249 = arith.constant 0 : index
    %393 = vector.load %arg8[%c8_248, %c0_249] : memref<208x512xf32, #tpu.memory_space<vmem>>, vector<8x512xf32>
    %c2_250 = arith.constant 2 : index
    %c8_251 = arith.constant 8 : index
    %c0_252 = arith.constant 0 : index
    %394 = vector.load %arg5[%c2_250, %c8_251, %c0_252] : memref<8x208x128xf32, #tpu.memory_space<vmem>>, vector<1x8x128xf32>
    %395 = vector.shape_cast %394 : vector<1x8x128xf32> to vector<8x128xf32>
    %396 = tpu.concatenate %395, %395, %395, %395 in 1 : vector<8x128xf32>, vector<8x128xf32>, vector<8x128xf32>, vector<8x128xf32> -> vector<8x512xf32>
    %397 = arith.subf %393, %396 : vector<8x512xf32>
    %398 = math.absf %397 : vector<8x512xf32>
    %399 = arith.addf %392, %398 : vector<8x512xf32>
    %c16_253 = arith.constant 16 : index
    %c0_254 = arith.constant 0 : index
    %400 = vector.load %arg8[%c16_253, %c0_254] : memref<208x512xf32, #tpu.memory_space<vmem>>, vector<8x512xf32>
    %c2_255 = arith.constant 2 : index
    %c16_256 = arith.constant 16 : index
    %c0_257 = arith.constant 0 : index
    %401 = vector.load %arg5[%c2_255, %c16_256, %c0_257] : memref<8x208x128xf32, #tpu.memory_space<vmem>>, vector<1x8x128xf32>
    %402 = vector.shape_cast %401 : vector<1x8x128xf32> to vector<8x128xf32>
    %403 = tpu.concatenate %402, %402, %402, %402 in 1 : vector<8x128xf32>, vector<8x128xf32>, vector<8x128xf32>, vector<8x128xf32> -> vector<8x512xf32>
    %404 = arith.subf %400, %403 : vector<8x512xf32>
    %405 = math.absf %404 : vector<8x512xf32>
    %406 = arith.addf %399, %405 : vector<8x512xf32>
    %c24_258 = arith.constant 24 : index
    %c0_259 = arith.constant 0 : index
    %407 = vector.load %arg8[%c24_258, %c0_259] : memref<208x512xf32, #tpu.memory_space<vmem>>, vector<8x512xf32>
    %c2_260 = arith.constant 2 : index
    %c24_261 = arith.constant 24 : index
    %c0_262 = arith.constant 0 : index
    %408 = vector.load %arg5[%c2_260, %c24_261, %c0_262] : memref<8x208x128xf32, #tpu.memory_space<vmem>>, vector<1x8x128xf32>
    %409 = vector.shape_cast %408 : vector<1x8x128xf32> to vector<8x128xf32>
    %410 = tpu.concatenate %409, %409, %409, %409 in 1 : vector<8x128xf32>, vector<8x128xf32>, vector<8x128xf32>, vector<8x128xf32> -> vector<8x512xf32>
    %411 = arith.subf %407, %410 : vector<8x512xf32>
    %412 = math.absf %411 : vector<8x512xf32>
    %413 = arith.addf %406, %412 : vector<8x512xf32>
    %c32_263 = arith.constant 32 : index
    %c0_264 = arith.constant 0 : index
    %414 = vector.load %arg8[%c32_263, %c0_264] : memref<208x512xf32, #tpu.memory_space<vmem>>, vector<8x512xf32>
    %c2_265 = arith.constant 2 : index
    %c32_266 = arith.constant 32 : index
    %c0_267 = arith.constant 0 : index
    %415 = vector.load %arg5[%c2_265, %c32_266, %c0_267] : memref<8x208x128xf32, #tpu.memory_space<vmem>>, vector<1x8x128xf32>
    %416 = vector.shape_cast %415 : vector<1x8x128xf32> to vector<8x128xf32>
    %417 = tpu.concatenate %416, %416, %416, %416 in 1 : vector<8x128xf32>, vector<8x128xf32>, vector<8x128xf32>, vector<8x128xf32> -> vector<8x512xf32>
    %418 = arith.subf %414, %417 : vector<8x512xf32>
    %419 = math.absf %418 : vector<8x512xf32>
    %420 = arith.addf %413, %419 : vector<8x512xf32>
    %c40_268 = arith.constant 40 : index
    %c0_269 = arith.constant 0 : index
    %421 = vector.load %arg8[%c40_268, %c0_269] : memref<208x512xf32, #tpu.memory_space<vmem>>, vector<8x512xf32>
    %c2_270 = arith.constant 2 : index
    %c40_271 = arith.constant 40 : index
    %c0_272 = arith.constant 0 : index
    %422 = vector.load %arg5[%c2_270, %c40_271, %c0_272] : memref<8x208x128xf32, #tpu.memory_space<vmem>>, vector<1x8x128xf32>
    %423 = vector.shape_cast %422 : vector<1x8x128xf32> to vector<8x128xf32>
    %424 = tpu.concatenate %423, %423, %423, %423 in 1 : vector<8x128xf32>, vector<8x128xf32>, vector<8x128xf32>, vector<8x128xf32> -> vector<8x512xf32>
    %425 = arith.subf %421, %424 : vector<8x512xf32>
    %426 = math.absf %425 : vector<8x512xf32>
    %427 = arith.addf %420, %426 : vector<8x512xf32>
    %c48_273 = arith.constant 48 : index
    %c0_274 = arith.constant 0 : index
    %428 = vector.load %arg8[%c48_273, %c0_274] : memref<208x512xf32, #tpu.memory_space<vmem>>, vector<8x512xf32>
    %c2_275 = arith.constant 2 : index
    %c48_276 = arith.constant 48 : index
    %c0_277 = arith.constant 0 : index
    %429 = vector.load %arg5[%c2_275, %c48_276, %c0_277] : memref<8x208x128xf32, #tpu.memory_space<vmem>>, vector<1x8x128xf32>
    %430 = vector.shape_cast %429 : vector<1x8x128xf32> to vector<8x128xf32>
    %431 = tpu.concatenate %430, %430, %430, %430 in 1 : vector<8x128xf32>, vector<8x128xf32>, vector<8x128xf32>, vector<8x128xf32> -> vector<8x512xf32>
    %432 = arith.subf %428, %431 : vector<8x512xf32>
    %433 = math.absf %432 : vector<8x512xf32>
    %434 = arith.addf %427, %433 : vector<8x512xf32>
    %c56_278 = arith.constant 56 : index
    %c0_279 = arith.constant 0 : index
    %435 = vector.load %arg8[%c56_278, %c0_279] : memref<208x512xf32, #tpu.memory_space<vmem>>, vector<8x512xf32>
    %c2_280 = arith.constant 2 : index
    %c56_281 = arith.constant 56 : index
    %c0_282 = arith.constant 0 : index
    %436 = vector.load %arg5[%c2_280, %c56_281, %c0_282] : memref<8x208x128xf32, #tpu.memory_space<vmem>>, vector<1x8x128xf32>
    %437 = vector.shape_cast %436 : vector<1x8x128xf32> to vector<8x128xf32>
    %438 = tpu.concatenate %437, %437, %437, %437 in 1 : vector<8x128xf32>, vector<8x128xf32>, vector<8x128xf32>, vector<8x128xf32> -> vector<8x512xf32>
    %439 = arith.subf %435, %438 : vector<8x512xf32>
    %440 = math.absf %439 : vector<8x512xf32>
    %441 = arith.addf %434, %440 : vector<8x512xf32>
    %c64_283 = arith.constant 64 : index
    %c0_284 = arith.constant 0 : index
    %442 = vector.load %arg8[%c64_283, %c0_284] : memref<208x512xf32, #tpu.memory_space<vmem>>, vector<8x512xf32>
    %c2_285 = arith.constant 2 : index
    %c64_286 = arith.constant 64 : index
    %c0_287 = arith.constant 0 : index
    %443 = vector.load %arg5[%c2_285, %c64_286, %c0_287] : memref<8x208x128xf32, #tpu.memory_space<vmem>>, vector<1x8x128xf32>
    %444 = vector.shape_cast %443 : vector<1x8x128xf32> to vector<8x128xf32>
    %445 = tpu.concatenate %444, %444, %444, %444 in 1 : vector<8x128xf32>, vector<8x128xf32>, vector<8x128xf32>, vector<8x128xf32> -> vector<8x512xf32>
    %446 = arith.subf %442, %445 : vector<8x512xf32>
    %447 = math.absf %446 : vector<8x512xf32>
    %448 = arith.addf %441, %447 : vector<8x512xf32>
    %c72_288 = arith.constant 72 : index
    %c0_289 = arith.constant 0 : index
    %449 = vector.load %arg8[%c72_288, %c0_289] : memref<208x512xf32, #tpu.memory_space<vmem>>, vector<8x512xf32>
    %c2_290 = arith.constant 2 : index
    %c72_291 = arith.constant 72 : index
    %c0_292 = arith.constant 0 : index
    %450 = vector.load %arg5[%c2_290, %c72_291, %c0_292] : memref<8x208x128xf32, #tpu.memory_space<vmem>>, vector<1x8x128xf32>
    %451 = vector.shape_cast %450 : vector<1x8x128xf32> to vector<8x128xf32>
    %452 = tpu.concatenate %451, %451, %451, %451 in 1 : vector<8x128xf32>, vector<8x128xf32>, vector<8x128xf32>, vector<8x128xf32> -> vector<8x512xf32>
    %453 = arith.subf %449, %452 : vector<8x512xf32>
    %454 = math.absf %453 : vector<8x512xf32>
    %455 = arith.addf %448, %454 : vector<8x512xf32>
    %c80_293 = arith.constant 80 : index
    %c0_294 = arith.constant 0 : index
    %456 = vector.load %arg8[%c80_293, %c0_294] : memref<208x512xf32, #tpu.memory_space<vmem>>, vector<8x512xf32>
    %c2_295 = arith.constant 2 : index
    %c80_296 = arith.constant 80 : index
    %c0_297 = arith.constant 0 : index
    %457 = vector.load %arg5[%c2_295, %c80_296, %c0_297] : memref<8x208x128xf32, #tpu.memory_space<vmem>>, vector<1x8x128xf32>
    %458 = vector.shape_cast %457 : vector<1x8x128xf32> to vector<8x128xf32>
    %459 = tpu.concatenate %458, %458, %458, %458 in 1 : vector<8x128xf32>, vector<8x128xf32>, vector<8x128xf32>, vector<8x128xf32> -> vector<8x512xf32>
    %460 = arith.subf %456, %459 : vector<8x512xf32>
    %461 = math.absf %460 : vector<8x512xf32>
    %462 = arith.addf %455, %461 : vector<8x512xf32>
    %c88_298 = arith.constant 88 : index
    %c0_299 = arith.constant 0 : index
    %463 = vector.load %arg8[%c88_298, %c0_299] : memref<208x512xf32, #tpu.memory_space<vmem>>, vector<8x512xf32>
    %c2_300 = arith.constant 2 : index
    %c88_301 = arith.constant 88 : index
    %c0_302 = arith.constant 0 : index
    %464 = vector.load %arg5[%c2_300, %c88_301, %c0_302] : memref<8x208x128xf32, #tpu.memory_space<vmem>>, vector<1x8x128xf32>
    %465 = vector.shape_cast %464 : vector<1x8x128xf32> to vector<8x128xf32>
    %466 = tpu.concatenate %465, %465, %465, %465 in 1 : vector<8x128xf32>, vector<8x128xf32>, vector<8x128xf32>, vector<8x128xf32> -> vector<8x512xf32>
    %467 = arith.subf %463, %466 : vector<8x512xf32>
    %468 = math.absf %467 : vector<8x512xf32>
    %469 = arith.addf %462, %468 : vector<8x512xf32>
    %c96_303 = arith.constant 96 : index
    %c0_304 = arith.constant 0 : index
    %470 = vector.load %arg8[%c96_303, %c0_304] : memref<208x512xf32, #tpu.memory_space<vmem>>, vector<8x512xf32>
    %c2_305 = arith.constant 2 : index
    %c96_306 = arith.constant 96 : index
    %c0_307 = arith.constant 0 : index
    %471 = vector.load %arg5[%c2_305, %c96_306, %c0_307] : memref<8x208x128xf32, #tpu.memory_space<vmem>>, vector<1x8x128xf32>
    %472 = vector.shape_cast %471 : vector<1x8x128xf32> to vector<8x128xf32>
    %473 = tpu.concatenate %472, %472, %472, %472 in 1 : vector<8x128xf32>, vector<8x128xf32>, vector<8x128xf32>, vector<8x128xf32> -> vector<8x512xf32>
    %474 = arith.subf %470, %473 : vector<8x512xf32>
    %475 = math.absf %474 : vector<8x512xf32>
    %476 = arith.addf %469, %475 : vector<8x512xf32>
    %c104_308 = arith.constant 104 : index
    %c0_309 = arith.constant 0 : index
    %477 = vector.load %arg8[%c104_308, %c0_309] : memref<208x512xf32, #tpu.memory_space<vmem>>, vector<8x512xf32>
    %c2_310 = arith.constant 2 : index
    %c104_311 = arith.constant 104 : index
    %c0_312 = arith.constant 0 : index
    %478 = vector.load %arg5[%c2_310, %c104_311, %c0_312] : memref<8x208x128xf32, #tpu.memory_space<vmem>>, vector<1x8x128xf32>
    %479 = vector.shape_cast %478 : vector<1x8x128xf32> to vector<8x128xf32>
    %480 = tpu.concatenate %479, %479, %479, %479 in 1 : vector<8x128xf32>, vector<8x128xf32>, vector<8x128xf32>, vector<8x128xf32> -> vector<8x512xf32>
    %481 = arith.subf %477, %480 : vector<8x512xf32>
    %482 = math.absf %481 : vector<8x512xf32>
    %483 = arith.addf %476, %482 : vector<8x512xf32>
    %c112_313 = arith.constant 112 : index
    %c0_314 = arith.constant 0 : index
    %484 = vector.load %arg8[%c112_313, %c0_314] : memref<208x512xf32, #tpu.memory_space<vmem>>, vector<8x512xf32>
    %c2_315 = arith.constant 2 : index
    %c112_316 = arith.constant 112 : index
    %c0_317 = arith.constant 0 : index
    %485 = vector.load %arg5[%c2_315, %c112_316, %c0_317] : memref<8x208x128xf32, #tpu.memory_space<vmem>>, vector<1x8x128xf32>
    %486 = vector.shape_cast %485 : vector<1x8x128xf32> to vector<8x128xf32>
    %487 = tpu.concatenate %486, %486, %486, %486 in 1 : vector<8x128xf32>, vector<8x128xf32>, vector<8x128xf32>, vector<8x128xf32> -> vector<8x512xf32>
    %488 = arith.subf %484, %487 : vector<8x512xf32>
    %489 = math.absf %488 : vector<8x512xf32>
    %490 = arith.addf %483, %489 : vector<8x512xf32>
    %c120_318 = arith.constant 120 : index
    %c0_319 = arith.constant 0 : index
    %491 = vector.load %arg8[%c120_318, %c0_319] : memref<208x512xf32, #tpu.memory_space<vmem>>, vector<8x512xf32>
    %c2_320 = arith.constant 2 : index
    %c120_321 = arith.constant 120 : index
    %c0_322 = arith.constant 0 : index
    %492 = vector.load %arg5[%c2_320, %c120_321, %c0_322] : memref<8x208x128xf32, #tpu.memory_space<vmem>>, vector<1x8x128xf32>
    %493 = vector.shape_cast %492 : vector<1x8x128xf32> to vector<8x128xf32>
    %494 = tpu.concatenate %493, %493, %493, %493 in 1 : vector<8x128xf32>, vector<8x128xf32>, vector<8x128xf32>, vector<8x128xf32> -> vector<8x512xf32>
    %495 = arith.subf %491, %494 : vector<8x512xf32>
    %496 = math.absf %495 : vector<8x512xf32>
    %497 = arith.addf %490, %496 : vector<8x512xf32>
    %c128_323 = arith.constant 128 : index
    %c0_324 = arith.constant 0 : index
    %498 = vector.load %arg8[%c128_323, %c0_324] : memref<208x512xf32, #tpu.memory_space<vmem>>, vector<8x512xf32>
    %c2_325 = arith.constant 2 : index
    %c128_326 = arith.constant 128 : index
    %c0_327 = arith.constant 0 : index
    %499 = vector.load %arg5[%c2_325, %c128_326, %c0_327] : memref<8x208x128xf32, #tpu.memory_space<vmem>>, vector<1x8x128xf32>
    %500 = vector.shape_cast %499 : vector<1x8x128xf32> to vector<8x128xf32>
    %501 = tpu.concatenate %500, %500, %500, %500 in 1 : vector<8x128xf32>, vector<8x128xf32>, vector<8x128xf32>, vector<8x128xf32> -> vector<8x512xf32>
    %502 = arith.subf %498, %501 : vector<8x512xf32>
    %503 = math.absf %502 : vector<8x512xf32>
    %504 = arith.addf %497, %503 : vector<8x512xf32>
    %c136_328 = arith.constant 136 : index
    %c0_329 = arith.constant 0 : index
    %505 = vector.load %arg8[%c136_328, %c0_329] : memref<208x512xf32, #tpu.memory_space<vmem>>, vector<8x512xf32>
    %c2_330 = arith.constant 2 : index
    %c136_331 = arith.constant 136 : index
    %c0_332 = arith.constant 0 : index
    %506 = vector.load %arg5[%c2_330, %c136_331, %c0_332] : memref<8x208x128xf32, #tpu.memory_space<vmem>>, vector<1x8x128xf32>
    %507 = vector.shape_cast %506 : vector<1x8x128xf32> to vector<8x128xf32>
    %508 = tpu.concatenate %507, %507, %507, %507 in 1 : vector<8x128xf32>, vector<8x128xf32>, vector<8x128xf32>, vector<8x128xf32> -> vector<8x512xf32>
    %509 = arith.subf %505, %508 : vector<8x512xf32>
    %510 = math.absf %509 : vector<8x512xf32>
    %511 = arith.addf %504, %510 : vector<8x512xf32>
    %c144_333 = arith.constant 144 : index
    %c0_334 = arith.constant 0 : index
    %512 = vector.load %arg8[%c144_333, %c0_334] : memref<208x512xf32, #tpu.memory_space<vmem>>, vector<8x512xf32>
    %c2_335 = arith.constant 2 : index
    %c144_336 = arith.constant 144 : index
    %c0_337 = arith.constant 0 : index
    %513 = vector.load %arg5[%c2_335, %c144_336, %c0_337] : memref<8x208x128xf32, #tpu.memory_space<vmem>>, vector<1x8x128xf32>
    %514 = vector.shape_cast %513 : vector<1x8x128xf32> to vector<8x128xf32>
    %515 = tpu.concatenate %514, %514, %514, %514 in 1 : vector<8x128xf32>, vector<8x128xf32>, vector<8x128xf32>, vector<8x128xf32> -> vector<8x512xf32>
    %516 = arith.subf %512, %515 : vector<8x512xf32>
    %517 = math.absf %516 : vector<8x512xf32>
    %518 = arith.addf %511, %517 : vector<8x512xf32>
    %c152_338 = arith.constant 152 : index
    %c0_339 = arith.constant 0 : index
    %519 = vector.load %arg8[%c152_338, %c0_339] : memref<208x512xf32, #tpu.memory_space<vmem>>, vector<8x512xf32>
    %c2_340 = arith.constant 2 : index
    %c152_341 = arith.constant 152 : index
    %c0_342 = arith.constant 0 : index
    %520 = vector.load %arg5[%c2_340, %c152_341, %c0_342] : memref<8x208x128xf32, #tpu.memory_space<vmem>>, vector<1x8x128xf32>
    %521 = vector.shape_cast %520 : vector<1x8x128xf32> to vector<8x128xf32>
    %522 = tpu.concatenate %521, %521, %521, %521 in 1 : vector<8x128xf32>, vector<8x128xf32>, vector<8x128xf32>, vector<8x128xf32> -> vector<8x512xf32>
    %523 = arith.subf %519, %522 : vector<8x512xf32>
    %524 = math.absf %523 : vector<8x512xf32>
    %525 = arith.addf %518, %524 : vector<8x512xf32>
    %c160_343 = arith.constant 160 : index
    %c0_344 = arith.constant 0 : index
    %526 = vector.load %arg8[%c160_343, %c0_344] : memref<208x512xf32, #tpu.memory_space<vmem>>, vector<8x512xf32>
    %c2_345 = arith.constant 2 : index
    %c160_346 = arith.constant 160 : index
    %c0_347 = arith.constant 0 : index
    %527 = vector.load %arg5[%c2_345, %c160_346, %c0_347] : memref<8x208x128xf32, #tpu.memory_space<vmem>>, vector<1x8x128xf32>
    %528 = vector.shape_cast %527 : vector<1x8x128xf32> to vector<8x128xf32>
    %529 = tpu.concatenate %528, %528, %528, %528 in 1 : vector<8x128xf32>, vector<8x128xf32>, vector<8x128xf32>, vector<8x128xf32> -> vector<8x512xf32>
    %530 = arith.subf %526, %529 : vector<8x512xf32>
    %531 = math.absf %530 : vector<8x512xf32>
    %532 = arith.addf %525, %531 : vector<8x512xf32>
    %c168_348 = arith.constant 168 : index
    %c0_349 = arith.constant 0 : index
    %533 = vector.load %arg8[%c168_348, %c0_349] : memref<208x512xf32, #tpu.memory_space<vmem>>, vector<8x512xf32>
    %c2_350 = arith.constant 2 : index
    %c168_351 = arith.constant 168 : index
    %c0_352 = arith.constant 0 : index
    %534 = vector.load %arg5[%c2_350, %c168_351, %c0_352] : memref<8x208x128xf32, #tpu.memory_space<vmem>>, vector<1x8x128xf32>
    %535 = vector.shape_cast %534 : vector<1x8x128xf32> to vector<8x128xf32>
    %536 = tpu.concatenate %535, %535, %535, %535 in 1 : vector<8x128xf32>, vector<8x128xf32>, vector<8x128xf32>, vector<8x128xf32> -> vector<8x512xf32>
    %537 = arith.subf %533, %536 : vector<8x512xf32>
    %538 = math.absf %537 : vector<8x512xf32>
    %539 = arith.addf %532, %538 : vector<8x512xf32>
    %c176_353 = arith.constant 176 : index
    %c0_354 = arith.constant 0 : index
    %540 = vector.load %arg8[%c176_353, %c0_354] : memref<208x512xf32, #tpu.memory_space<vmem>>, vector<8x512xf32>
    %c2_355 = arith.constant 2 : index
    %c176_356 = arith.constant 176 : index
    %c0_357 = arith.constant 0 : index
    %541 = vector.load %arg5[%c2_355, %c176_356, %c0_357] : memref<8x208x128xf32, #tpu.memory_space<vmem>>, vector<1x8x128xf32>
    %542 = vector.shape_cast %541 : vector<1x8x128xf32> to vector<8x128xf32>
    %543 = tpu.concatenate %542, %542, %542, %542 in 1 : vector<8x128xf32>, vector<8x128xf32>, vector<8x128xf32>, vector<8x128xf32> -> vector<8x512xf32>
    %544 = arith.subf %540, %543 : vector<8x512xf32>
    %545 = math.absf %544 : vector<8x512xf32>
    %546 = arith.addf %539, %545 : vector<8x512xf32>
    %c184_358 = arith.constant 184 : index
    %c0_359 = arith.constant 0 : index
    %547 = vector.load %arg8[%c184_358, %c0_359] : memref<208x512xf32, #tpu.memory_space<vmem>>, vector<8x512xf32>
    %c2_360 = arith.constant 2 : index
    %c184_361 = arith.constant 184 : index
    %c0_362 = arith.constant 0 : index
    %548 = vector.load %arg5[%c2_360, %c184_361, %c0_362] : memref<8x208x128xf32, #tpu.memory_space<vmem>>, vector<1x8x128xf32>
    %549 = vector.shape_cast %548 : vector<1x8x128xf32> to vector<8x128xf32>
    %550 = tpu.concatenate %549, %549, %549, %549 in 1 : vector<8x128xf32>, vector<8x128xf32>, vector<8x128xf32>, vector<8x128xf32> -> vector<8x512xf32>
    %551 = arith.subf %547, %550 : vector<8x512xf32>
    %552 = math.absf %551 : vector<8x512xf32>
    %553 = arith.addf %546, %552 : vector<8x512xf32>
    %c192_363 = arith.constant 192 : index
    %c0_364 = arith.constant 0 : index
    %554 = vector.load %arg8[%c192_363, %c0_364] : memref<208x512xf32, #tpu.memory_space<vmem>>, vector<8x512xf32>
    %c2_365 = arith.constant 2 : index
    %c192_366 = arith.constant 192 : index
    %c0_367 = arith.constant 0 : index
    %555 = vector.load %arg5[%c2_365, %c192_366, %c0_367] : memref<8x208x128xf32, #tpu.memory_space<vmem>>, vector<1x8x128xf32>
    %556 = vector.shape_cast %555 : vector<1x8x128xf32> to vector<8x128xf32>
    %557 = tpu.concatenate %556, %556, %556, %556 in 1 : vector<8x128xf32>, vector<8x128xf32>, vector<8x128xf32>, vector<8x128xf32> -> vector<8x512xf32>
    %558 = arith.subf %554, %557 : vector<8x512xf32>
    %559 = math.absf %558 : vector<8x512xf32>
    %560 = arith.addf %553, %559 : vector<8x512xf32>
    %c200_368 = arith.constant 200 : index
    %c0_369 = arith.constant 0 : index
    %561 = vector.load %arg8[%c200_368, %c0_369] : memref<208x512xf32, #tpu.memory_space<vmem>>, vector<8x512xf32>
    %c2_370 = arith.constant 2 : index
    %c200_371 = arith.constant 200 : index
    %c0_372 = arith.constant 0 : index
    %562 = vector.load %arg5[%c2_370, %c200_371, %c0_372] : memref<8x208x128xf32, #tpu.memory_space<vmem>>, vector<1x8x128xf32>
    %563 = vector.shape_cast %562 : vector<1x8x128xf32> to vector<8x128xf32>
    %564 = tpu.concatenate %563, %563, %563, %563 in 1 : vector<8x128xf32>, vector<8x128xf32>, vector<8x128xf32>, vector<8x128xf32> -> vector<8x512xf32>
    %565 = arith.subf %561, %564 : vector<8x512xf32>
    %566 = math.absf %565 : vector<8x512xf32>
    %567 = arith.addf %560, %566 : vector<8x512xf32>
    %cst_373 = arith.constant dense<0.000000e+00> : vector<512xf32>
    %568 = vector.multi_reduction <add>, %567, %cst_373 [0] : vector<8x512xf32> to vector<512xf32>
    %569 = vector.shape_cast %568 : vector<512xf32> to vector<1x512xf32>
    %c0_374 = arith.constant 0 : index
    %c0_375 = arith.constant 0 : index
    %570 = vector.load %arg8[%c0_374, %c0_375] : memref<208x512xf32, #tpu.memory_space<vmem>>, vector<8x512xf32>
    %c3 = arith.constant 3 : index
    %c0_376 = arith.constant 0 : index
    %c0_377 = arith.constant 0 : index
    %571 = vector.load %arg5[%c3, %c0_376, %c0_377] : memref<8x208x128xf32, #tpu.memory_space<vmem>>, vector<1x8x128xf32>
    %572 = vector.shape_cast %571 : vector<1x8x128xf32> to vector<8x128xf32>
    %573 = tpu.concatenate %572, %572, %572, %572 in 1 : vector<8x128xf32>, vector<8x128xf32>, vector<8x128xf32>, vector<8x128xf32> -> vector<8x512xf32>
    %574 = arith.subf %570, %573 : vector<8x512xf32>
    %575 = math.absf %574 : vector<8x512xf32>
    %c8_378 = arith.constant 8 : index
    %c0_379 = arith.constant 0 : index
    %576 = vector.load %arg8[%c8_378, %c0_379] : memref<208x512xf32, #tpu.memory_space<vmem>>, vector<8x512xf32>
    %c3_380 = arith.constant 3 : index
    %c8_381 = arith.constant 8 : index
    %c0_382 = arith.constant 0 : index
    %577 = vector.load %arg5[%c3_380, %c8_381, %c0_382] : memref<8x208x128xf32, #tpu.memory_space<vmem>>, vector<1x8x128xf32>
    %578 = vector.shape_cast %577 : vector<1x8x128xf32> to vector<8x128xf32>
    %579 = tpu.concatenate %578, %578, %578, %578 in 1 : vector<8x128xf32>, vector<8x128xf32>, vector<8x128xf32>, vector<8x128xf32> -> vector<8x512xf32>
    %580 = arith.subf %576, %579 : vector<8x512xf32>
    %581 = math.absf %580 : vector<8x512xf32>
    %582 = arith.addf %575, %581 : vector<8x512xf32>
    %c16_383 = arith.constant 16 : index
    %c0_384 = arith.constant 0 : index
    %583 = vector.load %arg8[%c16_383, %c0_384] : memref<208x512xf32, #tpu.memory_space<vmem>>, vector<8x512xf32>
    %c3_385 = arith.constant 3 : index
    %c16_386 = arith.constant 16 : index
    %c0_387 = arith.constant 0 : index
    %584 = vector.load %arg5[%c3_385, %c16_386, %c0_387] : memref<8x208x128xf32, #tpu.memory_space<vmem>>, vector<1x8x128xf32>
    %585 = vector.shape_cast %584 : vector<1x8x128xf32> to vector<8x128xf32>
    %586 = tpu.concatenate %585, %585, %585, %585 in 1 : vector<8x128xf32>, vector<8x128xf32>, vector<8x128xf32>, vector<8x128xf32> -> vector<8x512xf32>
    %587 = arith.subf %583, %586 : vector<8x512xf32>
    %588 = math.absf %587 : vector<8x512xf32>
    %589 = arith.addf %582, %588 : vector<8x512xf32>
    %c24_388 = arith.constant 24 : index
    %c0_389 = arith.constant 0 : index
    %590 = vector.load %arg8[%c24_388, %c0_389] : memref<208x512xf32, #tpu.memory_space<vmem>>, vector<8x512xf32>
    %c3_390 = arith.constant 3 : index
    %c24_391 = arith.constant 24 : index
    %c0_392 = arith.constant 0 : index
    %591 = vector.load %arg5[%c3_390, %c24_391, %c0_392] : memref<8x208x128xf32, #tpu.memory_space<vmem>>, vector<1x8x128xf32>
    %592 = vector.shape_cast %591 : vector<1x8x128xf32> to vector<8x128xf32>
    %593 = tpu.concatenate %592, %592, %592, %592 in 1 : vector<8x128xf32>, vector<8x128xf32>, vector<8x128xf32>, vector<8x128xf32> -> vector<8x512xf32>
    %594 = arith.subf %590, %593 : vector<8x512xf32>
    %595 = math.absf %594 : vector<8x512xf32>
    %596 = arith.addf %589, %595 : vector<8x512xf32>
    %c32_393 = arith.constant 32 : index
    %c0_394 = arith.constant 0 : index
    %597 = vector.load %arg8[%c32_393, %c0_394] : memref<208x512xf32, #tpu.memory_space<vmem>>, vector<8x512xf32>
    %c3_395 = arith.constant 3 : index
    %c32_396 = arith.constant 32 : index
    %c0_397 = arith.constant 0 : index
    %598 = vector.load %arg5[%c3_395, %c32_396, %c0_397] : memref<8x208x128xf32, #tpu.memory_space<vmem>>, vector<1x8x128xf32>
    %599 = vector.shape_cast %598 : vector<1x8x128xf32> to vector<8x128xf32>
    %600 = tpu.concatenate %599, %599, %599, %599 in 1 : vector<8x128xf32>, vector<8x128xf32>, vector<8x128xf32>, vector<8x128xf32> -> vector<8x512xf32>
    %601 = arith.subf %597, %600 : vector<8x512xf32>
    %602 = math.absf %601 : vector<8x512xf32>
    %603 = arith.addf %596, %602 : vector<8x512xf32>
    %c40_398 = arith.constant 40 : index
    %c0_399 = arith.constant 0 : index
    %604 = vector.load %arg8[%c40_398, %c0_399] : memref<208x512xf32, #tpu.memory_space<vmem>>, vector<8x512xf32>
    %c3_400 = arith.constant 3 : index
    %c40_401 = arith.constant 40 : index
    %c0_402 = arith.constant 0 : index
    %605 = vector.load %arg5[%c3_400, %c40_401, %c0_402] : memref<8x208x128xf32, #tpu.memory_space<vmem>>, vector<1x8x128xf32>
    %606 = vector.shape_cast %605 : vector<1x8x128xf32> to vector<8x128xf32>
    %607 = tpu.concatenate %606, %606, %606, %606 in 1 : vector<8x128xf32>, vector<8x128xf32>, vector<8x128xf32>, vector<8x128xf32> -> vector<8x512xf32>
    %608 = arith.subf %604, %607 : vector<8x512xf32>
    %609 = math.absf %608 : vector<8x512xf32>
    %610 = arith.addf %603, %609 : vector<8x512xf32>
    %c48_403 = arith.constant 48 : index
    %c0_404 = arith.constant 0 : index
    %611 = vector.load %arg8[%c48_403, %c0_404] : memref<208x512xf32, #tpu.memory_space<vmem>>, vector<8x512xf32>
    %c3_405 = arith.constant 3 : index
    %c48_406 = arith.constant 48 : index
    %c0_407 = arith.constant 0 : index
    %612 = vector.load %arg5[%c3_405, %c48_406, %c0_407] : memref<8x208x128xf32, #tpu.memory_space<vmem>>, vector<1x8x128xf32>
    %613 = vector.shape_cast %612 : vector<1x8x128xf32> to vector<8x128xf32>
    %614 = tpu.concatenate %613, %613, %613, %613 in 1 : vector<8x128xf32>, vector<8x128xf32>, vector<8x128xf32>, vector<8x128xf32> -> vector<8x512xf32>
    %615 = arith.subf %611, %614 : vector<8x512xf32>
    %616 = math.absf %615 : vector<8x512xf32>
    %617 = arith.addf %610, %616 : vector<8x512xf32>
    %c56_408 = arith.constant 56 : index
    %c0_409 = arith.constant 0 : index
    %618 = vector.load %arg8[%c56_408, %c0_409] : memref<208x512xf32, #tpu.memory_space<vmem>>, vector<8x512xf32>
    %c3_410 = arith.constant 3 : index
    %c56_411 = arith.constant 56 : index
    %c0_412 = arith.constant 0 : index
    %619 = vector.load %arg5[%c3_410, %c56_411, %c0_412] : memref<8x208x128xf32, #tpu.memory_space<vmem>>, vector<1x8x128xf32>
    %620 = vector.shape_cast %619 : vector<1x8x128xf32> to vector<8x128xf32>
    %621 = tpu.concatenate %620, %620, %620, %620 in 1 : vector<8x128xf32>, vector<8x128xf32>, vector<8x128xf32>, vector<8x128xf32> -> vector<8x512xf32>
    %622 = arith.subf %618, %621 : vector<8x512xf32>
    %623 = math.absf %622 : vector<8x512xf32>
    %624 = arith.addf %617, %623 : vector<8x512xf32>
    %c64_413 = arith.constant 64 : index
    %c0_414 = arith.constant 0 : index
    %625 = vector.load %arg8[%c64_413, %c0_414] : memref<208x512xf32, #tpu.memory_space<vmem>>, vector<8x512xf32>
    %c3_415 = arith.constant 3 : index
    %c64_416 = arith.constant 64 : index
    %c0_417 = arith.constant 0 : index
    %626 = vector.load %arg5[%c3_415, %c64_416, %c0_417] : memref<8x208x128xf32, #tpu.memory_space<vmem>>, vector<1x8x128xf32>
    %627 = vector.shape_cast %626 : vector<1x8x128xf32> to vector<8x128xf32>
    %628 = tpu.concatenate %627, %627, %627, %627 in 1 : vector<8x128xf32>, vector<8x128xf32>, vector<8x128xf32>, vector<8x128xf32> -> vector<8x512xf32>
    %629 = arith.subf %625, %628 : vector<8x512xf32>
    %630 = math.absf %629 : vector<8x512xf32>
    %631 = arith.addf %624, %630 : vector<8x512xf32>
    %c72_418 = arith.constant 72 : index
    %c0_419 = arith.constant 0 : index
    %632 = vector.load %arg8[%c72_418, %c0_419] : memref<208x512xf32, #tpu.memory_space<vmem>>, vector<8x512xf32>
    %c3_420 = arith.constant 3 : index
    %c72_421 = arith.constant 72 : index
    %c0_422 = arith.constant 0 : index
    %633 = vector.load %arg5[%c3_420, %c72_421, %c0_422] : memref<8x208x128xf32, #tpu.memory_space<vmem>>, vector<1x8x128xf32>
    %634 = vector.shape_cast %633 : vector<1x8x128xf32> to vector<8x128xf32>
    %635 = tpu.concatenate %634, %634, %634, %634 in 1 : vector<8x128xf32>, vector<8x128xf32>, vector<8x128xf32>, vector<8x128xf32> -> vector<8x512xf32>
    %636 = arith.subf %632, %635 : vector<8x512xf32>
    %637 = math.absf %636 : vector<8x512xf32>
    %638 = arith.addf %631, %637 : vector<8x512xf32>
    %c80_423 = arith.constant 80 : index
    %c0_424 = arith.constant 0 : index
    %639 = vector.load %arg8[%c80_423, %c0_424] : memref<208x512xf32, #tpu.memory_space<vmem>>, vector<8x512xf32>
    %c3_425 = arith.constant 3 : index
    %c80_426 = arith.constant 80 : index
    %c0_427 = arith.constant 0 : index
    %640 = vector.load %arg5[%c3_425, %c80_426, %c0_427] : memref<8x208x128xf32, #tpu.memory_space<vmem>>, vector<1x8x128xf32>
    %641 = vector.shape_cast %640 : vector<1x8x128xf32> to vector<8x128xf32>
    %642 = tpu.concatenate %641, %641, %641, %641 in 1 : vector<8x128xf32>, vector<8x128xf32>, vector<8x128xf32>, vector<8x128xf32> -> vector<8x512xf32>
    %643 = arith.subf %639, %642 : vector<8x512xf32>
    %644 = math.absf %643 : vector<8x512xf32>
    %645 = arith.addf %638, %644 : vector<8x512xf32>
    %c88_428 = arith.constant 88 : index
    %c0_429 = arith.constant 0 : index
    %646 = vector.load %arg8[%c88_428, %c0_429] : memref<208x512xf32, #tpu.memory_space<vmem>>, vector<8x512xf32>
    %c3_430 = arith.constant 3 : index
    %c88_431 = arith.constant 88 : index
    %c0_432 = arith.constant 0 : index
    %647 = vector.load %arg5[%c3_430, %c88_431, %c0_432] : memref<8x208x128xf32, #tpu.memory_space<vmem>>, vector<1x8x128xf32>
    %648 = vector.shape_cast %647 : vector<1x8x128xf32> to vector<8x128xf32>
    %649 = tpu.concatenate %648, %648, %648, %648 in 1 : vector<8x128xf32>, vector<8x128xf32>, vector<8x128xf32>, vector<8x128xf32> -> vector<8x512xf32>
    %650 = arith.subf %646, %649 : vector<8x512xf32>
    %651 = math.absf %650 : vector<8x512xf32>
    %652 = arith.addf %645, %651 : vector<8x512xf32>
    %c96_433 = arith.constant 96 : index
    %c0_434 = arith.constant 0 : index
    %653 = vector.load %arg8[%c96_433, %c0_434] : memref<208x512xf32, #tpu.memory_space<vmem>>, vector<8x512xf32>
    %c3_435 = arith.constant 3 : index
    %c96_436 = arith.constant 96 : index
    %c0_437 = arith.constant 0 : index
    %654 = vector.load %arg5[%c3_435, %c96_436, %c0_437] : memref<8x208x128xf32, #tpu.memory_space<vmem>>, vector<1x8x128xf32>
    %655 = vector.shape_cast %654 : vector<1x8x128xf32> to vector<8x128xf32>
    %656 = tpu.concatenate %655, %655, %655, %655 in 1 : vector<8x128xf32>, vector<8x128xf32>, vector<8x128xf32>, vector<8x128xf32> -> vector<8x512xf32>
    %657 = arith.subf %653, %656 : vector<8x512xf32>
    %658 = math.absf %657 : vector<8x512xf32>
    %659 = arith.addf %652, %658 : vector<8x512xf32>
    %c104_438 = arith.constant 104 : index
    %c0_439 = arith.constant 0 : index
    %660 = vector.load %arg8[%c104_438, %c0_439] : memref<208x512xf32, #tpu.memory_space<vmem>>, vector<8x512xf32>
    %c3_440 = arith.constant 3 : index
    %c104_441 = arith.constant 104 : index
    %c0_442 = arith.constant 0 : index
    %661 = vector.load %arg5[%c3_440, %c104_441, %c0_442] : memref<8x208x128xf32, #tpu.memory_space<vmem>>, vector<1x8x128xf32>
    %662 = vector.shape_cast %661 : vector<1x8x128xf32> to vector<8x128xf32>
    %663 = tpu.concatenate %662, %662, %662, %662 in 1 : vector<8x128xf32>, vector<8x128xf32>, vector<8x128xf32>, vector<8x128xf32> -> vector<8x512xf32>
    %664 = arith.subf %660, %663 : vector<8x512xf32>
    %665 = math.absf %664 : vector<8x512xf32>
    %666 = arith.addf %659, %665 : vector<8x512xf32>
    %c112_443 = arith.constant 112 : index
    %c0_444 = arith.constant 0 : index
    %667 = vector.load %arg8[%c112_443, %c0_444] : memref<208x512xf32, #tpu.memory_space<vmem>>, vector<8x512xf32>
    %c3_445 = arith.constant 3 : index
    %c112_446 = arith.constant 112 : index
    %c0_447 = arith.constant 0 : index
    %668 = vector.load %arg5[%c3_445, %c112_446, %c0_447] : memref<8x208x128xf32, #tpu.memory_space<vmem>>, vector<1x8x128xf32>
    %669 = vector.shape_cast %668 : vector<1x8x128xf32> to vector<8x128xf32>
    %670 = tpu.concatenate %669, %669, %669, %669 in 1 : vector<8x128xf32>, vector<8x128xf32>, vector<8x128xf32>, vector<8x128xf32> -> vector<8x512xf32>
    %671 = arith.subf %667, %670 : vector<8x512xf32>
    %672 = math.absf %671 : vector<8x512xf32>
    %673 = arith.addf %666, %672 : vector<8x512xf32>
    %c120_448 = arith.constant 120 : index
    %c0_449 = arith.constant 0 : index
    %674 = vector.load %arg8[%c120_448, %c0_449] : memref<208x512xf32, #tpu.memory_space<vmem>>, vector<8x512xf32>
    %c3_450 = arith.constant 3 : index
    %c120_451 = arith.constant 120 : index
    %c0_452 = arith.constant 0 : index
    %675 = vector.load %arg5[%c3_450, %c120_451, %c0_452] : memref<8x208x128xf32, #tpu.memory_space<vmem>>, vector<1x8x128xf32>
    %676 = vector.shape_cast %675 : vector<1x8x128xf32> to vector<8x128xf32>
    %677 = tpu.concatenate %676, %676, %676, %676 in 1 : vector<8x128xf32>, vector<8x128xf32>, vector<8x128xf32>, vector<8x128xf32> -> vector<8x512xf32>
    %678 = arith.subf %674, %677 : vector<8x512xf32>
    %679 = math.absf %678 : vector<8x512xf32>
    %680 = arith.addf %673, %679 : vector<8x512xf32>
    %c128_453 = arith.constant 128 : index
    %c0_454 = arith.constant 0 : index
    %681 = vector.load %arg8[%c128_453, %c0_454] : memref<208x512xf32, #tpu.memory_space<vmem>>, vector<8x512xf32>
    %c3_455 = arith.constant 3 : index
    %c128_456 = arith.constant 128 : index
    %c0_457 = arith.constant 0 : index
    %682 = vector.load %arg5[%c3_455, %c128_456, %c0_457] : memref<8x208x128xf32, #tpu.memory_space<vmem>>, vector<1x8x128xf32>
    %683 = vector.shape_cast %682 : vector<1x8x128xf32> to vector<8x128xf32>
    %684 = tpu.concatenate %683, %683, %683, %683 in 1 : vector<8x128xf32>, vector<8x128xf32>, vector<8x128xf32>, vector<8x128xf32> -> vector<8x512xf32>
    %685 = arith.subf %681, %684 : vector<8x512xf32>
    %686 = math.absf %685 : vector<8x512xf32>
    %687 = arith.addf %680, %686 : vector<8x512xf32>
    %c136_458 = arith.constant 136 : index
    %c0_459 = arith.constant 0 : index
    %688 = vector.load %arg8[%c136_458, %c0_459] : memref<208x512xf32, #tpu.memory_space<vmem>>, vector<8x512xf32>
    %c3_460 = arith.constant 3 : index
    %c136_461 = arith.constant 136 : index
    %c0_462 = arith.constant 0 : index
    %689 = vector.load %arg5[%c3_460, %c136_461, %c0_462] : memref<8x208x128xf32, #tpu.memory_space<vmem>>, vector<1x8x128xf32>
    %690 = vector.shape_cast %689 : vector<1x8x128xf32> to vector<8x128xf32>
    %691 = tpu.concatenate %690, %690, %690, %690 in 1 : vector<8x128xf32>, vector<8x128xf32>, vector<8x128xf32>, vector<8x128xf32> -> vector<8x512xf32>
    %692 = arith.subf %688, %691 : vector<8x512xf32>
    %693 = math.absf %692 : vector<8x512xf32>
    %694 = arith.addf %687, %693 : vector<8x512xf32>
    %c144_463 = arith.constant 144 : index
    %c0_464 = arith.constant 0 : index
    %695 = vector.load %arg8[%c144_463, %c0_464] : memref<208x512xf32, #tpu.memory_space<vmem>>, vector<8x512xf32>
    %c3_465 = arith.constant 3 : index
    %c144_466 = arith.constant 144 : index
    %c0_467 = arith.constant 0 : index
    %696 = vector.load %arg5[%c3_465, %c144_466, %c0_467] : memref<8x208x128xf32, #tpu.memory_space<vmem>>, vector<1x8x128xf32>
    %697 = vector.shape_cast %696 : vector<1x8x128xf32> to vector<8x128xf32>
    %698 = tpu.concatenate %697, %697, %697, %697 in 1 : vector<8x128xf32>, vector<8x128xf32>, vector<8x128xf32>, vector<8x128xf32> -> vector<8x512xf32>
    %699 = arith.subf %695, %698 : vector<8x512xf32>
    %700 = math.absf %699 : vector<8x512xf32>
    %701 = arith.addf %694, %700 : vector<8x512xf32>
    %c152_468 = arith.constant 152 : index
    %c0_469 = arith.constant 0 : index
    %702 = vector.load %arg8[%c152_468, %c0_469] : memref<208x512xf32, #tpu.memory_space<vmem>>, vector<8x512xf32>
    %c3_470 = arith.constant 3 : index
    %c152_471 = arith.constant 152 : index
    %c0_472 = arith.constant 0 : index
    %703 = vector.load %arg5[%c3_470, %c152_471, %c0_472] : memref<8x208x128xf32, #tpu.memory_space<vmem>>, vector<1x8x128xf32>
    %704 = vector.shape_cast %703 : vector<1x8x128xf32> to vector<8x128xf32>
    %705 = tpu.concatenate %704, %704, %704, %704 in 1 : vector<8x128xf32>, vector<8x128xf32>, vector<8x128xf32>, vector<8x128xf32> -> vector<8x512xf32>
    %706 = arith.subf %702, %705 : vector<8x512xf32>
    %707 = math.absf %706 : vector<8x512xf32>
    %708 = arith.addf %701, %707 : vector<8x512xf32>
    %c160_473 = arith.constant 160 : index
    %c0_474 = arith.constant 0 : index
    %709 = vector.load %arg8[%c160_473, %c0_474] : memref<208x512xf32, #tpu.memory_space<vmem>>, vector<8x512xf32>
    %c3_475 = arith.constant 3 : index
    %c160_476 = arith.constant 160 : index
    %c0_477 = arith.constant 0 : index
    %710 = vector.load %arg5[%c3_475, %c160_476, %c0_477] : memref<8x208x128xf32, #tpu.memory_space<vmem>>, vector<1x8x128xf32>
    %711 = vector.shape_cast %710 : vector<1x8x128xf32> to vector<8x128xf32>
    %712 = tpu.concatenate %711, %711, %711, %711 in 1 : vector<8x128xf32>, vector<8x128xf32>, vector<8x128xf32>, vector<8x128xf32> -> vector<8x512xf32>
    %713 = arith.subf %709, %712 : vector<8x512xf32>
    %714 = math.absf %713 : vector<8x512xf32>
    %715 = arith.addf %708, %714 : vector<8x512xf32>
    %c168_478 = arith.constant 168 : index
    %c0_479 = arith.constant 0 : index
    %716 = vector.load %arg8[%c168_478, %c0_479] : memref<208x512xf32, #tpu.memory_space<vmem>>, vector<8x512xf32>
    %c3_480 = arith.constant 3 : index
    %c168_481 = arith.constant 168 : index
    %c0_482 = arith.constant 0 : index
    %717 = vector.load %arg5[%c3_480, %c168_481, %c0_482] : memref<8x208x128xf32, #tpu.memory_space<vmem>>, vector<1x8x128xf32>
    %718 = vector.shape_cast %717 : vector<1x8x128xf32> to vector<8x128xf32>
    %719 = tpu.concatenate %718, %718, %718, %718 in 1 : vector<8x128xf32>, vector<8x128xf32>, vector<8x128xf32>, vector<8x128xf32> -> vector<8x512xf32>
    %720 = arith.subf %716, %719 : vector<8x512xf32>
    %721 = math.absf %720 : vector<8x512xf32>
    %722 = arith.addf %715, %721 : vector<8x512xf32>
    %c176_483 = arith.constant 176 : index
    %c0_484 = arith.constant 0 : index
    %723 = vector.load %arg8[%c176_483, %c0_484] : memref<208x512xf32, #tpu.memory_space<vmem>>, vector<8x512xf32>
    %c3_485 = arith.constant 3 : index
    %c176_486 = arith.constant 176 : index
    %c0_487 = arith.constant 0 : index
    %724 = vector.load %arg5[%c3_485, %c176_486, %c0_487] : memref<8x208x128xf32, #tpu.memory_space<vmem>>, vector<1x8x128xf32>
    %725 = vector.shape_cast %724 : vector<1x8x128xf32> to vector<8x128xf32>
    %726 = tpu.concatenate %725, %725, %725, %725 in 1 : vector<8x128xf32>, vector<8x128xf32>, vector<8x128xf32>, vector<8x128xf32> -> vector<8x512xf32>
    %727 = arith.subf %723, %726 : vector<8x512xf32>
    %728 = math.absf %727 : vector<8x512xf32>
    %729 = arith.addf %722, %728 : vector<8x512xf32>
    %c184_488 = arith.constant 184 : index
    %c0_489 = arith.constant 0 : index
    %730 = vector.load %arg8[%c184_488, %c0_489] : memref<208x512xf32, #tpu.memory_space<vmem>>, vector<8x512xf32>
    %c3_490 = arith.constant 3 : index
    %c184_491 = arith.constant 184 : index
    %c0_492 = arith.constant 0 : index
    %731 = vector.load %arg5[%c3_490, %c184_491, %c0_492] : memref<8x208x128xf32, #tpu.memory_space<vmem>>, vector<1x8x128xf32>
    %732 = vector.shape_cast %731 : vector<1x8x128xf32> to vector<8x128xf32>
    %733 = tpu.concatenate %732, %732, %732, %732 in 1 : vector<8x128xf32>, vector<8x128xf32>, vector<8x128xf32>, vector<8x128xf32> -> vector<8x512xf32>
    %734 = arith.subf %730, %733 : vector<8x512xf32>
    %735 = math.absf %734 : vector<8x512xf32>
    %736 = arith.addf %729, %735 : vector<8x512xf32>
    %c192_493 = arith.constant 192 : index
    %c0_494 = arith.constant 0 : index
    %737 = vector.load %arg8[%c192_493, %c0_494] : memref<208x512xf32, #tpu.memory_space<vmem>>, vector<8x512xf32>
    %c3_495 = arith.constant 3 : index
    %c192_496 = arith.constant 192 : index
    %c0_497 = arith.constant 0 : index
    %738 = vector.load %arg5[%c3_495, %c192_496, %c0_497] : memref<8x208x128xf32, #tpu.memory_space<vmem>>, vector<1x8x128xf32>
    %739 = vector.shape_cast %738 : vector<1x8x128xf32> to vector<8x128xf32>
    %740 = tpu.concatenate %739, %739, %739, %739 in 1 : vector<8x128xf32>, vector<8x128xf32>, vector<8x128xf32>, vector<8x128xf32> -> vector<8x512xf32>
    %741 = arith.subf %737, %740 : vector<8x512xf32>
    %742 = math.absf %741 : vector<8x512xf32>
    %743 = arith.addf %736, %742 : vector<8x512xf32>
    %c200_498 = arith.constant 200 : index
    %c0_499 = arith.constant 0 : index
    %744 = vector.load %arg8[%c200_498, %c0_499] : memref<208x512xf32, #tpu.memory_space<vmem>>, vector<8x512xf32>
    %c3_500 = arith.constant 3 : index
    %c200_501 = arith.constant 200 : index
    %c0_502 = arith.constant 0 : index
    %745 = vector.load %arg5[%c3_500, %c200_501, %c0_502] : memref<8x208x128xf32, #tpu.memory_space<vmem>>, vector<1x8x128xf32>
    %746 = vector.shape_cast %745 : vector<1x8x128xf32> to vector<8x128xf32>
    %747 = tpu.concatenate %746, %746, %746, %746 in 1 : vector<8x128xf32>, vector<8x128xf32>, vector<8x128xf32>, vector<8x128xf32> -> vector<8x512xf32>
    %748 = arith.subf %744, %747 : vector<8x512xf32>
    %749 = math.absf %748 : vector<8x512xf32>
    %750 = arith.addf %743, %749 : vector<8x512xf32>
    %cst_503 = arith.constant dense<0.000000e+00> : vector<512xf32>
    %751 = vector.multi_reduction <add>, %750, %cst_503 [0] : vector<8x512xf32> to vector<512xf32>
    %752 = vector.shape_cast %751 : vector<512xf32> to vector<1x512xf32>
    %c0_504 = arith.constant 0 : index
    %c0_505 = arith.constant 0 : index
    %753 = vector.load %arg8[%c0_504, %c0_505] : memref<208x512xf32, #tpu.memory_space<vmem>>, vector<8x512xf32>
    %c4 = arith.constant 4 : index
    %c0_506 = arith.constant 0 : index
    %c0_507 = arith.constant 0 : index
    %754 = vector.load %arg5[%c4, %c0_506, %c0_507] : memref<8x208x128xf32, #tpu.memory_space<vmem>>, vector<1x8x128xf32>
    %755 = vector.shape_cast %754 : vector<1x8x128xf32> to vector<8x128xf32>
    %756 = tpu.concatenate %755, %755, %755, %755 in 1 : vector<8x128xf32>, vector<8x128xf32>, vector<8x128xf32>, vector<8x128xf32> -> vector<8x512xf32>
    %757 = arith.subf %753, %756 : vector<8x512xf32>
    %758 = math.absf %757 : vector<8x512xf32>
    %c8_508 = arith.constant 8 : index
    %c0_509 = arith.constant 0 : index
    %759 = vector.load %arg8[%c8_508, %c0_509] : memref<208x512xf32, #tpu.memory_space<vmem>>, vector<8x512xf32>
    %c4_510 = arith.constant 4 : index
    %c8_511 = arith.constant 8 : index
    %c0_512 = arith.constant 0 : index
    %760 = vector.load %arg5[%c4_510, %c8_511, %c0_512] : memref<8x208x128xf32, #tpu.memory_space<vmem>>, vector<1x8x128xf32>
    %761 = vector.shape_cast %760 : vector<1x8x128xf32> to vector<8x128xf32>
    %762 = tpu.concatenate %761, %761, %761, %761 in 1 : vector<8x128xf32>, vector<8x128xf32>, vector<8x128xf32>, vector<8x128xf32> -> vector<8x512xf32>
    %763 = arith.subf %759, %762 : vector<8x512xf32>
    %764 = math.absf %763 : vector<8x512xf32>
    %765 = arith.addf %758, %764 : vector<8x512xf32>
    %c16_513 = arith.constant 16 : index
    %c0_514 = arith.constant 0 : index
    %766 = vector.load %arg8[%c16_513, %c0_514] : memref<208x512xf32, #tpu.memory_space<vmem>>, vector<8x512xf32>
    %c4_515 = arith.constant 4 : index
    %c16_516 = arith.constant 16 : index
    %c0_517 = arith.constant 0 : index
    %767 = vector.load %arg5[%c4_515, %c16_516, %c0_517] : memref<8x208x128xf32, #tpu.memory_space<vmem>>, vector<1x8x128xf32>
    %768 = vector.shape_cast %767 : vector<1x8x128xf32> to vector<8x128xf32>
    %769 = tpu.concatenate %768, %768, %768, %768 in 1 : vector<8x128xf32>, vector<8x128xf32>, vector<8x128xf32>, vector<8x128xf32> -> vector<8x512xf32>
    %770 = arith.subf %766, %769 : vector<8x512xf32>
    %771 = math.absf %770 : vector<8x512xf32>
    %772 = arith.addf %765, %771 : vector<8x512xf32>
    %c24_518 = arith.constant 24 : index
    %c0_519 = arith.constant 0 : index
    %773 = vector.load %arg8[%c24_518, %c0_519] : memref<208x512xf32, #tpu.memory_space<vmem>>, vector<8x512xf32>
    %c4_520 = arith.constant 4 : index
    %c24_521 = arith.constant 24 : index
    %c0_522 = arith.constant 0 : index
    %774 = vector.load %arg5[%c4_520, %c24_521, %c0_522] : memref<8x208x128xf32, #tpu.memory_space<vmem>>, vector<1x8x128xf32>
    %775 = vector.shape_cast %774 : vector<1x8x128xf32> to vector<8x128xf32>
    %776 = tpu.concatenate %775, %775, %775, %775 in 1 : vector<8x128xf32>, vector<8x128xf32>, vector<8x128xf32>, vector<8x128xf32> -> vector<8x512xf32>
    %777 = arith.subf %773, %776 : vector<8x512xf32>
    %778 = math.absf %777 : vector<8x512xf32>
    %779 = arith.addf %772, %778 : vector<8x512xf32>
    %c32_523 = arith.constant 32 : index
    %c0_524 = arith.constant 0 : index
    %780 = vector.load %arg8[%c32_523, %c0_524] : memref<208x512xf32, #tpu.memory_space<vmem>>, vector<8x512xf32>
    %c4_525 = arith.constant 4 : index
    %c32_526 = arith.constant 32 : index
    %c0_527 = arith.constant 0 : index
    %781 = vector.load %arg5[%c4_525, %c32_526, %c0_527] : memref<8x208x128xf32, #tpu.memory_space<vmem>>, vector<1x8x128xf32>
    %782 = vector.shape_cast %781 : vector<1x8x128xf32> to vector<8x128xf32>
    %783 = tpu.concatenate %782, %782, %782, %782 in 1 : vector<8x128xf32>, vector<8x128xf32>, vector<8x128xf32>, vector<8x128xf32> -> vector<8x512xf32>
    %784 = arith.subf %780, %783 : vector<8x512xf32>
    %785 = math.absf %784 : vector<8x512xf32>
    %786 = arith.addf %779, %785 : vector<8x512xf32>
    %c40_528 = arith.constant 40 : index
    %c0_529 = arith.constant 0 : index
    %787 = vector.load %arg8[%c40_528, %c0_529] : memref<208x512xf32, #tpu.memory_space<vmem>>, vector<8x512xf32>
    %c4_530 = arith.constant 4 : index
    %c40_531 = arith.constant 40 : index
    %c0_532 = arith.constant 0 : index
    %788 = vector.load %arg5[%c4_530, %c40_531, %c0_532] : memref<8x208x128xf32, #tpu.memory_space<vmem>>, vector<1x8x128xf32>
    %789 = vector.shape_cast %788 : vector<1x8x128xf32> to vector<8x128xf32>
    %790 = tpu.concatenate %789, %789, %789, %789 in 1 : vector<8x128xf32>, vector<8x128xf32>, vector<8x128xf32>, vector<8x128xf32> -> vector<8x512xf32>
    %791 = arith.subf %787, %790 : vector<8x512xf32>
    %792 = math.absf %791 : vector<8x512xf32>
    %793 = arith.addf %786, %792 : vector<8x512xf32>
    %c48_533 = arith.constant 48 : index
    %c0_534 = arith.constant 0 : index
    %794 = vector.load %arg8[%c48_533, %c0_534] : memref<208x512xf32, #tpu.memory_space<vmem>>, vector<8x512xf32>
    %c4_535 = arith.constant 4 : index
    %c48_536 = arith.constant 48 : index
    %c0_537 = arith.constant 0 : index
    %795 = vector.load %arg5[%c4_535, %c48_536, %c0_537] : memref<8x208x128xf32, #tpu.memory_space<vmem>>, vector<1x8x128xf32>
    %796 = vector.shape_cast %795 : vector<1x8x128xf32> to vector<8x128xf32>
    %797 = tpu.concatenate %796, %796, %796, %796 in 1 : vector<8x128xf32>, vector<8x128xf32>, vector<8x128xf32>, vector<8x128xf32> -> vector<8x512xf32>
    %798 = arith.subf %794, %797 : vector<8x512xf32>
    %799 = math.absf %798 : vector<8x512xf32>
    %800 = arith.addf %793, %799 : vector<8x512xf32>
    %c56_538 = arith.constant 56 : index
    %c0_539 = arith.constant 0 : index
    %801 = vector.load %arg8[%c56_538, %c0_539] : memref<208x512xf32, #tpu.memory_space<vmem>>, vector<8x512xf32>
    %c4_540 = arith.constant 4 : index
    %c56_541 = arith.constant 56 : index
    %c0_542 = arith.constant 0 : index
    %802 = vector.load %arg5[%c4_540, %c56_541, %c0_542] : memref<8x208x128xf32, #tpu.memory_space<vmem>>, vector<1x8x128xf32>
    %803 = vector.shape_cast %802 : vector<1x8x128xf32> to vector<8x128xf32>
    %804 = tpu.concatenate %803, %803, %803, %803 in 1 : vector<8x128xf32>, vector<8x128xf32>, vector<8x128xf32>, vector<8x128xf32> -> vector<8x512xf32>
    %805 = arith.subf %801, %804 : vector<8x512xf32>
    %806 = math.absf %805 : vector<8x512xf32>
    %807 = arith.addf %800, %806 : vector<8x512xf32>
    %c64_543 = arith.constant 64 : index
    %c0_544 = arith.constant 0 : index
    %808 = vector.load %arg8[%c64_543, %c0_544] : memref<208x512xf32, #tpu.memory_space<vmem>>, vector<8x512xf32>
    %c4_545 = arith.constant 4 : index
    %c64_546 = arith.constant 64 : index
    %c0_547 = arith.constant 0 : index
    %809 = vector.load %arg5[%c4_545, %c64_546, %c0_547] : memref<8x208x128xf32, #tpu.memory_space<vmem>>, vector<1x8x128xf32>
    %810 = vector.shape_cast %809 : vector<1x8x128xf32> to vector<8x128xf32>
    %811 = tpu.concatenate %810, %810, %810, %810 in 1 : vector<8x128xf32>, vector<8x128xf32>, vector<8x128xf32>, vector<8x128xf32> -> vector<8x512xf32>
    %812 = arith.subf %808, %811 : vector<8x512xf32>
    %813 = math.absf %812 : vector<8x512xf32>
    %814 = arith.addf %807, %813 : vector<8x512xf32>
    %c72_548 = arith.constant 72 : index
    %c0_549 = arith.constant 0 : index
    %815 = vector.load %arg8[%c72_548, %c0_549] : memref<208x512xf32, #tpu.memory_space<vmem>>, vector<8x512xf32>
    %c4_550 = arith.constant 4 : index
    %c72_551 = arith.constant 72 : index
    %c0_552 = arith.constant 0 : index
    %816 = vector.load %arg5[%c4_550, %c72_551, %c0_552] : memref<8x208x128xf32, #tpu.memory_space<vmem>>, vector<1x8x128xf32>
    %817 = vector.shape_cast %816 : vector<1x8x128xf32> to vector<8x128xf32>
    %818 = tpu.concatenate %817, %817, %817, %817 in 1 : vector<8x128xf32>, vector<8x128xf32>, vector<8x128xf32>, vector<8x128xf32> -> vector<8x512xf32>
    %819 = arith.subf %815, %818 : vector<8x512xf32>
    %820 = math.absf %819 : vector<8x512xf32>
    %821 = arith.addf %814, %820 : vector<8x512xf32>
    %c80_553 = arith.constant 80 : index
    %c0_554 = arith.constant 0 : index
    %822 = vector.load %arg8[%c80_553, %c0_554] : memref<208x512xf32, #tpu.memory_space<vmem>>, vector<8x512xf32>
    %c4_555 = arith.constant 4 : index
    %c80_556 = arith.constant 80 : index
    %c0_557 = arith.constant 0 : index
    %823 = vector.load %arg5[%c4_555, %c80_556, %c0_557] : memref<8x208x128xf32, #tpu.memory_space<vmem>>, vector<1x8x128xf32>
    %824 = vector.shape_cast %823 : vector<1x8x128xf32> to vector<8x128xf32>
    %825 = tpu.concatenate %824, %824, %824, %824 in 1 : vector<8x128xf32>, vector<8x128xf32>, vector<8x128xf32>, vector<8x128xf32> -> vector<8x512xf32>
    %826 = arith.subf %822, %825 : vector<8x512xf32>
    %827 = math.absf %826 : vector<8x512xf32>
    %828 = arith.addf %821, %827 : vector<8x512xf32>
    %c88_558 = arith.constant 88 : index
    %c0_559 = arith.constant 0 : index
    %829 = vector.load %arg8[%c88_558, %c0_559] : memref<208x512xf32, #tpu.memory_space<vmem>>, vector<8x512xf32>
    %c4_560 = arith.constant 4 : index
    %c88_561 = arith.constant 88 : index
    %c0_562 = arith.constant 0 : index
    %830 = vector.load %arg5[%c4_560, %c88_561, %c0_562] : memref<8x208x128xf32, #tpu.memory_space<vmem>>, vector<1x8x128xf32>
    %831 = vector.shape_cast %830 : vector<1x8x128xf32> to vector<8x128xf32>
    %832 = tpu.concatenate %831, %831, %831, %831 in 1 : vector<8x128xf32>, vector<8x128xf32>, vector<8x128xf32>, vector<8x128xf32> -> vector<8x512xf32>
    %833 = arith.subf %829, %832 : vector<8x512xf32>
    %834 = math.absf %833 : vector<8x512xf32>
    %835 = arith.addf %828, %834 : vector<8x512xf32>
    %c96_563 = arith.constant 96 : index
    %c0_564 = arith.constant 0 : index
    %836 = vector.load %arg8[%c96_563, %c0_564] : memref<208x512xf32, #tpu.memory_space<vmem>>, vector<8x512xf32>
    %c4_565 = arith.constant 4 : index
    %c96_566 = arith.constant 96 : index
    %c0_567 = arith.constant 0 : index
    %837 = vector.load %arg5[%c4_565, %c96_566, %c0_567] : memref<8x208x128xf32, #tpu.memory_space<vmem>>, vector<1x8x128xf32>
    %838 = vector.shape_cast %837 : vector<1x8x128xf32> to vector<8x128xf32>
    %839 = tpu.concatenate %838, %838, %838, %838 in 1 : vector<8x128xf32>, vector<8x128xf32>, vector<8x128xf32>, vector<8x128xf32> -> vector<8x512xf32>
    %840 = arith.subf %836, %839 : vector<8x512xf32>
    %841 = math.absf %840 : vector<8x512xf32>
    %842 = arith.addf %835, %841 : vector<8x512xf32>
    %c104_568 = arith.constant 104 : index
    %c0_569 = arith.constant 0 : index
    %843 = vector.load %arg8[%c104_568, %c0_569] : memref<208x512xf32, #tpu.memory_space<vmem>>, vector<8x512xf32>
    %c4_570 = arith.constant 4 : index
    %c104_571 = arith.constant 104 : index
    %c0_572 = arith.constant 0 : index
    %844 = vector.load %arg5[%c4_570, %c104_571, %c0_572] : memref<8x208x128xf32, #tpu.memory_space<vmem>>, vector<1x8x128xf32>
    %845 = vector.shape_cast %844 : vector<1x8x128xf32> to vector<8x128xf32>
    %846 = tpu.concatenate %845, %845, %845, %845 in 1 : vector<8x128xf32>, vector<8x128xf32>, vector<8x128xf32>, vector<8x128xf32> -> vector<8x512xf32>
    %847 = arith.subf %843, %846 : vector<8x512xf32>
    %848 = math.absf %847 : vector<8x512xf32>
    %849 = arith.addf %842, %848 : vector<8x512xf32>
    %c112_573 = arith.constant 112 : index
    %c0_574 = arith.constant 0 : index
    %850 = vector.load %arg8[%c112_573, %c0_574] : memref<208x512xf32, #tpu.memory_space<vmem>>, vector<8x512xf32>
    %c4_575 = arith.constant 4 : index
    %c112_576 = arith.constant 112 : index
    %c0_577 = arith.constant 0 : index
    %851 = vector.load %arg5[%c4_575, %c112_576, %c0_577] : memref<8x208x128xf32, #tpu.memory_space<vmem>>, vector<1x8x128xf32>
    %852 = vector.shape_cast %851 : vector<1x8x128xf32> to vector<8x128xf32>
    %853 = tpu.concatenate %852, %852, %852, %852 in 1 : vector<8x128xf32>, vector<8x128xf32>, vector<8x128xf32>, vector<8x128xf32> -> vector<8x512xf32>
    %854 = arith.subf %850, %853 : vector<8x512xf32>
    %855 = math.absf %854 : vector<8x512xf32>
    %856 = arith.addf %849, %855 : vector<8x512xf32>
    %c120_578 = arith.constant 120 : index
    %c0_579 = arith.constant 0 : index
    %857 = vector.load %arg8[%c120_578, %c0_579] : memref<208x512xf32, #tpu.memory_space<vmem>>, vector<8x512xf32>
    %c4_580 = arith.constant 4 : index
    %c120_581 = arith.constant 120 : index
    %c0_582 = arith.constant 0 : index
    %858 = vector.load %arg5[%c4_580, %c120_581, %c0_582] : memref<8x208x128xf32, #tpu.memory_space<vmem>>, vector<1x8x128xf32>
    %859 = vector.shape_cast %858 : vector<1x8x128xf32> to vector<8x128xf32>
    %860 = tpu.concatenate %859, %859, %859, %859 in 1 : vector<8x128xf32>, vector<8x128xf32>, vector<8x128xf32>, vector<8x128xf32> -> vector<8x512xf32>
    %861 = arith.subf %857, %860 : vector<8x512xf32>
    %862 = math.absf %861 : vector<8x512xf32>
    %863 = arith.addf %856, %862 : vector<8x512xf32>
    %c128_583 = arith.constant 128 : index
    %c0_584 = arith.constant 0 : index
    %864 = vector.load %arg8[%c128_583, %c0_584] : memref<208x512xf32, #tpu.memory_space<vmem>>, vector<8x512xf32>
    %c4_585 = arith.constant 4 : index
    %c128_586 = arith.constant 128 : index
    %c0_587 = arith.constant 0 : index
    %865 = vector.load %arg5[%c4_585, %c128_586, %c0_587] : memref<8x208x128xf32, #tpu.memory_space<vmem>>, vector<1x8x128xf32>
    %866 = vector.shape_cast %865 : vector<1x8x128xf32> to vector<8x128xf32>
    %867 = tpu.concatenate %866, %866, %866, %866 in 1 : vector<8x128xf32>, vector<8x128xf32>, vector<8x128xf32>, vector<8x128xf32> -> vector<8x512xf32>
    %868 = arith.subf %864, %867 : vector<8x512xf32>
    %869 = math.absf %868 : vector<8x512xf32>
    %870 = arith.addf %863, %869 : vector<8x512xf32>
    %c136_588 = arith.constant 136 : index
    %c0_589 = arith.constant 0 : index
    %871 = vector.load %arg8[%c136_588, %c0_589] : memref<208x512xf32, #tpu.memory_space<vmem>>, vector<8x512xf32>
    %c4_590 = arith.constant 4 : index
    %c136_591 = arith.constant 136 : index
    %c0_592 = arith.constant 0 : index
    %872 = vector.load %arg5[%c4_590, %c136_591, %c0_592] : memref<8x208x128xf32, #tpu.memory_space<vmem>>, vector<1x8x128xf32>
    %873 = vector.shape_cast %872 : vector<1x8x128xf32> to vector<8x128xf32>
    %874 = tpu.concatenate %873, %873, %873, %873 in 1 : vector<8x128xf32>, vector<8x128xf32>, vector<8x128xf32>, vector<8x128xf32> -> vector<8x512xf32>
    %875 = arith.subf %871, %874 : vector<8x512xf32>
    %876 = math.absf %875 : vector<8x512xf32>
    %877 = arith.addf %870, %876 : vector<8x512xf32>
    %c144_593 = arith.constant 144 : index
    %c0_594 = arith.constant 0 : index
    %878 = vector.load %arg8[%c144_593, %c0_594] : memref<208x512xf32, #tpu.memory_space<vmem>>, vector<8x512xf32>
    %c4_595 = arith.constant 4 : index
    %c144_596 = arith.constant 144 : index
    %c0_597 = arith.constant 0 : index
    %879 = vector.load %arg5[%c4_595, %c144_596, %c0_597] : memref<8x208x128xf32, #tpu.memory_space<vmem>>, vector<1x8x128xf32>
    %880 = vector.shape_cast %879 : vector<1x8x128xf32> to vector<8x128xf32>
    %881 = tpu.concatenate %880, %880, %880, %880 in 1 : vector<8x128xf32>, vector<8x128xf32>, vector<8x128xf32>, vector<8x128xf32> -> vector<8x512xf32>
    %882 = arith.subf %878, %881 : vector<8x512xf32>
    %883 = math.absf %882 : vector<8x512xf32>
    %884 = arith.addf %877, %883 : vector<8x512xf32>
    %c152_598 = arith.constant 152 : index
    %c0_599 = arith.constant 0 : index
    %885 = vector.load %arg8[%c152_598, %c0_599] : memref<208x512xf32, #tpu.memory_space<vmem>>, vector<8x512xf32>
    %c4_600 = arith.constant 4 : index
    %c152_601 = arith.constant 152 : index
    %c0_602 = arith.constant 0 : index
    %886 = vector.load %arg5[%c4_600, %c152_601, %c0_602] : memref<8x208x128xf32, #tpu.memory_space<vmem>>, vector<1x8x128xf32>
    %887 = vector.shape_cast %886 : vector<1x8x128xf32> to vector<8x128xf32>
    %888 = tpu.concatenate %887, %887, %887, %887 in 1 : vector<8x128xf32>, vector<8x128xf32>, vector<8x128xf32>, vector<8x128xf32> -> vector<8x512xf32>
    %889 = arith.subf %885, %888 : vector<8x512xf32>
    %890 = math.absf %889 : vector<8x512xf32>
    %891 = arith.addf %884, %890 : vector<8x512xf32>
    %c160_603 = arith.constant 160 : index
    %c0_604 = arith.constant 0 : index
    %892 = vector.load %arg8[%c160_603, %c0_604] : memref<208x512xf32, #tpu.memory_space<vmem>>, vector<8x512xf32>
    %c4_605 = arith.constant 4 : index
    %c160_606 = arith.constant 160 : index
    %c0_607 = arith.constant 0 : index
    %893 = vector.load %arg5[%c4_605, %c160_606, %c0_607] : memref<8x208x128xf32, #tpu.memory_space<vmem>>, vector<1x8x128xf32>
    %894 = vector.shape_cast %893 : vector<1x8x128xf32> to vector<8x128xf32>
    %895 = tpu.concatenate %894, %894, %894, %894 in 1 : vector<8x128xf32>, vector<8x128xf32>, vector<8x128xf32>, vector<8x128xf32> -> vector<8x512xf32>
    %896 = arith.subf %892, %895 : vector<8x512xf32>
    %897 = math.absf %896 : vector<8x512xf32>
    %898 = arith.addf %891, %897 : vector<8x512xf32>
    %c168_608 = arith.constant 168 : index
    %c0_609 = arith.constant 0 : index
    %899 = vector.load %arg8[%c168_608, %c0_609] : memref<208x512xf32, #tpu.memory_space<vmem>>, vector<8x512xf32>
    %c4_610 = arith.constant 4 : index
    %c168_611 = arith.constant 168 : index
    %c0_612 = arith.constant 0 : index
    %900 = vector.load %arg5[%c4_610, %c168_611, %c0_612] : memref<8x208x128xf32, #tpu.memory_space<vmem>>, vector<1x8x128xf32>
    %901 = vector.shape_cast %900 : vector<1x8x128xf32> to vector<8x128xf32>
    %902 = tpu.concatenate %901, %901, %901, %901 in 1 : vector<8x128xf32>, vector<8x128xf32>, vector<8x128xf32>, vector<8x128xf32> -> vector<8x512xf32>
    %903 = arith.subf %899, %902 : vector<8x512xf32>
    %904 = math.absf %903 : vector<8x512xf32>
    %905 = arith.addf %898, %904 : vector<8x512xf32>
    %c176_613 = arith.constant 176 : index
    %c0_614 = arith.constant 0 : index
    %906 = vector.load %arg8[%c176_613, %c0_614] : memref<208x512xf32, #tpu.memory_space<vmem>>, vector<8x512xf32>
    %c4_615 = arith.constant 4 : index
    %c176_616 = arith.constant 176 : index
    %c0_617 = arith.constant 0 : index
    %907 = vector.load %arg5[%c4_615, %c176_616, %c0_617] : memref<8x208x128xf32, #tpu.memory_space<vmem>>, vector<1x8x128xf32>
    %908 = vector.shape_cast %907 : vector<1x8x128xf32> to vector<8x128xf32>
    %909 = tpu.concatenate %908, %908, %908, %908 in 1 : vector<8x128xf32>, vector<8x128xf32>, vector<8x128xf32>, vector<8x128xf32> -> vector<8x512xf32>
    %910 = arith.subf %906, %909 : vector<8x512xf32>
    %911 = math.absf %910 : vector<8x512xf32>
    %912 = arith.addf %905, %911 : vector<8x512xf32>
    %c184_618 = arith.constant 184 : index
    %c0_619 = arith.constant 0 : index
    %913 = vector.load %arg8[%c184_618, %c0_619] : memref<208x512xf32, #tpu.memory_space<vmem>>, vector<8x512xf32>
    %c4_620 = arith.constant 4 : index
    %c184_621 = arith.constant 184 : index
    %c0_622 = arith.constant 0 : index
    %914 = vector.load %arg5[%c4_620, %c184_621, %c0_622] : memref<8x208x128xf32, #tpu.memory_space<vmem>>, vector<1x8x128xf32>
    %915 = vector.shape_cast %914 : vector<1x8x128xf32> to vector<8x128xf32>
    %916 = tpu.concatenate %915, %915, %915, %915 in 1 : vector<8x128xf32>, vector<8x128xf32>, vector<8x128xf32>, vector<8x128xf32> -> vector<8x512xf32>
    %917 = arith.subf %913, %916 : vector<8x512xf32>
    %918 = math.absf %917 : vector<8x512xf32>
    %919 = arith.addf %912, %918 : vector<8x512xf32>
    %c192_623 = arith.constant 192 : index
    %c0_624 = arith.constant 0 : index
    %920 = vector.load %arg8[%c192_623, %c0_624] : memref<208x512xf32, #tpu.memory_space<vmem>>, vector<8x512xf32>
    %c4_625 = arith.constant 4 : index
    %c192_626 = arith.constant 192 : index
    %c0_627 = arith.constant 0 : index
    %921 = vector.load %arg5[%c4_625, %c192_626, %c0_627] : memref<8x208x128xf32, #tpu.memory_space<vmem>>, vector<1x8x128xf32>
    %922 = vector.shape_cast %921 : vector<1x8x128xf32> to vector<8x128xf32>
    %923 = tpu.concatenate %922, %922, %922, %922 in 1 : vector<8x128xf32>, vector<8x128xf32>, vector<8x128xf32>, vector<8x128xf32> -> vector<8x512xf32>
    %924 = arith.subf %920, %923 : vector<8x512xf32>
    %925 = math.absf %924 : vector<8x512xf32>
    %926 = arith.addf %919, %925 : vector<8x512xf32>
    %c200_628 = arith.constant 200 : index
    %c0_629 = arith.constant 0 : index
    %927 = vector.load %arg8[%c200_628, %c0_629] : memref<208x512xf32, #tpu.memory_space<vmem>>, vector<8x512xf32>
    %c4_630 = arith.constant 4 : index
    %c200_631 = arith.constant 200 : index
    %c0_632 = arith.constant 0 : index
    %928 = vector.load %arg5[%c4_630, %c200_631, %c0_632] : memref<8x208x128xf32, #tpu.memory_space<vmem>>, vector<1x8x128xf32>
    %929 = vector.shape_cast %928 : vector<1x8x128xf32> to vector<8x128xf32>
    %930 = tpu.concatenate %929, %929, %929, %929 in 1 : vector<8x128xf32>, vector<8x128xf32>, vector<8x128xf32>, vector<8x128xf32> -> vector<8x512xf32>
    %931 = arith.subf %927, %930 : vector<8x512xf32>
    %932 = math.absf %931 : vector<8x512xf32>
    %933 = arith.addf %926, %932 : vector<8x512xf32>
    %cst_633 = arith.constant dense<0.000000e+00> : vector<512xf32>
    %934 = vector.multi_reduction <add>, %933, %cst_633 [0] : vector<8x512xf32> to vector<512xf32>
    %935 = vector.shape_cast %934 : vector<512xf32> to vector<1x512xf32>
    %c0_634 = arith.constant 0 : index
    %c0_635 = arith.constant 0 : index
    %936 = vector.load %arg8[%c0_634, %c0_635] : memref<208x512xf32, #tpu.memory_space<vmem>>, vector<8x512xf32>
    %c5 = arith.constant 5 : index
    %c0_636 = arith.constant 0 : index
    %c0_637 = arith.constant 0 : index
    %937 = vector.load %arg5[%c5, %c0_636, %c0_637] : memref<8x208x128xf32, #tpu.memory_space<vmem>>, vector<1x8x128xf32>
    %938 = vector.shape_cast %937 : vector<1x8x128xf32> to vector<8x128xf32>
    %939 = tpu.concatenate %938, %938, %938, %938 in 1 : vector<8x128xf32>, vector<8x128xf32>, vector<8x128xf32>, vector<8x128xf32> -> vector<8x512xf32>
    %940 = arith.subf %936, %939 : vector<8x512xf32>
    %941 = math.absf %940 : vector<8x512xf32>
    %c8_638 = arith.constant 8 : index
    %c0_639 = arith.constant 0 : index
    %942 = vector.load %arg8[%c8_638, %c0_639] : memref<208x512xf32, #tpu.memory_space<vmem>>, vector<8x512xf32>
    %c5_640 = arith.constant 5 : index
    %c8_641 = arith.constant 8 : index
    %c0_642 = arith.constant 0 : index
    %943 = vector.load %arg5[%c5_640, %c8_641, %c0_642] : memref<8x208x128xf32, #tpu.memory_space<vmem>>, vector<1x8x128xf32>
    %944 = vector.shape_cast %943 : vector<1x8x128xf32> to vector<8x128xf32>
    %945 = tpu.concatenate %944, %944, %944, %944 in 1 : vector<8x128xf32>, vector<8x128xf32>, vector<8x128xf32>, vector<8x128xf32> -> vector<8x512xf32>
    %946 = arith.subf %942, %945 : vector<8x512xf32>
    %947 = math.absf %946 : vector<8x512xf32>
    %948 = arith.addf %941, %947 : vector<8x512xf32>
    %c16_643 = arith.constant 16 : index
    %c0_644 = arith.constant 0 : index
    %949 = vector.load %arg8[%c16_643, %c0_644] : memref<208x512xf32, #tpu.memory_space<vmem>>, vector<8x512xf32>
    %c5_645 = arith.constant 5 : index
    %c16_646 = arith.constant 16 : index
    %c0_647 = arith.constant 0 : index
    %950 = vector.load %arg5[%c5_645, %c16_646, %c0_647] : memref<8x208x128xf32, #tpu.memory_space<vmem>>, vector<1x8x128xf32>
    %951 = vector.shape_cast %950 : vector<1x8x128xf32> to vector<8x128xf32>
    %952 = tpu.concatenate %951, %951, %951, %951 in 1 : vector<8x128xf32>, vector<8x128xf32>, vector<8x128xf32>, vector<8x128xf32> -> vector<8x512xf32>
    %953 = arith.subf %949, %952 : vector<8x512xf32>
    %954 = math.absf %953 : vector<8x512xf32>
    %955 = arith.addf %948, %954 : vector<8x512xf32>
    %c24_648 = arith.constant 24 : index
    %c0_649 = arith.constant 0 : index
    %956 = vector.load %arg8[%c24_648, %c0_649] : memref<208x512xf32, #tpu.memory_space<vmem>>, vector<8x512xf32>
    %c5_650 = arith.constant 5 : index
    %c24_651 = arith.constant 24 : index
    %c0_652 = arith.constant 0 : index
    %957 = vector.load %arg5[%c5_650, %c24_651, %c0_652] : memref<8x208x128xf32, #tpu.memory_space<vmem>>, vector<1x8x128xf32>
    %958 = vector.shape_cast %957 : vector<1x8x128xf32> to vector<8x128xf32>
    %959 = tpu.concatenate %958, %958, %958, %958 in 1 : vector<8x128xf32>, vector<8x128xf32>, vector<8x128xf32>, vector<8x128xf32> -> vector<8x512xf32>
    %960 = arith.subf %956, %959 : vector<8x512xf32>
    %961 = math.absf %960 : vector<8x512xf32>
    %962 = arith.addf %955, %961 : vector<8x512xf32>
    %c32_653 = arith.constant 32 : index
    %c0_654 = arith.constant 0 : index
    %963 = vector.load %arg8[%c32_653, %c0_654] : memref<208x512xf32, #tpu.memory_space<vmem>>, vector<8x512xf32>
    %c5_655 = arith.constant 5 : index
    %c32_656 = arith.constant 32 : index
    %c0_657 = arith.constant 0 : index
    %964 = vector.load %arg5[%c5_655, %c32_656, %c0_657] : memref<8x208x128xf32, #tpu.memory_space<vmem>>, vector<1x8x128xf32>
    %965 = vector.shape_cast %964 : vector<1x8x128xf32> to vector<8x128xf32>
    %966 = tpu.concatenate %965, %965, %965, %965 in 1 : vector<8x128xf32>, vector<8x128xf32>, vector<8x128xf32>, vector<8x128xf32> -> vector<8x512xf32>
    %967 = arith.subf %963, %966 : vector<8x512xf32>
    %968 = math.absf %967 : vector<8x512xf32>
    %969 = arith.addf %962, %968 : vector<8x512xf32>
    %c40_658 = arith.constant 40 : index
    %c0_659 = arith.constant 0 : index
    %970 = vector.load %arg8[%c40_658, %c0_659] : memref<208x512xf32, #tpu.memory_space<vmem>>, vector<8x512xf32>
    %c5_660 = arith.constant 5 : index
    %c40_661 = arith.constant 40 : index
    %c0_662 = arith.constant 0 : index
    %971 = vector.load %arg5[%c5_660, %c40_661, %c0_662] : memref<8x208x128xf32, #tpu.memory_space<vmem>>, vector<1x8x128xf32>
    %972 = vector.shape_cast %971 : vector<1x8x128xf32> to vector<8x128xf32>
    %973 = tpu.concatenate %972, %972, %972, %972 in 1 : vector<8x128xf32>, vector<8x128xf32>, vector<8x128xf32>, vector<8x128xf32> -> vector<8x512xf32>
    %974 = arith.subf %970, %973 : vector<8x512xf32>
    %975 = math.absf %974 : vector<8x512xf32>
    %976 = arith.addf %969, %975 : vector<8x512xf32>
    %c48_663 = arith.constant 48 : index
    %c0_664 = arith.constant 0 : index
    %977 = vector.load %arg8[%c48_663, %c0_664] : memref<208x512xf32, #tpu.memory_space<vmem>>, vector<8x512xf32>
    %c5_665 = arith.constant 5 : index
    %c48_666 = arith.constant 48 : index
    %c0_667 = arith.constant 0 : index
    %978 = vector.load %arg5[%c5_665, %c48_666, %c0_667] : memref<8x208x128xf32, #tpu.memory_space<vmem>>, vector<1x8x128xf32>
    %979 = vector.shape_cast %978 : vector<1x8x128xf32> to vector<8x128xf32>
    %980 = tpu.concatenate %979, %979, %979, %979 in 1 : vector<8x128xf32>, vector<8x128xf32>, vector<8x128xf32>, vector<8x128xf32> -> vector<8x512xf32>
    %981 = arith.subf %977, %980 : vector<8x512xf32>
    %982 = math.absf %981 : vector<8x512xf32>
    %983 = arith.addf %976, %982 : vector<8x512xf32>
    %c56_668 = arith.constant 56 : index
    %c0_669 = arith.constant 0 : index
    %984 = vector.load %arg8[%c56_668, %c0_669] : memref<208x512xf32, #tpu.memory_space<vmem>>, vector<8x512xf32>
    %c5_670 = arith.constant 5 : index
    %c56_671 = arith.constant 56 : index
    %c0_672 = arith.constant 0 : index
    %985 = vector.load %arg5[%c5_670, %c56_671, %c0_672] : memref<8x208x128xf32, #tpu.memory_space<vmem>>, vector<1x8x128xf32>
    %986 = vector.shape_cast %985 : vector<1x8x128xf32> to vector<8x128xf32>
    %987 = tpu.concatenate %986, %986, %986, %986 in 1 : vector<8x128xf32>, vector<8x128xf32>, vector<8x128xf32>, vector<8x128xf32> -> vector<8x512xf32>
    %988 = arith.subf %984, %987 : vector<8x512xf32>
    %989 = math.absf %988 : vector<8x512xf32>
    %990 = arith.addf %983, %989 : vector<8x512xf32>
    %c64_673 = arith.constant 64 : index
    %c0_674 = arith.constant 0 : index
    %991 = vector.load %arg8[%c64_673, %c0_674] : memref<208x512xf32, #tpu.memory_space<vmem>>, vector<8x512xf32>
    %c5_675 = arith.constant 5 : index
    %c64_676 = arith.constant 64 : index
    %c0_677 = arith.constant 0 : index
    %992 = vector.load %arg5[%c5_675, %c64_676, %c0_677] : memref<8x208x128xf32, #tpu.memory_space<vmem>>, vector<1x8x128xf32>
    %993 = vector.shape_cast %992 : vector<1x8x128xf32> to vector<8x128xf32>
    %994 = tpu.concatenate %993, %993, %993, %993 in 1 : vector<8x128xf32>, vector<8x128xf32>, vector<8x128xf32>, vector<8x128xf32> -> vector<8x512xf32>
    %995 = arith.subf %991, %994 : vector<8x512xf32>
    %996 = math.absf %995 : vector<8x512xf32>
    %997 = arith.addf %990, %996 : vector<8x512xf32>
    %c72_678 = arith.constant 72 : index
    %c0_679 = arith.constant 0 : index
    %998 = vector.load %arg8[%c72_678, %c0_679] : memref<208x512xf32, #tpu.memory_space<vmem>>, vector<8x512xf32>
    %c5_680 = arith.constant 5 : index
    %c72_681 = arith.constant 72 : index
    %c0_682 = arith.constant 0 : index
    %999 = vector.load %arg5[%c5_680, %c72_681, %c0_682] : memref<8x208x128xf32, #tpu.memory_space<vmem>>, vector<1x8x128xf32>
    %1000 = vector.shape_cast %999 : vector<1x8x128xf32> to vector<8x128xf32>
    %1001 = tpu.concatenate %1000, %1000, %1000, %1000 in 1 : vector<8x128xf32>, vector<8x128xf32>, vector<8x128xf32>, vector<8x128xf32> -> vector<8x512xf32>
    %1002 = arith.subf %998, %1001 : vector<8x512xf32>
    %1003 = math.absf %1002 : vector<8x512xf32>
    %1004 = arith.addf %997, %1003 : vector<8x512xf32>
    %c80_683 = arith.constant 80 : index
    %c0_684 = arith.constant 0 : index
    %1005 = vector.load %arg8[%c80_683, %c0_684] : memref<208x512xf32, #tpu.memory_space<vmem>>, vector<8x512xf32>
    %c5_685 = arith.constant 5 : index
    %c80_686 = arith.constant 80 : index
    %c0_687 = arith.constant 0 : index
    %1006 = vector.load %arg5[%c5_685, %c80_686, %c0_687] : memref<8x208x128xf32, #tpu.memory_space<vmem>>, vector<1x8x128xf32>
    %1007 = vector.shape_cast %1006 : vector<1x8x128xf32> to vector<8x128xf32>
    %1008 = tpu.concatenate %1007, %1007, %1007, %1007 in 1 : vector<8x128xf32>, vector<8x128xf32>, vector<8x128xf32>, vector<8x128xf32> -> vector<8x512xf32>
    %1009 = arith.subf %1005, %1008 : vector<8x512xf32>
    %1010 = math.absf %1009 : vector<8x512xf32>
    %1011 = arith.addf %1004, %1010 : vector<8x512xf32>
    %c88_688 = arith.constant 88 : index
    %c0_689 = arith.constant 0 : index
    %1012 = vector.load %arg8[%c88_688, %c0_689] : memref<208x512xf32, #tpu.memory_space<vmem>>, vector<8x512xf32>
    %c5_690 = arith.constant 5 : index
    %c88_691 = arith.constant 88 : index
    %c0_692 = arith.constant 0 : index
    %1013 = vector.load %arg5[%c5_690, %c88_691, %c0_692] : memref<8x208x128xf32, #tpu.memory_space<vmem>>, vector<1x8x128xf32>
    %1014 = vector.shape_cast %1013 : vector<1x8x128xf32> to vector<8x128xf32>
    %1015 = tpu.concatenate %1014, %1014, %1014, %1014 in 1 : vector<8x128xf32>, vector<8x128xf32>, vector<8x128xf32>, vector<8x128xf32> -> vector<8x512xf32>
    %1016 = arith.subf %1012, %1015 : vector<8x512xf32>
    %1017 = math.absf %1016 : vector<8x512xf32>
    %1018 = arith.addf %1011, %1017 : vector<8x512xf32>
    %c96_693 = arith.constant 96 : index
    %c0_694 = arith.constant 0 : index
    %1019 = vector.load %arg8[%c96_693, %c0_694] : memref<208x512xf32, #tpu.memory_space<vmem>>, vector<8x512xf32>
    %c5_695 = arith.constant 5 : index
    %c96_696 = arith.constant 96 : index
    %c0_697 = arith.constant 0 : index
    %1020 = vector.load %arg5[%c5_695, %c96_696, %c0_697] : memref<8x208x128xf32, #tpu.memory_space<vmem>>, vector<1x8x128xf32>
    %1021 = vector.shape_cast %1020 : vector<1x8x128xf32> to vector<8x128xf32>
    %1022 = tpu.concatenate %1021, %1021, %1021, %1021 in 1 : vector<8x128xf32>, vector<8x128xf32>, vector<8x128xf32>, vector<8x128xf32> -> vector<8x512xf32>
    %1023 = arith.subf %1019, %1022 : vector<8x512xf32>
    %1024 = math.absf %1023 : vector<8x512xf32>
    %1025 = arith.addf %1018, %1024 : vector<8x512xf32>
    %c104_698 = arith.constant 104 : index
    %c0_699 = arith.constant 0 : index
    %1026 = vector.load %arg8[%c104_698, %c0_699] : memref<208x512xf32, #tpu.memory_space<vmem>>, vector<8x512xf32>
    %c5_700 = arith.constant 5 : index
    %c104_701 = arith.constant 104 : index
    %c0_702 = arith.constant 0 : index
    %1027 = vector.load %arg5[%c5_700, %c104_701, %c0_702] : memref<8x208x128xf32, #tpu.memory_space<vmem>>, vector<1x8x128xf32>
    %1028 = vector.shape_cast %1027 : vector<1x8x128xf32> to vector<8x128xf32>
    %1029 = tpu.concatenate %1028, %1028, %1028, %1028 in 1 : vector<8x128xf32>, vector<8x128xf32>, vector<8x128xf32>, vector<8x128xf32> -> vector<8x512xf32>
    %1030 = arith.subf %1026, %1029 : vector<8x512xf32>
    %1031 = math.absf %1030 : vector<8x512xf32>
    %1032 = arith.addf %1025, %1031 : vector<8x512xf32>
    %c112_703 = arith.constant 112 : index
    %c0_704 = arith.constant 0 : index
    %1033 = vector.load %arg8[%c112_703, %c0_704] : memref<208x512xf32, #tpu.memory_space<vmem>>, vector<8x512xf32>
    %c5_705 = arith.constant 5 : index
    %c112_706 = arith.constant 112 : index
    %c0_707 = arith.constant 0 : index
    %1034 = vector.load %arg5[%c5_705, %c112_706, %c0_707] : memref<8x208x128xf32, #tpu.memory_space<vmem>>, vector<1x8x128xf32>
    %1035 = vector.shape_cast %1034 : vector<1x8x128xf32> to vector<8x128xf32>
    %1036 = tpu.concatenate %1035, %1035, %1035, %1035 in 1 : vector<8x128xf32>, vector<8x128xf32>, vector<8x128xf32>, vector<8x128xf32> -> vector<8x512xf32>
    %1037 = arith.subf %1033, %1036 : vector<8x512xf32>
    %1038 = math.absf %1037 : vector<8x512xf32>
    %1039 = arith.addf %1032, %1038 : vector<8x512xf32>
    %c120_708 = arith.constant 120 : index
    %c0_709 = arith.constant 0 : index
    %1040 = vector.load %arg8[%c120_708, %c0_709] : memref<208x512xf32, #tpu.memory_space<vmem>>, vector<8x512xf32>
    %c5_710 = arith.constant 5 : index
    %c120_711 = arith.constant 120 : index
    %c0_712 = arith.constant 0 : index
    %1041 = vector.load %arg5[%c5_710, %c120_711, %c0_712] : memref<8x208x128xf32, #tpu.memory_space<vmem>>, vector<1x8x128xf32>
    %1042 = vector.shape_cast %1041 : vector<1x8x128xf32> to vector<8x128xf32>
    %1043 = tpu.concatenate %1042, %1042, %1042, %1042 in 1 : vector<8x128xf32>, vector<8x128xf32>, vector<8x128xf32>, vector<8x128xf32> -> vector<8x512xf32>
    %1044 = arith.subf %1040, %1043 : vector<8x512xf32>
    %1045 = math.absf %1044 : vector<8x512xf32>
    %1046 = arith.addf %1039, %1045 : vector<8x512xf32>
    %c128_713 = arith.constant 128 : index
    %c0_714 = arith.constant 0 : index
    %1047 = vector.load %arg8[%c128_713, %c0_714] : memref<208x512xf32, #tpu.memory_space<vmem>>, vector<8x512xf32>
    %c5_715 = arith.constant 5 : index
    %c128_716 = arith.constant 128 : index
    %c0_717 = arith.constant 0 : index
    %1048 = vector.load %arg5[%c5_715, %c128_716, %c0_717] : memref<8x208x128xf32, #tpu.memory_space<vmem>>, vector<1x8x128xf32>
    %1049 = vector.shape_cast %1048 : vector<1x8x128xf32> to vector<8x128xf32>
    %1050 = tpu.concatenate %1049, %1049, %1049, %1049 in 1 : vector<8x128xf32>, vector<8x128xf32>, vector<8x128xf32>, vector<8x128xf32> -> vector<8x512xf32>
    %1051 = arith.subf %1047, %1050 : vector<8x512xf32>
    %1052 = math.absf %1051 : vector<8x512xf32>
    %1053 = arith.addf %1046, %1052 : vector<8x512xf32>
    %c136_718 = arith.constant 136 : index
    %c0_719 = arith.constant 0 : index
    %1054 = vector.load %arg8[%c136_718, %c0_719] : memref<208x512xf32, #tpu.memory_space<vmem>>, vector<8x512xf32>
    %c5_720 = arith.constant 5 : index
    %c136_721 = arith.constant 136 : index
    %c0_722 = arith.constant 0 : index
    %1055 = vector.load %arg5[%c5_720, %c136_721, %c0_722] : memref<8x208x128xf32, #tpu.memory_space<vmem>>, vector<1x8x128xf32>
    %1056 = vector.shape_cast %1055 : vector<1x8x128xf32> to vector<8x128xf32>
    %1057 = tpu.concatenate %1056, %1056, %1056, %1056 in 1 : vector<8x128xf32>, vector<8x128xf32>, vector<8x128xf32>, vector<8x128xf32> -> vector<8x512xf32>
    %1058 = arith.subf %1054, %1057 : vector<8x512xf32>
    %1059 = math.absf %1058 : vector<8x512xf32>
    %1060 = arith.addf %1053, %1059 : vector<8x512xf32>
    %c144_723 = arith.constant 144 : index
    %c0_724 = arith.constant 0 : index
    %1061 = vector.load %arg8[%c144_723, %c0_724] : memref<208x512xf32, #tpu.memory_space<vmem>>, vector<8x512xf32>
    %c5_725 = arith.constant 5 : index
    %c144_726 = arith.constant 144 : index
    %c0_727 = arith.constant 0 : index
    %1062 = vector.load %arg5[%c5_725, %c144_726, %c0_727] : memref<8x208x128xf32, #tpu.memory_space<vmem>>, vector<1x8x128xf32>
    %1063 = vector.shape_cast %1062 : vector<1x8x128xf32> to vector<8x128xf32>
    %1064 = tpu.concatenate %1063, %1063, %1063, %1063 in 1 : vector<8x128xf32>, vector<8x128xf32>, vector<8x128xf32>, vector<8x128xf32> -> vector<8x512xf32>
    %1065 = arith.subf %1061, %1064 : vector<8x512xf32>
    %1066 = math.absf %1065 : vector<8x512xf32>
    %1067 = arith.addf %1060, %1066 : vector<8x512xf32>
    %c152_728 = arith.constant 152 : index
    %c0_729 = arith.constant 0 : index
    %1068 = vector.load %arg8[%c152_728, %c0_729] : memref<208x512xf32, #tpu.memory_space<vmem>>, vector<8x512xf32>
    %c5_730 = arith.constant 5 : index
    %c152_731 = arith.constant 152 : index
    %c0_732 = arith.constant 0 : index
    %1069 = vector.load %arg5[%c5_730, %c152_731, %c0_732] : memref<8x208x128xf32, #tpu.memory_space<vmem>>, vector<1x8x128xf32>
    %1070 = vector.shape_cast %1069 : vector<1x8x128xf32> to vector<8x128xf32>
    %1071 = tpu.concatenate %1070, %1070, %1070, %1070 in 1 : vector<8x128xf32>, vector<8x128xf32>, vector<8x128xf32>, vector<8x128xf32> -> vector<8x512xf32>
    %1072 = arith.subf %1068, %1071 : vector<8x512xf32>
    %1073 = math.absf %1072 : vector<8x512xf32>
    %1074 = arith.addf %1067, %1073 : vector<8x512xf32>
    %c160_733 = arith.constant 160 : index
    %c0_734 = arith.constant 0 : index
    %1075 = vector.load %arg8[%c160_733, %c0_734] : memref<208x512xf32, #tpu.memory_space<vmem>>, vector<8x512xf32>
    %c5_735 = arith.constant 5 : index
    %c160_736 = arith.constant 160 : index
    %c0_737 = arith.constant 0 : index
    %1076 = vector.load %arg5[%c5_735, %c160_736, %c0_737] : memref<8x208x128xf32, #tpu.memory_space<vmem>>, vector<1x8x128xf32>
    %1077 = vector.shape_cast %1076 : vector<1x8x128xf32> to vector<8x128xf32>
    %1078 = tpu.concatenate %1077, %1077, %1077, %1077 in 1 : vector<8x128xf32>, vector<8x128xf32>, vector<8x128xf32>, vector<8x128xf32> -> vector<8x512xf32>
    %1079 = arith.subf %1075, %1078 : vector<8x512xf32>
    %1080 = math.absf %1079 : vector<8x512xf32>
    %1081 = arith.addf %1074, %1080 : vector<8x512xf32>
    %c168_738 = arith.constant 168 : index
    %c0_739 = arith.constant 0 : index
    %1082 = vector.load %arg8[%c168_738, %c0_739] : memref<208x512xf32, #tpu.memory_space<vmem>>, vector<8x512xf32>
    %c5_740 = arith.constant 5 : index
    %c168_741 = arith.constant 168 : index
    %c0_742 = arith.constant 0 : index
    %1083 = vector.load %arg5[%c5_740, %c168_741, %c0_742] : memref<8x208x128xf32, #tpu.memory_space<vmem>>, vector<1x8x128xf32>
    %1084 = vector.shape_cast %1083 : vector<1x8x128xf32> to vector<8x128xf32>
    %1085 = tpu.concatenate %1084, %1084, %1084, %1084 in 1 : vector<8x128xf32>, vector<8x128xf32>, vector<8x128xf32>, vector<8x128xf32> -> vector<8x512xf32>
    %1086 = arith.subf %1082, %1085 : vector<8x512xf32>
    %1087 = math.absf %1086 : vector<8x512xf32>
    %1088 = arith.addf %1081, %1087 : vector<8x512xf32>
    %c176_743 = arith.constant 176 : index
    %c0_744 = arith.constant 0 : index
    %1089 = vector.load %arg8[%c176_743, %c0_744] : memref<208x512xf32, #tpu.memory_space<vmem>>, vector<8x512xf32>
    %c5_745 = arith.constant 5 : index
    %c176_746 = arith.constant 176 : index
    %c0_747 = arith.constant 0 : index
    %1090 = vector.load %arg5[%c5_745, %c176_746, %c0_747] : memref<8x208x128xf32, #tpu.memory_space<vmem>>, vector<1x8x128xf32>
    %1091 = vector.shape_cast %1090 : vector<1x8x128xf32> to vector<8x128xf32>
    %1092 = tpu.concatenate %1091, %1091, %1091, %1091 in 1 : vector<8x128xf32>, vector<8x128xf32>, vector<8x128xf32>, vector<8x128xf32> -> vector<8x512xf32>
    %1093 = arith.subf %1089, %1092 : vector<8x512xf32>
    %1094 = math.absf %1093 : vector<8x512xf32>
    %1095 = arith.addf %1088, %1094 : vector<8x512xf32>
    %c184_748 = arith.constant 184 : index
    %c0_749 = arith.constant 0 : index
    %1096 = vector.load %arg8[%c184_748, %c0_749] : memref<208x512xf32, #tpu.memory_space<vmem>>, vector<8x512xf32>
    %c5_750 = arith.constant 5 : index
    %c184_751 = arith.constant 184 : index
    %c0_752 = arith.constant 0 : index
    %1097 = vector.load %arg5[%c5_750, %c184_751, %c0_752] : memref<8x208x128xf32, #tpu.memory_space<vmem>>, vector<1x8x128xf32>
    %1098 = vector.shape_cast %1097 : vector<1x8x128xf32> to vector<8x128xf32>
    %1099 = tpu.concatenate %1098, %1098, %1098, %1098 in 1 : vector<8x128xf32>, vector<8x128xf32>, vector<8x128xf32>, vector<8x128xf32> -> vector<8x512xf32>
    %1100 = arith.subf %1096, %1099 : vector<8x512xf32>
    %1101 = math.absf %1100 : vector<8x512xf32>
    %1102 = arith.addf %1095, %1101 : vector<8x512xf32>
    %c192_753 = arith.constant 192 : index
    %c0_754 = arith.constant 0 : index
    %1103 = vector.load %arg8[%c192_753, %c0_754] : memref<208x512xf32, #tpu.memory_space<vmem>>, vector<8x512xf32>
    %c5_755 = arith.constant 5 : index
    %c192_756 = arith.constant 192 : index
    %c0_757 = arith.constant 0 : index
    %1104 = vector.load %arg5[%c5_755, %c192_756, %c0_757] : memref<8x208x128xf32, #tpu.memory_space<vmem>>, vector<1x8x128xf32>
    %1105 = vector.shape_cast %1104 : vector<1x8x128xf32> to vector<8x128xf32>
    %1106 = tpu.concatenate %1105, %1105, %1105, %1105 in 1 : vector<8x128xf32>, vector<8x128xf32>, vector<8x128xf32>, vector<8x128xf32> -> vector<8x512xf32>
    %1107 = arith.subf %1103, %1106 : vector<8x512xf32>
    %1108 = math.absf %1107 : vector<8x512xf32>
    %1109 = arith.addf %1102, %1108 : vector<8x512xf32>
    %c200_758 = arith.constant 200 : index
    %c0_759 = arith.constant 0 : index
    %1110 = vector.load %arg8[%c200_758, %c0_759] : memref<208x512xf32, #tpu.memory_space<vmem>>, vector<8x512xf32>
    %c5_760 = arith.constant 5 : index
    %c200_761 = arith.constant 200 : index
    %c0_762 = arith.constant 0 : index
    %1111 = vector.load %arg5[%c5_760, %c200_761, %c0_762] : memref<8x208x128xf32, #tpu.memory_space<vmem>>, vector<1x8x128xf32>
    %1112 = vector.shape_cast %1111 : vector<1x8x128xf32> to vector<8x128xf32>
    %1113 = tpu.concatenate %1112, %1112, %1112, %1112 in 1 : vector<8x128xf32>, vector<8x128xf32>, vector<8x128xf32>, vector<8x128xf32> -> vector<8x512xf32>
    %1114 = arith.subf %1110, %1113 : vector<8x512xf32>
    %1115 = math.absf %1114 : vector<8x512xf32>
    %1116 = arith.addf %1109, %1115 : vector<8x512xf32>
    %cst_763 = arith.constant dense<0.000000e+00> : vector<512xf32>
    %1117 = vector.multi_reduction <add>, %1116, %cst_763 [0] : vector<8x512xf32> to vector<512xf32>
    %1118 = vector.shape_cast %1117 : vector<512xf32> to vector<1x512xf32>
    %c0_764 = arith.constant 0 : index
    %c0_765 = arith.constant 0 : index
    %1119 = vector.load %arg8[%c0_764, %c0_765] : memref<208x512xf32, #tpu.memory_space<vmem>>, vector<8x512xf32>
    %c6 = arith.constant 6 : index
    %c0_766 = arith.constant 0 : index
    %c0_767 = arith.constant 0 : index
    %1120 = vector.load %arg5[%c6, %c0_766, %c0_767] : memref<8x208x128xf32, #tpu.memory_space<vmem>>, vector<1x8x128xf32>
    %1121 = vector.shape_cast %1120 : vector<1x8x128xf32> to vector<8x128xf32>
    %1122 = tpu.concatenate %1121, %1121, %1121, %1121 in 1 : vector<8x128xf32>, vector<8x128xf32>, vector<8x128xf32>, vector<8x128xf32> -> vector<8x512xf32>
    %1123 = arith.subf %1119, %1122 : vector<8x512xf32>
    %1124 = math.absf %1123 : vector<8x512xf32>
    %c8_768 = arith.constant 8 : index
    %c0_769 = arith.constant 0 : index
    %1125 = vector.load %arg8[%c8_768, %c0_769] : memref<208x512xf32, #tpu.memory_space<vmem>>, vector<8x512xf32>
    %c6_770 = arith.constant 6 : index
    %c8_771 = arith.constant 8 : index
    %c0_772 = arith.constant 0 : index
    %1126 = vector.load %arg5[%c6_770, %c8_771, %c0_772] : memref<8x208x128xf32, #tpu.memory_space<vmem>>, vector<1x8x128xf32>
    %1127 = vector.shape_cast %1126 : vector<1x8x128xf32> to vector<8x128xf32>
    %1128 = tpu.concatenate %1127, %1127, %1127, %1127 in 1 : vector<8x128xf32>, vector<8x128xf32>, vector<8x128xf32>, vector<8x128xf32> -> vector<8x512xf32>
    %1129 = arith.subf %1125, %1128 : vector<8x512xf32>
    %1130 = math.absf %1129 : vector<8x512xf32>
    %1131 = arith.addf %1124, %1130 : vector<8x512xf32>
    %c16_773 = arith.constant 16 : index
    %c0_774 = arith.constant 0 : index
    %1132 = vector.load %arg8[%c16_773, %c0_774] : memref<208x512xf32, #tpu.memory_space<vmem>>, vector<8x512xf32>
    %c6_775 = arith.constant 6 : index
    %c16_776 = arith.constant 16 : index
    %c0_777 = arith.constant 0 : index
    %1133 = vector.load %arg5[%c6_775, %c16_776, %c0_777] : memref<8x208x128xf32, #tpu.memory_space<vmem>>, vector<1x8x128xf32>
    %1134 = vector.shape_cast %1133 : vector<1x8x128xf32> to vector<8x128xf32>
    %1135 = tpu.concatenate %1134, %1134, %1134, %1134 in 1 : vector<8x128xf32>, vector<8x128xf32>, vector<8x128xf32>, vector<8x128xf32> -> vector<8x512xf32>
    %1136 = arith.subf %1132, %1135 : vector<8x512xf32>
    %1137 = math.absf %1136 : vector<8x512xf32>
    %1138 = arith.addf %1131, %1137 : vector<8x512xf32>
    %c24_778 = arith.constant 24 : index
    %c0_779 = arith.constant 0 : index
    %1139 = vector.load %arg8[%c24_778, %c0_779] : memref<208x512xf32, #tpu.memory_space<vmem>>, vector<8x512xf32>
    %c6_780 = arith.constant 6 : index
    %c24_781 = arith.constant 24 : index
    %c0_782 = arith.constant 0 : index
    %1140 = vector.load %arg5[%c6_780, %c24_781, %c0_782] : memref<8x208x128xf32, #tpu.memory_space<vmem>>, vector<1x8x128xf32>
    %1141 = vector.shape_cast %1140 : vector<1x8x128xf32> to vector<8x128xf32>
    %1142 = tpu.concatenate %1141, %1141, %1141, %1141 in 1 : vector<8x128xf32>, vector<8x128xf32>, vector<8x128xf32>, vector<8x128xf32> -> vector<8x512xf32>
    %1143 = arith.subf %1139, %1142 : vector<8x512xf32>
    %1144 = math.absf %1143 : vector<8x512xf32>
    %1145 = arith.addf %1138, %1144 : vector<8x512xf32>
    %c32_783 = arith.constant 32 : index
    %c0_784 = arith.constant 0 : index
    %1146 = vector.load %arg8[%c32_783, %c0_784] : memref<208x512xf32, #tpu.memory_space<vmem>>, vector<8x512xf32>
    %c6_785 = arith.constant 6 : index
    %c32_786 = arith.constant 32 : index
    %c0_787 = arith.constant 0 : index
    %1147 = vector.load %arg5[%c6_785, %c32_786, %c0_787] : memref<8x208x128xf32, #tpu.memory_space<vmem>>, vector<1x8x128xf32>
    %1148 = vector.shape_cast %1147 : vector<1x8x128xf32> to vector<8x128xf32>
    %1149 = tpu.concatenate %1148, %1148, %1148, %1148 in 1 : vector<8x128xf32>, vector<8x128xf32>, vector<8x128xf32>, vector<8x128xf32> -> vector<8x512xf32>
    %1150 = arith.subf %1146, %1149 : vector<8x512xf32>
    %1151 = math.absf %1150 : vector<8x512xf32>
    %1152 = arith.addf %1145, %1151 : vector<8x512xf32>
    %c40_788 = arith.constant 40 : index
    %c0_789 = arith.constant 0 : index
    %1153 = vector.load %arg8[%c40_788, %c0_789] : memref<208x512xf32, #tpu.memory_space<vmem>>, vector<8x512xf32>
    %c6_790 = arith.constant 6 : index
    %c40_791 = arith.constant 40 : index
    %c0_792 = arith.constant 0 : index
    %1154 = vector.load %arg5[%c6_790, %c40_791, %c0_792] : memref<8x208x128xf32, #tpu.memory_space<vmem>>, vector<1x8x128xf32>
    %1155 = vector.shape_cast %1154 : vector<1x8x128xf32> to vector<8x128xf32>
    %1156 = tpu.concatenate %1155, %1155, %1155, %1155 in 1 : vector<8x128xf32>, vector<8x128xf32>, vector<8x128xf32>, vector<8x128xf32> -> vector<8x512xf32>
    %1157 = arith.subf %1153, %1156 : vector<8x512xf32>
    %1158 = math.absf %1157 : vector<8x512xf32>
    %1159 = arith.addf %1152, %1158 : vector<8x512xf32>
    %c48_793 = arith.constant 48 : index
    %c0_794 = arith.constant 0 : index
    %1160 = vector.load %arg8[%c48_793, %c0_794] : memref<208x512xf32, #tpu.memory_space<vmem>>, vector<8x512xf32>
    %c6_795 = arith.constant 6 : index
    %c48_796 = arith.constant 48 : index
    %c0_797 = arith.constant 0 : index
    %1161 = vector.load %arg5[%c6_795, %c48_796, %c0_797] : memref<8x208x128xf32, #tpu.memory_space<vmem>>, vector<1x8x128xf32>
    %1162 = vector.shape_cast %1161 : vector<1x8x128xf32> to vector<8x128xf32>
    %1163 = tpu.concatenate %1162, %1162, %1162, %1162 in 1 : vector<8x128xf32>, vector<8x128xf32>, vector<8x128xf32>, vector<8x128xf32> -> vector<8x512xf32>
    %1164 = arith.subf %1160, %1163 : vector<8x512xf32>
    %1165 = math.absf %1164 : vector<8x512xf32>
    %1166 = arith.addf %1159, %1165 : vector<8x512xf32>
    %c56_798 = arith.constant 56 : index
    %c0_799 = arith.constant 0 : index
    %1167 = vector.load %arg8[%c56_798, %c0_799] : memref<208x512xf32, #tpu.memory_space<vmem>>, vector<8x512xf32>
    %c6_800 = arith.constant 6 : index
    %c56_801 = arith.constant 56 : index
    %c0_802 = arith.constant 0 : index
    %1168 = vector.load %arg5[%c6_800, %c56_801, %c0_802] : memref<8x208x128xf32, #tpu.memory_space<vmem>>, vector<1x8x128xf32>
    %1169 = vector.shape_cast %1168 : vector<1x8x128xf32> to vector<8x128xf32>
    %1170 = tpu.concatenate %1169, %1169, %1169, %1169 in 1 : vector<8x128xf32>, vector<8x128xf32>, vector<8x128xf32>, vector<8x128xf32> -> vector<8x512xf32>
    %1171 = arith.subf %1167, %1170 : vector<8x512xf32>
    %1172 = math.absf %1171 : vector<8x512xf32>
    %1173 = arith.addf %1166, %1172 : vector<8x512xf32>
    %c64_803 = arith.constant 64 : index
    %c0_804 = arith.constant 0 : index
    %1174 = vector.load %arg8[%c64_803, %c0_804] : memref<208x512xf32, #tpu.memory_space<vmem>>, vector<8x512xf32>
    %c6_805 = arith.constant 6 : index
    %c64_806 = arith.constant 64 : index
    %c0_807 = arith.constant 0 : index
    %1175 = vector.load %arg5[%c6_805, %c64_806, %c0_807] : memref<8x208x128xf32, #tpu.memory_space<vmem>>, vector<1x8x128xf32>
    %1176 = vector.shape_cast %1175 : vector<1x8x128xf32> to vector<8x128xf32>
    %1177 = tpu.concatenate %1176, %1176, %1176, %1176 in 1 : vector<8x128xf32>, vector<8x128xf32>, vector<8x128xf32>, vector<8x128xf32> -> vector<8x512xf32>
    %1178 = arith.subf %1174, %1177 : vector<8x512xf32>
    %1179 = math.absf %1178 : vector<8x512xf32>
    %1180 = arith.addf %1173, %1179 : vector<8x512xf32>
    %c72_808 = arith.constant 72 : index
    %c0_809 = arith.constant 0 : index
    %1181 = vector.load %arg8[%c72_808, %c0_809] : memref<208x512xf32, #tpu.memory_space<vmem>>, vector<8x512xf32>
    %c6_810 = arith.constant 6 : index
    %c72_811 = arith.constant 72 : index
    %c0_812 = arith.constant 0 : index
    %1182 = vector.load %arg5[%c6_810, %c72_811, %c0_812] : memref<8x208x128xf32, #tpu.memory_space<vmem>>, vector<1x8x128xf32>
    %1183 = vector.shape_cast %1182 : vector<1x8x128xf32> to vector<8x128xf32>
    %1184 = tpu.concatenate %1183, %1183, %1183, %1183 in 1 : vector<8x128xf32>, vector<8x128xf32>, vector<8x128xf32>, vector<8x128xf32> -> vector<8x512xf32>
    %1185 = arith.subf %1181, %1184 : vector<8x512xf32>
    %1186 = math.absf %1185 : vector<8x512xf32>
    %1187 = arith.addf %1180, %1186 : vector<8x512xf32>
    %c80_813 = arith.constant 80 : index
    %c0_814 = arith.constant 0 : index
    %1188 = vector.load %arg8[%c80_813, %c0_814] : memref<208x512xf32, #tpu.memory_space<vmem>>, vector<8x512xf32>
    %c6_815 = arith.constant 6 : index
    %c80_816 = arith.constant 80 : index
    %c0_817 = arith.constant 0 : index
    %1189 = vector.load %arg5[%c6_815, %c80_816, %c0_817] : memref<8x208x128xf32, #tpu.memory_space<vmem>>, vector<1x8x128xf32>
    %1190 = vector.shape_cast %1189 : vector<1x8x128xf32> to vector<8x128xf32>
    %1191 = tpu.concatenate %1190, %1190, %1190, %1190 in 1 : vector<8x128xf32>, vector<8x128xf32>, vector<8x128xf32>, vector<8x128xf32> -> vector<8x512xf32>
    %1192 = arith.subf %1188, %1191 : vector<8x512xf32>
    %1193 = math.absf %1192 : vector<8x512xf32>
    %1194 = arith.addf %1187, %1193 : vector<8x512xf32>
    %c88_818 = arith.constant 88 : index
    %c0_819 = arith.constant 0 : index
    %1195 = vector.load %arg8[%c88_818, %c0_819] : memref<208x512xf32, #tpu.memory_space<vmem>>, vector<8x512xf32>
    %c6_820 = arith.constant 6 : index
    %c88_821 = arith.constant 88 : index
    %c0_822 = arith.constant 0 : index
    %1196 = vector.load %arg5[%c6_820, %c88_821, %c0_822] : memref<8x208x128xf32, #tpu.memory_space<vmem>>, vector<1x8x128xf32>
    %1197 = vector.shape_cast %1196 : vector<1x8x128xf32> to vector<8x128xf32>
    %1198 = tpu.concatenate %1197, %1197, %1197, %1197 in 1 : vector<8x128xf32>, vector<8x128xf32>, vector<8x128xf32>, vector<8x128xf32> -> vector<8x512xf32>
    %1199 = arith.subf %1195, %1198 : vector<8x512xf32>
    %1200 = math.absf %1199 : vector<8x512xf32>
    %1201 = arith.addf %1194, %1200 : vector<8x512xf32>
    %c96_823 = arith.constant 96 : index
    %c0_824 = arith.constant 0 : index
    %1202 = vector.load %arg8[%c96_823, %c0_824] : memref<208x512xf32, #tpu.memory_space<vmem>>, vector<8x512xf32>
    %c6_825 = arith.constant 6 : index
    %c96_826 = arith.constant 96 : index
    %c0_827 = arith.constant 0 : index
    %1203 = vector.load %arg5[%c6_825, %c96_826, %c0_827] : memref<8x208x128xf32, #tpu.memory_space<vmem>>, vector<1x8x128xf32>
    %1204 = vector.shape_cast %1203 : vector<1x8x128xf32> to vector<8x128xf32>
    %1205 = tpu.concatenate %1204, %1204, %1204, %1204 in 1 : vector<8x128xf32>, vector<8x128xf32>, vector<8x128xf32>, vector<8x128xf32> -> vector<8x512xf32>
    %1206 = arith.subf %1202, %1205 : vector<8x512xf32>
    %1207 = math.absf %1206 : vector<8x512xf32>
    %1208 = arith.addf %1201, %1207 : vector<8x512xf32>
    %c104_828 = arith.constant 104 : index
    %c0_829 = arith.constant 0 : index
    %1209 = vector.load %arg8[%c104_828, %c0_829] : memref<208x512xf32, #tpu.memory_space<vmem>>, vector<8x512xf32>
    %c6_830 = arith.constant 6 : index
    %c104_831 = arith.constant 104 : index
    %c0_832 = arith.constant 0 : index
    %1210 = vector.load %arg5[%c6_830, %c104_831, %c0_832] : memref<8x208x128xf32, #tpu.memory_space<vmem>>, vector<1x8x128xf32>
    %1211 = vector.shape_cast %1210 : vector<1x8x128xf32> to vector<8x128xf32>
    %1212 = tpu.concatenate %1211, %1211, %1211, %1211 in 1 : vector<8x128xf32>, vector<8x128xf32>, vector<8x128xf32>, vector<8x128xf32> -> vector<8x512xf32>
    %1213 = arith.subf %1209, %1212 : vector<8x512xf32>
    %1214 = math.absf %1213 : vector<8x512xf32>
    %1215 = arith.addf %1208, %1214 : vector<8x512xf32>
    %c112_833 = arith.constant 112 : index
    %c0_834 = arith.constant 0 : index
    %1216 = vector.load %arg8[%c112_833, %c0_834] : memref<208x512xf32, #tpu.memory_space<vmem>>, vector<8x512xf32>
    %c6_835 = arith.constant 6 : index
    %c112_836 = arith.constant 112 : index
    %c0_837 = arith.constant 0 : index
    %1217 = vector.load %arg5[%c6_835, %c112_836, %c0_837] : memref<8x208x128xf32, #tpu.memory_space<vmem>>, vector<1x8x128xf32>
    %1218 = vector.shape_cast %1217 : vector<1x8x128xf32> to vector<8x128xf32>
    %1219 = tpu.concatenate %1218, %1218, %1218, %1218 in 1 : vector<8x128xf32>, vector<8x128xf32>, vector<8x128xf32>, vector<8x128xf32> -> vector<8x512xf32>
    %1220 = arith.subf %1216, %1219 : vector<8x512xf32>
    %1221 = math.absf %1220 : vector<8x512xf32>
    %1222 = arith.addf %1215, %1221 : vector<8x512xf32>
    %c120_838 = arith.constant 120 : index
    %c0_839 = arith.constant 0 : index
    %1223 = vector.load %arg8[%c120_838, %c0_839] : memref<208x512xf32, #tpu.memory_space<vmem>>, vector<8x512xf32>
    %c6_840 = arith.constant 6 : index
    %c120_841 = arith.constant 120 : index
    %c0_842 = arith.constant 0 : index
    %1224 = vector.load %arg5[%c6_840, %c120_841, %c0_842] : memref<8x208x128xf32, #tpu.memory_space<vmem>>, vector<1x8x128xf32>
    %1225 = vector.shape_cast %1224 : vector<1x8x128xf32> to vector<8x128xf32>
    %1226 = tpu.concatenate %1225, %1225, %1225, %1225 in 1 : vector<8x128xf32>, vector<8x128xf32>, vector<8x128xf32>, vector<8x128xf32> -> vector<8x512xf32>
    %1227 = arith.subf %1223, %1226 : vector<8x512xf32>
    %1228 = math.absf %1227 : vector<8x512xf32>
    %1229 = arith.addf %1222, %1228 : vector<8x512xf32>
    %c128_843 = arith.constant 128 : index
    %c0_844 = arith.constant 0 : index
    %1230 = vector.load %arg8[%c128_843, %c0_844] : memref<208x512xf32, #tpu.memory_space<vmem>>, vector<8x512xf32>
    %c6_845 = arith.constant 6 : index
    %c128_846 = arith.constant 128 : index
    %c0_847 = arith.constant 0 : index
    %1231 = vector.load %arg5[%c6_845, %c128_846, %c0_847] : memref<8x208x128xf32, #tpu.memory_space<vmem>>, vector<1x8x128xf32>
    %1232 = vector.shape_cast %1231 : vector<1x8x128xf32> to vector<8x128xf32>
    %1233 = tpu.concatenate %1232, %1232, %1232, %1232 in 1 : vector<8x128xf32>, vector<8x128xf32>, vector<8x128xf32>, vector<8x128xf32> -> vector<8x512xf32>
    %1234 = arith.subf %1230, %1233 : vector<8x512xf32>
    %1235 = math.absf %1234 : vector<8x512xf32>
    %1236 = arith.addf %1229, %1235 : vector<8x512xf32>
    %c136_848 = arith.constant 136 : index
    %c0_849 = arith.constant 0 : index
    %1237 = vector.load %arg8[%c136_848, %c0_849] : memref<208x512xf32, #tpu.memory_space<vmem>>, vector<8x512xf32>
    %c6_850 = arith.constant 6 : index
    %c136_851 = arith.constant 136 : index
    %c0_852 = arith.constant 0 : index
    %1238 = vector.load %arg5[%c6_850, %c136_851, %c0_852] : memref<8x208x128xf32, #tpu.memory_space<vmem>>, vector<1x8x128xf32>
    %1239 = vector.shape_cast %1238 : vector<1x8x128xf32> to vector<8x128xf32>
    %1240 = tpu.concatenate %1239, %1239, %1239, %1239 in 1 : vector<8x128xf32>, vector<8x128xf32>, vector<8x128xf32>, vector<8x128xf32> -> vector<8x512xf32>
    %1241 = arith.subf %1237, %1240 : vector<8x512xf32>
    %1242 = math.absf %1241 : vector<8x512xf32>
    %1243 = arith.addf %1236, %1242 : vector<8x512xf32>
    %c144_853 = arith.constant 144 : index
    %c0_854 = arith.constant 0 : index
    %1244 = vector.load %arg8[%c144_853, %c0_854] : memref<208x512xf32, #tpu.memory_space<vmem>>, vector<8x512xf32>
    %c6_855 = arith.constant 6 : index
    %c144_856 = arith.constant 144 : index
    %c0_857 = arith.constant 0 : index
    %1245 = vector.load %arg5[%c6_855, %c144_856, %c0_857] : memref<8x208x128xf32, #tpu.memory_space<vmem>>, vector<1x8x128xf32>
    %1246 = vector.shape_cast %1245 : vector<1x8x128xf32> to vector<8x128xf32>
    %1247 = tpu.concatenate %1246, %1246, %1246, %1246 in 1 : vector<8x128xf32>, vector<8x128xf32>, vector<8x128xf32>, vector<8x128xf32> -> vector<8x512xf32>
    %1248 = arith.subf %1244, %1247 : vector<8x512xf32>
    %1249 = math.absf %1248 : vector<8x512xf32>
    %1250 = arith.addf %1243, %1249 : vector<8x512xf32>
    %c152_858 = arith.constant 152 : index
    %c0_859 = arith.constant 0 : index
    %1251 = vector.load %arg8[%c152_858, %c0_859] : memref<208x512xf32, #tpu.memory_space<vmem>>, vector<8x512xf32>
    %c6_860 = arith.constant 6 : index
    %c152_861 = arith.constant 152 : index
    %c0_862 = arith.constant 0 : index
    %1252 = vector.load %arg5[%c6_860, %c152_861, %c0_862] : memref<8x208x128xf32, #tpu.memory_space<vmem>>, vector<1x8x128xf32>
    %1253 = vector.shape_cast %1252 : vector<1x8x128xf32> to vector<8x128xf32>
    %1254 = tpu.concatenate %1253, %1253, %1253, %1253 in 1 : vector<8x128xf32>, vector<8x128xf32>, vector<8x128xf32>, vector<8x128xf32> -> vector<8x512xf32>
    %1255 = arith.subf %1251, %1254 : vector<8x512xf32>
    %1256 = math.absf %1255 : vector<8x512xf32>
    %1257 = arith.addf %1250, %1256 : vector<8x512xf32>
    %c160_863 = arith.constant 160 : index
    %c0_864 = arith.constant 0 : index
    %1258 = vector.load %arg8[%c160_863, %c0_864] : memref<208x512xf32, #tpu.memory_space<vmem>>, vector<8x512xf32>
    %c6_865 = arith.constant 6 : index
    %c160_866 = arith.constant 160 : index
    %c0_867 = arith.constant 0 : index
    %1259 = vector.load %arg5[%c6_865, %c160_866, %c0_867] : memref<8x208x128xf32, #tpu.memory_space<vmem>>, vector<1x8x128xf32>
    %1260 = vector.shape_cast %1259 : vector<1x8x128xf32> to vector<8x128xf32>
    %1261 = tpu.concatenate %1260, %1260, %1260, %1260 in 1 : vector<8x128xf32>, vector<8x128xf32>, vector<8x128xf32>, vector<8x128xf32> -> vector<8x512xf32>
    %1262 = arith.subf %1258, %1261 : vector<8x512xf32>
    %1263 = math.absf %1262 : vector<8x512xf32>
    %1264 = arith.addf %1257, %1263 : vector<8x512xf32>
    %c168_868 = arith.constant 168 : index
    %c0_869 = arith.constant 0 : index
    %1265 = vector.load %arg8[%c168_868, %c0_869] : memref<208x512xf32, #tpu.memory_space<vmem>>, vector<8x512xf32>
    %c6_870 = arith.constant 6 : index
    %c168_871 = arith.constant 168 : index
    %c0_872 = arith.constant 0 : index
    %1266 = vector.load %arg5[%c6_870, %c168_871, %c0_872] : memref<8x208x128xf32, #tpu.memory_space<vmem>>, vector<1x8x128xf32>
    %1267 = vector.shape_cast %1266 : vector<1x8x128xf32> to vector<8x128xf32>
    %1268 = tpu.concatenate %1267, %1267, %1267, %1267 in 1 : vector<8x128xf32>, vector<8x128xf32>, vector<8x128xf32>, vector<8x128xf32> -> vector<8x512xf32>
    %1269 = arith.subf %1265, %1268 : vector<8x512xf32>
    %1270 = math.absf %1269 : vector<8x512xf32>
    %1271 = arith.addf %1264, %1270 : vector<8x512xf32>
    %c176_873 = arith.constant 176 : index
    %c0_874 = arith.constant 0 : index
    %1272 = vector.load %arg8[%c176_873, %c0_874] : memref<208x512xf32, #tpu.memory_space<vmem>>, vector<8x512xf32>
    %c6_875 = arith.constant 6 : index
    %c176_876 = arith.constant 176 : index
    %c0_877 = arith.constant 0 : index
    %1273 = vector.load %arg5[%c6_875, %c176_876, %c0_877] : memref<8x208x128xf32, #tpu.memory_space<vmem>>, vector<1x8x128xf32>
    %1274 = vector.shape_cast %1273 : vector<1x8x128xf32> to vector<8x128xf32>
    %1275 = tpu.concatenate %1274, %1274, %1274, %1274 in 1 : vector<8x128xf32>, vector<8x128xf32>, vector<8x128xf32>, vector<8x128xf32> -> vector<8x512xf32>
    %1276 = arith.subf %1272, %1275 : vector<8x512xf32>
    %1277 = math.absf %1276 : vector<8x512xf32>
    %1278 = arith.addf %1271, %1277 : vector<8x512xf32>
    %c184_878 = arith.constant 184 : index
    %c0_879 = arith.constant 0 : index
    %1279 = vector.load %arg8[%c184_878, %c0_879] : memref<208x512xf32, #tpu.memory_space<vmem>>, vector<8x512xf32>
    %c6_880 = arith.constant 6 : index
    %c184_881 = arith.constant 184 : index
    %c0_882 = arith.constant 0 : index
    %1280 = vector.load %arg5[%c6_880, %c184_881, %c0_882] : memref<8x208x128xf32, #tpu.memory_space<vmem>>, vector<1x8x128xf32>
    %1281 = vector.shape_cast %1280 : vector<1x8x128xf32> to vector<8x128xf32>
    %1282 = tpu.concatenate %1281, %1281, %1281, %1281 in 1 : vector<8x128xf32>, vector<8x128xf32>, vector<8x128xf32>, vector<8x128xf32> -> vector<8x512xf32>
    %1283 = arith.subf %1279, %1282 : vector<8x512xf32>
    %1284 = math.absf %1283 : vector<8x512xf32>
    %1285 = arith.addf %1278, %1284 : vector<8x512xf32>
    %c192_883 = arith.constant 192 : index
    %c0_884 = arith.constant 0 : index
    %1286 = vector.load %arg8[%c192_883, %c0_884] : memref<208x512xf32, #tpu.memory_space<vmem>>, vector<8x512xf32>
    %c6_885 = arith.constant 6 : index
    %c192_886 = arith.constant 192 : index
    %c0_887 = arith.constant 0 : index
    %1287 = vector.load %arg5[%c6_885, %c192_886, %c0_887] : memref<8x208x128xf32, #tpu.memory_space<vmem>>, vector<1x8x128xf32>
    %1288 = vector.shape_cast %1287 : vector<1x8x128xf32> to vector<8x128xf32>
    %1289 = tpu.concatenate %1288, %1288, %1288, %1288 in 1 : vector<8x128xf32>, vector<8x128xf32>, vector<8x128xf32>, vector<8x128xf32> -> vector<8x512xf32>
    %1290 = arith.subf %1286, %1289 : vector<8x512xf32>
    %1291 = math.absf %1290 : vector<8x512xf32>
    %1292 = arith.addf %1285, %1291 : vector<8x512xf32>
    %c200_888 = arith.constant 200 : index
    %c0_889 = arith.constant 0 : index
    %1293 = vector.load %arg8[%c200_888, %c0_889] : memref<208x512xf32, #tpu.memory_space<vmem>>, vector<8x512xf32>
    %c6_890 = arith.constant 6 : index
    %c200_891 = arith.constant 200 : index
    %c0_892 = arith.constant 0 : index
    %1294 = vector.load %arg5[%c6_890, %c200_891, %c0_892] : memref<8x208x128xf32, #tpu.memory_space<vmem>>, vector<1x8x128xf32>
    %1295 = vector.shape_cast %1294 : vector<1x8x128xf32> to vector<8x128xf32>
    %1296 = tpu.concatenate %1295, %1295, %1295, %1295 in 1 : vector<8x128xf32>, vector<8x128xf32>, vector<8x128xf32>, vector<8x128xf32> -> vector<8x512xf32>
    %1297 = arith.subf %1293, %1296 : vector<8x512xf32>
    %1298 = math.absf %1297 : vector<8x512xf32>
    %1299 = arith.addf %1292, %1298 : vector<8x512xf32>
    %cst_893 = arith.constant dense<0.000000e+00> : vector<512xf32>
    %1300 = vector.multi_reduction <add>, %1299, %cst_893 [0] : vector<8x512xf32> to vector<512xf32>
    %1301 = vector.shape_cast %1300 : vector<512xf32> to vector<1x512xf32>
    %c0_894 = arith.constant 0 : index
    %c0_895 = arith.constant 0 : index
    %1302 = vector.load %arg8[%c0_894, %c0_895] : memref<208x512xf32, #tpu.memory_space<vmem>>, vector<8x512xf32>
    %c7 = arith.constant 7 : index
    %c0_896 = arith.constant 0 : index
    %c0_897 = arith.constant 0 : index
    %1303 = vector.load %arg5[%c7, %c0_896, %c0_897] : memref<8x208x128xf32, #tpu.memory_space<vmem>>, vector<1x8x128xf32>
    %1304 = vector.shape_cast %1303 : vector<1x8x128xf32> to vector<8x128xf32>
    %1305 = tpu.concatenate %1304, %1304, %1304, %1304 in 1 : vector<8x128xf32>, vector<8x128xf32>, vector<8x128xf32>, vector<8x128xf32> -> vector<8x512xf32>
    %1306 = arith.subf %1302, %1305 : vector<8x512xf32>
    %1307 = math.absf %1306 : vector<8x512xf32>
    %c8_898 = arith.constant 8 : index
    %c0_899 = arith.constant 0 : index
    %1308 = vector.load %arg8[%c8_898, %c0_899] : memref<208x512xf32, #tpu.memory_space<vmem>>, vector<8x512xf32>
    %c7_900 = arith.constant 7 : index
    %c8_901 = arith.constant 8 : index
    %c0_902 = arith.constant 0 : index
    %1309 = vector.load %arg5[%c7_900, %c8_901, %c0_902] : memref<8x208x128xf32, #tpu.memory_space<vmem>>, vector<1x8x128xf32>
    %1310 = vector.shape_cast %1309 : vector<1x8x128xf32> to vector<8x128xf32>
    %1311 = tpu.concatenate %1310, %1310, %1310, %1310 in 1 : vector<8x128xf32>, vector<8x128xf32>, vector<8x128xf32>, vector<8x128xf32> -> vector<8x512xf32>
    %1312 = arith.subf %1308, %1311 : vector<8x512xf32>
    %1313 = math.absf %1312 : vector<8x512xf32>
    %1314 = arith.addf %1307, %1313 : vector<8x512xf32>
    %c16_903 = arith.constant 16 : index
    %c0_904 = arith.constant 0 : index
    %1315 = vector.load %arg8[%c16_903, %c0_904] : memref<208x512xf32, #tpu.memory_space<vmem>>, vector<8x512xf32>
    %c7_905 = arith.constant 7 : index
    %c16_906 = arith.constant 16 : index
    %c0_907 = arith.constant 0 : index
    %1316 = vector.load %arg5[%c7_905, %c16_906, %c0_907] : memref<8x208x128xf32, #tpu.memory_space<vmem>>, vector<1x8x128xf32>
    %1317 = vector.shape_cast %1316 : vector<1x8x128xf32> to vector<8x128xf32>
    %1318 = tpu.concatenate %1317, %1317, %1317, %1317 in 1 : vector<8x128xf32>, vector<8x128xf32>, vector<8x128xf32>, vector<8x128xf32> -> vector<8x512xf32>
    %1319 = arith.subf %1315, %1318 : vector<8x512xf32>
    %1320 = math.absf %1319 : vector<8x512xf32>
    %1321 = arith.addf %1314, %1320 : vector<8x512xf32>
    %c24_908 = arith.constant 24 : index
    %c0_909 = arith.constant 0 : index
    %1322 = vector.load %arg8[%c24_908, %c0_909] : memref<208x512xf32, #tpu.memory_space<vmem>>, vector<8x512xf32>
    %c7_910 = arith.constant 7 : index
    %c24_911 = arith.constant 24 : index
    %c0_912 = arith.constant 0 : index
    %1323 = vector.load %arg5[%c7_910, %c24_911, %c0_912] : memref<8x208x128xf32, #tpu.memory_space<vmem>>, vector<1x8x128xf32>
    %1324 = vector.shape_cast %1323 : vector<1x8x128xf32> to vector<8x128xf32>
    %1325 = tpu.concatenate %1324, %1324, %1324, %1324 in 1 : vector<8x128xf32>, vector<8x128xf32>, vector<8x128xf32>, vector<8x128xf32> -> vector<8x512xf32>
    %1326 = arith.subf %1322, %1325 : vector<8x512xf32>
    %1327 = math.absf %1326 : vector<8x512xf32>
    %1328 = arith.addf %1321, %1327 : vector<8x512xf32>
    %c32_913 = arith.constant 32 : index
    %c0_914 = arith.constant 0 : index
    %1329 = vector.load %arg8[%c32_913, %c0_914] : memref<208x512xf32, #tpu.memory_space<vmem>>, vector<8x512xf32>
    %c7_915 = arith.constant 7 : index
    %c32_916 = arith.constant 32 : index
    %c0_917 = arith.constant 0 : index
    %1330 = vector.load %arg5[%c7_915, %c32_916, %c0_917] : memref<8x208x128xf32, #tpu.memory_space<vmem>>, vector<1x8x128xf32>
    %1331 = vector.shape_cast %1330 : vector<1x8x128xf32> to vector<8x128xf32>
    %1332 = tpu.concatenate %1331, %1331, %1331, %1331 in 1 : vector<8x128xf32>, vector<8x128xf32>, vector<8x128xf32>, vector<8x128xf32> -> vector<8x512xf32>
    %1333 = arith.subf %1329, %1332 : vector<8x512xf32>
    %1334 = math.absf %1333 : vector<8x512xf32>
    %1335 = arith.addf %1328, %1334 : vector<8x512xf32>
    %c40_918 = arith.constant 40 : index
    %c0_919 = arith.constant 0 : index
    %1336 = vector.load %arg8[%c40_918, %c0_919] : memref<208x512xf32, #tpu.memory_space<vmem>>, vector<8x512xf32>
    %c7_920 = arith.constant 7 : index
    %c40_921 = arith.constant 40 : index
    %c0_922 = arith.constant 0 : index
    %1337 = vector.load %arg5[%c7_920, %c40_921, %c0_922] : memref<8x208x128xf32, #tpu.memory_space<vmem>>, vector<1x8x128xf32>
    %1338 = vector.shape_cast %1337 : vector<1x8x128xf32> to vector<8x128xf32>
    %1339 = tpu.concatenate %1338, %1338, %1338, %1338 in 1 : vector<8x128xf32>, vector<8x128xf32>, vector<8x128xf32>, vector<8x128xf32> -> vector<8x512xf32>
    %1340 = arith.subf %1336, %1339 : vector<8x512xf32>
    %1341 = math.absf %1340 : vector<8x512xf32>
    %1342 = arith.addf %1335, %1341 : vector<8x512xf32>
    %c48_923 = arith.constant 48 : index
    %c0_924 = arith.constant 0 : index
    %1343 = vector.load %arg8[%c48_923, %c0_924] : memref<208x512xf32, #tpu.memory_space<vmem>>, vector<8x512xf32>
    %c7_925 = arith.constant 7 : index
    %c48_926 = arith.constant 48 : index
    %c0_927 = arith.constant 0 : index
    %1344 = vector.load %arg5[%c7_925, %c48_926, %c0_927] : memref<8x208x128xf32, #tpu.memory_space<vmem>>, vector<1x8x128xf32>
    %1345 = vector.shape_cast %1344 : vector<1x8x128xf32> to vector<8x128xf32>
    %1346 = tpu.concatenate %1345, %1345, %1345, %1345 in 1 : vector<8x128xf32>, vector<8x128xf32>, vector<8x128xf32>, vector<8x128xf32> -> vector<8x512xf32>
    %1347 = arith.subf %1343, %1346 : vector<8x512xf32>
    %1348 = math.absf %1347 : vector<8x512xf32>
    %1349 = arith.addf %1342, %1348 : vector<8x512xf32>
    %c56_928 = arith.constant 56 : index
    %c0_929 = arith.constant 0 : index
    %1350 = vector.load %arg8[%c56_928, %c0_929] : memref<208x512xf32, #tpu.memory_space<vmem>>, vector<8x512xf32>
    %c7_930 = arith.constant 7 : index
    %c56_931 = arith.constant 56 : index
    %c0_932 = arith.constant 0 : index
    %1351 = vector.load %arg5[%c7_930, %c56_931, %c0_932] : memref<8x208x128xf32, #tpu.memory_space<vmem>>, vector<1x8x128xf32>
    %1352 = vector.shape_cast %1351 : vector<1x8x128xf32> to vector<8x128xf32>
    %1353 = tpu.concatenate %1352, %1352, %1352, %1352 in 1 : vector<8x128xf32>, vector<8x128xf32>, vector<8x128xf32>, vector<8x128xf32> -> vector<8x512xf32>
    %1354 = arith.subf %1350, %1353 : vector<8x512xf32>
    %1355 = math.absf %1354 : vector<8x512xf32>
    %1356 = arith.addf %1349, %1355 : vector<8x512xf32>
    %c64_933 = arith.constant 64 : index
    %c0_934 = arith.constant 0 : index
    %1357 = vector.load %arg8[%c64_933, %c0_934] : memref<208x512xf32, #tpu.memory_space<vmem>>, vector<8x512xf32>
    %c7_935 = arith.constant 7 : index
    %c64_936 = arith.constant 64 : index
    %c0_937 = arith.constant 0 : index
    %1358 = vector.load %arg5[%c7_935, %c64_936, %c0_937] : memref<8x208x128xf32, #tpu.memory_space<vmem>>, vector<1x8x128xf32>
    %1359 = vector.shape_cast %1358 : vector<1x8x128xf32> to vector<8x128xf32>
    %1360 = tpu.concatenate %1359, %1359, %1359, %1359 in 1 : vector<8x128xf32>, vector<8x128xf32>, vector<8x128xf32>, vector<8x128xf32> -> vector<8x512xf32>
    %1361 = arith.subf %1357, %1360 : vector<8x512xf32>
    %1362 = math.absf %1361 : vector<8x512xf32>
    %1363 = arith.addf %1356, %1362 : vector<8x512xf32>
    %c72_938 = arith.constant 72 : index
    %c0_939 = arith.constant 0 : index
    %1364 = vector.load %arg8[%c72_938, %c0_939] : memref<208x512xf32, #tpu.memory_space<vmem>>, vector<8x512xf32>
    %c7_940 = arith.constant 7 : index
    %c72_941 = arith.constant 72 : index
    %c0_942 = arith.constant 0 : index
    %1365 = vector.load %arg5[%c7_940, %c72_941, %c0_942] : memref<8x208x128xf32, #tpu.memory_space<vmem>>, vector<1x8x128xf32>
    %1366 = vector.shape_cast %1365 : vector<1x8x128xf32> to vector<8x128xf32>
    %1367 = tpu.concatenate %1366, %1366, %1366, %1366 in 1 : vector<8x128xf32>, vector<8x128xf32>, vector<8x128xf32>, vector<8x128xf32> -> vector<8x512xf32>
    %1368 = arith.subf %1364, %1367 : vector<8x512xf32>
    %1369 = math.absf %1368 : vector<8x512xf32>
    %1370 = arith.addf %1363, %1369 : vector<8x512xf32>
    %c80_943 = arith.constant 80 : index
    %c0_944 = arith.constant 0 : index
    %1371 = vector.load %arg8[%c80_943, %c0_944] : memref<208x512xf32, #tpu.memory_space<vmem>>, vector<8x512xf32>
    %c7_945 = arith.constant 7 : index
    %c80_946 = arith.constant 80 : index
    %c0_947 = arith.constant 0 : index
    %1372 = vector.load %arg5[%c7_945, %c80_946, %c0_947] : memref<8x208x128xf32, #tpu.memory_space<vmem>>, vector<1x8x128xf32>
    %1373 = vector.shape_cast %1372 : vector<1x8x128xf32> to vector<8x128xf32>
    %1374 = tpu.concatenate %1373, %1373, %1373, %1373 in 1 : vector<8x128xf32>, vector<8x128xf32>, vector<8x128xf32>, vector<8x128xf32> -> vector<8x512xf32>
    %1375 = arith.subf %1371, %1374 : vector<8x512xf32>
    %1376 = math.absf %1375 : vector<8x512xf32>
    %1377 = arith.addf %1370, %1376 : vector<8x512xf32>
    %c88_948 = arith.constant 88 : index
    %c0_949 = arith.constant 0 : index
    %1378 = vector.load %arg8[%c88_948, %c0_949] : memref<208x512xf32, #tpu.memory_space<vmem>>, vector<8x512xf32>
    %c7_950 = arith.constant 7 : index
    %c88_951 = arith.constant 88 : index
    %c0_952 = arith.constant 0 : index
    %1379 = vector.load %arg5[%c7_950, %c88_951, %c0_952] : memref<8x208x128xf32, #tpu.memory_space<vmem>>, vector<1x8x128xf32>
    %1380 = vector.shape_cast %1379 : vector<1x8x128xf32> to vector<8x128xf32>
    %1381 = tpu.concatenate %1380, %1380, %1380, %1380 in 1 : vector<8x128xf32>, vector<8x128xf32>, vector<8x128xf32>, vector<8x128xf32> -> vector<8x512xf32>
    %1382 = arith.subf %1378, %1381 : vector<8x512xf32>
    %1383 = math.absf %1382 : vector<8x512xf32>
    %1384 = arith.addf %1377, %1383 : vector<8x512xf32>
    %c96_953 = arith.constant 96 : index
    %c0_954 = arith.constant 0 : index
    %1385 = vector.load %arg8[%c96_953, %c0_954] : memref<208x512xf32, #tpu.memory_space<vmem>>, vector<8x512xf32>
    %c7_955 = arith.constant 7 : index
    %c96_956 = arith.constant 96 : index
    %c0_957 = arith.constant 0 : index
    %1386 = vector.load %arg5[%c7_955, %c96_956, %c0_957] : memref<8x208x128xf32, #tpu.memory_space<vmem>>, vector<1x8x128xf32>
    %1387 = vector.shape_cast %1386 : vector<1x8x128xf32> to vector<8x128xf32>
    %1388 = tpu.concatenate %1387, %1387, %1387, %1387 in 1 : vector<8x128xf32>, vector<8x128xf32>, vector<8x128xf32>, vector<8x128xf32> -> vector<8x512xf32>
    %1389 = arith.subf %1385, %1388 : vector<8x512xf32>
    %1390 = math.absf %1389 : vector<8x512xf32>
    %1391 = arith.addf %1384, %1390 : vector<8x512xf32>
    %c104_958 = arith.constant 104 : index
    %c0_959 = arith.constant 0 : index
    %1392 = vector.load %arg8[%c104_958, %c0_959] : memref<208x512xf32, #tpu.memory_space<vmem>>, vector<8x512xf32>
    %c7_960 = arith.constant 7 : index
    %c104_961 = arith.constant 104 : index
    %c0_962 = arith.constant 0 : index
    %1393 = vector.load %arg5[%c7_960, %c104_961, %c0_962] : memref<8x208x128xf32, #tpu.memory_space<vmem>>, vector<1x8x128xf32>
    %1394 = vector.shape_cast %1393 : vector<1x8x128xf32> to vector<8x128xf32>
    %1395 = tpu.concatenate %1394, %1394, %1394, %1394 in 1 : vector<8x128xf32>, vector<8x128xf32>, vector<8x128xf32>, vector<8x128xf32> -> vector<8x512xf32>
    %1396 = arith.subf %1392, %1395 : vector<8x512xf32>
    %1397 = math.absf %1396 : vector<8x512xf32>
    %1398 = arith.addf %1391, %1397 : vector<8x512xf32>
    %c112_963 = arith.constant 112 : index
    %c0_964 = arith.constant 0 : index
    %1399 = vector.load %arg8[%c112_963, %c0_964] : memref<208x512xf32, #tpu.memory_space<vmem>>, vector<8x512xf32>
    %c7_965 = arith.constant 7 : index
    %c112_966 = arith.constant 112 : index
    %c0_967 = arith.constant 0 : index
    %1400 = vector.load %arg5[%c7_965, %c112_966, %c0_967] : memref<8x208x128xf32, #tpu.memory_space<vmem>>, vector<1x8x128xf32>
    %1401 = vector.shape_cast %1400 : vector<1x8x128xf32> to vector<8x128xf32>
    %1402 = tpu.concatenate %1401, %1401, %1401, %1401 in 1 : vector<8x128xf32>, vector<8x128xf32>, vector<8x128xf32>, vector<8x128xf32> -> vector<8x512xf32>
    %1403 = arith.subf %1399, %1402 : vector<8x512xf32>
    %1404 = math.absf %1403 : vector<8x512xf32>
    %1405 = arith.addf %1398, %1404 : vector<8x512xf32>
    %c120_968 = arith.constant 120 : index
    %c0_969 = arith.constant 0 : index
    %1406 = vector.load %arg8[%c120_968, %c0_969] : memref<208x512xf32, #tpu.memory_space<vmem>>, vector<8x512xf32>
    %c7_970 = arith.constant 7 : index
    %c120_971 = arith.constant 120 : index
    %c0_972 = arith.constant 0 : index
    %1407 = vector.load %arg5[%c7_970, %c120_971, %c0_972] : memref<8x208x128xf32, #tpu.memory_space<vmem>>, vector<1x8x128xf32>
    %1408 = vector.shape_cast %1407 : vector<1x8x128xf32> to vector<8x128xf32>
    %1409 = tpu.concatenate %1408, %1408, %1408, %1408 in 1 : vector<8x128xf32>, vector<8x128xf32>, vector<8x128xf32>, vector<8x128xf32> -> vector<8x512xf32>
    %1410 = arith.subf %1406, %1409 : vector<8x512xf32>
    %1411 = math.absf %1410 : vector<8x512xf32>
    %1412 = arith.addf %1405, %1411 : vector<8x512xf32>
    %c128_973 = arith.constant 128 : index
    %c0_974 = arith.constant 0 : index
    %1413 = vector.load %arg8[%c128_973, %c0_974] : memref<208x512xf32, #tpu.memory_space<vmem>>, vector<8x512xf32>
    %c7_975 = arith.constant 7 : index
    %c128_976 = arith.constant 128 : index
    %c0_977 = arith.constant 0 : index
    %1414 = vector.load %arg5[%c7_975, %c128_976, %c0_977] : memref<8x208x128xf32, #tpu.memory_space<vmem>>, vector<1x8x128xf32>
    %1415 = vector.shape_cast %1414 : vector<1x8x128xf32> to vector<8x128xf32>
    %1416 = tpu.concatenate %1415, %1415, %1415, %1415 in 1 : vector<8x128xf32>, vector<8x128xf32>, vector<8x128xf32>, vector<8x128xf32> -> vector<8x512xf32>
    %1417 = arith.subf %1413, %1416 : vector<8x512xf32>
    %1418 = math.absf %1417 : vector<8x512xf32>
    %1419 = arith.addf %1412, %1418 : vector<8x512xf32>
    %c136_978 = arith.constant 136 : index
    %c0_979 = arith.constant 0 : index
    %1420 = vector.load %arg8[%c136_978, %c0_979] : memref<208x512xf32, #tpu.memory_space<vmem>>, vector<8x512xf32>
    %c7_980 = arith.constant 7 : index
    %c136_981 = arith.constant 136 : index
    %c0_982 = arith.constant 0 : index
    %1421 = vector.load %arg5[%c7_980, %c136_981, %c0_982] : memref<8x208x128xf32, #tpu.memory_space<vmem>>, vector<1x8x128xf32>
    %1422 = vector.shape_cast %1421 : vector<1x8x128xf32> to vector<8x128xf32>
    %1423 = tpu.concatenate %1422, %1422, %1422, %1422 in 1 : vector<8x128xf32>, vector<8x128xf32>, vector<8x128xf32>, vector<8x128xf32> -> vector<8x512xf32>
    %1424 = arith.subf %1420, %1423 : vector<8x512xf32>
    %1425 = math.absf %1424 : vector<8x512xf32>
    %1426 = arith.addf %1419, %1425 : vector<8x512xf32>
    %c144_983 = arith.constant 144 : index
    %c0_984 = arith.constant 0 : index
    %1427 = vector.load %arg8[%c144_983, %c0_984] : memref<208x512xf32, #tpu.memory_space<vmem>>, vector<8x512xf32>
    %c7_985 = arith.constant 7 : index
    %c144_986 = arith.constant 144 : index
    %c0_987 = arith.constant 0 : index
    %1428 = vector.load %arg5[%c7_985, %c144_986, %c0_987] : memref<8x208x128xf32, #tpu.memory_space<vmem>>, vector<1x8x128xf32>
    %1429 = vector.shape_cast %1428 : vector<1x8x128xf32> to vector<8x128xf32>
    %1430 = tpu.concatenate %1429, %1429, %1429, %1429 in 1 : vector<8x128xf32>, vector<8x128xf32>, vector<8x128xf32>, vector<8x128xf32> -> vector<8x512xf32>
    %1431 = arith.subf %1427, %1430 : vector<8x512xf32>
    %1432 = math.absf %1431 : vector<8x512xf32>
    %1433 = arith.addf %1426, %1432 : vector<8x512xf32>
    %c152_988 = arith.constant 152 : index
    %c0_989 = arith.constant 0 : index
    %1434 = vector.load %arg8[%c152_988, %c0_989] : memref<208x512xf32, #tpu.memory_space<vmem>>, vector<8x512xf32>
    %c7_990 = arith.constant 7 : index
    %c152_991 = arith.constant 152 : index
    %c0_992 = arith.constant 0 : index
    %1435 = vector.load %arg5[%c7_990, %c152_991, %c0_992] : memref<8x208x128xf32, #tpu.memory_space<vmem>>, vector<1x8x128xf32>
    %1436 = vector.shape_cast %1435 : vector<1x8x128xf32> to vector<8x128xf32>
    %1437 = tpu.concatenate %1436, %1436, %1436, %1436 in 1 : vector<8x128xf32>, vector<8x128xf32>, vector<8x128xf32>, vector<8x128xf32> -> vector<8x512xf32>
    %1438 = arith.subf %1434, %1437 : vector<8x512xf32>
    %1439 = math.absf %1438 : vector<8x512xf32>
    %1440 = arith.addf %1433, %1439 : vector<8x512xf32>
    %c160_993 = arith.constant 160 : index
    %c0_994 = arith.constant 0 : index
    %1441 = vector.load %arg8[%c160_993, %c0_994] : memref<208x512xf32, #tpu.memory_space<vmem>>, vector<8x512xf32>
    %c7_995 = arith.constant 7 : index
    %c160_996 = arith.constant 160 : index
    %c0_997 = arith.constant 0 : index
    %1442 = vector.load %arg5[%c7_995, %c160_996, %c0_997] : memref<8x208x128xf32, #tpu.memory_space<vmem>>, vector<1x8x128xf32>
    %1443 = vector.shape_cast %1442 : vector<1x8x128xf32> to vector<8x128xf32>
    %1444 = tpu.concatenate %1443, %1443, %1443, %1443 in 1 : vector<8x128xf32>, vector<8x128xf32>, vector<8x128xf32>, vector<8x128xf32> -> vector<8x512xf32>
    %1445 = arith.subf %1441, %1444 : vector<8x512xf32>
    %1446 = math.absf %1445 : vector<8x512xf32>
    %1447 = arith.addf %1440, %1446 : vector<8x512xf32>
    %c168_998 = arith.constant 168 : index
    %c0_999 = arith.constant 0 : index
    %1448 = vector.load %arg8[%c168_998, %c0_999] : memref<208x512xf32, #tpu.memory_space<vmem>>, vector<8x512xf32>
    %c7_1000 = arith.constant 7 : index
    %c168_1001 = arith.constant 168 : index
    %c0_1002 = arith.constant 0 : index
    %1449 = vector.load %arg5[%c7_1000, %c168_1001, %c0_1002] : memref<8x208x128xf32, #tpu.memory_space<vmem>>, vector<1x8x128xf32>
    %1450 = vector.shape_cast %1449 : vector<1x8x128xf32> to vector<8x128xf32>
    %1451 = tpu.concatenate %1450, %1450, %1450, %1450 in 1 : vector<8x128xf32>, vector<8x128xf32>, vector<8x128xf32>, vector<8x128xf32> -> vector<8x512xf32>
    %1452 = arith.subf %1448, %1451 : vector<8x512xf32>
    %1453 = math.absf %1452 : vector<8x512xf32>
    %1454 = arith.addf %1447, %1453 : vector<8x512xf32>
    %c176_1003 = arith.constant 176 : index
    %c0_1004 = arith.constant 0 : index
    %1455 = vector.load %arg8[%c176_1003, %c0_1004] : memref<208x512xf32, #tpu.memory_space<vmem>>, vector<8x512xf32>
    %c7_1005 = arith.constant 7 : index
    %c176_1006 = arith.constant 176 : index
    %c0_1007 = arith.constant 0 : index
    %1456 = vector.load %arg5[%c7_1005, %c176_1006, %c0_1007] : memref<8x208x128xf32, #tpu.memory_space<vmem>>, vector<1x8x128xf32>
    %1457 = vector.shape_cast %1456 : vector<1x8x128xf32> to vector<8x128xf32>
    %1458 = tpu.concatenate %1457, %1457, %1457, %1457 in 1 : vector<8x128xf32>, vector<8x128xf32>, vector<8x128xf32>, vector<8x128xf32> -> vector<8x512xf32>
    %1459 = arith.subf %1455, %1458 : vector<8x512xf32>
    %1460 = math.absf %1459 : vector<8x512xf32>
    %1461 = arith.addf %1454, %1460 : vector<8x512xf32>
    %c184_1008 = arith.constant 184 : index
    %c0_1009 = arith.constant 0 : index
    %1462 = vector.load %arg8[%c184_1008, %c0_1009] : memref<208x512xf32, #tpu.memory_space<vmem>>, vector<8x512xf32>
    %c7_1010 = arith.constant 7 : index
    %c184_1011 = arith.constant 184 : index
    %c0_1012 = arith.constant 0 : index
    %1463 = vector.load %arg5[%c7_1010, %c184_1011, %c0_1012] : memref<8x208x128xf32, #tpu.memory_space<vmem>>, vector<1x8x128xf32>
    %1464 = vector.shape_cast %1463 : vector<1x8x128xf32> to vector<8x128xf32>
    %1465 = tpu.concatenate %1464, %1464, %1464, %1464 in 1 : vector<8x128xf32>, vector<8x128xf32>, vector<8x128xf32>, vector<8x128xf32> -> vector<8x512xf32>
    %1466 = arith.subf %1462, %1465 : vector<8x512xf32>
    %1467 = math.absf %1466 : vector<8x512xf32>
    %1468 = arith.addf %1461, %1467 : vector<8x512xf32>
    %c192_1013 = arith.constant 192 : index
    %c0_1014 = arith.constant 0 : index
    %1469 = vector.load %arg8[%c192_1013, %c0_1014] : memref<208x512xf32, #tpu.memory_space<vmem>>, vector<8x512xf32>
    %c7_1015 = arith.constant 7 : index
    %c192_1016 = arith.constant 192 : index
    %c0_1017 = arith.constant 0 : index
    %1470 = vector.load %arg5[%c7_1015, %c192_1016, %c0_1017] : memref<8x208x128xf32, #tpu.memory_space<vmem>>, vector<1x8x128xf32>
    %1471 = vector.shape_cast %1470 : vector<1x8x128xf32> to vector<8x128xf32>
    %1472 = tpu.concatenate %1471, %1471, %1471, %1471 in 1 : vector<8x128xf32>, vector<8x128xf32>, vector<8x128xf32>, vector<8x128xf32> -> vector<8x512xf32>
    %1473 = arith.subf %1469, %1472 : vector<8x512xf32>
    %1474 = math.absf %1473 : vector<8x512xf32>
    %1475 = arith.addf %1468, %1474 : vector<8x512xf32>
    %c200_1018 = arith.constant 200 : index
    %c0_1019 = arith.constant 0 : index
    %1476 = vector.load %arg8[%c200_1018, %c0_1019] : memref<208x512xf32, #tpu.memory_space<vmem>>, vector<8x512xf32>
    %c7_1020 = arith.constant 7 : index
    %c200_1021 = arith.constant 200 : index
    %c0_1022 = arith.constant 0 : index
    %1477 = vector.load %arg5[%c7_1020, %c200_1021, %c0_1022] : memref<8x208x128xf32, #tpu.memory_space<vmem>>, vector<1x8x128xf32>
    %1478 = vector.shape_cast %1477 : vector<1x8x128xf32> to vector<8x128xf32>
    %1479 = tpu.concatenate %1478, %1478, %1478, %1478 in 1 : vector<8x128xf32>, vector<8x128xf32>, vector<8x128xf32>, vector<8x128xf32> -> vector<8x512xf32>
    %1480 = arith.subf %1476, %1479 : vector<8x512xf32>
    %1481 = math.absf %1480 : vector<8x512xf32>
    %1482 = arith.addf %1475, %1481 : vector<8x512xf32>
    %cst_1023 = arith.constant dense<0.000000e+00> : vector<512xf32>
    %1483 = vector.multi_reduction <add>, %1482, %cst_1023 [0] : vector<8x512xf32> to vector<512xf32>
    %1484 = vector.shape_cast %1483 : vector<512xf32> to vector<1x512xf32>
    %1485 = tpu.concatenate %203, %386, %569, %752, %935, %1118, %1301, %1484 in 0 : vector<1x512xf32>, vector<1x512xf32>, vector<1x512xf32>, vector<1x512xf32>, vector<1x512xf32>, vector<1x512xf32>, vector<1x512xf32>, vector<1x512xf32> -> vector<8x512xf32>
    %cst_1024 = arith.constant 0.00999999977 : f32
    %1486 = vector.broadcast %cst_1024 : f32 to vector<8x512xf32>
    %1487 = arith.mulf %1485, %1486 : vector<8x512xf32>
    %cst_1025 = arith.constant 1.000000e+00 : f32
    %1488 = vector.broadcast %cst_1025 : f32 to vector<8x512xf32>
    %1489 = arith.subf %1488, %1487 : vector<8x512xf32>
    %cst_1026 = arith.constant 0.000000e+00 : f32
    %cst_1027 = arith.constant 1.000000e+00 : f32
    %1490 = vector.broadcast %cst_1026 : f32 to vector<8x512xf32>
    %1491 = arith.maximumf %1490, %1489 : vector<8x512xf32>
    %1492 = vector.broadcast %cst_1027 : f32 to vector<8x512xf32>
    %1493 = arith.minimumf %1492, %1491 : vector<8x512xf32>
    %cst_1028 = arith.constant 8.000000e-01 : f32
    %1494 = vector.broadcast %cst_1028 : f32 to vector<8x512xf32>
    %1495 = math.powf %1493, %1494 : vector<8x512xf32>
    %1496 = vector.broadcast %20 : vector<1x512xf32> to vector<8x512xf32>
    %1497 = arith.mulf %1496, %1495 : vector<8x512xf32>
    %c0_1029 = arith.constant 0 : index
    %c0_1030 = arith.constant 0 : index
    %1498 = vector.load %arg7[%c0_1029, %c0_1030] : memref<8x512xf32, #tpu.memory_space<vmem>>, vector<8x512xf32>
    tpu.vector_store %arg7[%c0_1029, %c0_1030], %1497 {strides = array<i32>} : memref<8x512xf32, #tpu.memory_space<vmem>>, vector<8x512xf32>,
    return
  }
  func.func @transform_0(%arg0: i32, %arg1: i32) -> (i32, i32) {
    %c0_i32 = arith.constant 0 : i32
    %c0_i32_0 = arith.constant 0 : i32
    return %c0_i32, %arg0 : i32, i32
  }
  func.func @transform_1(%arg0: i32, %arg1: i32) -> (i32, i32) {
    %c0_i32 = arith.constant 0 : i32
    %c0_i32_0 = arith.constant 0 : i32
    return %c0_i32, %arg0 : i32, i32
  }
  func.func @transform_2(%arg0: i32, %arg1: i32) -> (i32, i32) {
    %c0_i32 = arith.constant 0 : i32
    %c0_i32_0 = arith.constant 0 : i32
    return %c0_i32, %arg0 : i32, i32
  }
  func.func @transform_3(%arg0: i32, %arg1: i32) -> (i32, i32, i32) {
    %c0_i32 = arith.constant 0 : i32
    %c0_i32_0 = arith.constant 0 : i32
    %c0_i32_1 = arith.constant 0 : i32
    return %arg1, %c0_i32, %c0_i32_0 : i32, i32, i32
  }
  func.func @transform_4(%arg0: i32, %arg1: i32) -> (i32, i32) {
    %c0_i32 = arith.constant 0 : i32
    %c0_i32_0 = arith.constant 0 : i32
    %c0_i32_1 = arith.constant 0 : i32
    return %c0_i32, %c0_i32_0 : i32, i32
  }
  func.func @transform_5(%arg0: i32, %arg1: i32) -> (i32, i32) {
    %c0_i32 = arith.constant 0 : i32
    return %arg1, %arg0 : i32, i32
  }
}

</mosaic_0001>

<bundles_post_ra>
// kernel: _cost_matrix_pallas.1
= control target key start
LH: loop header
LB: loop body
LE: loop exit
PB: predicated region body
PF: predicated region fallthrough
CT: control target
= control target key end

     0   :  { %10 = vsyncpa [#allocation4], 0  ;;  %s10809_s0 = inlined_call_operand.vmem [shape: f32[1,512], index: 0, kind: input, shape index: {}]   ;;  %s10810_s1 = inlined_call_operand.vmem [shape: f32[1,512], index: 1, kind: input, shape index: {}]   ;;  %s10811_s2 = inlined_call_operand.vmem [shape: f32[8,512], index: 2, kind: input, shape index: {}]   ;;  %s10812_s3 = inlined_call_operand.hbm [shape: f32[8,208,128], index: 3, kind: input, shape index: {}]   ;;  %s10813_s4 = inlined_call_operand.vmem [shape: f32[208,8], index: 4, kind: input, shape index: {}]   ;;  %s10814_s5 = inlined_call_operand.hbm [shape: f32[8,512], index: 5, kind: output, shape index: {}]  }
   0x1   :  { %11 = vsyncpa [#allocation5], 0  ;;  %s5649_s18 = smov [#allocation3]   ;;  %s5601_s22 = scalar_lea.hbm %s10812_s3, 26624 }
   0x2   :  { %s23_s19 = sshll.u32 %s5649_s18, 4  ;;  %p5602_p0 = scmp.ne.s32.totalorder %s10812_s3, %s5601_s22  ;;  %s24_s19 = int_to_ptr.vmem [resolvable:$true] %s23_s19 }
   0x3   :  { %p5605_p1 = scmp.lt.u32.totalorder %s5601_s22, %s10812_s3 }
   0x5   :  { %p5607_p2 = pnand %p5605_p1, %p5602_p0 }
   0x7   :  { %5610 = shalt.err (!%p5607_p2)
}
   0x8   :  { %s5611_s27 = scalar_lea.vmem %s24_s19, 26624  ;;  %p5616_p4 = scmp.lt.s32.totalorder %s24_s19, %s24_s19 }
   0x9   :  { %p5612_p3 = scmp.ne.s32.totalorder %s24_s19, %s5611_s27  ;;  %p5617_p5 = scmp.lt.s32.totalorder %s5611_s27, %s5611_s27 }
   0xb   :  { %p5618_p6 = por %p5617_p5, %p5616_p4 }
   0xd   :  { %p5619_p7 = pnand %p5618_p6, %p5612_p3 }
   0xf   :  { %5622 = shalt.err (!%p5619_p7)
}
  0x10   :  { %s5650_s28 = smov 128   ;;  %s5651_s29 = smov 8  }
  0x11   :  { %29 = dma.hbm_to_vmem [thread:$0]  %s10812_s3, 26624, %s24_s19, [#allocation4], %s5650_s28, %s5650_s28, %s5651_s29  }
  0x12   :  { %5645 = dma.done.wait [#allocation4], 26624  }
  0x13   :  { %5646 = vsyncadd [#allocation4], 4294940672  ;;  %v5652_v0 = vmov 0.0   ;;  %v5701_v1 = vld [vmem:[%s10811_s2 + $0x8] sm:$0xff]  ;;  %v5706_v2 = vld [vmem:[%s10811_s2 + $0x18] sm:$0xff]  ;;  %vm45_vm0 = vcmask 64512  }
  0x14   :  { %116 = vmatprep.mubr.f32.mxu0 %v5652_v0  ;;  %193 = vmatprep.mubr.f32.mxu1 %v5652_v0  ;;  %v5711_v3 = vld [vmem:[%s10811_s2] sm:$0xff]  ;;  %v5718_v4 = vld [vmem:[%s10811_s2 + $0x10] sm:$0xff]  ;;  %v40_v6 = vld [vmem:[%s10813_s4 + $0x8] sm:$0xff]  ;;  %vm5291_vm1 = vcmask 1040384   ;;  %vm5296_vm2 = vcmask 1041408   ;;  %vm5301_vm3 = vcmask 1042432  }
  0x15   :  { %52 = vmatprep.subr.mxu0 %v5701_v1  ;;  %129 = vmatprep.subr.mxu1 %v5706_v2  ;;  %v39_v5 = vld [vmem:[%s10813_s4] sm:$0xff]  ;;  %v214_v7 = vld [vmem:[%s10813_s4 + $0x10] sm:$0xff]  ;;  %v215_v8 = vld [vmem:[%s10813_s4 + $0x18] sm:$0xff]  ;;  %vm5306_vm4 = vcmask 1043456   ;;  %vm5311_vm5 = vcmask 1044480   ;;  %vm5316_vm6 = vcmask 1045504  }
  0x16   :  { %53 = vmatpush1.msra.mxu0 %v5711_v3  ;;  %130 = vmatpush1.msra.mxu1 %v5718_v4  ;;  %v388_v9 = vld [vmem:[%s10813_s4 + $0x20] sm:$0xff]  ;;  %v389_v10 = vld [vmem:[%s10813_s4 + $0x28] sm:$0xff]  ;;  %v562_v11 = vld [vmem:[%s10813_s4 + $0x30] sm:$0xff]  ;;  %vm5321_vm7 = vcmask 1046528  }
  0x17   :  { %5390 = vmatmul.mubr.msk.f32.vlgmr.msra.gmra.mrb[0].mxu0 %vm45_vm0, %v39_v5  ;;  %5392 = vmatmul.mubr.msk.f32.vlgmr.msra.gmra.mrb[0].mxu1 %vm45_vm0, %v39_v5  ;;  %v563_v12 = vld [vmem:[%s10813_s4 + $0x38] sm:$0xff]  ;;  %v736_v13 = vld [vmem:[%s10813_s4 + $0x40] sm:$0xff]  ;;  %v737_v14 = vld [vmem:[%s10813_s4 + $0x48] sm:$0xff] }
  0x18   :  { %226 = vmatprep.subr.mxu0 %v5701_v1  ;;  %303 = vmatprep.subr.mxu1 %v5706_v2  ;;  %v910_v15 = vld [vmem:[%s10813_s4 + $0x50] sm:$0xff]  ;;  %v911_v16 = vld [vmem:[%s10813_s4 + $0x58] sm:$0xff]  ;;  %v1084_v17 = vld [vmem:[%s10813_s4 + $0x60] sm:$0xff] }
  0x19   :  { %227 = vmatpush1.msra.mxu0 %v5711_v3  ;;  %304 = vmatpush1.msra.mxu1 %v5718_v4  ;;  %v1085_v18 = vld [vmem:[%s10813_s4 + $0x68] sm:$0xff]  ;;  %v1258_v19 = vld [vmem:[%s10813_s4 + $0x70] sm:$0xff]  ;;  %v1259_v20 = vld [vmem:[%s10813_s4 + $0x78] sm:$0xff] }
  0x1a   :  { %122 = vmatprep.mubr.f32.mxu0 %v5652_v0  ;;  %199 = vmatprep.mubr.f32.mxu1 %v5652_v0  ;;  %v1432_v21 = vld [vmem:[%s10813_s4 + $0x80] sm:$0xff]  ;;  %v1433_v22 = vld [vmem:[%s10813_s4 + $0x88] sm:$0xff]  ;;  %v1606_v23 = vld [vmem:[%s10813_s4 + $0x90] sm:$0xff] }
  0x1b   :  { %5391 = vmatmul.mubr.msk.f32.gmra.mrb[2].mxu0 %vm45_vm0, %v40_v6  ;;  %5393 = vmatmul.mubr.msk.f32.gmra.mrb[2].mxu1 %vm45_vm0, %v40_v6  ;;  %v1607_v24 = vld [vmem:[%s10813_s4 + $0x98] sm:$0xff]  ;;  %v1780_v25 = vld [vmem:[%s10813_s4 + $0xa0] sm:$0xff]  ;;  %v1781_v26 = vld [vmem:[%s10813_s4 + $0xa8] sm:$0xff] }
  0x1c   :  { %290 = vmatprep.mubr.f32.mxu0 %v5652_v0  ;;  %367 = vmatprep.mubr.f32.mxu1 %v5652_v0  ;;  %v1954_v27 = vld [vmem:[%s10813_s4 + $0xb0] sm:$0xff]  ;;  %v1955_v28 = vld [vmem:[%s10813_s4 + $0xb8] sm:$0xff]  ;;  %v2128_v29 = vld [vmem:[%s10813_s4 + $0xc0] sm:$0xff] }
  0x1d   :  { %400 = vmatprep.subr.mxu0 %v5701_v1  ;;  %477 = vmatprep.subr.mxu1 %v5706_v2  ;;  %v2129_v30 = vld [vmem:[%s10813_s4 + $0xc8] sm:$0xff]  ;;  %v5950_v31 = vld [vmem:[#allocation3] sm:$0xff]  ;;  %v5952_v32 = vld [vmem:[#allocation3 + $0xd0] sm:$0xff] }
  0x1e   :  { %v5954_v33 = vld [vmem:[#allocation3 + $0x1a0] sm:$0xff]  ;;  %v5956_v34 = vld [vmem:[#allocation3 + $0x270] sm:$0xff] }
  0x1f   :  { %5394 = vmatmul.mubr.msk.f32.vlgmr.msra.gmra.mrb[4].mxu0 %vm45_vm0, %v214_v7  ;;  %5396 = vmatmul.mubr.msk.f32.vlgmr.msra.gmra.mrb[4].mxu1 %vm45_vm0, %v214_v7  ;;  %v5958_v35 = vld [vmem:[#allocation3 + $0x340] sm:$0xff]  ;;  %v5960_v36 = vld [vmem:[#allocation3 + $0x410] sm:$0xff] }
  0x20   :  { %401 = vmatpush1.msra.mxu0 %v5711_v3  ;;  %478 = vmatpush1.msra.mxu1 %v5718_v4  ;;  %v5962_v37 = vld [vmem:[#allocation3 + $0x4e0] sm:$0xff]  ;;  %v5964_v38 = vld [vmem:[#allocation3 + $0x5b0] sm:$0xff] }
  0x21   :  { %296 = vmatprep.mubr.f32.mxu0 %v5652_v0  ;;  %373 = vmatprep.mubr.f32.mxu1 %v5652_v0 }
  0x22   :  { %574 = vmatprep.subr.mxu0 %v5701_v1  ;;  %651 = vmatprep.subr.mxu1 %v5706_v2 }
  0x23   :  { %5395 = vmatmul.mubr.msk.f32.gmra.mrb[6].mxu0 %vm45_vm0, %v215_v8  ;;  %5397 = vmatmul.mubr.msk.f32.gmra.mrb[6].mxu1 %vm45_vm0, %v215_v8 }
  0x24   :  { %464 = vmatprep.mubr.f32.mxu0 %v5652_v0  ;;  %541 = vmatprep.mubr.f32.mxu1 %v5652_v0 }
  0x27   :  { %5398 = vmatmul.mubr.msk.f32.vlgmr.msra.gmra.mrb[8].mxu0 %vm45_vm0, %v388_v9  ;;  %5400 = vmatmul.mubr.msk.f32.vlgmr.msra.gmra.mrb[8].mxu1 %vm45_vm0, %v388_v9 }
  0x28   :  { %575 = vmatpush1.msra.mxu0 %v5711_v3  ;;  %652 = vmatpush1.msra.mxu1 %v5718_v4 }
  0x29   :  { %470 = vmatprep.mubr.f32.mxu0 %v5652_v0  ;;  %547 = vmatprep.mubr.f32.mxu1 %v5652_v0 }
  0x2a   :  { %748 = vmatprep.subr.mxu0 %v5701_v1  ;;  %825 = vmatprep.subr.mxu1 %v5706_v2 }
  0x2b   :  { %5399 = vmatmul.mubr.msk.f32.gmra.mrb[10].mxu0 %vm45_vm0, %v389_v10  ;;  %5401 = vmatmul.mubr.msk.f32.gmra.mrb[10].mxu1 %vm45_vm0, %v389_v10 }
  0x2c   :  { %638 = vmatprep.mubr.f32.mxu0 %v5652_v0  ;;  %715 = vmatprep.mubr.f32.mxu1 %v5652_v0 }
  0x2f   :  { %5402 = vmatmul.mubr.msk.f32.vlgmr.msra.gmra.mrb[12].mxu0 %vm45_vm0, %v562_v11  ;;  %5404 = vmatmul.mubr.msk.f32.vlgmr.msra.gmra.mrb[12].mxu1 %vm45_vm0, %v562_v11 }
  0x30   :  { %749 = vmatpush1.msra.mxu0 %v5711_v3  ;;  %826 = vmatpush1.msra.mxu1 %v5718_v4 }
  0x31   :  { %644 = vmatprep.mubr.f32.mxu0 %v5652_v0  ;;  %721 = vmatprep.mubr.f32.mxu1 %v5652_v0 }
  0x32   :  { %922 = vmatprep.subr.mxu0 %v5701_v1  ;;  %999 = vmatprep.subr.mxu1 %v5706_v2 }
  0x33   :  { %5403 = vmatmul.mubr.msk.f32.gmra.mrb[14].mxu0 %vm45_vm0, %v563_v12  ;;  %5405 = vmatmul.mubr.msk.f32.gmra.mrb[14].mxu1 %vm45_vm0, %v563_v12 }
  0x34   :  { %812 = vmatprep.mubr.f32.mxu0 %v5652_v0  ;;  %889 = vmatprep.mubr.f32.mxu1 %v5652_v0 }
  0x37   :  { %5406 = vmatmul.mubr.msk.f32.vlgmr.msra.gmra.mrb[16].mxu0 %vm45_vm0, %v736_v13  ;;  %5408 = vmatmul.mubr.msk.f32.vlgmr.msra.gmra.mrb[16].mxu1 %vm45_vm0, %v736_v13 }
  0x38   :  { %923 = vmatpush1.msra.mxu0 %v5711_v3  ;;  %1000 = vmatpush1.msra.mxu1 %v5718_v4 }
  0x39   :  { %818 = vmatprep.mubr.f32.mxu0 %v5652_v0  ;;  %895 = vmatprep.mubr.f32.mxu1 %v5652_v0 }
  0x3a   :  { %1096 = vmatprep.subr.mxu0 %v5701_v1  ;;  %1173 = vmatprep.subr.mxu1 %v5706_v2 }
  0x3b   :  { %5407 = vmatmul.mubr.msk.f32.gmra.mrb[18].mxu0 %vm45_vm0, %v737_v14  ;;  %5409 = vmatmul.mubr.msk.f32.gmra.mrb[18].mxu1 %vm45_vm0, %v737_v14 }
  0x3c   :  { %986 = vmatprep.mubr.f32.mxu0 %v5652_v0  ;;  %1063 = vmatprep.mubr.f32.mxu1 %v5652_v0 }
  0x3f   :  { %5410 = vmatmul.mubr.msk.f32.vlgmr.msra.gmra.mrb[20].mxu0 %vm45_vm0, %v910_v15  ;;  %5412 = vmatmul.mubr.msk.f32.vlgmr.msra.gmra.mrb[20].mxu1 %vm45_vm0, %v910_v15 }
  0x40   :  { %1097 = vmatpush1.msra.mxu0 %v5711_v3  ;;  %1174 = vmatpush1.msra.mxu1 %v5718_v4 }
  0x41   :  { %992 = vmatprep.mubr.f32.mxu0 %v5652_v0  ;;  %1069 = vmatprep.mubr.f32.mxu1 %v5652_v0 }
  0x42   :  { %1270 = vmatprep.subr.mxu0 %v5701_v1  ;;  %1347 = vmatprep.subr.mxu1 %v5706_v2 }
  0x43   :  { %5411 = vmatmul.mubr.msk.f32.gmra.mrb[22].mxu0 %vm45_vm0, %v911_v16  ;;  %5413 = vmatmul.mubr.msk.f32.gmra.mrb[22].mxu1 %vm45_vm0, %v911_v16 }
  0x44   :  { %1160 = vmatprep.mubr.f32.mxu0 %v5652_v0  ;;  %1237 = vmatprep.mubr.f32.mxu1 %v5652_v0 }
  0x47   :  { %5414 = vmatmul.mubr.msk.f32.vlgmr.msra.gmra.mrb[24].mxu0 %vm45_vm0, %v1084_v17  ;;  %5416 = vmatmul.mubr.msk.f32.vlgmr.msra.gmra.mrb[24].mxu1 %vm45_vm0, %v1084_v17 }
  0x48   :  { %1271 = vmatpush1.msra.mxu0 %v5711_v3  ;;  %1348 = vmatpush1.msra.mxu1 %v5718_v4 }
  0x49   :  { %1166 = vmatprep.mubr.f32.mxu0 %v5652_v0  ;;  %1243 = vmatprep.mubr.f32.mxu1 %v5652_v0 }
  0x4a   :  { %1444 = vmatprep.subr.mxu0 %v5701_v1  ;;  %1521 = vmatprep.subr.mxu1 %v5706_v2 }
  0x4b   :  { %5415 = vmatmul.mubr.msk.f32.gmra.mrb[26].mxu0 %vm45_vm0, %v1085_v18  ;;  %5417 = vmatmul.mubr.msk.f32.gmra.mrb[26].mxu1 %vm45_vm0, %v1085_v18 }
  0x4c   :  { %1334 = vmatprep.mubr.f32.mxu0 %v5652_v0  ;;  %1411 = vmatprep.mubr.f32.mxu1 %v5652_v0 }
  0x4f   :  { %5418 = vmatmul.mubr.msk.f32.vlgmr.msra.gmra.mrb[28].mxu0 %vm45_vm0, %v1258_v19  ;;  %5420 = vmatmul.mubr.msk.f32.vlgmr.msra.gmra.mrb[28].mxu1 %vm45_vm0, %v1258_v19 }
  0x50   :  { %1445 = vmatpush1.msra.mxu0 %v5711_v3  ;;  %1522 = vmatpush1.msra.mxu1 %v5718_v4 }
  0x51   :  { %1340 = vmatprep.mubr.f32.mxu0 %v5652_v0  ;;  %1417 = vmatprep.mubr.f32.mxu1 %v5652_v0 }
  0x52   :  { %1618 = vmatprep.subr.mxu0 %v5701_v1  ;;  %1695 = vmatprep.subr.mxu1 %v5706_v2 }
  0x53   :  { %5419 = vmatmul.mubr.msk.f32.gmra.mrb[30].mxu0 %vm45_vm0, %v1259_v20  ;;  %5421 = vmatmul.mubr.msk.f32.gmra.mrb[30].mxu1 %vm45_vm0, %v1259_v20 }
  0x54   :  { %1508 = vmatprep.mubr.f32.mxu0 %v5652_v0  ;;  %1585 = vmatprep.mubr.f32.mxu1 %v5652_v0 }
  0x57   :  { %5422 = vmatmul.mubr.msk.f32.vlgmr.msra.gmra.mrb[32].mxu0 %vm45_vm0, %v1432_v21  ;;  %5424 = vmatmul.mubr.msk.f32.vlgmr.msra.gmra.mrb[32].mxu1 %vm45_vm0, %v1432_v21 }
  0x58   :  { %1619 = vmatpush1.msra.mxu0 %v5711_v3  ;;  %1696 = vmatpush1.msra.mxu1 %v5718_v4 }
  0x59   :  { %1514 = vmatprep.mubr.f32.mxu0 %v5652_v0  ;;  %1591 = vmatprep.mubr.f32.mxu1 %v5652_v0 }
  0x5a   :  { %1792 = vmatprep.subr.mxu0 %v5701_v1  ;;  %1869 = vmatprep.subr.mxu1 %v5706_v2 }
  0x5b   :  { %5423 = vmatmul.mubr.msk.f32.gmra.mrb[34].mxu0 %vm45_vm0, %v1433_v22  ;;  %5425 = vmatmul.mubr.msk.f32.gmra.mrb[34].mxu1 %vm45_vm0, %v1433_v22 }
  0x5c   :  { %1682 = vmatprep.mubr.f32.mxu0 %v5652_v0  ;;  %1759 = vmatprep.mubr.f32.mxu1 %v5652_v0 }
  0x5f   :  { %5426 = vmatmul.mubr.msk.f32.vlgmr.msra.gmra.mrb[36].mxu0 %vm45_vm0, %v1606_v23  ;;  %5428 = vmatmul.mubr.msk.f32.vlgmr.msra.gmra.mrb[36].mxu1 %vm45_vm0, %v1606_v23 }
  0x60   :  { %1793 = vmatpush1.msra.mxu0 %v5711_v3  ;;  %1870 = vmatpush1.msra.mxu1 %v5718_v4 }
  0x61   :  { %1688 = vmatprep.mubr.f32.mxu0 %v5652_v0  ;;  %1765 = vmatprep.mubr.f32.mxu1 %v5652_v0 }
  0x62   :  { %1966 = vmatprep.subr.mxu0 %v5701_v1  ;;  %2043 = vmatprep.subr.mxu1 %v5706_v2 }
  0x63   :  { %5427 = vmatmul.mubr.msk.f32.gmra.mrb[38].mxu0 %vm45_vm0, %v1607_v24  ;;  %5429 = vmatmul.mubr.msk.f32.gmra.mrb[38].mxu1 %vm45_vm0, %v1607_v24 }
  0x64   :  { %1856 = vmatprep.mubr.f32.mxu0 %v5652_v0  ;;  %1933 = vmatprep.mubr.f32.mxu1 %v5652_v0 }
  0x67   :  { %5430 = vmatmul.mubr.msk.f32.vlgmr.msra.gmra.mrb[40].mxu0 %vm45_vm0, %v1780_v25  ;;  %5432 = vmatmul.mubr.msk.f32.vlgmr.msra.gmra.mrb[40].mxu1 %vm45_vm0, %v1780_v25 }
  0x68   :  { %1967 = vmatpush1.msra.mxu0 %v5711_v3  ;;  %2044 = vmatpush1.msra.mxu1 %v5718_v4 }
  0x69   :  { %1862 = vmatprep.mubr.f32.mxu0 %v5652_v0  ;;  %1939 = vmatprep.mubr.f32.mxu1 %v5652_v0 }
  0x6a   :  { %2140 = vmatprep.subr.mxu0 %v5701_v1  ;;  %2217 = vmatprep.subr.mxu1 %v5706_v2 }
  0x6b   :  { %5431 = vmatmul.mubr.msk.f32.gmra.mrb[42].mxu0 %vm45_vm0, %v1781_v26  ;;  %5433 = vmatmul.mubr.msk.f32.gmra.mrb[42].mxu1 %vm45_vm0, %v1781_v26 }
  0x6c   :  { %2030 = vmatprep.mubr.f32.mxu0 %v5652_v0  ;;  %2107 = vmatprep.mubr.f32.mxu1 %v5652_v0 }
  0x6f   :  { %5434 = vmatmul.mubr.msk.f32.vlgmr.msra.gmra.mrb[44].mxu0 %vm45_vm0, %v1954_v27  ;;  %5436 = vmatmul.mubr.msk.f32.vlgmr.msra.gmra.mrb[44].mxu1 %vm45_vm0, %v1954_v27 }
  0x70   :  { %2141 = vmatpush1.msra.mxu0 %v5711_v3  ;;  %2218 = vmatpush1.msra.mxu1 %v5718_v4 }
  0x71   :  { %2036 = vmatprep.mubr.f32.mxu0 %v5652_v0  ;;  %2113 = vmatprep.mubr.f32.mxu1 %v5652_v0 }
  0x73   :  { %5435 = vmatmul.mubr.msk.f32.gmra.mrb[46].mxu0 %vm45_vm0, %v1955_v28  ;;  %5437 = vmatmul.mubr.msk.f32.gmra.mrb[46].mxu1 %vm45_vm0, %v1955_v28 }
  0x74   :  { %2204 = vmatprep.mubr.f32.mxu0 %v5652_v0  ;;  %2281 = vmatprep.mubr.f32.mxu1 %v5652_v0 }
  0x77   :  { %5438 = vmatmul.mubr.msk.f32.vlgmr.msra.gmra.mrb[48].mxu0 %vm45_vm0, %v2128_v29  ;;  %5440 = vmatmul.mubr.msk.f32.vlgmr.msra.gmra.mrb[48].mxu1 %vm45_vm0, %v2128_v29  ;;  %v6044_v29 = vld [vmem:[#allocation3 + $0x8] sm:$0xff] }
  0x78   :  { %2210 = vmatprep.mubr.f32.mxu0 %v5652_v0  ;;  %2287 = vmatprep.mubr.f32.mxu1 %v5652_v0 }
  0x7b   :  { %5439 = vmatmul.mubr.msk.f32.gmra.mrb[50].mxu0 %vm45_vm0, %v2129_v30  ;;  %5441 = vmatmul.mubr.msk.f32.gmra.mrb[50].mxu1 %vm45_vm0, %v2129_v30  ;;  %v6046_v30 = vld [vmem:[#allocation3 + $0xd8] sm:$0xff] }
  0xea   :  { %v118_v39 = vpop.f32.mrb[0].mxu0  ;;  %v195_v40 = vpop.f32.mrb[0].mxu1 }
  0xeb   :  { %v2321_v41 = vsub.f32 %v118_v39, %v5950_v31  ;;  %v2780_v42 = vsub.f32 %v118_v39, %v5952_v32  ;;  %v3139_v43 = vsub.f32 %v118_v39, %v5954_v33  ;;  %v3498_v44 = vsub.f32 %v118_v39, %v5956_v34  ;;  %v120_v45 = vpop.f32.mrb[1].mxu0  ;;  %v5970_v46 = vpop.f32.mrb[1].mxu1 }
  0xec   :  { %v3857_v47 = vsub.f32 %v118_v39, %v5958_v35  ;;  %v4216_v48 = vsub.f32 %v118_v39, %v5960_v36  ;;  %v4575_v49 = vsub.f32 %v118_v39, %v5962_v37  ;;  %v4934_v50 = vsub.f32 %v118_v39, %v5964_v38 }
  0xed   :  { %v5976_v51 = vand.u32 2147483647, %v2321_v41  ;;  %v5978_v52 = vand.u32 2147483647, %v2780_v42  ;;  %v5980_v53 = vand.u32 2147483647, %v3139_v43  ;;  %v2323_v54 = vsub.f32 %v195_v40, %v5950_v31 }
  0xee   :  { %v5983_v55 = vand.u32 2147483647, %v3498_v44  ;;  %v5985_v56 = vand.u32 2147483647, %v3857_v47  ;;  %v5987_v57 = vand.u32 2147483647, %v4216_v48  ;;  %v2782_v58 = vsub.f32 %v195_v40, %v5952_v32 }
  0xef   :  { %v5990_v59 = vand.u32 2147483647, %v4575_v49  ;;  %v5992_v60 = vand.u32 2147483647, %v4934_v50  ;;  %v5994_v61 = vand.u32 2147483647, %v2323_v54  ;;  %v3141_v62 = vsub.f32 %v195_v40, %v5954_v33 }
  0xf0   :  { %v5997_v63 = vand.u32 2147483647, %v2782_v58  ;;  %v3500_v0 = vsub.f32 %v195_v40, %v5956_v34  ;;  %v3859_v1 = vsub.f32 %v195_v40, %v5958_v35  ;;  %v4218_v2 = vsub.f32 %v195_v40, %v5960_v36  ;;  %v6002_v3 = vpop.f32.mrb[2].mxu0  ;;  %v6004_v4 = vpop.f32.mrb[2].mxu1  ;;  %v6070_v50 = vld [vmem:[#allocation3 + $0x278] sm:$0xff] }
  0xf1   :  { %v6006_v5 = vand.u32 2147483647, %v3141_v62  ;;  %v4577_v6 = vsub.f32 %v195_v40, %v5962_v37  ;;  %v4936_v7 = vsub.f32 %v195_v40, %v5964_v38  ;;  %v2322_v8 = vsub.f32 %v120_v45, %v5950_v31  ;;  %v6011_v9 = vpop.f32.mrb[3].mxu0  ;;  %v6013_v10 = vpop.f32.mrb[3].mxu1 }
  0xf2   :  { %v6015_v11 = vand.u32 2147483647, %v3500_v0  ;;  %v6017_v12 = vand.u32 2147483647, %v3859_v1  ;;  %v6019_v13 = vand.u32 2147483647, %v4218_v2  ;;  %v2781_v14 = vsub.f32 %v120_v45, %v5952_v32 }
  0xf3   :  { %v6022_v15 = vand.u32 2147483647, %v4577_v6  ;;  %v6024_v16 = vand.u32 2147483647, %v4936_v7  ;;  %v6026_v17 = vand.u32 2147483647, %v2322_v8  ;;  %v3140_v18 = vsub.f32 %v120_v45, %v5954_v33 }
  0xf4   :  { %v6029_v19 = vand.u32 2147483647, %v2781_v14  ;;  %v3499_v20 = vsub.f32 %v120_v45, %v5956_v34  ;;  %v3858_v21 = vsub.f32 %v120_v45, %v5958_v35  ;;  %v4217_v22 = vsub.f32 %v120_v45, %v5960_v36  ;;  %v6034_v23 = vpop.f32.mrb[4].mxu0  ;;  %v6036_v24 = vpop.f32.mrb[4].mxu1  ;;  %v6080_v0 = vld [vmem:[#allocation3 + $0x348] sm:$0xff]  ;;  %v6082_v1 = vld [vmem:[#allocation3 + $0x418] sm:$0xff] }
  0xf5   :  { %v6038_v25 = vand.u32 2147483647, %v3140_v18  ;;  %v4576_v26 = vsub.f32 %v120_v45, %v5962_v37  ;;  %v4935_v27 = vsub.f32 %v120_v45, %v5964_v38  ;;  %v2324_v28 = vsub.f32 %v5970_v46, %v5950_v31  ;;  %v6048_v39 = vpop.f32.mrb[5].mxu0  ;;  %v6050_v40 = vpop.f32.mrb[5].mxu1  ;;  %v6060_v45 = vld [vmem:[#allocation3 + $0x1a8] sm:$0xff]  ;;  %v6098_v8 = vld [vmem:[#allocation3 + $0x5b8] sm:$0xff] }
  0xf6   :  { %10892 = vst [vmem:[#allocation9_spill] sm:$0xff] %v6048_v39  ;;  %10893 = vst [vmem:[#allocation10_spill] sm:$0xff] %v6050_v40  ;;  %v6052_v41 = vand.u32 2147483647, %v3499_v20  ;;  %v6054_v42 = vand.u32 2147483647, %v3858_v21  ;;  %v2783_v44 = vsub.f32 %v5970_v46, %v5952_v32  ;;  %v3142_v49 = vsub.f32 %v5970_v46, %v5954_v33 }
  0xf7   :  { %v6056_v43 = vand.u32 2147483647, %v4217_v22  ;;  %v6062_v31 = vand.u32 2147483647, %v4576_v26  ;;  %v6064_v47 = vand.u32 2147483647, %v4935_v27  ;;  %v3501_v58 = vsub.f32 %v5970_v46, %v5956_v34 }
  0xf8   :  { %v6066_v48 = vand.u32 2147483647, %v2324_v28  ;;  %v6072_v54 = vand.u32 2147483647, %v2783_v44  ;;  %v3860_v32 = vsub.f32 %v5970_v46, %v5958_v35  ;;  %v4219_v62 = vsub.f32 %v5970_v46, %v5960_v36  ;;  %v6084_v2 = vpop.f32.mrb[6].mxu0  ;;  %v6086_v33 = vpop.f32.mrb[6].mxu1 }
  0xf9   :  { %10894 = vst [vmem:[#allocation11_spill] sm:$0xff] %v6084_v2  ;;  %10895 = vst [vmem:[#allocation12_spill] sm:$0xff] %v6086_v33  ;;  %v6088_v6 = vand.u32 2147483647, %v3142_v49  ;;  %v4578_v7 = vsub.f32 %v5970_v46, %v5962_v37  ;;  %v4937_v34 = vsub.f32 %v5970_v46, %v5964_v38  ;;  %v2334_v35 = vsub.f32 %v6002_v3, %v6044_v29  ;;  %v6096_v36 = vld [vmem:[#allocation3 + $0x4e8] sm:$0xff]  ;;  %v6100_v14 = vpop.f32.mrb[7].mxu0 }
  0xfa   :  { %10896 = vst [vmem:[#allocation13_spill] sm:$0xff] %v6100_v14  ;;  %v6102_v18 = vpop.f32.mrb[7].mxu1  ;;  %v6104_v20 = vand.u32 2147483647, %v3501_v58  ;;  %v6106_v21 = vand.u32 2147483647, %v3860_v32  ;;  %v2789_v37 = vsub.f32 %v6002_v3, %v6046_v30  ;;  %v3148_v27 = vsub.f32 %v6002_v3, %v6060_v45 }
  0xfb   :  { %10897 = vst [vmem:[#allocation14_spill] sm:$0xff] %v6102_v18  ;;  %v6108_v22 = vand.u32 2147483647, %v4219_v62  ;;  %v6112_v38 = vand.u32 2147483647, %v4578_v7  ;;  %v3507_v44 = vsub.f32 %v6002_v3, %v6070_v50  ;;  %v3866_v49 = vsub.f32 %v6002_v3, %v6080_v0  ;;  %v6124_v32 = vpop.f32.mrb[8].mxu0 }
  0xfc   :  { %v6114_v46 = vand.u32 2147483647, %v4937_v34  ;;  %v2338_v26 = vand.u32 2147483647, %v2334_v35  ;;  %v2793_v28 = vand.u32 2147483647, %v2789_v37  ;;  %v4225_v58 = vsub.f32 %v6002_v3, %v6082_v1 }
  0xfd   :  { %10898 = vst [vmem:[#allocation15_spill] sm:$0xff] %v6124_v32  ;;  %v6126_v62 = vpop.f32.mrb[8].mxu1  ;;  %v3152_v34 = vand.u32 2147483647, %v3148_v27  ;;  %v4584_v35 = vsub.f32 %v6002_v3, %v6096_v36  ;;  %v4943_v37 = vsub.f32 %v6002_v3, %v6098_v8  ;;  %v6135_v18 = vpop.f32.mrb[9].mxu0  ;;  %v2336_v40 = vsub.f32 %v6004_v4, %v6044_v29 }
  0xfe   :  { %10899 = vst [vmem:[#allocation16_spill] sm:$0xff] %v6126_v62  ;;  %v6129_v7 = vadd.f32 %v2338_v26, %v5976_v51  ;;  %v6137_v14 = vpop.f32.mrb[9].mxu1  ;;  %v6140_v33 = vadd.f32 %v2793_v28, %v5978_v52  ;;  %v3511_v32 = vand.u32 2147483647, %v3507_v44  ;;  %v3870_v2 = vand.u32 2147483647, %v3866_v49 }
  0xff   :  { %10900 = vst [vmem:[#allocation17_spill] sm:$0xff] %v6137_v14  ;;  %v4229_v62 = vand.u32 2147483647, %v4225_v58  ;;  %v6143_v51 = vadd.f32 %v3152_v34, %v5980_v53  ;;  %v4588_v26 = vand.u32 2147483647, %v4584_v35  ;;  %v6147_v39 = vpop.f32.mrb[10].mxu0  ;;  %v2791_v53 = vsub.f32 %v6004_v4, %v6046_v30 }
 0x100   :  { %v4947_v27 = vand.u32 2147483647, %v4943_v37  ;;  %v6149_v3 = vpop.f32.mrb[10].mxu1  ;;  %v6152_v14 = vadd.f32 %v3511_v32, %v5983_v55  ;;  %v6155_v52 = vadd.f32 %v3870_v2, %v5985_v56  ;;  %v6162_v44 = vpop.f32.mrb[11].mxu0  ;;  %v2340_v55 = vand.u32 2147483647, %v2336_v40 }
 0x101   :  { %10901 = vst [vmem:[#allocation18_spill] sm:$0xff] %v6149_v3  ;;  %v6158_v28 = vadd.f32 %v4229_v62, %v5987_v57  ;;  %10902 = vst [vmem:[#allocation19_spill] sm:$0xff] %v6162_v44  ;;  %v6164_v49 = vpop.f32.mrb[11].mxu1  ;;  %v6167_v58 = vadd.f32 %v4588_v26, %v5990_v59  ;;  %v3150_v56 = vsub.f32 %v6004_v4, %v6060_v45  ;;  %v2795_v2 = vand.u32 2147483647, %v2791_v53 }
 0x102   :  { %10903 = vst [vmem:[#allocation20_spill] sm:$0xff] %v6164_v49  ;;  %v6170_v34 = vadd.f32 %v4947_v27, %v5992_v60  ;;  %v3509_v57 = vsub.f32 %v6004_v4, %v6070_v50  ;;  %v3868_v32 = vsub.f32 %v6004_v4, %v6080_v0  ;;  %v4227_v62 = vsub.f32 %v6004_v4, %v6082_v1  ;;  %v6180_v35 = vpop.f32.mrb[12].mxu0  ;;  %v6182_v59 = vpop.f32.mrb[12].mxu1 }
 0x103   :  { %10904 = vst [vmem:[#allocation21_spill] sm:$0xff] %v6180_v35  ;;  %10905 = vst [vmem:[#allocation22_spill] sm:$0xff] %v6182_v59  ;;  %v6185_v60 = vadd.f32 %v2340_v55, %v5994_v61  ;;  %v3154_v40 = vand.u32 2147483647, %v3150_v56  ;;  %v4586_v37 = vsub.f32 %v6004_v4, %v6096_v36  ;;  %v4945_v26 = vsub.f32 %v6004_v4, %v6098_v8  ;;  %v6191_v27 = vpop.f32.mrb[13].mxu0  ;;  %v6193_v53 = vpop.f32.mrb[13].mxu1 }
 0x104   :  { %10906 = vst [vmem:[#allocation23_spill] sm:$0xff] %v6191_v27  ;;  %v6196_v49 = vadd.f32 %v2795_v2, %v5997_v63  ;;  %v3513_v35 = vand.u32 2147483647, %v3509_v57  ;;  %v3872_v44 = vand.u32 2147483647, %v3868_v32  ;;  %v2335_v3 = vsub.f32 %v6011_v9, %v6044_v29 }
 0x105   :  { %v4231_v59 = vand.u32 2147483647, %v4227_v62  ;;  %v6199_v61 = vadd.f32 %v3154_v40, %v6006_v5  ;;  %v4590_v55 = vand.u32 2147483647, %v4586_v37  ;;  %v4949_v56 = vand.u32 2147483647, %v4945_v26 }
 0x106   :  { %v6204_v4 = vadd.f32 %v3513_v35, %v6015_v11  ;;  %v6207_v27 = vadd.f32 %v3872_v44, %v6017_v12  ;;  %v2790_v2 = vsub.f32 %v6011_v9, %v6046_v30  ;;  %v2339_v32 = vand.u32 2147483647, %v2335_v3 }
 0x107   :  { %v6210_v63 = vadd.f32 %v4231_v59, %v6019_v13  ;;  %v6215_v5 = vadd.f32 %v4590_v55, %v6022_v15  ;;  %v6218_v57 = vadd.f32 %v4949_v56, %v6024_v16  ;;  %v3149_v11 = vsub.f32 %v6011_v9, %v6060_v45  ;;  %v6235_v59 = vpop.f32.mrb[14].mxu0 }
 0x108   :  { %v2794_v62 = vand.u32 2147483647, %v2790_v2  ;;  %v3508_v12 = vsub.f32 %v6011_v9, %v6070_v50  ;;  %v3867_v13 = vsub.f32 %v6011_v9, %v6080_v0  ;;  %v4226_v44 = vsub.f32 %v6011_v9, %v6082_v1 }
 0x109   :  { %v6229_v15 = vadd.f32 %v2339_v32, %v6026_v17  ;;  %v3153_v35 = vand.u32 2147483647, %v3149_v11  ;;  %v4585_v16 = vsub.f32 %v6011_v9, %v6096_v36  ;;  %v4944_v3 = vsub.f32 %v6011_v9, %v6098_v8 }
 0x10a   :  { %v6238_v40 = vadd.f32 %v2794_v62, %v6029_v19  ;;  %v3512_v37 = vand.u32 2147483647, %v3508_v12  ;;  %v3871_v26 = vand.u32 2147483647, %v3867_v13  ;;  %v4230_v55 = vand.u32 2147483647, %v4226_v44 }
 0x10b   :  { %v6241_v56 = vadd.f32 %v3153_v35, %v6038_v25  ;;  %v4589_v17 = vand.u32 2147483647, %v4585_v16  ;;  %v4948_v2 = vand.u32 2147483647, %v4944_v3  ;;  %v2337_v32 = vsub.f32 %v6013_v10, %v6044_v29  ;;  %v6256_v12 = vpop.f32.mrb[14].mxu1  ;;  %v6272_v35 = vld [vmem:[#allocation3 + $0x10] sm:$0xff] }
 0x10c   :  { %v6246_v11 = vadd.f32 %v3512_v37, %v6052_v41  ;;  %v6249_v9 = vadd.f32 %v3871_v26, %v6054_v42  ;;  %v6252_v19 = vadd.f32 %v4230_v55, %v6056_v43  ;;  %v2792_v62 = vsub.f32 %v6013_v10, %v6046_v30  ;;  %v6281_v3 = vld [vmem:[#allocation3 + $0xe0] sm:$0xff] }
 0x10d   :  { %v6259_v25 = vadd.f32 %v4589_v17, %v6062_v31  ;;  %v6262_v13 = vadd.f32 %v4948_v2, %v6064_v47  ;;  %v2341_v29 = vand.u32 2147483647, %v2337_v32  ;;  %v3151_v41 = vsub.f32 %v6013_v10, %v6060_v45  ;;  %v6297_v2 = vld [vmem:[#allocation3 + $0x420] sm:$0xff] }
 0x10e   :  { %v2796_v42 = vand.u32 2147483647, %v2792_v62  ;;  %v3510_v43 = vsub.f32 %v6013_v10, %v6070_v50  ;;  %v3869_v44 = vsub.f32 %v6013_v10, %v6080_v0  ;;  %v4228_v30 = vsub.f32 %v6013_v10, %v6082_v1  ;;  %v6283_v50 = vld [vmem:[#allocation3 + $0x1b0] sm:$0xff]  ;;  %v6285_v0 = vld [vmem:[#allocation3 + $0x280] sm:$0xff] }
 0x10f   :  { %v6275_v31 = vadd.f32 %v2341_v29, %v6066_v48  ;;  %v3155_v47 = vand.u32 2147483647, %v3151_v41  ;;  %v4587_v16 = vsub.f32 %v6013_v10, %v6096_v36  ;;  %v4946_v45 = vsub.f32 %v6013_v10, %v6098_v8  ;;  %v6295_v8 = vld [vmem:[#allocation3 + $0x350] sm:$0xff]  ;;  %v6312_v41 = vld [vmem:[#allocation3 + $0x5c0] sm:$0xff] }
 0x110   :  { %v6288_v1 = vadd.f32 %v2796_v42, %v6072_v54  ;;  %v3514_v37 = vand.u32 2147483647, %v3510_v43  ;;  %v3873_v26 = vand.u32 2147483647, %v3869_v44  ;;  %v4232_v48 = vand.u32 2147483647, %v4228_v30 }
 0x111   :  { %v6291_v55 = vadd.f32 %v3155_v47, %v6088_v6  ;;  %v4591_v17 = vand.u32 2147483647, %v4587_v16  ;;  %v4950_v36 = vand.u32 2147483647, %v4946_v45  ;;  %v2351_v10 = vsub.f32 %v6034_v23, %v6272_v35  ;;  %v6310_v29 = vld [vmem:[#allocation3 + $0x4f0] sm:$0xff]  ;;  %v6322_v44 = vpop.f32.mrb[15].mxu0 }
 0x112   :  { %v6300_v32 = vadd.f32 %v3514_v37, %v6104_v20  ;;  %v6303_v54 = vadd.f32 %v3873_v26, %v6106_v21  ;;  %v6306_v62 = vadd.f32 %v4232_v48, %v6108_v22  ;;  %v2802_v6 = vsub.f32 %v6034_v23, %v6281_v3  ;;  %10907 = vst [vmem:[#allocation24_spill] sm:$0xff] %v6322_v44 }
 0x113   :  { %v6315_v42 = vadd.f32 %v4591_v17, %v6112_v38  ;;  %v6318_v43 = vadd.f32 %v4950_v36, %v6114_v46  ;;  %v2355_v20 = vand.u32 2147483647, %v2351_v10  ;;  %v3161_v21 = vsub.f32 %v6034_v23, %v6283_v50 }
 0x114   :  { %v2806_v22 = vand.u32 2147483647, %v2802_v6  ;;  %v3520_v30 = vsub.f32 %v6034_v23, %v6285_v0  ;;  %v3879_v47 = vsub.f32 %v6034_v23, %v6295_v8  ;;  %v4238_v38 = vsub.f32 %v6034_v23, %v6297_v2 }
 0x115   :  { %v6331_v16 = vadd.f32 %v2355_v20, %v6129_v7  ;;  %v3165_v46 = vand.u32 2147483647, %v3161_v21  ;;  %v4597_v45 = vsub.f32 %v6034_v23, %v6310_v29  ;;  %v4956_v37 = vsub.f32 %v6034_v23, %v6312_v41 }
 0x116   :  { %v6338_v26 = vadd.f32 %v2806_v22, %v6140_v33  ;;  %v3524_v48 = vand.u32 2147483647, %v3520_v30  ;;  %v3883_v17 = vand.u32 2147483647, %v3879_v47  ;;  %v4242_v36 = vand.u32 2147483647, %v4238_v38 }
 0x117   :  { %v6341_v10 = vadd.f32 %v3165_v46, %v6143_v51  ;;  %v4601_v6 = vand.u32 2147483647, %v4597_v45  ;;  %v4960_v44 = vand.u32 2147483647, %v4956_v37  ;;  %v2353_v7 = vsub.f32 %v6036_v24, %v6272_v35  ;;  %v6356_v22 = vpop.f32.mrb[15].mxu1 }
 0x118   :  { %v6346_v20 = vadd.f32 %v3524_v48, %v6152_v14  ;;  %v6349_v21 = vadd.f32 %v3883_v17, %v6155_v52  ;;  %v6352_v23 = vadd.f32 %v4242_v36, %v6158_v28  ;;  %v2804_v33 = vsub.f32 %v6036_v24, %v6281_v3  ;;  %10908 = vst [vmem:[#allocation25_spill] sm:$0xff] %v6356_v22 }
 0x119   :  { %v6359_v51 = vadd.f32 %v4601_v6, %v6167_v58  ;;  %v6362_v30 = vadd.f32 %v4960_v44, %v6170_v34  ;;  %v2357_v47 = vand.u32 2147483647, %v2353_v7  ;;  %v3163_v14 = vsub.f32 %v6036_v24, %v6283_v50 }
 0x11a   :  { %v2808_v52 = vand.u32 2147483647, %v2804_v33  ;;  %v3522_v28 = vsub.f32 %v6036_v24, %v6285_v0  ;;  %v3881_v38 = vsub.f32 %v6036_v24, %v6295_v8  ;;  %v4240_v46 = vsub.f32 %v6036_v24, %v6297_v2 }
 0x11b   :  { %v6373_v58 = vadd.f32 %v2357_v47, %v6185_v60  ;;  %v3167_v45 = vand.u32 2147483647, %v3163_v14  ;;  %v4599_v34 = vsub.f32 %v6036_v24, %v6310_v29  ;;  %v4958_v44 = vsub.f32 %v6036_v24, %v6312_v41  ;;  %v10909_v60 = vld [vmem:[#allocation9_spill] sm:$0xff] }
 0x11c   :  { %v6380_v37 = vadd.f32 %v2808_v52, %v6196_v49  ;;  %v3526_v48 = vand.u32 2147483647, %v3522_v28  ;;  %v3885_v17 = vand.u32 2147483647, %v3881_v38  ;;  %v4244_v36 = vand.u32 2147483647, %v4240_v46 }
 0x11d   :  { %v6383_v6 = vadd.f32 %v3167_v45, %v6199_v61  ;;  %v4603_v7 = vand.u32 2147483647, %v4599_v34  ;;  %v4962_v33 = vand.u32 2147483647, %v4958_v44  ;;  %v2352_v47 = vsub.f32 %v10909_v60, %v6272_v35  ;;  %v6419_v44 = vpop.f32.mrb[16].mxu0 }
 0x11e   :  { %v6388_v14 = vadd.f32 %v3526_v48, %v6204_v4  ;;  %v6391_v22 = vadd.f32 %v3885_v17, %v6207_v27  ;;  %v6394_v24 = vadd.f32 %v4244_v36, %v6210_v63  ;;  %v2803_v49 = vsub.f32 %v10909_v60, %v6281_v3  ;;  %10910 = vst [vmem:[#allocation9_spill] sm:$0xff] %v6419_v44 }
 0x11f   :  { %v6399_v61 = vadd.f32 %v4603_v7, %v6215_v5  ;;  %v6402_v52 = vadd.f32 %v4962_v33, %v6218_v57  ;;  %v2356_v28 = vand.u32 2147483647, %v2352_v47  ;;  %v3162_v4 = vsub.f32 %v10909_v60, %v6283_v50 }
 0x120   :  { %v2807_v38 = vand.u32 2147483647, %v2803_v49  ;;  %v3521_v27 = vsub.f32 %v10909_v60, %v6285_v0  ;;  %v3880_v63 = vsub.f32 %v10909_v60, %v6295_v8  ;;  %v4239_v46 = vsub.f32 %v10909_v60, %v6297_v2  ;;  %v10911_v49 = vld [vmem:[#allocation10_spill] sm:$0xff] }
 0x121   :  { %v6413_v5 = vadd.f32 %v2356_v28, %v6229_v15  ;;  %v3166_v45 = vand.u32 2147483647, %v3162_v4  ;;  %v4598_v57 = vsub.f32 %v10909_v60, %v6310_v29  ;;  %v4957_v34 = vsub.f32 %v10909_v60, %v6312_v41 }
 0x122   :  { %v6422_v48 = vadd.f32 %v2807_v38, %v6238_v40  ;;  %v3525_v17 = vand.u32 2147483647, %v3521_v27  ;;  %v3884_v36 = vand.u32 2147483647, %v3880_v63  ;;  %v4243_v7 = vand.u32 2147483647, %v4239_v46 }
 0x123   :  { %v6425_v33 = vadd.f32 %v3166_v45, %v6241_v56  ;;  %v4602_v15 = vand.u32 2147483647, %v4598_v57  ;;  %v4961_v47 = vand.u32 2147483647, %v4957_v34  ;;  %v2354_v28 = vsub.f32 %v10911_v49, %v6272_v35  ;;  %v6440_v27 = vpop.f32.mrb[16].mxu1  ;;  %v6456_v45 = vld [vmem:[#allocation3 + $0x18] sm:$0xff] }
 0x124   :  { %v6430_v4 = vadd.f32 %v3525_v17, %v6246_v11  ;;  %v6433_v60 = vadd.f32 %v3884_v36, %v6249_v9  ;;  %v6436_v40 = vadd.f32 %v4243_v7, %v6252_v19  ;;  %v2805_v38 = vsub.f32 %v10911_v49, %v6281_v3  ;;  %10912 = vst [vmem:[#allocation10_spill] sm:$0xff] %v6440_v27  ;;  %v6465_v34 = vld [vmem:[#allocation3 + $0xe8] sm:$0xff] }
 0x125   :  { %v6443_v56 = vadd.f32 %v4602_v15, %v6259_v25  ;;  %v6446_v63 = vadd.f32 %v4961_v47, %v6262_v13  ;;  %v2358_v35 = vand.u32 2147483647, %v2354_v28  ;;  %v3164_v11 = vsub.f32 %v10911_v49, %v6283_v50  ;;  %v10913_v47 = vld [vmem:[#allocation11_spill] sm:$0xff]  ;;  %v6481_v28 = vld [vmem:[#allocation3 + $0x428] sm:$0xff] }
 0x126   :  { %v2809_v9 = vand.u32 2147483647, %v2805_v38  ;;  %v3523_v19 = vsub.f32 %v10911_v49, %v6285_v0  ;;  %v3882_v46 = vsub.f32 %v10911_v49, %v6295_v8  ;;  %v4241_v3 = vsub.f32 %v10911_v49, %v6297_v2  ;;  %v6467_v0 = vld [vmem:[#allocation3 + $0x1b8] sm:$0xff]  ;;  %v6469_v8 = vld [vmem:[#allocation3 + $0x288] sm:$0xff] }
 0x127   :  { %v6459_v25 = vadd.f32 %v2358_v35, %v6275_v31  ;;  %v3168_v13 = vand.u32 2147483647, %v3164_v11  ;;  %v4600_v57 = vsub.f32 %v10911_v49, %v6310_v29  ;;  %v4959_v50 = vsub.f32 %v10911_v49, %v6312_v41  ;;  %v6479_v49 = vld [vmem:[#allocation3 + $0x358] sm:$0xff] }
 0x128   :  { %v6472_v2 = vadd.f32 %v2809_v9, %v6288_v1  ;;  %v3527_v17 = vand.u32 2147483647, %v3523_v19  ;;  %v3886_v36 = vand.u32 2147483647, %v3882_v46  ;;  %v4245_v31 = vand.u32 2147483647, %v4241_v3 }
 0x129   :  { %v6475_v7 = vadd.f32 %v3168_v13, %v6291_v55  ;;  %v4604_v15 = vand.u32 2147483647, %v4600_v57  ;;  %v4963_v29 = vand.u32 2147483647, %v4959_v50  ;;  %v2368_v41 = vsub.f32 %v10913_v47, %v6456_v45  ;;  %v6494_v11 = vld [vmem:[#allocation3 + $0x4f8] sm:$0xff]  ;;  %v6496_v9 = vld [vmem:[#allocation3 + $0x5c8] sm:$0xff] }
 0x12a   :  { %v6484_v38 = vadd.f32 %v3527_v17, %v6300_v32  ;;  %v6487_v1 = vadd.f32 %v3886_v36, %v6303_v54  ;;  %v6490_v35 = vadd.f32 %v4245_v31, %v6306_v62  ;;  %v2815_v55 = vsub.f32 %v10913_v47, %v6465_v34  ;;  %v6506_v3 = vpop.f32.mrb[17].mxu0 }
 0x12b   :  { %v6499_v19 = vadd.f32 %v4604_v15, %v6315_v42  ;;  %v6502_v46 = vadd.f32 %v4963_v29, %v6318_v43  ;;  %v2372_v32 = vand.u32 2147483647, %v2368_v41  ;;  %v3174_v54 = vsub.f32 %v10913_v47, %v6467_v0  ;;  %10914 = vst [vmem:[#allocation11_spill] sm:$0xff] %v6506_v3 }
 0x12c   :  { %v2819_v62 = vand.u32 2147483647, %v2815_v55  ;;  %v3533_v13 = vsub.f32 %v10913_v47, %v6469_v8  ;;  %v3892_v57 = vsub.f32 %v10913_v47, %v6479_v49  ;;  %v4251_v42 = vsub.f32 %v10913_v47, %v6481_v28 }
 0x12d   :  { %v6515_v50 = vadd.f32 %v2372_v32, %v6331_v16  ;;  %v3178_v43 = vand.u32 2147483647, %v3174_v54  ;;  %v4610_v17 = vsub.f32 %v10913_v47, %v6494_v11  ;;  %v4969_v36 = vsub.f32 %v10913_v47, %v6496_v9  ;;  %v10915_v16 = vld [vmem:[#allocation12_spill] sm:$0xff] }
 0x12e   :  { %v6522_v31 = vadd.f32 %v2819_v62, %v6338_v26  ;;  %v3537_v15 = vand.u32 2147483647, %v3533_v13  ;;  %v3896_v29 = vand.u32 2147483647, %v3892_v57  ;;  %v4255_v41 = vand.u32 2147483647, %v4251_v42 }
 0x12f   :  { %v6525_v55 = vadd.f32 %v3178_v43, %v6341_v10  ;;  %v4614_v3 = vand.u32 2147483647, %v4610_v17  ;;  %v4973_v27 = vand.u32 2147483647, %v4969_v36  ;;  %v2370_v32 = vsub.f32 %v10915_v16, %v6456_v45  ;;  %v6540_v62 = vpop.f32.mrb[17].mxu1 }
 0x130   :  { %v6530_v54 = vadd.f32 %v3537_v15, %v6346_v20  ;;  %v6533_v44 = vadd.f32 %v3896_v29, %v6349_v21  ;;  %v6536_v26 = vadd.f32 %v4255_v41, %v6352_v23  ;;  %v2817_v47 = vsub.f32 %v10915_v16, %v6465_v34  ;;  %10916 = vst [vmem:[#allocation12_spill] sm:$0xff] %v6540_v62 }
 0x131   :  { %v6543_v10 = vadd.f32 %v4614_v3, %v6359_v51  ;;  %v6546_v13 = vadd.f32 %v4973_v27, %v6362_v30  ;;  %v2374_v57 = vand.u32 2147483647, %v2370_v32  ;;  %v3176_v20 = vsub.f32 %v10915_v16, %v6467_v0 }
 0x132   :  { %v2821_v21 = vand.u32 2147483647, %v2817_v47  ;;  %v3535_v23 = vsub.f32 %v10915_v16, %v6469_v8  ;;  %v3894_v42 = vsub.f32 %v10915_v16, %v6479_v49  ;;  %v4253_v43 = vsub.f32 %v10915_v16, %v6481_v28 }
 0x133   :  { %v6557_v51 = vadd.f32 %v2374_v57, %v6373_v58  ;;  %v3180_v3 = vand.u32 2147483647, %v3176_v20  ;;  %v4612_v30 = vsub.f32 %v10915_v16, %v6494_v11  ;;  %v4971_v27 = vsub.f32 %v10915_v16, %v6496_v9  ;;  %v10917_v58 = vld [vmem:[#allocation13_spill] sm:$0xff] }
 0x134   :  { %v6564_v17 = vadd.f32 %v2821_v21, %v6380_v37  ;;  %v3539_v36 = vand.u32 2147483647, %v3535_v23  ;;  %v3898_v15 = vand.u32 2147483647, %v3894_v42  ;;  %v4257_v29 = vand.u32 2147483647, %v4253_v43 }
 0x135   :  { %v6567_v41 = vadd.f32 %v3180_v3, %v6383_v6  ;;  %v4616_v32 = vand.u32 2147483647, %v4612_v30  ;;  %v4975_v47 = vand.u32 2147483647, %v4971_v27  ;;  %v2369_v57 = vsub.f32 %v10917_v58, %v6456_v45  ;;  %v6603_v27 = vpop.f32.mrb[18].mxu0 }
 0x136   :  { %v6572_v20 = vadd.f32 %v3539_v36, %v6388_v14  ;;  %v6575_v62 = vadd.f32 %v3898_v15, %v6391_v22  ;;  %v6578_v37 = vadd.f32 %v4257_v29, %v6394_v24  ;;  %v2816_v16 = vsub.f32 %v10917_v58, %v6465_v34  ;;  %10918 = vst [vmem:[#allocation13_spill] sm:$0xff] %v6603_v27 }
 0x137   :  { %v6583_v6 = vadd.f32 %v4616_v32, %v6399_v61  ;;  %v6586_v21 = vadd.f32 %v4975_v47, %v6402_v52  ;;  %v2373_v23 = vand.u32 2147483647, %v2369_v57  ;;  %v3175_v14 = vsub.f32 %v10917_v58, %v6467_v0 }
 0x138   :  { %v2820_v42 = vand.u32 2147483647, %v2816_v16  ;;  %v3534_v22 = vsub.f32 %v10917_v58, %v6469_v8  ;;  %v3893_v24 = vsub.f32 %v10917_v58, %v6479_v49  ;;  %v4252_v43 = vsub.f32 %v10917_v58, %v6481_v28  ;;  %v10919_v16 = vld [vmem:[#allocation14_spill] sm:$0xff] }
 0x139   :  { %v6597_v61 = vadd.f32 %v2373_v23, %v6413_v5  ;;  %v3179_v3 = vand.u32 2147483647, %v3175_v14  ;;  %v4611_v52 = vsub.f32 %v10917_v58, %v6494_v11  ;;  %v4970_v30 = vsub.f32 %v10917_v58, %v6496_v9 }
 0x13a   :  { %v6606_v36 = vadd.f32 %v2820_v42, %v6422_v48  ;;  %v3538_v15 = vand.u32 2147483647, %v3534_v22  ;;  %v3897_v29 = vand.u32 2147483647, %v3893_v24  ;;  %v4256_v32 = vand.u32 2147483647, %v4252_v43 }
 0x13b   :  { %v6609_v47 = vadd.f32 %v3179_v3, %v6425_v33  ;;  %v4615_v5 = vand.u32 2147483647, %v4611_v52  ;;  %v4974_v57 = vand.u32 2147483647, %v4970_v30  ;;  %v2371_v23 = vsub.f32 %v10919_v16, %v6456_v45  ;;  %v6624_v22 = vpop.f32.mrb[18].mxu1  ;;  %v6640_v3 = vld [vmem:[#allocation3 + $0x20] sm:$0xff] }
 0x13c   :  { %v6614_v14 = vadd.f32 %v3538_v15, %v6430_v4  ;;  %v6617_v58 = vadd.f32 %v3897_v29, %v6433_v60  ;;  %v6620_v48 = vadd.f32 %v4256_v32, %v6436_v40  ;;  %v2818_v42 = vsub.f32 %v10919_v16, %v6465_v34  ;;  %10920 = vst [vmem:[#allocation14_spill] sm:$0xff] %v6624_v22  ;;  %v6649_v30 = vld [vmem:[#allocation3 + $0xf0] sm:$0xff] }
 0x13d   :  { %v6627_v33 = vadd.f32 %v4615_v5, %v6443_v56  ;;  %v6630_v24 = vadd.f32 %v4974_v57, %v6446_v63  ;;  %v2375_v45 = vand.u32 2147483647, %v2371_v23  ;;  %v3177_v4 = vsub.f32 %v10919_v16, %v6467_v0  ;;  %v10921_v57 = vld [vmem:[#allocation15_spill] sm:$0xff] }
 0x13e   :  { %v2822_v60 = vand.u32 2147483647, %v2818_v42  ;;  %v3536_v40 = vsub.f32 %v10919_v16, %v6469_v8  ;;  %v3895_v43 = vsub.f32 %v10919_v16, %v6479_v49  ;;  %v4254_v34 = vsub.f32 %v10919_v16, %v6481_v28  ;;  %v6651_v8 = vld [vmem:[#allocation3 + $0x1c0] sm:$0xff]  ;;  %v6653_v49 = vld [vmem:[#allocation3 + $0x290] sm:$0xff] }
 0x13f   :  { %v6643_v56 = vadd.f32 %v2375_v45, %v6459_v25  ;;  %v3181_v63 = vand.u32 2147483647, %v3177_v4  ;;  %v4613_v52 = vsub.f32 %v10919_v16, %v6494_v11  ;;  %v4972_v0 = vsub.f32 %v10919_v16, %v6496_v9  ;;  %v6663_v16 = vld [vmem:[#allocation3 + $0x360] sm:$0xff]  ;;  %v6665_v23 = vld [vmem:[#allocation3 + $0x430] sm:$0xff] }
 0x140   :  { %v6656_v28 = vadd.f32 %v2822_v60, %v6472_v2  ;;  %v3540_v15 = vand.u32 2147483647, %v3536_v40  ;;  %v3899_v29 = vand.u32 2147483647, %v3895_v43  ;;  %v4258_v25 = vand.u32 2147483647, %v4254_v34 }
 0x141   :  { %v6659_v32 = vadd.f32 %v3181_v63, %v6475_v7  ;;  %v4617_v5 = vand.u32 2147483647, %v4613_v52  ;;  %v4976_v11 = vand.u32 2147483647, %v4972_v0  ;;  %v2385_v9 = vsub.f32 %v10921_v57, %v6640_v3  ;;  %v6678_v4 = vld [vmem:[#allocation3 + $0x500] sm:$0xff]  ;;  %v6680_v60 = vld [vmem:[#allocation3 + $0x5d0] sm:$0xff] }
 0x142   :  { %v6668_v42 = vadd.f32 %v3540_v15, %v6484_v38  ;;  %v6671_v2 = vadd.f32 %v3899_v29, %v6487_v1  ;;  %v6674_v45 = vadd.f32 %v4258_v25, %v6490_v35  ;;  %v2828_v7 = vsub.f32 %v10921_v57, %v6649_v30  ;;  %v6690_v34 = vpop.f32.mrb[19].mxu0 }
 0x143   :  { %v6683_v40 = vadd.f32 %v4617_v5, %v6499_v19  ;;  %v6686_v43 = vadd.f32 %v4976_v11, %v6502_v46  ;;  %v2389_v38 = vand.u32 2147483647, %v2385_v9  ;;  %v3187_v1 = vsub.f32 %v10921_v57, %v6651_v8  ;;  %10922 = vst [vmem:[#allocation15_spill] sm:$0xff] %v6690_v34 }
 0x144   :  { %v2832_v35 = vand.u32 2147483647, %v2828_v7  ;;  %v3546_v63 = vsub.f32 %v10921_v57, %v6653_v49  ;;  %v3905_v52 = vsub.f32 %v10921_v57, %v6663_v16  ;;  %v4264_v19 = vsub.f32 %v10921_v57, %v6665_v23 }
 0x145   :  { %v6699_v0 = vadd.f32 %v2389_v38, %v6515_v50  ;;  %v3191_v46 = vand.u32 2147483647, %v3187_v1  ;;  %v4623_v15 = vsub.f32 %v10921_v57, %v6678_v4  ;;  %v4982_v29 = vsub.f32 %v10921_v57, %v6680_v60  ;;  %v10923_v50 = vld [vmem:[#allocation16_spill] sm:$0xff] }
 0x146   :  { %v6706_v25 = vadd.f32 %v2832_v35, %v6522_v31  ;;  %v3550_v5 = vand.u32 2147483647, %v3546_v63  ;;  %v3909_v11 = vand.u32 2147483647, %v3905_v52  ;;  %v4268_v9 = vand.u32 2147483647, %v4264_v19 }
 0x147   :  { %v6709_v7 = vadd.f32 %v3191_v46, %v6525_v55  ;;  %v4627_v34 = vand.u32 2147483647, %v4623_v15  ;;  %v4986_v22 = vand.u32 2147483647, %v4982_v29  ;;  %v2387_v38 = vsub.f32 %v10923_v50, %v6640_v3  ;;  %v6724_v35 = vpop.f32.mrb[19].mxu1 }
 0x148   :  { %v6714_v1 = vadd.f32 %v3550_v5, %v6530_v54  ;;  %v6717_v27 = vadd.f32 %v3909_v11, %v6533_v44  ;;  %v6720_v31 = vadd.f32 %v4268_v9, %v6536_v26  ;;  %v2830_v57 = vsub.f32 %v10923_v50, %v6649_v30 }
 0x149   :  { %v6727_v55 = vadd.f32 %v4627_v34, %v6543_v10  ;;  %v6730_v63 = vadd.f32 %v4986_v22, %v6546_v13  ;;  %v2391_v52 = vand.u32 2147483647, %v2387_v38  ;;  %v3189_v54 = vsub.f32 %v10923_v50, %v6651_v8 }
 0x14a   :  { %v2834_v44 = vand.u32 2147483647, %v2830_v57  ;;  %v3548_v26 = vsub.f32 %v10923_v50, %v6653_v49  ;;  %v3907_v19 = vsub.f32 %v10923_v50, %v6663_v16  ;;  %v4266_v46 = vsub.f32 %v10923_v50, %v6665_v23 }
 0x14b   :  { %v6741_v10 = vadd.f32 %v2391_v52, %v6557_v51  ;;  %v3193_v34 = vand.u32 2147483647, %v3189_v54  ;;  %v4625_v13 = vsub.f32 %v10923_v50, %v6678_v4  ;;  %v4984_v22 = vsub.f32 %v10923_v50, %v6680_v60 }
 0x14c   :  { %v6748_v15 = vadd.f32 %v2834_v44, %v6564_v17  ;;  %v3552_v29 = vand.u32 2147483647, %v3548_v26  ;;  %v3911_v5 = vand.u32 2147483647, %v3907_v19  ;;  %v4270_v11 = vand.u32 2147483647, %v4266_v46 }
 0x14d   :  { %v6751_v9 = vadd.f32 %v3193_v34, %v6567_v41  ;;  %v4629_v38 = vand.u32 2147483647, %v4625_v13  ;;  %v4988_v57 = vand.u32 2147483647, %v4984_v22  ;;  %v2386_v51 = vsub.f32 %v6135_v18, %v6640_v3  ;;  %v6787_v22 = vpop.f32.mrb[20].mxu0 }
 0x14e   :  { %v6756_v52 = vadd.f32 %v3552_v29, %v6572_v20  ;;  %v6759_v54 = vadd.f32 %v3911_v5, %v6575_v62  ;;  %v6762_v17 = vadd.f32 %v4270_v11, %v6578_v37  ;;  %v2829_v50 = vsub.f32 %v6135_v18, %v6649_v30 }
 0x14f   :  { %v6767_v41 = vadd.f32 %v4629_v38, %v6583_v6  ;;  %v6770_v44 = vadd.f32 %v4988_v57, %v6586_v21  ;;  %v2390_v26 = vand.u32 2147483647, %v2386_v51  ;;  %v3188_v20 = vsub.f32 %v6135_v18, %v6651_v8 }
 0x150   :  { %v2833_v19 = vand.u32 2147483647, %v2829_v50  ;;  %v3547_v62 = vsub.f32 %v6135_v18, %v6653_v49  ;;  %v3906_v37 = vsub.f32 %v6135_v18, %v6663_v16  ;;  %v4265_v46 = vsub.f32 %v6135_v18, %v6665_v23  ;;  %v10924_v50 = vld [vmem:[#allocation17_spill] sm:$0xff] }
 0x151   :  { %v6781_v6 = vadd.f32 %v2390_v26, %v6597_v61  ;;  %v3192_v34 = vand.u32 2147483647, %v3188_v20  ;;  %v4624_v21 = vsub.f32 %v6135_v18, %v6678_v4  ;;  %v4983_v13 = vsub.f32 %v6135_v18, %v6680_v60 }
 0x152   :  { %v6790_v29 = vadd.f32 %v2833_v19, %v6606_v36  ;;  %v3551_v5 = vand.u32 2147483647, %v3547_v62  ;;  %v3910_v11 = vand.u32 2147483647, %v3906_v37  ;;  %v4269_v38 = vand.u32 2147483647, %v4265_v46 }
 0x153   :  { %v6793_v57 = vadd.f32 %v3192_v34, %v6609_v47  ;;  %v4628_v61 = vand.u32 2147483647, %v4624_v21  ;;  %v4987_v51 = vand.u32 2147483647, %v4983_v13  ;;  %v2388_v26 = vsub.f32 %v10924_v50, %v6640_v3  ;;  %v6808_v62 = vpop.f32.mrb[20].mxu1  ;;  %v6824_v34 = vld [vmem:[#allocation3 + $0x28] sm:$0xff] }
 0x154   :  { %v6798_v20 = vadd.f32 %v3551_v5, %v6614_v14  ;;  %v6801_v18 = vadd.f32 %v3910_v11, %v6617_v58  ;;  %v6804_v36 = vadd.f32 %v4269_v38, %v6620_v48  ;;  %v2831_v19 = vsub.f32 %v10924_v50, %v6649_v30  ;;  %10925 = vst [vmem:[#allocation16_spill] sm:$0xff] %v6808_v62  ;;  %v6833_v13 = vld [vmem:[#allocation3 + $0xf8] sm:$0xff] }
 0x155   :  { %v6811_v47 = vadd.f32 %v4628_v61, %v6627_v33  ;;  %v6814_v37 = vadd.f32 %v4987_v51, %v6630_v24  ;;  %v2392_v3 = vand.u32 2147483647, %v2388_v26  ;;  %v3190_v14 = vsub.f32 %v10924_v50, %v6651_v8  ;;  %v6847_v51 = vld [vmem:[#allocation3 + $0x368] sm:$0xff] }
 0x156   :  { %v2835_v58 = vand.u32 2147483647, %v2831_v19  ;;  %v3549_v48 = vsub.f32 %v10924_v50, %v6653_v49  ;;  %v3908_v46 = vsub.f32 %v10924_v50, %v6663_v16  ;;  %v4267_v30 = vsub.f32 %v10924_v50, %v6665_v23  ;;  %v6835_v49 = vld [vmem:[#allocation3 + $0x1c8] sm:$0xff]  ;;  %v6837_v16 = vld [vmem:[#allocation3 + $0x298] sm:$0xff] }
 0x157   :  { %v6827_v33 = vadd.f32 %v2392_v3, %v6643_v56  ;;  %v3194_v24 = vand.u32 2147483647, %v3190_v14  ;;  %v4626_v21 = vsub.f32 %v10924_v50, %v6678_v4  ;;  %v4985_v8 = vsub.f32 %v10924_v50, %v6680_v60  ;;  %v6849_v50 = vld [vmem:[#allocation3 + $0x438] sm:$0xff]  ;;  %v6862_v3 = vld [vmem:[#allocation3 + $0x508] sm:$0xff] }
 0x158   :  { %v6840_v23 = vadd.f32 %v2835_v58, %v6656_v28  ;;  %v3553_v5 = vand.u32 2147483647, %v3549_v48  ;;  %v3912_v11 = vand.u32 2147483647, %v3908_v46  ;;  %v4271_v56 = vand.u32 2147483647, %v4267_v30 }
 0x159   :  { %v6843_v38 = vadd.f32 %v3194_v24, %v6659_v32  ;;  %v4630_v61 = vand.u32 2147483647, %v4626_v21  ;;  %v4989_v4 = vand.u32 2147483647, %v4985_v8  ;;  %v2402_v60 = vsub.f32 %v6147_v39, %v6824_v34  ;;  %v6864_v14 = vld [vmem:[#allocation3 + $0x5d8] sm:$0xff]  ;;  %v6874_v46 = vpop.f32.mrb[21].mxu0 }
 0x15a   :  { %v6852_v26 = vadd.f32 %v3553_v5, %v6668_v42  ;;  %v6855_v28 = vadd.f32 %v3912_v11, %v6671_v2  ;;  %v6858_v19 = vadd.f32 %v4271_v56, %v6674_v45  ;;  %v2841_v32 = vsub.f32 %v6147_v39, %v6833_v13  ;;  %10926 = vst [vmem:[#allocation17_spill] sm:$0xff] %v6874_v46 }
 0x15b   :  { %v6867_v58 = vadd.f32 %v4630_v61, %v6683_v40  ;;  %v6870_v48 = vadd.f32 %v4989_v4, %v6686_v43  ;;  %v2406_v42 = vand.u32 2147483647, %v2402_v60  ;;  %v3200_v2 = vsub.f32 %v6147_v39, %v6835_v49 }
 0x15c   :  { %v2845_v45 = vand.u32 2147483647, %v2841_v32  ;;  %v3559_v30 = vsub.f32 %v6147_v39, %v6837_v16  ;;  %v3918_v24 = vsub.f32 %v6147_v39, %v6847_v51  ;;  %v4277_v40 = vsub.f32 %v6147_v39, %v6849_v50 }
 0x15d   :  { %v6883_v21 = vadd.f32 %v2406_v42, %v6699_v0  ;;  %v3204_v43 = vand.u32 2147483647, %v3200_v2  ;;  %v4636_v8 = vsub.f32 %v6147_v39, %v6862_v3  ;;  %v4995_v5 = vsub.f32 %v6147_v39, %v6864_v14  ;;  %v10927_v0 = vld [vmem:[#allocation18_spill] sm:$0xff] }
 0x15e   :  { %v6890_v11 = vadd.f32 %v2845_v45, %v6706_v25  ;;  %v3563_v56 = vand.u32 2147483647, %v3559_v30  ;;  %v3922_v61 = vand.u32 2147483647, %v3918_v24  ;;  %v4281_v4 = vand.u32 2147483647, %v4277_v40 }
 0x15f   :  { %v6893_v60 = vadd.f32 %v3204_v43, %v6709_v7  ;;  %v4640_v32 = vand.u32 2147483647, %v4636_v8  ;;  %v4999_v46 = vand.u32 2147483647, %v4995_v5  ;;  %v2404_v42 = vsub.f32 %v10927_v0, %v6824_v34  ;;  %v6908_v45 = vpop.f32.mrb[21].mxu1 }
 0x160   :  { %v6898_v2 = vadd.f32 %v3563_v56, %v6714_v1  ;;  %v6901_v62 = vadd.f32 %v3922_v61, %v6717_v27  ;;  %v6904_v39 = vadd.f32 %v4281_v4, %v6720_v31  ;;  %v2843_v25 = vsub.f32 %v10927_v0, %v6833_v13  ;;  %10928 = vst [vmem:[#allocation18_spill] sm:$0xff] %v6908_v45 }
 0x161   :  { %v6911_v7 = vadd.f32 %v4640_v32, %v6727_v55  ;;  %v6914_v30 = vadd.f32 %v4999_v46, %v6730_v63  ;;  %v2408_v24 = vand.u32 2147483647, %v2404_v42  ;;  %v3202_v1 = vsub.f32 %v10927_v0, %v6835_v49 }
 0x162   :  { %v2847_v27 = vand.u32 2147483647, %v2843_v25  ;;  %v3561_v31 = vsub.f32 %v10927_v0, %v6837_v16  ;;  %v3920_v40 = vsub.f32 %v10927_v0, %v6847_v51  ;;  %v4279_v43 = vsub.f32 %v10927_v0, %v6849_v50 }
 0x163   :  { %v6925_v55 = vadd.f32 %v2408_v24, %v6741_v10  ;;  %v3206_v8 = vand.u32 2147483647, %v3202_v1  ;;  %v4638_v63 = vsub.f32 %v10927_v0, %v6862_v3  ;;  %v4997_v46 = vsub.f32 %v10927_v0, %v6864_v14  ;;  %v10929_v10 = vld [vmem:[#allocation19_spill] sm:$0xff] }
 0x164   :  { %v6932_v5 = vadd.f32 %v2847_v27, %v6748_v15  ;;  %v3565_v56 = vand.u32 2147483647, %v3561_v31  ;;  %v3924_v61 = vand.u32 2147483647, %v3920_v40  ;;  %v4283_v4 = vand.u32 2147483647, %v4279_v43 }
 0x165   :  { %v6935_v32 = vadd.f32 %v3206_v8, %v6751_v9  ;;  %v4642_v42 = vand.u32 2147483647, %v4638_v63  ;;  %v5001_v25 = vand.u32 2147483647, %v4997_v46  ;;  %v2403_v24 = vsub.f32 %v10929_v10, %v6824_v34  ;;  %v6971_v46 = vpop.f32.mrb[22].mxu0 }
 0x166   :  { %v6940_v1 = vadd.f32 %v3565_v56, %v6756_v52  ;;  %v6943_v45 = vadd.f32 %v3924_v61, %v6759_v54  ;;  %v6946_v15 = vadd.f32 %v4283_v4, %v6762_v17  ;;  %v2842_v0 = vsub.f32 %v10929_v10, %v6833_v13  ;;  %10930 = vst [vmem:[#allocation19_spill] sm:$0xff] %v6971_v46 }
 0x167   :  { %v6951_v9 = vadd.f32 %v4642_v42, %v6767_v41  ;;  %v6954_v27 = vadd.f32 %v5001_v25, %v6770_v44  ;;  %v2407_v31 = vand.u32 2147483647, %v2403_v24  ;;  %v3201_v52 = vsub.f32 %v10929_v10, %v6835_v49 }
 0x168   :  { %v2846_v40 = vand.u32 2147483647, %v2842_v0  ;;  %v3560_v54 = vsub.f32 %v10929_v10, %v6837_v16  ;;  %v3919_v17 = vsub.f32 %v10929_v10, %v6847_v51  ;;  %v4278_v43 = vsub.f32 %v10929_v10, %v6849_v50  ;;  %v10931_v0 = vld [vmem:[#allocation20_spill] sm:$0xff] }
 0x169   :  { %v6965_v41 = vadd.f32 %v2407_v31, %v6781_v6  ;;  %v3205_v8 = vand.u32 2147483647, %v3201_v52  ;;  %v4637_v44 = vsub.f32 %v10929_v10, %v6862_v3  ;;  %v4996_v63 = vsub.f32 %v10929_v10, %v6864_v14 }
 0x16a   :  { %v6974_v56 = vadd.f32 %v2846_v40, %v6790_v29  ;;  %v3564_v61 = vand.u32 2147483647, %v3560_v54  ;;  %v3923_v4 = vand.u32 2147483647, %v3919_v17  ;;  %v4282_v42 = vand.u32 2147483647, %v4278_v43 }
 0x16b   :  { %v6977_v25 = vadd.f32 %v3205_v8, %v6793_v57  ;;  %v4641_v6 = vand.u32 2147483647, %v4637_v44  ;;  %v5000_v24 = vand.u32 2147483647, %v4996_v63  ;;  %v2405_v31 = vsub.f32 %v10931_v0, %v6824_v34  ;;  %v6992_v54 = vpop.f32.mrb[22].mxu1  ;;  %v7008_v8 = vld [vmem:[#allocation3 + $0x30] sm:$0xff] }
 0x16c   :  { %v6982_v52 = vadd.f32 %v3564_v61, %v6798_v20  ;;  %v6985_v10 = vadd.f32 %v3923_v4, %v6801_v18  ;;  %v6988_v29 = vadd.f32 %v4282_v42, %v6804_v36  ;;  %v2844_v40 = vsub.f32 %v10931_v0, %v6833_v13  ;;  %10932 = vst [vmem:[#allocation20_spill] sm:$0xff] %v6992_v54  ;;  %v7017_v63 = vld [vmem:[#allocation3 + $0x100] sm:$0xff] }
 0x16d   :  { %v6995_v57 = vadd.f32 %v4641_v6, %v6811_v47  ;;  %v6998_v17 = vadd.f32 %v5000_v24, %v6814_v37  ;;  %v2409_v34 = vand.u32 2147483647, %v2405_v31  ;;  %v3203_v20 = vsub.f32 %v10931_v0, %v6835_v49  ;;  %v10933_v24 = vld [vmem:[#allocation21_spill] sm:$0xff] }
 0x16e   :  { %v2848_v18 = vand.u32 2147483647, %v2844_v40  ;;  %v3562_v36 = vsub.f32 %v10931_v0, %v6837_v16  ;;  %v3921_v43 = vsub.f32 %v10931_v0, %v6847_v51  ;;  %v4280_v13 = vsub.f32 %v10931_v0, %v6849_v50  ;;  %v7019_v16 = vld [vmem:[#allocation3 + $0x1d0] sm:$0xff]  ;;  %v7021_v51 = vld [vmem:[#allocation3 + $0x2a0] sm:$0xff] }
 0x16f   :  { %v7011_v47 = vadd.f32 %v2409_v34, %v6827_v33  ;;  %v3207_v37 = vand.u32 2147483647, %v3203_v20  ;;  %v4639_v44 = vsub.f32 %v10931_v0, %v6862_v3  ;;  %v4998_v49 = vsub.f32 %v10931_v0, %v6864_v14  ;;  %v7031_v0 = vld [vmem:[#allocation3 + $0x370] sm:$0xff]  ;;  %v7033_v31 = vld [vmem:[#allocation3 + $0x440] sm:$0xff] }
 0x170   :  { %v7024_v50 = vadd.f32 %v2848_v18, %v6840_v23  ;;  %v3566_v61 = vand.u32 2147483647, %v3562_v36  ;;  %v3925_v4 = vand.u32 2147483647, %v3921_v43  ;;  %v4284_v33 = vand.u32 2147483647, %v4280_v13 }
 0x171   :  { %v7027_v42 = vadd.f32 %v3207_v37, %v6843_v38  ;;  %v4643_v6 = vand.u32 2147483647, %v4639_v44  ;;  %v5002_v3 = vand.u32 2147483647, %v4998_v49  ;;  %v2419_v14 = vsub.f32 %v10933_v24, %v7008_v8  ;;  %v7046_v20 = vld [vmem:[#allocation3 + $0x510] sm:$0xff]  ;;  %v7048_v18 = vld [vmem:[#allocation3 + $0x5e0] sm:$0xff] }
 0x172   :  { %v7036_v40 = vadd.f32 %v3566_v61, %v6852_v26  ;;  %v7039_v23 = vadd.f32 %v3925_v4, %v6855_v28  ;;  %v7042_v34 = vadd.f32 %v4284_v33, %v6858_v19  ;;  %v2854_v38 = vsub.f32 %v10933_v24, %v7017_v63  ;;  %v7058_v13 = vpop.f32.mrb[23].mxu0 }
 0x173   :  { %v7051_v36 = vadd.f32 %v4643_v6, %v6867_v58  ;;  %v7054_v43 = vadd.f32 %v5002_v3, %v6870_v48  ;;  %v2423_v26 = vand.u32 2147483647, %v2419_v14  ;;  %v3213_v28 = vsub.f32 %v10933_v24, %v7019_v16  ;;  %10934 = vst [vmem:[#allocation21_spill] sm:$0xff] %v7058_v13 }
 0x174   :  { %v2858_v19 = vand.u32 2147483647, %v2854_v38  ;;  %v3572_v37 = vsub.f32 %v10933_v24, %v7021_v51  ;;  %v3931_v44 = vsub.f32 %v10933_v24, %v7031_v0  ;;  %v4290_v58 = vsub.f32 %v10933_v24, %v7033_v31 }
 0x175   :  { %v7067_v49 = vadd.f32 %v2423_v26, %v6883_v21  ;;  %v3217_v48 = vand.u32 2147483647, %v3213_v28  ;;  %v4649_v61 = vsub.f32 %v10933_v24, %v7046_v20  ;;  %v5008_v4 = vsub.f32 %v10933_v24, %v7048_v18  ;;  %v10935_v21 = vld [vmem:[#allocation22_spill] sm:$0xff] }
 0x176   :  { %v7074_v33 = vadd.f32 %v2858_v19, %v6890_v11  ;;  %v3576_v6 = vand.u32 2147483647, %v3572_v37  ;;  %v3935_v3 = vand.u32 2147483647, %v3931_v44  ;;  %v4294_v14 = vand.u32 2147483647, %v4290_v58 }
 0x177   :  { %v7077_v38 = vadd.f32 %v3217_v48, %v6893_v60  ;;  %v4653_v13 = vand.u32 2147483647, %v4649_v61  ;;  %v5012_v54 = vand.u32 2147483647, %v5008_v4  ;;  %v2421_v26 = vsub.f32 %v10935_v21, %v7008_v8  ;;  %v7092_v19 = vpop.f32.mrb[23].mxu1 }
 0x178   :  { %v7082_v28 = vadd.f32 %v3576_v6, %v6898_v2  ;;  %v7085_v46 = vadd.f32 %v3935_v3, %v6901_v62  ;;  %v7088_v11 = vadd.f32 %v4294_v14, %v6904_v39  ;;  %v2856_v24 = vsub.f32 %v10935_v21, %v7017_v63  ;;  %10936 = vst [vmem:[#allocation22_spill] sm:$0xff] %v7092_v19 }
 0x179   :  { %v7095_v60 = vadd.f32 %v4653_v13, %v6911_v7  ;;  %v7098_v37 = vadd.f32 %v5012_v54, %v6914_v30  ;;  %v2425_v44 = vand.u32 2147483647, %v2421_v26  ;;  %v3215_v2 = vsub.f32 %v10935_v21, %v7019_v16 }
 0x17a   :  { %v2860_v62 = vand.u32 2147483647, %v2856_v24  ;;  %v3574_v39 = vsub.f32 %v10935_v21, %v7021_v51  ;;  %v3933_v58 = vsub.f32 %v10935_v21, %v7031_v0  ;;  %v4292_v48 = vsub.f32 %v10935_v21, %v7033_v31 }
 0x17b   :  { %v7109_v7 = vadd.f32 %v2425_v44, %v6925_v55  ;;  %v3219_v13 = vand.u32 2147483647, %v3215_v2  ;;  %v4651_v30 = vsub.f32 %v10935_v21, %v7046_v20  ;;  %v5010_v54 = vsub.f32 %v10935_v21, %v7048_v18  ;;  %v10937_v55 = vld [vmem:[#allocation23_spill] sm:$0xff] }
 0x17c   :  { %v7116_v61 = vadd.f32 %v2860_v62, %v6932_v5  ;;  %v3578_v4 = vand.u32 2147483647, %v3574_v39  ;;  %v3937_v6 = vand.u32 2147483647, %v3933_v58  ;;  %v4296_v3 = vand.u32 2147483647, %v4292_v48 }
 0x17d   :  { %v7119_v14 = vadd.f32 %v3219_v13, %v6935_v32  ;;  %v4655_v26 = vand.u32 2147483647, %v4651_v30  ;;  %v5014_v24 = vand.u32 2147483647, %v5010_v54  ;;  %v2420_v44 = vsub.f32 %v10937_v55, %v7008_v8  ;;  %v7155_v54 = vpop.f32.mrb[24].mxu0 }
 0x17e   :  { %v7124_v2 = vadd.f32 %v3578_v4, %v6940_v1  ;;  %v7127_v19 = vadd.f32 %v3937_v6, %v6943_v45  ;;  %v7130_v5 = vadd.f32 %v4296_v3, %v6946_v15  ;;  %v2855_v21 = vsub.f32 %v10937_v55, %v7017_v63 }
 0x17f   :  { %v7135_v32 = vadd.f32 %v4655_v26, %v6951_v9  ;;  %v7138_v62 = vadd.f32 %v5014_v24, %v6954_v27  ;;  %v2424_v39 = vand.u32 2147483647, %v2420_v44  ;;  %v3214_v1 = vsub.f32 %v10937_v55, %v7019_v16 }
 0x180   :  { %v2859_v58 = vand.u32 2147483647, %v2855_v21  ;;  %v3573_v45 = vsub.f32 %v10937_v55, %v7021_v51  ;;  %v3932_v15 = vsub.f32 %v10937_v55, %v7031_v0  ;;  %v4291_v48 = vsub.f32 %v10937_v55, %v7033_v31 }
 0x181   :  { %v7149_v9 = vadd.f32 %v2424_v39, %v6965_v41  ;;  %v3218_v13 = vand.u32 2147483647, %v3214_v1  ;;  %v4650_v27 = vsub.f32 %v10937_v55, %v7046_v20  ;;  %v5009_v30 = vsub.f32 %v10937_v55, %v7048_v18 }
 0x182   :  { %v7158_v4 = vadd.f32 %v2859_v58, %v6974_v56  ;;  %v3577_v6 = vand.u32 2147483647, %v3573_v45  ;;  %v3936_v3 = vand.u32 2147483647, %v3932_v15  ;;  %v4295_v26 = vand.u32 2147483647, %v4291_v48 }
 0x183   :  { %v7161_v24 = vadd.f32 %v3218_v13, %v6977_v25  ;;  %v4654_v41 = vand.u32 2147483647, %v4650_v27  ;;  %v5013_v44 = vand.u32 2147483647, %v5009_v30  ;;  %v2422_v21 = vsub.f32 %v6193_v53, %v7008_v8  ;;  %v7176_v58 = vpop.f32.mrb[24].mxu1  ;;  %v7192_v48 = vld [vmem:[#allocation3 + $0x38] sm:$0xff] }
 0x184   :  { %v7166_v39 = vadd.f32 %v3577_v6, %v6982_v52  ;;  %v7169_v55 = vadd.f32 %v3936_v3, %v6985_v10  ;;  %v7172_v56 = vadd.f32 %v4295_v26, %v6988_v29  ;;  %v2857_v1 = vsub.f32 %v6193_v53, %v7017_v63  ;;  %v7201_v27 = vld [vmem:[#allocation3 + $0x108] sm:$0xff] }
 0x185   :  { %v7179_v25 = vadd.f32 %v4654_v41, %v6995_v57  ;;  %v7182_v45 = vadd.f32 %v5013_v44, %v6998_v17  ;;  %v2426_v8 = vand.u32 2147483647, %v2422_v21  ;;  %v3216_v52 = vsub.f32 %v6193_v53, %v7019_v16  ;;  %v7217_v41 = vld [vmem:[#allocation3 + $0x448] sm:$0xff] }
 0x186   :  { %v2861_v10 = vand.u32 2147483647, %v2857_v1  ;;  %v3575_v29 = vsub.f32 %v6193_v53, %v7021_v51  ;;  %v3934_v15 = vsub.f32 %v6193_v53, %v7031_v0  ;;  %v4293_v63 = vsub.f32 %v6193_v53, %v7033_v31  ;;  %v7203_v51 = vld [vmem:[#allocation3 + $0x1d8] sm:$0xff]  ;;  %v7205_v0 = vld [vmem:[#allocation3 + $0x2a8] sm:$0xff] }
 0x187   :  { %v7195_v57 = vadd.f32 %v2426_v8, %v7011_v47  ;;  %v3220_v17 = vand.u32 2147483647, %v3216_v52  ;;  %v4652_v13 = vsub.f32 %v6193_v53, %v7046_v20  ;;  %v5011_v16 = vsub.f32 %v6193_v53, %v7048_v18  ;;  %v7215_v18 = vld [vmem:[#allocation3 + $0x378] sm:$0xff]  ;;  %v7232_v8 = vld [vmem:[#allocation3 + $0x5e8] sm:$0xff] }
 0x188   :  { %v7208_v31 = vadd.f32 %v2861_v10, %v7024_v50  ;;  %v3579_v30 = vand.u32 2147483647, %v3575_v29  ;;  %v3938_v6 = vand.u32 2147483647, %v3934_v15  ;;  %v4297_v47 = vand.u32 2147483647, %v4293_v63 }
 0x189   :  { %v7211_v3 = vadd.f32 %v3220_v17, %v7027_v42  ;;  %v4656_v26 = vand.u32 2147483647, %v4652_v13  ;;  %v5015_v20 = vand.u32 2147483647, %v5011_v16  ;;  %v2436_v53 = vsub.f32 %v6235_v59, %v7192_v48  ;;  %v7230_v1 = vld [vmem:[#allocation3 + $0x518] sm:$0xff]  ;;  %v7242_v29 = vpop.f32.mrb[25].mxu0 }
 0x18a   :  { %v7220_v44 = vadd.f32 %v3579_v30, %v7036_v40  ;;  %v7223_v50 = vadd.f32 %v3938_v6, %v7039_v23  ;;  %v7226_v21 = vadd.f32 %v4297_v47, %v7042_v34  ;;  %v2867_v42 = vsub.f32 %v6235_v59, %v7201_v27 }
 0x18b   :  { %v7235_v52 = vadd.f32 %v4656_v26, %v7051_v36  ;;  %v7238_v10 = vadd.f32 %v5015_v20, %v7054_v43  ;;  %v2440_v40 = vand.u32 2147483647, %v2436_v53  ;;  %v3226_v23 = vsub.f32 %v6235_v59, %v7203_v51 }
 0x18c   :  { %v2871_v34 = vand.u32 2147483647, %v2867_v42  ;;  %v3585_v15 = vsub.f32 %v6235_v59, %v7205_v0  ;;  %v3944_v63 = vsub.f32 %v6235_v59, %v7215_v18  ;;  %v4303_v36 = vsub.f32 %v6235_v59, %v7217_v41 }
 0x18d   :  { %v7251_v17 = vadd.f32 %v2440_v40, %v7067_v49  ;;  %v3230_v43 = vand.u32 2147483647, %v3226_v23  ;;  %v4662_v13 = vsub.f32 %v6235_v59, %v7230_v1  ;;  %v5021_v16 = vsub.f32 %v6235_v59, %v7232_v8 }
 0x18e   :  { %v7258_v30 = vadd.f32 %v2871_v34, %v7074_v33  ;;  %v3589_v6 = vand.u32 2147483647, %v3585_v15  ;;  %v3948_v47 = vand.u32 2147483647, %v3944_v63  ;;  %v4307_v26 = vand.u32 2147483647, %v4303_v36 }
 0x18f   :  { %v7261_v20 = vadd.f32 %v3230_v43, %v7077_v38  ;;  %v4666_v53 = vand.u32 2147483647, %v4662_v13  ;;  %v5025_v42 = vand.u32 2147483647, %v5021_v16  ;;  %v2438_v49 = vsub.f32 %v6256_v12, %v7192_v48  ;;  %v7276_v34 = vpop.f32.mrb[25].mxu1 }
 0x190   :  { %v7266_v40 = vadd.f32 %v3589_v6, %v7082_v28  ;;  %v7269_v23 = vadd.f32 %v3948_v47, %v7085_v46  ;;  %v7272_v59 = vadd.f32 %v4307_v26, %v7088_v11  ;;  %v2869_v33 = vsub.f32 %v6256_v12, %v7201_v27  ;;  %10938 = vst [vmem:[#allocation23_spill] sm:$0xff] %v7276_v34 }
 0x191   :  { %v7279_v38 = vadd.f32 %v4666_v53, %v7095_v60  ;;  %v7282_v15 = vadd.f32 %v5025_v42, %v7098_v37  ;;  %v2442_v63 = vand.u32 2147483647, %v2438_v49  ;;  %v3228_v28 = vsub.f32 %v6256_v12, %v7203_v51 }
 0x192   :  { %v2873_v46 = vand.u32 2147483647, %v2869_v33  ;;  %v3587_v11 = vsub.f32 %v6256_v12, %v7205_v0  ;;  %v3946_v36 = vsub.f32 %v6256_v12, %v7215_v18  ;;  %v4305_v43 = vsub.f32 %v6256_v12, %v7217_v41 }
 0x193   :  { %v7293_v60 = vadd.f32 %v2442_v63, %v7109_v7  ;;  %v3232_v13 = vand.u32 2147483647, %v3228_v28  ;;  %v4664_v37 = vsub.f32 %v6256_v12, %v7230_v1  ;;  %v5023_v16 = vsub.f32 %v6256_v12, %v7232_v8  ;;  %v10939_v7 = vld [vmem:[#allocation24_spill] sm:$0xff] }
 0x194   :  { %v7300_v6 = vadd.f32 %v2873_v46, %v7116_v61  ;;  %v3591_v47 = vand.u32 2147483647, %v3587_v11  ;;  %v3950_v26 = vand.u32 2147483647, %v3946_v36  ;;  %v4309_v53 = vand.u32 2147483647, %v4305_v43 }
 0x195   :  { %v7303_v42 = vadd.f32 %v3232_v13, %v7119_v14  ;;  %v4668_v49 = vand.u32 2147483647, %v4664_v37  ;;  %v5027_v33 = vand.u32 2147483647, %v5023_v16  ;;  %v2437_v63 = vsub.f32 %v10939_v7, %v7192_v48  ;;  %v7339_v16 = vpop.f32.mrb[26].mxu0 }
 0x196   :  { %v7308_v28 = vadd.f32 %v3591_v47, %v7124_v2  ;;  %v7311_v34 = vadd.f32 %v3950_v26, %v7127_v19  ;;  %v7314_v12 = vadd.f32 %v4309_v53, %v7130_v5  ;;  %v2868_v61 = vsub.f32 %v10939_v7, %v7201_v27  ;;  %10940 = vst [vmem:[#allocation24_spill] sm:$0xff] %v7339_v16 }
 0x197   :  { %v7319_v14 = vadd.f32 %v4668_v49, %v7135_v32  ;;  %v7322_v46 = vadd.f32 %v5027_v33, %v7138_v62  ;;  %v2441_v11 = vand.u32 2147483647, %v2437_v63  ;;  %v3227_v2 = vsub.f32 %v10939_v7, %v7203_v51 }
 0x198   :  { %v2872_v36 = vand.u32 2147483647, %v2868_v61  ;;  %v3586_v19 = vsub.f32 %v10939_v7, %v7205_v0  ;;  %v3945_v5 = vsub.f32 %v10939_v7, %v7215_v18  ;;  %v4304_v43 = vsub.f32 %v10939_v7, %v7217_v41  ;;  %v10941_v61 = vld [vmem:[#allocation25_spill] sm:$0xff] }
 0x199   :  { %v7333_v32 = vadd.f32 %v2441_v11, %v7149_v9  ;;  %v3231_v13 = vand.u32 2147483647, %v3227_v2  ;;  %v4663_v62 = vsub.f32 %v10939_v7, %v7230_v1  ;;  %v5022_v37 = vsub.f32 %v10939_v7, %v7232_v8 }
 0x19a   :  { %v7342_v47 = vadd.f32 %v2872_v36, %v7158_v4  ;;  %v3590_v26 = vand.u32 2147483647, %v3586_v19  ;;  %v3949_v53 = vand.u32 2147483647, %v3945_v5  ;;  %v4308_v49 = vand.u32 2147483647, %v4304_v43 }
 0x19b   :  { %v7345_v33 = vadd.f32 %v3231_v13, %v7161_v24  ;;  %v4667_v9 = vand.u32 2147483647, %v4663_v62  ;;  %v5026_v63 = vand.u32 2147483647, %v5022_v37  ;;  %v2439_v11 = vsub.f32 %v10941_v61, %v7192_v48  ;;  %v7360_v19 = vpop.f32.mrb[26].mxu1  ;;  %v7376_v13 = vld [vmem:[#allocation3 + $0x40] sm:$0xff] }
 0x19c   :  { %v7350_v2 = vadd.f32 %v3590_v26, %v7166_v39  ;;  %v7353_v7 = vadd.f32 %v3949_v53, %v7169_v55  ;;  %v7356_v4 = vadd.f32 %v4308_v49, %v7172_v56  ;;  %v2870_v36 = vsub.f32 %v10941_v61, %v7201_v27  ;;  %10942 = vst [vmem:[#allocation25_spill] sm:$0xff] %v7360_v19  ;;  %v7385_v37 = vld [vmem:[#allocation3 + $0x110] sm:$0xff] }
 0x19d   :  { %v7363_v24 = vadd.f32 %v4667_v9, %v7179_v25  ;;  %v7366_v5 = vadd.f32 %v5026_v63, %v7182_v45  ;;  %v2443_v48 = vand.u32 2147483647, %v2439_v11  ;;  %v3229_v39 = vsub.f32 %v10941_v61, %v7203_v51  ;;  %v10943_v63 = vld [vmem:[#allocation9_spill] sm:$0xff]  ;;  %v7401_v11 = vld [vmem:[#allocation3 + $0x450] sm:$0xff] }
 0x19e   :  { %v2874_v55 = vand.u32 2147483647, %v2870_v36  ;;  %v3588_v56 = vsub.f32 %v10941_v61, %v7205_v0  ;;  %v3947_v43 = vsub.f32 %v10941_v61, %v7215_v18  ;;  %v4306_v27 = vsub.f32 %v10941_v61, %v7217_v41  ;;  %v7387_v0 = vld [vmem:[#allocation3 + $0x1e0] sm:$0xff]  ;;  %v7389_v18 = vld [vmem:[#allocation3 + $0x2b0] sm:$0xff] }
 0x19f   :  { %v7379_v25 = vadd.f32 %v2443_v48, %v7195_v57  ;;  %v3233_v45 = vand.u32 2147483647, %v3229_v39  ;;  %v4665_v62 = vsub.f32 %v10941_v61, %v7230_v1  ;;  %v5024_v51 = vsub.f32 %v10941_v61, %v7232_v8  ;;  %v7399_v61 = vld [vmem:[#allocation3 + $0x380] sm:$0xff] }
 0x1a0   :  { %v7392_v41 = vadd.f32 %v2874_v55, %v7208_v31  ;;  %v3592_v26 = vand.u32 2147483647, %v3588_v56  ;;  %v3951_v53 = vand.u32 2147483647, %v3947_v43  ;;  %v4310_v57 = vand.u32 2147483647, %v4306_v27 }
 0x1a1   :  { %v7395_v49 = vadd.f32 %v3233_v45, %v7211_v3  ;;  %v4669_v9 = vand.u32 2147483647, %v4665_v62  ;;  %v5028_v1 = vand.u32 2147483647, %v5024_v51  ;;  %v2453_v8 = vsub.f32 %v10943_v63, %v7376_v13  ;;  %v7414_v39 = vld [vmem:[#allocation3 + $0x520] sm:$0xff]  ;;  %v7416_v55 = vld [vmem:[#allocation3 + $0x5f0] sm:$0xff] }
 0x1a2   :  { %v7404_v36 = vadd.f32 %v3592_v26, %v7220_v44  ;;  %v7407_v31 = vadd.f32 %v3951_v53, %v7223_v50  ;;  %v7410_v48 = vadd.f32 %v4310_v57, %v7226_v21  ;;  %v2880_v3 = vsub.f32 %v10943_v63, %v7385_v37  ;;  %v7426_v27 = vpop.f32.mrb[27].mxu0 }
 0x1a3   :  { %v7419_v56 = vadd.f32 %v4669_v9, %v7235_v52  ;;  %v7422_v43 = vadd.f32 %v5028_v1, %v7238_v10  ;;  %v2457_v44 = vand.u32 2147483647, %v2453_v8  ;;  %v3239_v50 = vsub.f32 %v10943_v63, %v7387_v0  ;;  %10944 = vst [vmem:[#allocation9_spill] sm:$0xff] %v7426_v27 }
 0x1a4   :  { %v2884_v21 = vand.u32 2147483647, %v2880_v3  ;;  %v3598_v45 = vsub.f32 %v10943_v63, %v7389_v18  ;;  %v3957_v62 = vsub.f32 %v10943_v63, %v7399_v61  ;;  %v4316_v52 = vsub.f32 %v10943_v63, %v7401_v11 }
 0x1a5   :  { %v7435_v51 = vadd.f32 %v2457_v44, %v7251_v17  ;;  %v3243_v10 = vand.u32 2147483647, %v3239_v50  ;;  %v4675_v26 = vsub.f32 %v10943_v63, %v7414_v39  ;;  %v5034_v53 = vsub.f32 %v10943_v63, %v7416_v55  ;;  %v10945_v17 = vld [vmem:[#allocation10_spill] sm:$0xff] }
 0x1a6   :  { %v7442_v57 = vadd.f32 %v2884_v21, %v7258_v30  ;;  %v3602_v9 = vand.u32 2147483647, %v3598_v45  ;;  %v3961_v1 = vand.u32 2147483647, %v3957_v62  ;;  %v4320_v8 = vand.u32 2147483647, %v4316_v52 }
 0x1a7   :  { %v7445_v3 = vadd.f32 %v3243_v10, %v7261_v20  ;;  %v4679_v27 = vand.u32 2147483647, %v4675_v26  ;;  %v5038_v19 = vand.u32 2147483647, %v5034_v53  ;;  %v2455_v44 = vsub.f32 %v10945_v17, %v7376_v13  ;;  %v7460_v21 = vpop.f32.mrb[27].mxu1 }
 0x1a8   :  { %v7450_v50 = vadd.f32 %v3602_v9, %v7266_v40  ;;  %v7453_v16 = vadd.f32 %v3961_v1, %v7269_v23  ;;  %v7456_v30 = vadd.f32 %v4320_v8, %v7272_v59  ;;  %v2882_v63 = vsub.f32 %v10945_v17, %v7385_v37  ;;  %10946 = vst [vmem:[#allocation10_spill] sm:$0xff] %v7460_v21 }
 0x1a9   :  { %v7463_v20 = vadd.f32 %v4679_v27, %v7279_v38  ;;  %v7466_v45 = vadd.f32 %v5038_v19, %v7282_v15  ;;  %v2459_v62 = vand.u32 2147483647, %v2455_v44  ;;  %v3241_v40 = vsub.f32 %v10945_v17, %v7387_v0 }
 0x1aa   :  { %v2886_v23 = vand.u32 2147483647, %v2882_v63  ;;  %v3600_v59 = vsub.f32 %v10945_v17, %v7389_v18  ;;  %v3959_v52 = vsub.f32 %v10945_v17, %v7399_v61  ;;  %v4318_v10 = vsub.f32 %v10945_v17, %v7401_v11 }
 0x1ab   :  { %v7477_v38 = vadd.f32 %v2459_v62, %v7293_v60  ;;  %v3245_v27 = vand.u32 2147483647, %v3241_v40  ;;  %v4677_v15 = vsub.f32 %v10945_v17, %v7414_v39  ;;  %v5036_v19 = vsub.f32 %v10945_v17, %v7416_v55  ;;  %v10947_v60 = vld [vmem:[#allocation11_spill] sm:$0xff] }
 0x1ac   :  { %v7484_v26 = vadd.f32 %v2886_v23, %v7300_v6  ;;  %v3604_v53 = vand.u32 2147483647, %v3600_v59  ;;  %v3963_v9 = vand.u32 2147483647, %v3959_v52  ;;  %v4322_v1 = vand.u32 2147483647, %v4318_v10 }
 0x1ad   :  { %v7487_v8 = vadd.f32 %v3245_v27, %v7303_v42  ;;  %v4681_v44 = vand.u32 2147483647, %v4677_v15  ;;  %v5040_v63 = vand.u32 2147483647, %v5036_v19  ;;  %v2454_v62 = vsub.f32 %v10947_v60, %v7376_v13  ;;  %v7523_v19 = vpop.f32.mrb[28].mxu0 }
 0x1ae   :  { %v7492_v40 = vadd.f32 %v3604_v53, %v7308_v28  ;;  %v7495_v21 = vadd.f32 %v3963_v9, %v7311_v34  ;;  %v7498_v6 = vadd.f32 %v4322_v1, %v7314_v12  ;;  %v2881_v17 = vsub.f32 %v10947_v60, %v7385_v37  ;;  %10948 = vst [vmem:[#allocation11_spill] sm:$0xff] %v7523_v19 }
 0x1af   :  { %v7503_v42 = vadd.f32 %v4681_v44, %v7319_v14  ;;  %v7506_v23 = vadd.f32 %v5040_v63, %v7322_v46  ;;  %v2458_v59 = vand.u32 2147483647, %v2454_v62  ;;  %v3240_v28 = vsub.f32 %v10947_v60, %v7387_v0 }
 0x1b0   :  { %v2885_v52 = vand.u32 2147483647, %v2881_v17  ;;  %v3599_v34 = vsub.f32 %v10947_v60, %v7389_v18  ;;  %v3958_v12 = vsub.f32 %v10947_v60, %v7399_v61  ;;  %v4317_v10 = vsub.f32 %v10947_v60, %v7401_v11  ;;  %v10949_v17 = vld [vmem:[#allocation12_spill] sm:$0xff] }
 0x1b1   :  { %v7517_v14 = vadd.f32 %v2458_v59, %v7333_v32  ;;  %v3244_v27 = vand.u32 2147483647, %v3240_v28  ;;  %v4676_v46 = vsub.f32 %v10947_v60, %v7414_v39  ;;  %v5035_v15 = vsub.f32 %v10947_v60, %v7416_v55 }
 0x1b2   :  { %v7526_v53 = vadd.f32 %v2885_v52, %v7342_v47  ;;  %v3603_v9 = vand.u32 2147483647, %v3599_v34  ;;  %v3962_v1 = vand.u32 2147483647, %v3958_v12  ;;  %v4321_v44 = vand.u32 2147483647, %v4317_v10 }
 0x1b3   :  { %v7529_v63 = vadd.f32 %v3244_v27, %v7345_v33  ;;  %v4680_v32 = vand.u32 2147483647, %v4676_v46  ;;  %v5039_v62 = vand.u32 2147483647, %v5035_v15  ;;  %v2456_v59 = vsub.f32 %v10949_v17, %v7376_v13  ;;  %v7544_v34 = vpop.f32.mrb[28].mxu1  ;;  %v7560_v27 = vld [vmem:[#allocation3 + $0x48] sm:$0xff] }
 0x1b4   :  { %v7534_v28 = vadd.f32 %v3603_v9, %v7350_v2  ;;  %v7537_v60 = vadd.f32 %v3962_v1, %v7353_v7  ;;  %v7540_v47 = vadd.f32 %v4321_v44, %v7356_v4  ;;  %v2883_v52 = vsub.f32 %v10949_v17, %v7385_v37  ;;  %10950 = vst [vmem:[#allocation12_spill] sm:$0xff] %v7544_v34  ;;  %v7569_v15 = vld [vmem:[#allocation3 + $0x118] sm:$0xff] }
 0x1b5   :  { %v7547_v33 = vadd.f32 %v4680_v32, %v7363_v24  ;;  %v7550_v12 = vadd.f32 %v5039_v62, %v7366_v5  ;;  %v2460_v13 = vand.u32 2147483647, %v2456_v59  ;;  %v3242_v2 = vsub.f32 %v10949_v17, %v7387_v0  ;;  %v10951_v62 = vld [vmem:[#allocation13_spill] sm:$0xff]  ;;  %v7585_v59 = vld [vmem:[#allocation3 + $0x458] sm:$0xff] }
 0x1b6   :  { %v2887_v7 = vand.u32 2147483647, %v2883_v52  ;;  %v3601_v4 = vsub.f32 %v10949_v17, %v7389_v18  ;;  %v3960_v10 = vsub.f32 %v10949_v17, %v7399_v61  ;;  %v4319_v37 = vsub.f32 %v10949_v17, %v7401_v11  ;;  %v7571_v18 = vld [vmem:[#allocation3 + $0x1e8] sm:$0xff]  ;;  %v7573_v61 = vld [vmem:[#allocation3 + $0x2b8] sm:$0xff] }
 0x1b7   :  { %v7563_v24 = vadd.f32 %v2460_v13, %v7379_v25  ;;  %v3246_v5 = vand.u32 2147483647, %v3242_v2  ;;  %v4678_v46 = vsub.f32 %v10949_v17, %v7414_v39  ;;  %v5037_v0 = vsub.f32 %v10949_v17, %v7416_v55  ;;  %v7583_v17 = vld [vmem:[#allocation3 + $0x388] sm:$0xff] }
 0x1b8   :  { %v7576_v11 = vadd.f32 %v2887_v7, %v7392_v41  ;;  %v3605_v9 = vand.u32 2147483647, %v3601_v4  ;;  %v3964_v1 = vand.u32 2147483647, %v3960_v10  ;;  %v4323_v25 = vand.u32 2147483647, %v4319_v37 }
 0x1b9   :  { %v7579_v44 = vadd.f32 %v3246_v5, %v7395_v49  ;;  %v4682_v32 = vand.u32 2147483647, %v4678_v46  ;;  %v5041_v39 = vand.u32 2147483647, %v5037_v0  ;;  %v2470_v55 = vsub.f32 %v10951_v62, %v7560_v27  ;;  %v7598_v2 = vld [vmem:[#allocation3 + $0x528] sm:$0xff]  ;;  %v7600_v7 = vld [vmem:[#allocation3 + $0x5f8] sm:$0xff] }
 0x1ba   :  { %v7588_v52 = vadd.f32 %v3605_v9, %v7404_v36  ;;  %v7591_v41 = vadd.f32 %v3964_v1, %v7407_v31  ;;  %v7594_v13 = vadd.f32 %v4323_v25, %v7410_v48  ;;  %v2893_v49 = vsub.f32 %v10951_v62, %v7569_v15  ;;  %v7610_v37 = vpop.f32.mrb[29].mxu0 }
 0x1bb   :  { %v7603_v4 = vadd.f32 %v4682_v32, %v7419_v56  ;;  %v7606_v10 = vadd.f32 %v5041_v39, %v7422_v43  ;;  %v2474_v36 = vand.u32 2147483647, %v2470_v55  ;;  %v3252_v31 = vsub.f32 %v10951_v62, %v7571_v18  ;;  %10952 = vst [vmem:[#allocation13_spill] sm:$0xff] %v7610_v37 }
 0x1bc   :  { %v2897_v48 = vand.u32 2147483647, %v2893_v49  ;;  %v3611_v5 = vsub.f32 %v10951_v62, %v7573_v61  ;;  %v3970_v46 = vsub.f32 %v10951_v62, %v7583_v17  ;;  %v4329_v56 = vsub.f32 %v10951_v62, %v7585_v59 }
 0x1bd   :  { %v7619_v0 = vadd.f32 %v2474_v36, %v7435_v51  ;;  %v3256_v43 = vand.u32 2147483647, %v3252_v31  ;;  %v4688_v9 = vsub.f32 %v10951_v62, %v7598_v2  ;;  %v5047_v1 = vsub.f32 %v10951_v62, %v7600_v7  ;;  %v10953_v51 = vld [vmem:[#allocation14_spill] sm:$0xff] }
 0x1be   :  { %v7626_v25 = vadd.f32 %v2897_v48, %v7442_v57  ;;  %v3615_v32 = vand.u32 2147483647, %v3611_v5  ;;  %v3974_v39 = vand.u32 2147483647, %v3970_v46  ;;  %v4333_v55 = vand.u32 2147483647, %v4329_v56 }
 0x1bf   :  { %v7629_v49 = vadd.f32 %v3256_v43, %v7445_v3  ;;  %v4692_v37 = vand.u32 2147483647, %v4688_v9  ;;  %v5051_v34 = vand.u32 2147483647, %v5047_v1  ;;  %v2472_v36 = vsub.f32 %v10953_v51, %v7560_v27  ;;  %v7644_v48 = vpop.f32.mrb[29].mxu1 }
 0x1c0   :  { %v7634_v31 = vadd.f32 %v3615_v32, %v7450_v50  ;;  %v7637_v19 = vadd.f32 %v3974_v39, %v7453_v16  ;;  %v7640_v57 = vadd.f32 %v4333_v55, %v7456_v30  ;;  %v2895_v62 = vsub.f32 %v10953_v51, %v7569_v15  ;;  %10954 = vst [vmem:[#allocation14_spill] sm:$0xff] %v7644_v48 }
 0x1c1   :  { %v7647_v3 = vadd.f32 %v4692_v37, %v7463_v20  ;;  %v7650_v5 = vadd.f32 %v5051_v34, %v7466_v45  ;;  %v2476_v46 = vand.u32 2147483647, %v2472_v36  ;;  %v3254_v50 = vsub.f32 %v10953_v51, %v7571_v18 }
 0x1c2   :  { %v2899_v16 = vand.u32 2147483647, %v2895_v62  ;;  %v3613_v30 = vsub.f32 %v10953_v51, %v7573_v61  ;;  %v3972_v56 = vsub.f32 %v10953_v51, %v7583_v17  ;;  %v4331_v43 = vsub.f32 %v10953_v51, %v7585_v59 }
 0x1c3   :  { %v7661_v20 = vadd.f32 %v2476_v46, %v7477_v38  ;;  %v3258_v37 = vand.u32 2147483647, %v3254_v50  ;;  %v4690_v45 = vsub.f32 %v10953_v51, %v7598_v2  ;;  %v5049_v34 = vsub.f32 %v10953_v51, %v7600_v7  ;;  %v10955_v38 = vld [vmem:[#allocation15_spill] sm:$0xff] }
 0x1c4   :  { %v7668_v9 = vadd.f32 %v2899_v16, %v7484_v26  ;;  %v3617_v1 = vand.u32 2147483647, %v3613_v30  ;;  %v3976_v32 = vand.u32 2147483647, %v3972_v56  ;;  %v4335_v39 = vand.u32 2147483647, %v4331_v43 }
 0x1c5   :  { %v7671_v55 = vadd.f32 %v3258_v37, %v7487_v8  ;;  %v4694_v36 = vand.u32 2147483647, %v4690_v45  ;;  %v5053_v62 = vand.u32 2147483647, %v5049_v34  ;;  %v2471_v46 = vsub.f32 %v10955_v38, %v7560_v27  ;;  %v7707_v34 = vpop.f32.mrb[30].mxu0 }
 0x1c6   :  { %v7676_v50 = vadd.f32 %v3617_v1, %v7492_v40  ;;  %v7679_v48 = vadd.f32 %v3976_v32, %v7495_v21  ;;  %v7682_v26 = vadd.f32 %v4335_v39, %v7498_v6  ;;  %v2894_v51 = vsub.f32 %v10955_v38, %v7569_v15 }
 0x1c7   :  { %v7687_v8 = vadd.f32 %v4694_v36, %v7503_v42  ;;  %v7690_v16 = vadd.f32 %v5053_v62, %v7506_v23  ;;  %v2475_v30 = vand.u32 2147483647, %v2471_v46  ;;  %v3253_v40 = vsub.f32 %v10955_v38, %v7571_v18 }
 0x1c8   :  { %v2898_v56 = vand.u32 2147483647, %v2894_v51  ;;  %v3612_v21 = vsub.f32 %v10955_v38, %v7573_v61  ;;  %v3971_v6 = vsub.f32 %v10955_v38, %v7583_v17  ;;  %v4330_v43 = vsub.f32 %v10955_v38, %v7585_v59 }
 0x1c9   :  { %v7701_v42 = vadd.f32 %v2475_v30, %v7517_v14  ;;  %v3257_v37 = vand.u32 2147483647, %v3253_v40  ;;  %v4689_v23 = vsub.f32 %v10955_v38, %v7598_v2  ;;  %v5048_v45 = vsub.f32 %v10955_v38, %v7600_v7 }
 0x1ca   :  { %v7710_v1 = vadd.f32 %v2898_v56, %v7526_v53  ;;  %v3616_v32 = vand.u32 2147483647, %v3612_v21  ;;  %v3975_v39 = vand.u32 2147483647, %v3971_v6  ;;  %v4334_v36 = vand.u32 2147483647, %v4330_v43 }
 0x1cb   :  { %v7713_v62 = vadd.f32 %v3257_v37, %v7529_v63  ;;  %v4693_v14 = vand.u32 2147483647, %v4689_v23  ;;  %v5052_v46 = vand.u32 2147483647, %v5048_v45  ;;  %v2473_v51 = vsub.f32 %v6724_v35, %v7560_v27  ;;  %v7728_v56 = vpop.f32.mrb[30].mxu1  ;;  %v7744_v43 = vld [vmem:[#allocation3 + $0x50] sm:$0xff] }
 0x1cc   :  { %v7718_v30 = vadd.f32 %v3616_v32, %v7534_v28  ;;  %v7721_v38 = vadd.f32 %v3975_v39, %v7537_v60  ;;  %v7724_v53 = vadd.f32 %v4334_v36, %v7540_v47  ;;  %v2896_v40 = vsub.f32 %v6724_v35, %v7569_v15  ;;  %v7753_v23 = vld [vmem:[#allocation3 + $0x120] sm:$0xff] }
 0x1cd   :  { %v7731_v63 = vadd.f32 %v4693_v14, %v7547_v33  ;;  %v7734_v21 = vadd.f32 %v5052_v46, %v7550_v12  ;;  %v2477_v27 = vand.u32 2147483647, %v2473_v51  ;;  %v3255_v28 = vsub.f32 %v6724_v35, %v7571_v18  ;;  %v7769_v14 = vld [vmem:[#allocation3 + $0x460] sm:$0xff] }
 0x1ce   :  { %v2900_v60 = vand.u32 2147483647, %v2896_v40  ;;  %v3614_v47 = vsub.f32 %v6724_v35, %v7573_v61  ;;  %v3973_v6 = vsub.f32 %v6724_v35, %v7583_v17  ;;  %v4332_v15 = vsub.f32 %v6724_v35, %v7585_v59  ;;  %v7755_v61 = vld [vmem:[#allocation3 + $0x1f0] sm:$0xff]  ;;  %v7757_v17 = vld [vmem:[#allocation3 + $0x2c0] sm:$0xff] }
 0x1cf   :  { %v7747_v33 = vadd.f32 %v2477_v27, %v7563_v24  ;;  %v3259_v12 = vand.u32 2147483647, %v3255_v28  ;;  %v4691_v37 = vsub.f32 %v6724_v35, %v7598_v2  ;;  %v5050_v18 = vsub.f32 %v6724_v35, %v7600_v7  ;;  %v7767_v7 = vld [vmem:[#allocation3 + $0x390] sm:$0xff]  ;;  %v7784_v27 = vld [vmem:[#allocation3 + $0x600] sm:$0xff] }
 0x1d0   :  { %v7760_v59 = vadd.f32 %v2900_v60, %v7576_v11  ;;  %v3618_v45 = vand.u32 2147483647, %v3614_v47  ;;  %v3977_v32 = vand.u32 2147483647, %v3973_v6  ;;  %v4336_v24 = vand.u32 2147483647, %v4332_v15 }
 0x1d1   :  { %v7763_v39 = vadd.f32 %v3259_v12, %v7579_v44  ;;  %v4695_v36 = vand.u32 2147483647, %v4691_v37  ;;  %v5054_v2 = vand.u32 2147483647, %v5050_v18  ;;  %v2487_v35 = vsub.f32 %v6787_v22, %v7744_v43  ;;  %v7782_v40 = vld [vmem:[#allocation3 + $0x530] sm:$0xff]  ;;  %v7794_v47 = vpop.f32.mrb[31].mxu0 }
 0x1d2   :  { %v7772_v46 = vadd.f32 %v3618_v45, %v7588_v52  ;;  %v7775_v11 = vadd.f32 %v3977_v32, %v7591_v41  ;;  %v7778_v51 = vadd.f32 %v4336_v24, %v7594_v13  ;;  %v2906_v44 = vsub.f32 %v6787_v22, %v7753_v23  ;;  %10956 = vst [vmem:[#allocation15_spill] sm:$0xff] %v7794_v47 }
 0x1d3   :  { %v7787_v28 = vadd.f32 %v4695_v36, %v7603_v4  ;;  %v7790_v60 = vadd.f32 %v5054_v2, %v7606_v10  ;;  %v2491_v52 = vand.u32 2147483647, %v2487_v35  ;;  %v3265_v41 = vsub.f32 %v6787_v22, %v7755_v61 }
 0x1d4   :  { %v2910_v13 = vand.u32 2147483647, %v2906_v44  ;;  %v3624_v6 = vsub.f32 %v6787_v22, %v7757_v17  ;;  %v3983_v15 = vsub.f32 %v6787_v22, %v7767_v7  ;;  %v4342_v4 = vsub.f32 %v6787_v22, %v7769_v14 }
 0x1d5   :  { %v7803_v12 = vadd.f32 %v2491_v52, %v7619_v0  ;;  %v3269_v10 = vand.u32 2147483647, %v3265_v41  ;;  %v4701_v37 = vsub.f32 %v6787_v22, %v7782_v40  ;;  %v5060_v18 = vsub.f32 %v6787_v22, %v7784_v27  ;;  %v10957_v0 = vld [vmem:[#allocation16_spill] sm:$0xff] }
 0x1d6   :  { %v7810_v45 = vadd.f32 %v2910_v13, %v7626_v25  ;;  %v3628_v32 = vand.u32 2147483647, %v3624_v6  ;;  %v3987_v24 = vand.u32 2147483647, %v3983_v15  ;;  %v4346_v36 = vand.u32 2147483647, %v4342_v4 }
 0x1d7   :  { %v7813_v2 = vadd.f32 %v3269_v10, %v7629_v49  ;;  %v4705_v35 = vand.u32 2147483647, %v4701_v37  ;;  %v5064_v44 = vand.u32 2147483647, %v5060_v18  ;;  %v2489_v52 = vsub.f32 %v10957_v0, %v7744_v43  ;;  %v7828_v13 = vpop.f32.mrb[31].mxu1 }
 0x1d8   :  { %v7818_v41 = vadd.f32 %v3628_v32, %v7634_v31  ;;  %v7821_v47 = vadd.f32 %v3987_v24, %v7637_v19  ;;  %v7824_v22 = vadd.f32 %v4346_v36, %v7640_v57  ;;  %v2908_v25 = vsub.f32 %v10957_v0, %v7753_v23  ;;  %10958 = vst [vmem:[#allocation16_spill] sm:$0xff] %v7828_v13 }
 0x1d9   :  { %v7831_v49 = vadd.f32 %v4705_v35, %v7647_v3  ;;  %v7834_v6 = vadd.f32 %v5064_v44, %v7650_v5  ;;  %v2493_v15 = vand.u32 2147483647, %v2489_v52  ;;  %v3267_v31 = vsub.f32 %v10957_v0, %v7755_v61 }
 0x1da   :  { %v2912_v19 = vand.u32 2147483647, %v2908_v25  ;;  %v3626_v57 = vsub.f32 %v10957_v0, %v7757_v17  ;;  %v3985_v4 = vsub.f32 %v10957_v0, %v7767_v7  ;;  %v4344_v10 = vsub.f32 %v10957_v0, %v7769_v14 }
 0x1db   :  { %v7845_v3 = vadd.f32 %v2493_v15, %v7661_v20  ;;  %v3271_v37 = vand.u32 2147483647, %v3267_v31  ;;  %v4703_v5 = vsub.f32 %v10957_v0, %v7782_v40  ;;  %v5062_v18 = vsub.f32 %v10957_v0, %v7784_v27  ;;  %v10959_v20 = vld [vmem:[#allocation17_spill] sm:$0xff] }
 0x1dc   :  { %v7852_v32 = vadd.f32 %v2912_v19, %v7668_v9  ;;  %v3630_v24 = vand.u32 2147483647, %v3626_v57  ;;  %v3989_v36 = vand.u32 2147483647, %v3985_v4  ;;  %v4348_v35 = vand.u32 2147483647, %v4344_v10 }
 0x1dd   :  { %v7855_v44 = vadd.f32 %v3271_v37, %v7671_v55  ;;  %v4707_v52 = vand.u32 2147483647, %v4703_v5  ;;  %v5066_v25 = vand.u32 2147483647, %v5062_v18  ;;  %v2488_v15 = vsub.f32 %v10959_v20, %v7744_v43  ;;  %v7891_v18 = vpop.f32.mrb[32].mxu0 }
 0x1de   :  { %v7860_v31 = vadd.f32 %v3630_v24, %v7676_v50  ;;  %v7863_v13 = vadd.f32 %v3989_v36, %v7679_v48  ;;  %v7866_v9 = vadd.f32 %v4348_v35, %v7682_v26  ;;  %v2907_v0 = vsub.f32 %v10959_v20, %v7753_v23  ;;  %10960 = vst [vmem:[#allocation17_spill] sm:$0xff] %v7891_v18 }
 0x1df   :  { %v7871_v55 = vadd.f32 %v4707_v52, %v7687_v8  ;;  %v7874_v19 = vadd.f32 %v5066_v25, %v7690_v16  ;;  %v2492_v57 = vand.u32 2147483647, %v2488_v15  ;;  %v3266_v50 = vsub.f32 %v10959_v20, %v7755_v61 }
 0x1e0   :  { %v2911_v4 = vand.u32 2147483647, %v2907_v0  ;;  %v3625_v48 = vsub.f32 %v10959_v20, %v7757_v17  ;;  %v3984_v26 = vsub.f32 %v10959_v20, %v7767_v7  ;;  %v4343_v10 = vsub.f32 %v10959_v20, %v7769_v14  ;;  %v10961_v0 = vld [vmem:[#allocation18_spill] sm:$0xff] }
 0x1e1   :  { %v7885_v8 = vadd.f32 %v2492_v57, %v7701_v42  ;;  %v3270_v37 = vand.u32 2147483647, %v3266_v50  ;;  %v4702_v16 = vsub.f32 %v10959_v20, %v7782_v40  ;;  %v5061_v5 = vsub.f32 %v10959_v20, %v7784_v27 }
 0x1e2   :  { %v7894_v24 = vadd.f32 %v2911_v4, %v7710_v1  ;;  %v3629_v36 = vand.u32 2147483647, %v3625_v48  ;;  %v3988_v35 = vand.u32 2147483647, %v3984_v26  ;;  %v4347_v52 = vand.u32 2147483647, %v4343_v10 }
 0x1e3   :  { %v7897_v25 = vadd.f32 %v3270_v37, %v7713_v62  ;;  %v4706_v42 = vand.u32 2147483647, %v4702_v16  ;;  %v5065_v15 = vand.u32 2147483647, %v5061_v5  ;;  %v2490_v57 = vsub.f32 %v10961_v0, %v7744_v43  ;;  %v7912_v48 = vpop.f32.mrb[32].mxu1  ;;  %v7928_v37 = vld [vmem:[#allocation3 + $0x58] sm:$0xff] }
 0x1e4   :  { %v7902_v50 = vadd.f32 %v3629_v36, %v7718_v30  ;;  %v7905_v20 = vadd.f32 %v3988_v35, %v7721_v38  ;;  %v7908_v1 = vadd.f32 %v4347_v52, %v7724_v53  ;;  %v2909_v4 = vsub.f32 %v10961_v0, %v7753_v23  ;;  %10962 = vst [vmem:[#allocation18_spill] sm:$0xff] %v7912_v48  ;;  %v7937_v5 = vld [vmem:[#allocation3 + $0x128] sm:$0xff] }
 0x1e5   :  { %v7915_v62 = vadd.f32 %v4706_v42, %v7731_v63  ;;  %v7918_v26 = vadd.f32 %v5065_v15, %v7734_v21  ;;  %v2494_v43 = vand.u32 2147483647, %v2490_v57  ;;  %v3268_v30 = vsub.f32 %v10961_v0, %v7755_v61  ;;  %v10963_v15 = vld [vmem:[#allocation19_spill] sm:$0xff]  ;;  %v7953_v57 = vld [vmem:[#allocation3 + $0x468] sm:$0xff] }
 0x1e6   :  { %v2913_v38 = vand.u32 2147483647, %v2909_v4  ;;  %v3627_v53 = vsub.f32 %v10961_v0, %v7757_v17  ;;  %v3986_v10 = vsub.f32 %v10961_v0, %v7767_v7  ;;  %v4345_v23 = vsub.f32 %v10961_v0, %v7769_v14  ;;  %v7939_v17 = vld [vmem:[#allocation3 + $0x1f8] sm:$0xff]  ;;  %v7941_v7 = vld [vmem:[#allocation3 + $0x2c8] sm:$0xff] }
 0x1e7   :  { %v7931_v63 = vadd.f32 %v2494_v43, %v7747_v33  ;;  %v3272_v21 = vand.u32 2147483647, %v3268_v30  ;;  %v4704_v16 = vsub.f32 %v10961_v0, %v7782_v40  ;;  %v5063_v61 = vsub.f32 %v10961_v0, %v7784_v27  ;;  %v7951_v0 = vld [vmem:[#allocation3 + $0x398] sm:$0xff] }
 0x1e8   :  { %v7944_v14 = vadd.f32 %v2913_v38, %v7760_v59  ;;  %v3631_v36 = vand.u32 2147483647, %v3627_v53  ;;  %v3990_v35 = vand.u32 2147483647, %v3986_v10  ;;  %v4349_v33 = vand.u32 2147483647, %v4345_v23 }
 0x1e9   :  { %v7947_v52 = vadd.f32 %v3272_v21, %v7763_v39  ;;  %v4708_v42 = vand.u32 2147483647, %v4704_v16  ;;  %v5067_v40 = vand.u32 2147483647, %v5063_v61  ;;  %v2504_v27 = vsub.f32 %v10963_v15, %v7928_v37  ;;  %v7966_v30 = vld [vmem:[#allocation3 + $0x538] sm:$0xff]  ;;  %v7968_v38 = vld [vmem:[#allocation3 + $0x608] sm:$0xff] }
 0x1ea   :  { %v7956_v4 = vadd.f32 %v3631_v36, %v7772_v46  ;;  %v7959_v59 = vadd.f32 %v3990_v35, %v7775_v11  ;;  %v7962_v43 = vadd.f32 %v4349_v33, %v7778_v51  ;;  %v2919_v39 = vsub.f32 %v10963_v15, %v7937_v5  ;;  %v7978_v23 = vpop.f32.mrb[33].mxu0 }
 0x1eb   :  { %v7971_v53 = vadd.f32 %v4708_v42, %v7787_v28  ;;  %v7974_v10 = vadd.f32 %v5067_v40, %v7790_v60  ;;  %v2508_v46 = vand.u32 2147483647, %v2504_v27  ;;  %v3278_v11 = vsub.f32 %v10963_v15, %v7939_v17  ;;  %10964 = vst [vmem:[#allocation19_spill] sm:$0xff] %v7978_v23 }
 0x1ec   :  { %v2923_v51 = vand.u32 2147483647, %v2919_v39  ;;  %v3637_v21 = vsub.f32 %v10963_v15, %v7941_v7  ;;  %v3996_v16 = vsub.f32 %v10963_v15, %v7951_v0  ;;  %v4355_v28 = vsub.f32 %v10963_v15, %v7953_v57 }
 0x1ed   :  { %v7987_v61 = vadd.f32 %v2508_v46, %v7803_v12  ;;  %v3282_v60 = vand.u32 2147483647, %v3278_v11  ;;  %v4714_v36 = vsub.f32 %v10963_v15, %v7966_v30  ;;  %v5073_v35 = vsub.f32 %v10963_v15, %v7968_v38  ;;  %v10965_v12 = vld [vmem:[#allocation20_spill] sm:$0xff] }
 0x1ee   :  { %v7994_v33 = vadd.f32 %v2923_v51, %v7810_v45  ;;  %v3641_v42 = vand.u32 2147483647, %v3637_v21  ;;  %v4000_v40 = vand.u32 2147483647, %v3996_v16  ;;  %v4359_v27 = vand.u32 2147483647, %v4355_v28 }
 0x1ef   :  { %v7997_v39 = vadd.f32 %v3282_v60, %v7813_v2  ;;  %v4718_v23 = vand.u32 2147483647, %v4714_v36  ;;  %v5077_v48 = vand.u32 2147483647, %v5073_v35  ;;  %v2506_v46 = vsub.f32 %v10965_v12, %v7928_v37  ;;  %v8012_v51 = vpop.f32.mrb[33].mxu1 }
 0x1f0   :  { %v8002_v11 = vadd.f32 %v3641_v42, %v7818_v41  ;;  %v8005_v18 = vadd.f32 %v4000_v40, %v7821_v47  ;;  %v8008_v45 = vadd.f32 %v4359_v27, %v7824_v22  ;;  %v2921_v15 = vsub.f32 %v10965_v12, %v7937_v5  ;;  %10966 = vst [vmem:[#allocation20_spill] sm:$0xff] %v8012_v51 }
 0x1f1   :  { %v8015_v2 = vadd.f32 %v4718_v23, %v7831_v49  ;;  %v8018_v21 = vadd.f32 %v5077_v48, %v7834_v6  ;;  %v2510_v16 = vand.u32 2147483647, %v2506_v46  ;;  %v3280_v41 = vsub.f32 %v10965_v12, %v7939_v17 }
 0x1f2   :  { %v2925_v47 = vand.u32 2147483647, %v2921_v15  ;;  %v3639_v22 = vsub.f32 %v10965_v12, %v7941_v7  ;;  %v3998_v28 = vsub.f32 %v10965_v12, %v7951_v0  ;;  %v4357_v60 = vsub.f32 %v10965_v12, %v7953_v57 }
 0x1f3   :  { %v8029_v49 = vadd.f32 %v2510_v16, %v7845_v3  ;;  %v3284_v23 = vand.u32 2147483647, %v3280_v41  ;;  %v4716_v6 = vsub.f32 %v10965_v12, %v7966_v30  ;;  %v5075_v48 = vsub.f32 %v10965_v12, %v7968_v38  ;;  %v10967_v3 = vld [vmem:[#allocation21_spill] sm:$0xff] }
 0x1f4   :  { %v8036_v36 = vadd.f32 %v2925_v47, %v7852_v32  ;;  %v3643_v35 = vand.u32 2147483647, %v3639_v22  ;;  %v4002_v42 = vand.u32 2147483647, %v3998_v28  ;;  %v4361_v40 = vand.u32 2147483647, %v4357_v60 }
 0x1f5   :  { %v8039_v27 = vadd.f32 %v3284_v23, %v7855_v44  ;;  %v4720_v46 = vand.u32 2147483647, %v4716_v6  ;;  %v5079_v15 = vand.u32 2147483647, %v5075_v48  ;;  %v2505_v16 = vsub.f32 %v10967_v3, %v7928_v37  ;;  %v8075_v48 = vpop.f32.mrb[34].mxu0 }
 0x1f6   :  { %v8044_v41 = vadd.f32 %v3643_v35, %v7860_v31  ;;  %v8047_v51 = vadd.f32 %v4002_v42, %v7863_v13  ;;  %v8050_v32 = vadd.f32 %v4361_v40, %v7866_v9  ;;  %v2920_v12 = vsub.f32 %v10967_v3, %v7937_v5 }
 0x1f7   :  { %v8055_v44 = vadd.f32 %v4720_v46, %v7871_v55  ;;  %v8058_v47 = vadd.f32 %v5079_v15, %v7874_v19  ;;  %v2509_v22 = vand.u32 2147483647, %v2505_v16  ;;  %v3279_v31 = vsub.f32 %v10967_v3, %v7939_v17 }
 0x1f8   :  { %v2924_v28 = vand.u32 2147483647, %v2920_v12  ;;  %v3638_v13 = vsub.f32 %v10967_v3, %v7941_v7  ;;  %v3997_v9 = vsub.f32 %v10967_v3, %v7951_v0  ;;  %v4356_v60 = vsub.f32 %v10967_v3, %v7953_v57  ;;  %v10968_v12 = vld [vmem:[#allocation22_spill] sm:$0xff] }
 0x1f9   :  { %v8069_v55 = vadd.f32 %v2509_v22, %v7885_v8  ;;  %v3283_v23 = vand.u32 2147483647, %v3279_v31  ;;  %v4715_v19 = vsub.f32 %v10967_v3, %v7966_v30  ;;  %v5074_v6 = vsub.f32 %v10967_v3, %v7968_v38 }
 0x1fa   :  { %v8078_v35 = vadd.f32 %v2924_v28, %v7894_v24  ;;  %v3642_v42 = vand.u32 2147483647, %v3638_v13  ;;  %v4001_v40 = vand.u32 2147483647, %v3997_v9  ;;  %v4360_v46 = vand.u32 2147483647, %v4356_v60 }
 0x1fb   :  { %v8081_v15 = vadd.f32 %v3283_v23, %v7897_v25  ;;  %v4719_v8 = vand.u32 2147483647, %v4715_v19  ;;  %v5078_v16 = vand.u32 2147483647, %v5074_v6  ;;  %v2507_v22 = vsub.f32 %v10968_v12, %v7928_v37  ;;  %v8096_v13 = vpop.f32.mrb[34].mxu1  ;;  %v8112_v23 = vld [vmem:[#allocation3 + $0x60] sm:$0xff] }
 0x1fc   :  { %v8086_v31 = vadd.f32 %v3642_v42, %v7902_v50  ;;  %v8089_v3 = vadd.f32 %v4001_v40, %v7905_v20  ;;  %v8092_v24 = vadd.f32 %v4360_v46, %v7908_v1  ;;  %v2922_v28 = vsub.f32 %v10968_v12, %v7937_v5  ;;  %v8121_v6 = vld [vmem:[#allocation3 + $0x130] sm:$0xff] }
 0x1fd   :  { %v8099_v25 = vadd.f32 %v4719_v8, %v7915_v62  ;;  %v8102_v9 = vadd.f32 %v5078_v16, %v7918_v26  ;;  %v2511_v37 = vand.u32 2147483647, %v2507_v22  ;;  %v3281_v50 = vsub.f32 %v10968_v12, %v7939_v17  ;;  %v8135_v16 = vld [vmem:[#allocation3 + $0x3a0] sm:$0xff] }
 0x1fe   :  { %v2926_v20 = vand.u32 2147483647, %v2922_v28  ;;  %v3640_v1 = vsub.f32 %v10968_v12, %v7941_v7  ;;  %v3999_v60 = vsub.f32 %v10968_v12, %v7951_v0  ;;  %v4358_v5 = vsub.f32 %v10968_v12, %v7953_v57  ;;  %v8123_v7 = vld [vmem:[#allocation3 + $0x200] sm:$0xff]  ;;  %v8125_v0 = vld [vmem:[#allocation3 + $0x2d0] sm:$0xff] }
 0x1ff   :  { %v8115_v62 = vadd.f32 %v2511_v37, %v7931_v63  ;;  %v3285_v26 = vand.u32 2147483647, %v3281_v50  ;;  %v4717_v19 = vsub.f32 %v10968_v12, %v7966_v30  ;;  %v5076_v17 = vsub.f32 %v10968_v12, %v7968_v38  ;;  %v8137_v12 = vld [vmem:[#allocation3 + $0x470] sm:$0xff]  ;;  %v8150_v37 = vld [vmem:[#allocation3 + $0x540] sm:$0xff] }
 0x200   :  { %v8128_v57 = vadd.f32 %v2926_v20, %v7944_v14  ;;  %v3644_v42 = vand.u32 2147483647, %v3640_v1  ;;  %v4003_v40 = vand.u32 2147483647, %v3999_v60  ;;  %v4362_v63 = vand.u32 2147483647, %v4358_v5 }
 0x201   :  { %v8131_v46 = vadd.f32 %v3285_v26, %v7947_v52  ;;  %v4721_v8 = vand.u32 2147483647, %v4717_v19  ;;  %v5080_v30 = vand.u32 2147483647, %v5076_v17  ;;  %v2521_v38 = vsub.f32 %v7155_v54, %v8112_v23  ;;  %v8152_v50 = vld [vmem:[#allocation3 + $0x610] sm:$0xff]  ;;  %v8162_v60 = vpop.f32.mrb[35].mxu0 }
 0x202   :  { %v8140_v22 = vadd.f32 %v3644_v42, %v7956_v4  ;;  %v8143_v14 = vadd.f32 %v4003_v40, %v7959_v59  ;;  %v8146_v28 = vadd.f32 %v4362_v63, %v7962_v43  ;;  %v2932_v52 = vsub.f32 %v7155_v54, %v8121_v6  ;;  %10969 = vst [vmem:[#allocation21_spill] sm:$0xff] %v8162_v60 }
 0x203   :  { %v8155_v20 = vadd.f32 %v4721_v8, %v7971_v53  ;;  %v8158_v1 = vadd.f32 %v5080_v30, %v7974_v10  ;;  %v2525_v4 = vand.u32 2147483647, %v2521_v38  ;;  %v3291_v59 = vsub.f32 %v7155_v54, %v8123_v7 }
 0x204   :  { %v2936_v43 = vand.u32 2147483647, %v2932_v52  ;;  %v3650_v5 = vsub.f32 %v7155_v54, %v8125_v0  ;;  %v4009_v26 = vsub.f32 %v7155_v54, %v8135_v16  ;;  %v4368_v53 = vsub.f32 %v7155_v54, %v8137_v12 }
 0x205   :  { %v8171_v19 = vadd.f32 %v2525_v4, %v7987_v61  ;;  %v3295_v10 = vand.u32 2147483647, %v3291_v59  ;;  %v4727_v17 = vsub.f32 %v7155_v54, %v8150_v37  ;;  %v5086_v42 = vsub.f32 %v7155_v54, %v8152_v50 }
 0x206   :  { %v8178_v40 = vadd.f32 %v2936_v43, %v7994_v33  ;;  %v3654_v63 = vand.u32 2147483647, %v3650_v5  ;;  %v4013_v8 = vand.u32 2147483647, %v4009_v26  ;;  %v4372_v30 = vand.u32 2147483647, %v4368_v53 }
 0x207   :  { %v8181_v38 = vadd.f32 %v3295_v10, %v7997_v39  ;;  %v4731_v52 = vand.u32 2147483647, %v4727_v17  ;;  %v5090_v60 = vand.u32 2147483647, %v5086_v42  ;;  %v2523_v61 = vsub.f32 %v7176_v58, %v8112_v23  ;;  %v8196_v43 = vpop.f32.mrb[35].mxu1 }
 0x208   :  { %v8186_v4 = vadd.f32 %v3654_v63, %v8002_v11  ;;  %v8189_v59 = vadd.f32 %v4013_v8, %v8005_v18  ;;  %v8192_v54 = vadd.f32 %v4372_v30, %v8008_v45  ;;  %v2934_v33 = vsub.f32 %v7176_v58, %v8121_v6 }
 0x209   :  { %v8199_v39 = vadd.f32 %v4731_v52, %v8015_v2  ;;  %v8202_v5 = vadd.f32 %v5090_v60, %v8018_v21  ;;  %v2527_v26 = vand.u32 2147483647, %v2523_v61  ;;  %v3293_v11 = vsub.f32 %v7176_v58, %v8123_v7 }
 0x20a   :  { %v2938_v18 = vand.u32 2147483647, %v2934_v33  ;;  %v3652_v45 = vsub.f32 %v7176_v58, %v8125_v0  ;;  %v4011_v53 = vsub.f32 %v7176_v58, %v8135_v16  ;;  %v4370_v10 = vsub.f32 %v7176_v58, %v8137_v12 }
 0x20b   :  { %v8213_v2 = vadd.f32 %v2527_v26, %v8029_v49  ;;  %v3297_v17 = vand.u32 2147483647, %v3293_v11  ;;  %v4729_v21 = vsub.f32 %v7176_v58, %v8150_v37  ;;  %v5088_v60 = vsub.f32 %v7176_v58, %v8152_v50 }
 0x20c   :  { %v8220_v42 = vadd.f32 %v2938_v18, %v8036_v36  ;;  %v3656_v63 = vand.u32 2147483647, %v3652_v45  ;;  %v4015_v8 = vand.u32 2147483647, %v4011_v53  ;;  %v4374_v30 = vand.u32 2147483647, %v4370_v10 }
 0x20d   :  { %v8223_v52 = vadd.f32 %v3297_v17, %v8039_v27  ;;  %v4733_v61 = vand.u32 2147483647, %v4729_v21  ;;  %v5092_v33 = vand.u32 2147483647, %v5088_v60  ;;  %v2522_v49 = vsub.f32 %v7242_v29, %v8112_v23  ;;  %v8259_v60 = vpop.f32.mrb[36].mxu0 }
 0x20e   :  { %v8228_v26 = vadd.f32 %v3656_v63, %v8044_v41  ;;  %v8231_v11 = vadd.f32 %v4015_v8, %v8047_v51  ;;  %v8234_v58 = vadd.f32 %v4374_v30, %v8050_v32  ;;  %v2933_v36 = vsub.f32 %v7242_v29, %v8121_v6  ;;  %10970 = vst [vmem:[#allocation22_spill] sm:$0xff] %v8259_v60 }
 0x20f   :  { %v8239_v27 = vadd.f32 %v4733_v61, %v8055_v44  ;;  %v8242_v18 = vadd.f32 %v5092_v33, %v8058_v47  ;;  %v2526_v45 = vand.u32 2147483647, %v2522_v49  ;;  %v3292_v41 = vsub.f32 %v7242_v29, %v8123_v7 }
 0x210   :  { %v2937_v53 = vand.u32 2147483647, %v2933_v36  ;;  %v3651_v51 = vsub.f32 %v7242_v29, %v8125_v0  ;;  %v4010_v32 = vsub.f32 %v7242_v29, %v8135_v16  ;;  %v4369_v10 = vsub.f32 %v7242_v29, %v8137_v12  ;;  %v10971_v36 = vld [vmem:[#allocation23_spill] sm:$0xff] }
 0x211   :  { %v8253_v44 = vadd.f32 %v2526_v45, %v8069_v55  ;;  %v3296_v17 = vand.u32 2147483647, %v3292_v41  ;;  %v4728_v47 = vsub.f32 %v7242_v29, %v8150_v37  ;;  %v5087_v21 = vsub.f32 %v7242_v29, %v8152_v50 }
 0x212   :  { %v8262_v63 = vadd.f32 %v2937_v53, %v8078_v35  ;;  %v3655_v8 = vand.u32 2147483647, %v3651_v51  ;;  %v4014_v30 = vand.u32 2147483647, %v4010_v32  ;;  %v4373_v61 = vand.u32 2147483647, %v4369_v10 }
 0x213   :  { %v8265_v33 = vadd.f32 %v3296_v17, %v8081_v15  ;;  %v4732_v55 = vand.u32 2147483647, %v4728_v47  ;;  %v5091_v49 = vand.u32 2147483647, %v5087_v21  ;;  %v2524_v45 = vsub.f32 %v10971_v36, %v8112_v23  ;;  %v8280_v51 = vpop.f32.mrb[36].mxu1  ;;  %v8296_v17 = vld [vmem:[#allocation3 + $0x68] sm:$0xff] }
 0x214   :  { %v8270_v41 = vadd.f32 %v3655_v8, %v8086_v31  ;;  %v8273_v29 = vadd.f32 %v4014_v30, %v8089_v3  ;;  %v8276_v35 = vadd.f32 %v4373_v61, %v8092_v24  ;;  %v2935_v53 = vsub.f32 %v10971_v36, %v8121_v6  ;;  %10972 = vst [vmem:[#allocation23_spill] sm:$0xff] %v8280_v51  ;;  %v8305_v21 = vld [vmem:[#allocation3 + $0x138] sm:$0xff] }
 0x215   :  { %v8283_v15 = vadd.f32 %v4732_v55, %v8099_v25  ;;  %v8286_v32 = vadd.f32 %v5091_v49, %v8102_v9  ;;  %v2528_v23 = vand.u32 2147483647, %v2524_v45  ;;  %v3294_v31 = vsub.f32 %v10971_v36, %v8123_v7  ;;  %v10973_v49 = vld [vmem:[#allocation24_spill] sm:$0xff] }
 0x216   :  { %v2939_v3 = vand.u32 2147483647, %v2935_v53  ;;  %v3653_v24 = vsub.f32 %v10971_v36, %v8125_v0  ;;  %v4012_v10 = vsub.f32 %v10971_v36, %v8135_v16  ;;  %v4371_v6 = vsub.f32 %v10971_v36, %v8137_v12  ;;  %v8307_v0 = vld [vmem:[#allocation3 + $0x208] sm:$0xff]  ;;  %v8309_v16 = vld [vmem:[#allocation3 + $0x2d8] sm:$0xff] }
 0x217   :  { %v8299_v25 = vadd.f32 %v2528_v23, %v8115_v62  ;;  %v3298_v9 = vand.u32 2147483647, %v3294_v31  ;;  %v4730_v47 = vsub.f32 %v10971_v36, %v8150_v37  ;;  %v5089_v7 = vsub.f32 %v10971_v36, %v8152_v50  ;;  %v8319_v36 = vld [vmem:[#allocation3 + $0x3a8] sm:$0xff]  ;;  %v8321_v45 = vld [vmem:[#allocation3 + $0x478] sm:$0xff] }
 0x218   :  { %v8312_v12 = vadd.f32 %v2939_v3, %v8128_v57  ;;  %v3657_v8 = vand.u32 2147483647, %v3653_v24  ;;  %v4016_v30 = vand.u32 2147483647, %v4012_v10  ;;  %v4375_v62 = vand.u32 2147483647, %v4371_v6 }
 0x219   :  { %v8315_v61 = vadd.f32 %v3298_v9, %v8131_v46  ;;  %v4734_v55 = vand.u32 2147483647, %v4730_v47  ;;  %v5093_v37 = vand.u32 2147483647, %v5089_v7  ;;  %v2538_v50 = vsub.f32 %v10973_v49, %v8296_v17  ;;  %v8334_v31 = vld [vmem:[#allocation3 + $0x548] sm:$0xff]  ;;  %v8336_v3 = vld [vmem:[#allocation3 + $0x618] sm:$0xff] }
 0x21a   :  { %v8324_v53 = vadd.f32 %v3657_v8, %v8140_v22  ;;  %v8327_v57 = vadd.f32 %v4016_v30, %v8143_v14  ;;  %v8330_v23 = vadd.f32 %v4375_v62, %v8146_v28  ;;  %v2945_v46 = vsub.f32 %v10973_v49, %v8305_v21  ;;  %v8346_v6 = vpop.f32.mrb[37].mxu0 }
 0x21b   :  { %v8339_v24 = vadd.f32 %v4734_v55, %v8155_v20  ;;  %v8342_v10 = vadd.f32 %v5093_v37, %v8158_v1  ;;  %v2542_v22 = vand.u32 2147483647, %v2538_v50  ;;  %v3304_v14 = vsub.f32 %v10973_v49, %v8307_v0  ;;  %10974 = vst [vmem:[#allocation24_spill] sm:$0xff] %v8346_v6 }
 0x21c   :  { %v2949_v28 = vand.u32 2147483647, %v2945_v46  ;;  %v3663_v9 = vsub.f32 %v10973_v49, %v8309_v16  ;;  %v4022_v47 = vsub.f32 %v10973_v49, %v8319_v36  ;;  %v4381_v20 = vsub.f32 %v10973_v49, %v8321_v45 }
 0x21d   :  { %v8355_v7 = vadd.f32 %v2542_v22, %v8171_v19  ;;  %v3308_v1 = vand.u32 2147483647, %v3304_v14  ;;  %v4740_v8 = vsub.f32 %v10973_v49, %v8334_v31  ;;  %v5099_v30 = vsub.f32 %v10973_v49, %v8336_v3  ;;  %v10975_v19 = vld [vmem:[#allocation25_spill] sm:$0xff] }
 0x21e   :  { %v8362_v62 = vadd.f32 %v2949_v28, %v8178_v40  ;;  %v3667_v55 = vand.u32 2147483647, %v3663_v9  ;;  %v4026_v37 = vand.u32 2147483647, %v4022_v47  ;;  %v4385_v50 = vand.u32 2147483647, %v4381_v20 }
 0x21f   :  { %v8365_v46 = vadd.f32 %v3308_v1, %v8181_v38  ;;  %v4744_v6 = vand.u32 2147483647, %v4740_v8  ;;  %v5103_v51 = vand.u32 2147483647, %v5099_v30  ;;  %v2540_v22 = vsub.f32 %v10975_v19, %v8296_v17  ;;  %v8380_v28 = vpop.f32.mrb[37].mxu1 }
 0x220   :  { %v8370_v14 = vadd.f32 %v3667_v55, %v8186_v4  ;;  %v8373_v60 = vadd.f32 %v4026_v37, %v8189_v59  ;;  %v8376_v40 = vadd.f32 %v4385_v50, %v8192_v54  ;;  %v2947_v49 = vsub.f32 %v10975_v19, %v8305_v21  ;;  %10976 = vst [vmem:[#allocation25_spill] sm:$0xff] %v8380_v28 }
 0x221   :  { %v8383_v38 = vadd.f32 %v4744_v6, %v8199_v39  ;;  %v8386_v9 = vadd.f32 %v5103_v51, %v8202_v5  ;;  %v2544_v47 = vand.u32 2147483647, %v2540_v22  ;;  %v3306_v4 = vsub.f32 %v10975_v19, %v8307_v0 }
 0x222   :  { %v2951_v59 = vand.u32 2147483647, %v2947_v49  ;;  %v3665_v54 = vsub.f32 %v10975_v19, %v8309_v16  ;;  %v4024_v20 = vsub.f32 %v10975_v19, %v8319_v36  ;;  %v4383_v1 = vsub.f32 %v10975_v19, %v8321_v45 }
 0x223   :  { %v8397_v39 = vadd.f32 %v2544_v47, %v8213_v2  ;;  %v3310_v6 = vand.u32 2147483647, %v3306_v4  ;;  %v4742_v5 = vsub.f32 %v10975_v19, %v8334_v31  ;;  %v5101_v51 = vsub.f32 %v10975_v19, %v8336_v3  ;;  %v10977_v2 = vld [vmem:[#allocation9_spill] sm:$0xff] }
 0x224   :  { %v8404_v8 = vadd.f32 %v2951_v59, %v8220_v42  ;;  %v3669_v30 = vand.u32 2147483647, %v3665_v54  ;;  %v4028_v55 = vand.u32 2147483647, %v4024_v20  ;;  %v4387_v37 = vand.u32 2147483647, %v4383_v1 }
 0x225   :  { %v8407_v50 = vadd.f32 %v3310_v6, %v8223_v52  ;;  %v4746_v22 = vand.u32 2147483647, %v4742_v5  ;;  %v5105_v49 = vand.u32 2147483647, %v5101_v51  ;;  %v2539_v47 = vsub.f32 %v10977_v2, %v8296_v17  ;;  %v8443_v51 = vpop.f32.mrb[38].mxu0 }
 0x226   :  { %v8412_v4 = vadd.f32 %v3669_v30, %v8228_v26  ;;  %v8415_v28 = vadd.f32 %v4028_v55, %v8231_v11  ;;  %v8418_v42 = vadd.f32 %v4387_v37, %v8234_v58  ;;  %v2946_v19 = vsub.f32 %v10977_v2, %v8305_v21  ;;  %10978 = vst [vmem:[#allocation9_spill] sm:$0xff] %v8443_v51 }
 0x227   :  { %v8423_v52 = vadd.f32 %v4746_v22, %v8239_v27  ;;  %v8426_v59 = vadd.f32 %v5105_v49, %v8242_v18  ;;  %v2543_v54 = vand.u32 2147483647, %v2539_v47  ;;  %v3305_v26 = vsub.f32 %v10977_v2, %v8307_v0 }
 0x228   :  { %v2950_v20 = vand.u32 2147483647, %v2946_v19  ;;  %v3664_v11 = vsub.f32 %v10977_v2, %v8309_v16  ;;  %v4023_v58 = vsub.f32 %v10977_v2, %v8319_v36  ;;  %v4382_v1 = vsub.f32 %v10977_v2, %v8321_v45  ;;  %v10979_v19 = vld [vmem:[#allocation10_spill] sm:$0xff] }
 0x229   :  { %v8437_v27 = vadd.f32 %v2543_v54, %v8253_v44  ;;  %v3309_v6 = vand.u32 2147483647, %v3305_v26  ;;  %v4741_v18 = vsub.f32 %v10977_v2, %v8334_v31  ;;  %v5100_v5 = vsub.f32 %v10977_v2, %v8336_v3 }
 0x22a   :  { %v8446_v30 = vadd.f32 %v2950_v20, %v8262_v63  ;;  %v3668_v55 = vand.u32 2147483647, %v3664_v11  ;;  %v4027_v37 = vand.u32 2147483647, %v4023_v58  ;;  %v4386_v22 = vand.u32 2147483647, %v4382_v1 }
 0x22b   :  { %v8449_v49 = vadd.f32 %v3309_v6, %v8265_v33  ;;  %v4745_v44 = vand.u32 2147483647, %v4741_v18  ;;  %v5104_v47 = vand.u32 2147483647, %v5100_v5  ;;  %v2541_v54 = vsub.f32 %v10979_v19, %v8296_v17  ;;  %v8464_v11 = vpop.f32.mrb[38].mxu1  ;;  %v8480_v6 = vld [vmem:[#allocation3 + $0x70] sm:$0xff] }
 0x22c   :  { %v8454_v26 = vadd.f32 %v3668_v55, %v8270_v41  ;;  %v8457_v2 = vadd.f32 %v4027_v37, %v8273_v29  ;;  %v8460_v63 = vadd.f32 %v4386_v22, %v8276_v35  ;;  %v2948_v20 = vsub.f32 %v10979_v19, %v8305_v21  ;;  %10980 = vst [vmem:[#allocation10_spill] sm:$0xff] %v8464_v11  ;;  %v8489_v5 = vld [vmem:[#allocation3 + $0x140] sm:$0xff] }
 0x22d   :  { %v8467_v33 = vadd.f32 %v4745_v44, %v8283_v15  ;;  %v8470_v58 = vadd.f32 %v5104_v47, %v8286_v32  ;;  %v2545_v17 = vand.u32 2147483647, %v2541_v54  ;;  %v3307_v41 = vsub.f32 %v10979_v19, %v8307_v0  ;;  %v10981_v47 = vld [vmem:[#allocation11_spill] sm:$0xff]  ;;  %v8505_v54 = vld [vmem:[#allocation3 + $0x480] sm:$0xff] }
 0x22e   :  { %v2952_v29 = vand.u32 2147483647, %v2948_v20  ;;  %v3666_v35 = vsub.f32 %v10979_v19, %v8309_v16  ;;  %v4025_v1 = vsub.f32 %v10979_v19, %v8319_v36  ;;  %v4384_v21 = vsub.f32 %v10979_v19, %v8321_v45  ;;  %v8491_v16 = vld [vmem:[#allocation3 + $0x210] sm:$0xff]  ;;  %v8493_v36 = vld [vmem:[#allocation3 + $0x2e0] sm:$0xff] }
 0x22f   :  { %v8483_v15 = vadd.f32 %v2545_v17, %v8299_v25  ;;  %v3311_v32 = vand.u32 2147483647, %v3307_v41  ;;  %v4743_v18 = vsub.f32 %v10979_v19, %v8334_v31  ;;  %v5102_v0 = vsub.f32 %v10979_v19, %v8336_v3  ;;  %v8503_v19 = vld [vmem:[#allocation3 + $0x3b0] sm:$0xff] }
 0x230   :  { %v8496_v45 = vadd.f32 %v2952_v29, %v8312_v12  ;;  %v3670_v55 = vand.u32 2147483647, %v3666_v35  ;;  %v4029_v37 = vand.u32 2147483647, %v4025_v1  ;;  %v4388_v25 = vand.u32 2147483647, %v4384_v21 }
 0x231   :  { %v8499_v22 = vadd.f32 %v3311_v32, %v8315_v61  ;;  %v4747_v44 = vand.u32 2147483647, %v4743_v18  ;;  %v5106_v31 = vand.u32 2147483647, %v5102_v0  ;;  %v2555_v3 = vsub.f32 %v10981_v47, %v8480_v6  ;;  %v8518_v41 = vld [vmem:[#allocation3 + $0x550] sm:$0xff]  ;;  %v8520_v29 = vld [vmem:[#allocation3 + $0x620] sm:$0xff] }
 0x232   :  { %v8508_v20 = vadd.f32 %v3670_v55, %v8324_v53  ;;  %v8511_v12 = vadd.f32 %v4029_v37, %v8327_v57  ;;  %v8514_v17 = vadd.f32 %v4388_v25, %v8330_v23  ;;  %v2958_v61 = vsub.f32 %v10981_v47, %v8489_v5  ;;  %v8530_v21 = vpop.f32.mrb[39].mxu0 }
 0x233   :  { %v8523_v35 = vadd.f32 %v4747_v44, %v8339_v24  ;;  %v8526_v1 = vadd.f32 %v5106_v31, %v8342_v10  ;;  %v2559_v53 = vand.u32 2147483647, %v2555_v3  ;;  %v3317_v57 = vsub.f32 %v10981_v47, %v8491_v16  ;;  %10982 = vst [vmem:[#allocation11_spill] sm:$0xff] %v8530_v21 }
 0x234   :  { %v2962_v23 = vand.u32 2147483647, %v2958_v61  ;;  %v3676_v32 = vsub.f32 %v10981_v47, %v8493_v36  ;;  %v4035_v18 = vsub.f32 %v10981_v47, %v8503_v19  ;;  %v4394_v24 = vsub.f32 %v10981_v47, %v8505_v54 }
 0x235   :  { %v8539_v0 = vadd.f32 %v2559_v53, %v8355_v7  ;;  %v3321_v10 = vand.u32 2147483647, %v3317_v57  ;;  %v4753_v55 = vsub.f32 %v10981_v47, %v8518_v41  ;;  %v5112_v37 = vsub.f32 %v10981_v47, %v8520_v29  ;;  %v10983_v7 = vld [vmem:[#allocation12_spill] sm:$0xff] }
 0x236   :  { %v8546_v25 = vadd.f32 %v2962_v23, %v8362_v62  ;;  %v3680_v44 = vand.u32 2147483647, %v3676_v32  ;;  %v4039_v31 = vand.u32 2147483647, %v4035_v18  ;;  %v4398_v3 = vand.u32 2147483647, %v4394_v24 }
 0x237   :  { %v8549_v61 = vadd.f32 %v3321_v10, %v8365_v46  ;;  %v4757_v21 = vand.u32 2147483647, %v4753_v55  ;;  %v5116_v11 = vand.u32 2147483647, %v5112_v37  ;;  %v2557_v53 = vsub.f32 %v10983_v7, %v8480_v6  ;;  %v8564_v23 = vpop.f32.mrb[39].mxu1 }
 0x238   :  { %v8554_v57 = vadd.f32 %v3680_v44, %v8370_v14  ;;  %v8557_v51 = vadd.f32 %v4039_v31, %v8373_v60  ;;  %v8560_v62 = vadd.f32 %v4398_v3, %v8376_v40  ;;  %v2960_v47 = vsub.f32 %v10983_v7, %v8489_v5  ;;  %10984 = vst [vmem:[#allocation12_spill] sm:$0xff] %v8564_v23 }
 0x239   :  { %v8567_v46 = vadd.f32 %v4757_v21, %v8383_v38  ;;  %v8570_v32 = vadd.f32 %v5116_v11, %v8386_v9  ;;  %v2561_v18 = vand.u32 2147483647, %v2557_v53  ;;  %v3319_v14 = vsub.f32 %v10983_v7, %v8491_v16 }
 0x23a   :  { %v2964_v60 = vand.u32 2147483647, %v2960_v47  ;;  %v3678_v40 = vsub.f32 %v10983_v7, %v8493_v36  ;;  %v4037_v24 = vsub.f32 %v10983_v7, %v8503_v19  ;;  %v4396_v10 = vsub.f32 %v10983_v7, %v8505_v54 }
 0x23b   :  { %v8581_v38 = vadd.f32 %v2561_v18, %v8397_v39  ;;  %v3323_v21 = vand.u32 2147483647, %v3319_v14  ;;  %v4755_v9 = vsub.f32 %v10983_v7, %v8518_v41  ;;  %v5114_v11 = vsub.f32 %v10983_v7, %v8520_v29  ;;  %v10985_v39 = vld [vmem:[#allocation13_spill] sm:$0xff] }
 0x23c   :  { %v8588_v55 = vadd.f32 %v2964_v60, %v8404_v8  ;;  %v3682_v37 = vand.u32 2147483647, %v3678_v40  ;;  %v4041_v44 = vand.u32 2147483647, %v4037_v24  ;;  %v4400_v31 = vand.u32 2147483647, %v4396_v10 }
 0x23d   :  { %v8591_v3 = vadd.f32 %v3323_v21, %v8407_v50  ;;  %v4759_v53 = vand.u32 2147483647, %v4755_v9  ;;  %v5118_v47 = vand.u32 2147483647, %v5114_v11  ;;  %v2556_v18 = vsub.f32 %v10985_v39, %v8480_v6  ;;  %v8627_v11 = vpop.f32.mrb[40].mxu0 }
 0x23e   :  { %v8596_v14 = vadd.f32 %v3682_v37, %v8412_v4  ;;  %v8599_v23 = vadd.f32 %v4041_v44, %v8415_v28  ;;  %v8602_v8 = vadd.f32 %v4400_v31, %v8418_v42  ;;  %v2959_v7 = vsub.f32 %v10985_v39, %v8489_v5 }
 0x23f   :  { %v8607_v50 = vadd.f32 %v4759_v53, %v8423_v52  ;;  %v8610_v60 = vadd.f32 %v5118_v47, %v8426_v59  ;;  %v2560_v40 = vand.u32 2147483647, %v2556_v18  ;;  %v3318_v4 = vsub.f32 %v10985_v39, %v8491_v16 }
 0x240   :  { %v2963_v24 = vand.u32 2147483647, %v2959_v7  ;;  %v3677_v28 = vsub.f32 %v10985_v39, %v8493_v36  ;;  %v4036_v42 = vsub.f32 %v10985_v39, %v8503_v19  ;;  %v4395_v10 = vsub.f32 %v10985_v39, %v8505_v54  ;;  %v10986_v7 = vld [vmem:[#allocation14_spill] sm:$0xff] }
 0x241   :  { %v8621_v52 = vadd.f32 %v2560_v40, %v8437_v27  ;;  %v3322_v21 = vand.u32 2147483647, %v3318_v4  ;;  %v4754_v59 = vsub.f32 %v10985_v39, %v8518_v41  ;;  %v5113_v9 = vsub.f32 %v10985_v39, %v8520_v29 }
 0x242   :  { %v8630_v37 = vadd.f32 %v2963_v24, %v8446_v30  ;;  %v3681_v44 = vand.u32 2147483647, %v3677_v28  ;;  %v4040_v31 = vand.u32 2147483647, %v4036_v42  ;;  %v4399_v53 = vand.u32 2147483647, %v4395_v10 }
 0x243   :  { %v8633_v47 = vadd.f32 %v3322_v21, %v8449_v49  ;;  %v4758_v27 = vand.u32 2147483647, %v4754_v59  ;;  %v5117_v18 = vand.u32 2147483647, %v5113_v9  ;;  %v2558_v40 = vsub.f32 %v10986_v7, %v8480_v6  ;;  %v8648_v28 = vpop.f32.mrb[40].mxu1  ;;  %v8664_v21 = vld [vmem:[#allocation3 + $0x78] sm:$0xff] }
 0x244   :  { %v8638_v4 = vadd.f32 %v3681_v44, %v8454_v26  ;;  %v8641_v39 = vadd.f32 %v4040_v31, %v8457_v2  ;;  %v8644_v30 = vadd.f32 %v4399_v53, %v8460_v63  ;;  %v2961_v24 = vsub.f32 %v10986_v7, %v8489_v5  ;;  %v8673_v9 = vld [vmem:[#allocation3 + $0x148] sm:$0xff] }
 0x245   :  { %v8651_v49 = vadd.f32 %v4758_v27, %v8467_v33  ;;  %v8654_v42 = vadd.f32 %v5117_v18, %v8470_v58  ;;  %v2562_v6 = vand.u32 2147483647, %v2558_v40  ;;  %v3320_v26 = vsub.f32 %v10986_v7, %v8491_v16  ;;  %v8687_v18 = vld [vmem:[#allocation3 + $0x3b8] sm:$0xff] }
 0x246   :  { %v2965_v2 = vand.u32 2147483647, %v2961_v24  ;;  %v3679_v63 = vsub.f32 %v10986_v7, %v8493_v36  ;;  %v4038_v10 = vsub.f32 %v10986_v7, %v8503_v19  ;;  %v4397_v5 = vsub.f32 %v10986_v7, %v8505_v54  ;;  %v8675_v36 = vld [vmem:[#allocation3 + $0x218] sm:$0xff]  ;;  %v8677_v19 = vld [vmem:[#allocation3 + $0x2e8] sm:$0xff] }
 0x247   :  { %v8667_v33 = vadd.f32 %v2562_v6, %v8483_v15  ;;  %v3324_v58 = vand.u32 2147483647, %v3320_v26  ;;  %v4756_v59 = vsub.f32 %v10986_v7, %v8518_v41  ;;  %v5115_v16 = vsub.f32 %v10986_v7, %v8520_v29  ;;  %v8689_v7 = vld [vmem:[#allocation3 + $0x488] sm:$0xff]  ;;  %v8702_v6 = vld [vmem:[#allocation3 + $0x558] sm:$0xff] }
 0x248   :  { %v8680_v54 = vadd.f32 %v2965_v2, %v8496_v45  ;;  %v3683_v44 = vand.u32 2147483647, %v3679_v63  ;;  %v4042_v31 = vand.u32 2147483647, %v4038_v10  ;;  %v4401_v15 = vand.u32 2147483647, %v4397_v5 }
 0x249   :  { %v8683_v53 = vadd.f32 %v3324_v58, %v8499_v22  ;;  %v4760_v27 = vand.u32 2147483647, %v4756_v59  ;;  %v5119_v41 = vand.u32 2147483647, %v5115_v16  ;;  %v2572_v29 = vsub.f32 %v7707_v34, %v8664_v21  ;;  %v8704_v26 = vld [vmem:[#allocation3 + $0x628] sm:$0xff]  ;;  %v8714_v10 = vpop.f32.mrb[41].mxu0 }
 0x24a   :  { %v8692_v40 = vadd.f32 %v3683_v44, %v8508_v20  ;;  %v8695_v45 = vadd.f32 %v4042_v31, %v8511_v12  ;;  %v8698_v24 = vadd.f32 %v4401_v15, %v8514_v17  ;;  %v2971_v22 = vsub.f32 %v7707_v34, %v8673_v9  ;;  %10987 = vst [vmem:[#allocation13_spill] sm:$0xff] %v8714_v10 }
 0x24b   :  { %v8707_v2 = vadd.f32 %v4760_v27, %v8523_v35  ;;  %v8710_v63 = vadd.f32 %v5119_v41, %v8526_v1  ;;  %v2576_v20 = vand.u32 2147483647, %v2572_v29  ;;  %v3330_v12 = vsub.f32 %v7707_v34, %v8675_v36 }
 0x24c   :  { %v2975_v17 = vand.u32 2147483647, %v2971_v22  ;;  %v3689_v5 = vsub.f32 %v7707_v34, %v8677_v19  ;;  %v4048_v58 = vsub.f32 %v7707_v34, %v8687_v18  ;;  %v4407_v35 = vsub.f32 %v7707_v34, %v8689_v7 }
 0x24d   :  { %v8723_v59 = vadd.f32 %v2576_v20, %v8539_v0  ;;  %v3334_v1 = vand.u32 2147483647, %v3330_v12  ;;  %v4766_v16 = vsub.f32 %v7707_v34, %v8702_v6  ;;  %v5125_v44 = vsub.f32 %v7707_v34, %v8704_v26 }
 0x24e   :  { %v8730_v31 = vadd.f32 %v2975_v17, %v8546_v25  ;;  %v3693_v15 = vand.u32 2147483647, %v3689_v5  ;;  %v4052_v27 = vand.u32 2147483647, %v4048_v58  ;;  %v4411_v41 = vand.u32 2147483647, %v4407_v35 }
 0x24f   :  { %v8733_v29 = vadd.f32 %v3334_v1, %v8549_v61  ;;  %v4770_v22 = vand.u32 2147483647, %v4766_v16  ;;  %v5129_v10 = vand.u32 2147483647, %v5125_v44  ;;  %v2574_v0 = vsub.f32 %v7728_v56, %v8664_v21  ;;  %v8748_v17 = vpop.f32.mrb[41].mxu1 }
 0x250   :  { %v8738_v20 = vadd.f32 %v3693_v15, %v8554_v57  ;;  %v8741_v12 = vadd.f32 %v4052_v27, %v8557_v51  ;;  %v8744_v34 = vadd.f32 %v4411_v41, %v8560_v62  ;;  %v2973_v25 = vsub.f32 %v7728_v56, %v8673_v9  ;;  %10988 = vst [vmem:[#allocation14_spill] sm:$0xff] %v8748_v17 }
 0x251   :  { %v8751_v61 = vadd.f32 %v4770_v22, %v8567_v46  ;;  %v8754_v5 = vadd.f32 %v5129_v10, %v8570_v32  ;;  %v2578_v58 = vand.u32 2147483647, %v2574_v0  ;;  %v3332_v57 = vsub.f32 %v7728_v56, %v8675_v36 }
 0x252   :  { %v2977_v51 = vand.u32 2147483647, %v2973_v25  ;;  %v3691_v62 = vsub.f32 %v7728_v56, %v8677_v19  ;;  %v4050_v35 = vsub.f32 %v7728_v56, %v8687_v18  ;;  %v4409_v1 = vsub.f32 %v7728_v56, %v8689_v7 }
 0x253   :  { %v8765_v46 = vadd.f32 %v2578_v58, %v8581_v38  ;;  %v3336_v16 = vand.u32 2147483647, %v3332_v57  ;;  %v4768_v32 = vsub.f32 %v7728_v56, %v8702_v6  ;;  %v5127_v10 = vsub.f32 %v7728_v56, %v8704_v26  ;;  %v10989_v38 = vld [vmem:[#allocation15_spill] sm:$0xff] }
 0x254   :  { %v8772_v44 = vadd.f32 %v2977_v51, %v8588_v55  ;;  %v3695_v15 = vand.u32 2147483647, %v3691_v62  ;;  %v4054_v27 = vand.u32 2147483647, %v4050_v35  ;;  %v4413_v41 = vand.u32 2147483647, %v4409_v1 }
 0x255   :  { %v8775_v22 = vadd.f32 %v3336_v16, %v8591_v3  ;;  %v4772_v0 = vand.u32 2147483647, %v4768_v32  ;;  %v5131_v25 = vand.u32 2147483647, %v5127_v10  ;;  %v2573_v58 = vsub.f32 %v10989_v38, %v8664_v21  ;;  %v8811_v10 = vpop.f32.mrb[42].mxu0 }
 0x256   :  { %v8780_v57 = vadd.f32 %v3695_v15, %v8596_v14  ;;  %v8783_v17 = vadd.f32 %v4054_v27, %v8599_v23  ;;  %v8786_v56 = vadd.f32 %v4413_v41, %v8602_v8  ;;  %v2972_v55 = vsub.f32 %v10989_v38, %v8673_v9  ;;  %10990 = vst [vmem:[#allocation15_spill] sm:$0xff] %v8811_v10 }
 0x257   :  { %v8791_v3 = vadd.f32 %v4772_v0, %v8607_v50  ;;  %v8794_v51 = vadd.f32 %v5131_v25, %v8610_v60  ;;  %v2577_v62 = vand.u32 2147483647, %v2573_v58  ;;  %v3331_v14 = vsub.f32 %v10989_v38, %v8675_v36 }
 0x258   :  { %v2976_v35 = vand.u32 2147483647, %v2972_v55  ;;  %v3690_v23 = vsub.f32 %v10989_v38, %v8677_v19  ;;  %v4049_v8 = vsub.f32 %v10989_v38, %v8687_v18  ;;  %v4408_v1 = vsub.f32 %v10989_v38, %v8689_v7  ;;  %v10991_v55 = vld [vmem:[#allocation16_spill] sm:$0xff] }
 0x259   :  { %v8805_v50 = vadd.f32 %v2577_v62, %v8621_v52  ;;  %v3335_v16 = vand.u32 2147483647, %v3331_v14  ;;  %v4767_v60 = vsub.f32 %v10989_v38, %v8702_v6  ;;  %v5126_v32 = vsub.f32 %v10989_v38, %v8704_v26 }
 0x25a   :  { %v8814_v15 = vadd.f32 %v2976_v35, %v8630_v37  ;;  %v3694_v27 = vand.u32 2147483647, %v3690_v23  ;;  %v4053_v41 = vand.u32 2147483647, %v4049_v8  ;;  %v4412_v0 = vand.u32 2147483647, %v4408_v1 }
 0x25b   :  { %v8817_v25 = vadd.f32 %v3335_v16, %v8633_v47  ;;  %v4771_v52 = vand.u32 2147483647, %v4767_v60  ;;  %v5130_v58 = vand.u32 2147483647, %v5126_v32  ;;  %v2575_v62 = vsub.f32 %v10991_v55, %v8664_v21  ;;  %v8832_v23 = vpop.f32.mrb[42].mxu1  ;;  %v8848_v16 = vld [vmem:[#allocation3 + $0x80] sm:$0xff] }
 0x25c   :  { %v8822_v14 = vadd.f32 %v3694_v27, %v8638_v4  ;;  %v8825_v38 = vadd.f32 %v4053_v41, %v8641_v39  ;;  %v8828_v37 = vadd.f32 %v4412_v0, %v8644_v30  ;;  %v2974_v35 = vsub.f32 %v10991_v55, %v8673_v9  ;;  %10992 = vst [vmem:[#allocation16_spill] sm:$0xff] %v8832_v23  ;;  %v8857_v32 = vld [vmem:[#allocation3 + $0x150] sm:$0xff] }
 0x25d   :  { %v8835_v47 = vadd.f32 %v4771_v52, %v8651_v49  ;;  %v8838_v8 = vadd.f32 %v5130_v58, %v8654_v42  ;;  %v2579_v21 = vand.u32 2147483647, %v2575_v62  ;;  %v3333_v4 = vsub.f32 %v10991_v55, %v8675_v36  ;;  %v10993_v58 = vld [vmem:[#allocation17_spill] sm:$0xff]  ;;  %v8873_v62 = vld [vmem:[#allocation3 + $0x490] sm:$0xff] }
 0x25e   :  { %v2978_v39 = vand.u32 2147483647, %v2974_v35  ;;  %v3692_v30 = vsub.f32 %v10991_v55, %v8677_v19  ;;  %v4051_v1 = vsub.f32 %v10991_v55, %v8687_v18  ;;  %v4410_v9 = vsub.f32 %v10991_v55, %v8689_v7  ;;  %v8859_v19 = vld [vmem:[#allocation3 + $0x220] sm:$0xff]  ;;  %v8861_v18 = vld [vmem:[#allocation3 + $0x2f0] sm:$0xff] }
 0x25f   :  { %v8851_v49 = vadd.f32 %v2579_v21, %v8667_v33  ;;  %v3337_v42 = vand.u32 2147483647, %v3333_v4  ;;  %v4769_v60 = vsub.f32 %v10991_v55, %v8702_v6  ;;  %v5128_v36 = vsub.f32 %v10991_v55, %v8704_v26  ;;  %v8871_v55 = vld [vmem:[#allocation3 + $0x3c0] sm:$0xff] }
 0x260   :  { %v8864_v7 = vadd.f32 %v2978_v39, %v8680_v54  ;;  %v3696_v27 = vand.u32 2147483647, %v3692_v30  ;;  %v4055_v41 = vand.u32 2147483647, %v4051_v1  ;;  %v4414_v33 = vand.u32 2147483647, %v4410_v9 }
 0x261   :  { %v8867_v0 = vadd.f32 %v3337_v42, %v8683_v53  ;;  %v4773_v52 = vand.u32 2147483647, %v4769_v60  ;;  %v5132_v6 = vand.u32 2147483647, %v5128_v36  ;;  %v2589_v26 = vsub.f32 %v10993_v58, %v8848_v16  ;;  %v8886_v4 = vld [vmem:[#allocation3 + $0x560] sm:$0xff]  ;;  %v8888_v39 = vld [vmem:[#allocation3 + $0x630] sm:$0xff] }
 0x262   :  { %v8876_v35 = vadd.f32 %v3696_v27, %v8692_v40  ;;  %v8879_v54 = vadd.f32 %v4055_v41, %v8695_v45  ;;  %v8882_v21 = vadd.f32 %v4414_v33, %v8698_v24  ;;  %v2984_v53 = vsub.f32 %v10993_v58, %v8857_v32  ;;  %v8898_v9 = vpop.f32.mrb[43].mxu0 }
 0x263   :  { %v8891_v30 = vadd.f32 %v4773_v52, %v8707_v2  ;;  %v8894_v1 = vadd.f32 %v5132_v6, %v8710_v63  ;;  %v2593_v40 = vand.u32 2147483647, %v2589_v26  ;;  %v3343_v45 = vsub.f32 %v10993_v58, %v8859_v19  ;;  %10994 = vst [vmem:[#allocation17_spill] sm:$0xff] %v8898_v9 }
 0x264   :  { %v2988_v24 = vand.u32 2147483647, %v2984_v53  ;;  %v3702_v42 = vsub.f32 %v10993_v58, %v8861_v18  ;;  %v4061_v60 = vsub.f32 %v10993_v58, %v8871_v55  ;;  %v4420_v2 = vsub.f32 %v10993_v58, %v8873_v62 }
 0x265   :  { %v8907_v36 = vadd.f32 %v2593_v40, %v8723_v59  ;;  %v3347_v63 = vand.u32 2147483647, %v3343_v45  ;;  %v4779_v27 = vsub.f32 %v10993_v58, %v8886_v4  ;;  %v5138_v41 = vsub.f32 %v10993_v58, %v8888_v39  ;;  %v10995_v59 = vld [vmem:[#allocation18_spill] sm:$0xff] }
 0x266   :  { %v8914_v33 = vadd.f32 %v2988_v24, %v8730_v31  ;;  %v3706_v52 = vand.u32 2147483647, %v3702_v42  ;;  %v4065_v6 = vand.u32 2147483647, %v4061_v60  ;;  %v4424_v26 = vand.u32 2147483647, %v4420_v2 }
 0x267   :  { %v8917_v53 = vadd.f32 %v3347_v63, %v8733_v29  ;;  %v4783_v9 = vand.u32 2147483647, %v4779_v27  ;;  %v5142_v23 = vand.u32 2147483647, %v5138_v41  ;;  %v2591_v40 = vsub.f32 %v10995_v59, %v8848_v16  ;;  %v8932_v24 = vpop.f32.mrb[43].mxu1 }
 0x268   :  { %v8922_v45 = vadd.f32 %v3706_v52, %v8738_v20  ;;  %v8925_v10 = vadd.f32 %v4065_v6, %v8741_v12  ;;  %v8928_v31 = vadd.f32 %v4424_v26, %v8744_v34  ;;  %v2986_v58 = vsub.f32 %v10995_v59, %v8857_v32  ;;  %10996 = vst [vmem:[#allocation18_spill] sm:$0xff] %v8932_v24 }
 0x269   :  { %v8935_v29 = vadd.f32 %v4783_v9, %v8751_v61  ;;  %v8938_v42 = vadd.f32 %v5142_v23, %v8754_v5  ;;  %v2595_v60 = vand.u32 2147483647, %v2591_v40  ;;  %v3345_v20 = vsub.f32 %v10995_v59, %v8859_v19 }
 0x26a   :  { %v2990_v12 = vand.u32 2147483647, %v2986_v58  ;;  %v3704_v34 = vsub.f32 %v10995_v59, %v8861_v18  ;;  %v4063_v2 = vsub.f32 %v10995_v59, %v8871_v55  ;;  %v4422_v63 = vsub.f32 %v10995_v59, %v8873_v62 }
 0x26b   :  { %v8949_v61 = vadd.f32 %v2595_v60, %v8765_v46  ;;  %v3349_v9 = vand.u32 2147483647, %v3345_v20  ;;  %v4781_v5 = vsub.f32 %v10995_v59, %v8886_v4  ;;  %v5140_v23 = vsub.f32 %v10995_v59, %v8888_v39  ;;  %v10997_v46 = vld [vmem:[#allocation19_spill] sm:$0xff] }
 0x26c   :  { %v8956_v27 = vadd.f32 %v2990_v12, %v8772_v44  ;;  %v3708_v41 = vand.u32 2147483647, %v3704_v34  ;;  %v4067_v52 = vand.u32 2147483647, %v4063_v2  ;;  %v4426_v6 = vand.u32 2147483647, %v4422_v63 }
 0x26d   :  { %v8959_v26 = vadd.f32 %v3349_v9, %v8775_v22  ;;  %v4785_v40 = vand.u32 2147483647, %v4781_v5  ;;  %v5144_v58 = vand.u32 2147483647, %v5140_v23  ;;  %v2590_v60 = vsub.f32 %v10997_v46, %v8848_v16  ;;  %v8995_v23 = vpop.f32.mrb[44].mxu0 }
 0x26e   :  { %v8964_v20 = vadd.f32 %v3708_v41, %v8780_v57  ;;  %v8967_v24 = vadd.f32 %v4067_v52, %v8783_v17  ;;  %v8970_v44 = vadd.f32 %v4426_v6, %v8786_v56  ;;  %v2985_v59 = vsub.f32 %v10997_v46, %v8857_v32 }
 0x26f   :  { %v8975_v22 = vadd.f32 %v4785_v40, %v8791_v3  ;;  %v8978_v12 = vadd.f32 %v5144_v58, %v8794_v51  ;;  %v2594_v34 = vand.u32 2147483647, %v2590_v60  ;;  %v3344_v57 = vsub.f32 %v10997_v46, %v8859_v19 }
 0x270   :  { %v2989_v2 = vand.u32 2147483647, %v2985_v59  ;;  %v3703_v17 = vsub.f32 %v10997_v46, %v8861_v18  ;;  %v4062_v56 = vsub.f32 %v10997_v46, %v8871_v55  ;;  %v4421_v63 = vsub.f32 %v10997_v46, %v8873_v62  ;;  %v10998_v59 = vld [vmem:[#allocation20_spill] sm:$0xff] }
 0x271   :  { %v8989_v3 = vadd.f32 %v2594_v34, %v8805_v50  ;;  %v3348_v9 = vand.u32 2147483647, %v3344_v57  ;;  %v4780_v51 = vsub.f32 %v10997_v46, %v8886_v4  ;;  %v5139_v5 = vsub.f32 %v10997_v46, %v8888_v39 }
 0x272   :  { %v8998_v41 = vadd.f32 %v2989_v2, %v8814_v15  ;;  %v3707_v52 = vand.u32 2147483647, %v3703_v17  ;;  %v4066_v6 = vand.u32 2147483647, %v4062_v56  ;;  %v4425_v40 = vand.u32 2147483647, %v4421_v63 }
 0x273   :  { %v9001_v58 = vadd.f32 %v3348_v9, %v8817_v25  ;;  %v4784_v50 = vand.u32 2147483647, %v4780_v51  ;;  %v5143_v60 = vand.u32 2147483647, %v5139_v5  ;;  %v2592_v34 = vsub.f32 %v10998_v59, %v8848_v16  ;;  %v9016_v17 = vpop.f32.mrb[44].mxu1  ;;  %v9032_v9 = vld [vmem:[#allocation3 + $0x88] sm:$0xff] }
 0x274   :  { %v9006_v57 = vadd.f32 %v3707_v52, %v8822_v14  ;;  %v9009_v46 = vadd.f32 %v4066_v6, %v8825_v38  ;;  %v9012_v15 = vadd.f32 %v4425_v40, %v8828_v37  ;;  %v2987_v2 = vsub.f32 %v10998_v59, %v8857_v32  ;;  %v9041_v5 = vld [vmem:[#allocation3 + $0x158] sm:$0xff] }
 0x275   :  { %v9019_v25 = vadd.f32 %v4784_v50, %v8835_v47  ;;  %v9022_v56 = vadd.f32 %v5143_v60, %v8838_v8  ;;  %v2596_v16 = vand.u32 2147483647, %v2592_v34  ;;  %v3346_v14 = vsub.f32 %v10998_v59, %v8859_v19  ;;  %v9055_v60 = vld [vmem:[#allocation3 + $0x3c8] sm:$0xff] }
 0x276   :  { %v2991_v38 = vand.u32 2147483647, %v2987_v2  ;;  %v3705_v37 = vsub.f32 %v10998_v59, %v8861_v18  ;;  %v4064_v63 = vsub.f32 %v10998_v59, %v8871_v55  ;;  %v4423_v32 = vsub.f32 %v10998_v59, %v8873_v62  ;;  %v9043_v18 = vld [vmem:[#allocation3 + $0x228] sm:$0xff]  ;;  %v9045_v55 = vld [vmem:[#allocation3 + $0x2f8] sm:$0xff] }
 0x277   :  { %v9035_v47 = vadd.f32 %v2596_v16, %v8851_v49  ;;  %v3350_v8 = vand.u32 2147483647, %v3346_v14  ;;  %v4782_v51 = vsub.f32 %v10998_v59, %v8886_v4  ;;  %v5141_v19 = vsub.f32 %v10998_v59, %v8888_v39  ;;  %v9057_v59 = vld [vmem:[#allocation3 + $0x498] sm:$0xff]  ;;  %v9070_v16 = vld [vmem:[#allocation3 + $0x568] sm:$0xff] }
 0x278   :  { %v9048_v62 = vadd.f32 %v2991_v38, %v8864_v7  ;;  %v3709_v52 = vand.u32 2147483647, %v3705_v37  ;;  %v4068_v6 = vand.u32 2147483647, %v4064_v63  ;;  %v4427_v49 = vand.u32 2147483647, %v4423_v32 }
 0x279   :  { %v9051_v40 = vadd.f32 %v3350_v8, %v8867_v0  ;;  %v4786_v50 = vand.u32 2147483647, %v4782_v51  ;;  %v5145_v4 = vand.u32 2147483647, %v5141_v19  ;;  %v2606_v39 = vsub.f32 %v8075_v48, %v9032_v9  ;;  %v9072_v14 = vld [vmem:[#allocation3 + $0x638] sm:$0xff]  ;;  %v9082_v63 = vpop.f32.mrb[45].mxu0 }
 0x27a   :  { %v9060_v34 = vadd.f32 %v3709_v52, %v8876_v35  ;;  %v9063_v7 = vadd.f32 %v4068_v6, %v8879_v54  ;;  %v9066_v2 = vadd.f32 %v4427_v49, %v8882_v21  ;;  %v2997_v0 = vsub.f32 %v8075_v48, %v9041_v5  ;;  %10999 = vst [vmem:[#allocation19_spill] sm:$0xff] %v9082_v63 }
 0x27b   :  { %v9075_v38 = vadd.f32 %v4786_v50, %v8891_v30  ;;  %v9078_v37 = vadd.f32 %v5145_v4, %v8894_v1  ;;  %v2610_v35 = vand.u32 2147483647, %v2606_v39  ;;  %v3356_v54 = vsub.f32 %v8075_v48, %v9043_v18 }
 0x27c   :  { %v3001_v21 = vand.u32 2147483647, %v2997_v0  ;;  %v3715_v32 = vsub.f32 %v8075_v48, %v9045_v55  ;;  %v4074_v8 = vsub.f32 %v8075_v48, %v9055_v60  ;;  %v4433_v30 = vsub.f32 %v8075_v48, %v9057_v59 }
 0x27d   :  { %v9091_v51 = vadd.f32 %v2610_v35, %v8907_v36  ;;  %v3360_v1 = vand.u32 2147483647, %v3356_v54  ;;  %v4792_v19 = vsub.f32 %v8075_v48, %v9070_v16  ;;  %v5151_v52 = vsub.f32 %v8075_v48, %v9072_v14 }
 0x27e   :  { %v9098_v6 = vadd.f32 %v3001_v21, %v8914_v33  ;;  %v3719_v49 = vand.u32 2147483647, %v3715_v32  ;;  %v4078_v50 = vand.u32 2147483647, %v4074_v8  ;;  %v4437_v4 = vand.u32 2147483647, %v4433_v30 }
 0x27f   :  { %v9101_v39 = vadd.f32 %v3360_v1, %v8917_v53  ;;  %v4796_v0 = vand.u32 2147483647, %v4792_v19  ;;  %v5155_v63 = vand.u32 2147483647, %v5151_v52  ;;  %v2608_v36 = vsub.f32 %v8096_v13, %v9032_v9  ;;  %v9116_v21 = vpop.f32.mrb[45].mxu1 }
 0x280   :  { %v9106_v35 = vadd.f32 %v3719_v49, %v8922_v45  ;;  %v9109_v54 = vadd.f32 %v4078_v50, %v8925_v10  ;;  %v9112_v48 = vadd.f32 %v4437_v4, %v8928_v31  ;;  %v2999_v33 = vsub.f32 %v8096_v13, %v9041_v5  ;;  %11000 = vst [vmem:[#allocation20_spill] sm:$0xff] %v9116_v21 }
 0x281   :  { %v9119_v53 = vadd.f32 %v4796_v0, %v8935_v29  ;;  %v9122_v32 = vadd.f32 %v5155_v63, %v8938_v42  ;;  %v2612_v8 = vand.u32 2147483647, %v2608_v36  ;;  %v3358_v45 = vsub.f32 %v8096_v13, %v9043_v18 }
 0x282   :  { %v3003_v10 = vand.u32 2147483647, %v2999_v33  ;;  %v3717_v31 = vsub.f32 %v8096_v13, %v9045_v55  ;;  %v4076_v30 = vsub.f32 %v8096_v13, %v9055_v60  ;;  %v4435_v1 = vsub.f32 %v8096_v13, %v9057_v59 }
 0x283   :  { %v9133_v29 = vadd.f32 %v2612_v8, %v8949_v61  ;;  %v3362_v19 = vand.u32 2147483647, %v3358_v45  ;;  %v4794_v42 = vsub.f32 %v8096_v13, %v9070_v16  ;;  %v5153_v63 = vsub.f32 %v8096_v13, %v9072_v14  ;;  %v11001_v61 = vld [vmem:[#allocation21_spill] sm:$0xff] }
 0x284   :  { %v9140_v52 = vadd.f32 %v3003_v10, %v8956_v27  ;;  %v3721_v49 = vand.u32 2147483647, %v3717_v31  ;;  %v4080_v50 = vand.u32 2147483647, %v4076_v30  ;;  %v4439_v4 = vand.u32 2147483647, %v4435_v1 }
 0x285   :  { %v9143_v0 = vadd.f32 %v3362_v19, %v8959_v26  ;;  %v4798_v36 = vand.u32 2147483647, %v4794_v42  ;;  %v5157_v33 = vand.u32 2147483647, %v5153_v63  ;;  %v2607_v8 = vsub.f32 %v11001_v61, %v9032_v9  ;;  %v9179_v63 = vpop.f32.mrb[46].mxu0 }
 0x286   :  { %v9148_v45 = vadd.f32 %v3721_v49, %v8964_v20  ;;  %v9151_v21 = vadd.f32 %v4080_v50, %v8967_v24  ;;  %v9154_v13 = vadd.f32 %v4439_v4, %v8970_v44  ;;  %v2998_v27 = vsub.f32 %v11001_v61, %v9041_v5  ;;  %11002 = vst [vmem:[#allocation21_spill] sm:$0xff] %v9179_v63 }
 0x287   :  { %v9159_v26 = vadd.f32 %v4798_v36, %v8975_v22  ;;  %v9162_v10 = vadd.f32 %v5157_v33, %v8978_v12  ;;  %v2611_v31 = vand.u32 2147483647, %v2607_v8  ;;  %v3357_v20 = vsub.f32 %v11001_v61, %v9043_v18 }
 0x288   :  { %v3002_v30 = vand.u32 2147483647, %v2998_v27  ;;  %v3716_v24 = vsub.f32 %v11001_v61, %v9045_v55  ;;  %v4075_v44 = vsub.f32 %v11001_v61, %v9055_v60  ;;  %v4434_v1 = vsub.f32 %v11001_v61, %v9057_v59 }
 0x289   :  { %v9173_v22 = vadd.f32 %v2611_v31, %v8989_v3  ;;  %v3361_v19 = vand.u32 2147483647, %v3357_v20  ;;  %v4793_v12 = vsub.f32 %v11001_v61, %v9070_v16  ;;  %v5152_v42 = vsub.f32 %v11001_v61, %v9072_v14 }
 0x28a   :  { %v9182_v49 = vadd.f32 %v3002_v30, %v8998_v41  ;;  %v3720_v50 = vand.u32 2147483647, %v3716_v24  ;;  %v4079_v4 = vand.u32 2147483647, %v4075_v44  ;;  %v4438_v36 = vand.u32 2147483647, %v4434_v1 }
 0x28b   :  { %v9185_v33 = vadd.f32 %v3361_v19, %v9001_v58  ;;  %v4797_v3 = vand.u32 2147483647, %v4793_v12  ;;  %v5156_v8 = vand.u32 2147483647, %v5152_v42  ;;  %v2609_v27 = vsub.f32 %v8196_v43, %v9032_v9  ;;  %v9200_v30 = vpop.f32.mrb[46].mxu1  ;;  %v9216_v1 = vld [vmem:[#allocation3 + $0x90] sm:$0xff] }
 0x28c   :  { %v9190_v31 = vadd.f32 %v3720_v50, %v9006_v57  ;;  %v9193_v61 = vadd.f32 %v4079_v4, %v9009_v46  ;;  %v9196_v41 = vadd.f32 %v4438_v36, %v9012_v15  ;;  %v3000_v20 = vsub.f32 %v8196_v43, %v9041_v5  ;;  %11003 = vst [vmem:[#allocation26_spill] sm:$0xff] %v9200_v30  ;;  %v9225_v12 = vld [vmem:[#allocation3 + $0x160] sm:$0xff] }
 0x28d   :  { %v9203_v58 = vadd.f32 %v4797_v3, %v9019_v25  ;;  %v9206_v24 = vadd.f32 %v5156_v8, %v9022_v56  ;;  %v2613_v9 = vand.u32 2147483647, %v2609_v27  ;;  %v3359_v57 = vsub.f32 %v8196_v43, %v9043_v18  ;;  %v11004_v3 = vld [vmem:[#allocation22_spill] sm:$0xff]  ;;  %v9241_v8 = vld [vmem:[#allocation3 + $0x4a0] sm:$0xff] }
 0x28e   :  { %v3004_v46 = vand.u32 2147483647, %v3000_v20  ;;  %v3718_v15 = vsub.f32 %v8196_v43, %v9045_v55  ;;  %v4077_v44 = vsub.f32 %v8196_v43, %v9055_v60  ;;  %v4436_v5 = vsub.f32 %v8196_v43, %v9057_v59  ;;  %v9227_v55 = vld [vmem:[#allocation3 + $0x230] sm:$0xff]  ;;  %v9229_v60 = vld [vmem:[#allocation3 + $0x300] sm:$0xff] }
 0x28f   :  { %v9219_v25 = vadd.f32 %v2613_v9, %v9035_v47  ;;  %v3363_v56 = vand.u32 2147483647, %v3359_v57  ;;  %v4795_v19 = vsub.f32 %v8196_v43, %v9070_v16  ;;  %v5154_v18 = vsub.f32 %v8196_v43, %v9072_v14  ;;  %v9239_v14 = vld [vmem:[#allocation3 + $0x3d0] sm:$0xff]  ;;  %v9256_v57 = vld [vmem:[#allocation3 + $0x640] sm:$0xff] }
 0x290   :  { %v9232_v59 = vadd.f32 %v3004_v46, %v9048_v62  ;;  %v3722_v42 = vand.u32 2147483647, %v3718_v15  ;;  %v4081_v50 = vand.u32 2147483647, %v4077_v44  ;;  %v4440_v47 = vand.u32 2147483647, %v4436_v5 }
 0x291   :  { %v9235_v4 = vadd.f32 %v3363_v56, %v9051_v40  ;;  %v4799_v36 = vand.u32 2147483647, %v4795_v19  ;;  %v5158_v16 = vand.u32 2147483647, %v5154_v18  ;;  %v2623_v43 = vsub.f32 %v11004_v3, %v9216_v1  ;;  %v9254_v9 = vld [vmem:[#allocation3 + $0x570] sm:$0xff]  ;;  %v9266_v44 = vpop.f32.mrb[47].mxu0 }
 0x292   :  { %v9244_v27 = vadd.f32 %v3722_v42, %v9060_v34  ;;  %v9247_v62 = vadd.f32 %v4081_v50, %v9063_v7  ;;  %v9250_v20 = vadd.f32 %v4440_v47, %v9066_v2  ;;  %v3010_v40 = vsub.f32 %v11004_v3, %v9225_v12  ;;  %11005 = vst [vmem:[#allocation22_spill] sm:$0xff] %v9266_v44 }
 0x293   :  { %v9259_v46 = vadd.f32 %v4799_v36, %v9075_v38  ;;  %v9262_v15 = vadd.f32 %v5158_v16, %v9078_v37  ;;  %v2627_v34 = vand.u32 2147483647, %v2623_v43  ;;  %v3369_v7 = vsub.f32 %v11004_v3, %v9227_v55 }
 0x294   :  { %v3014_v2 = vand.u32 2147483647, %v3010_v40  ;;  %v3728_v5 = vsub.f32 %v11004_v3, %v9229_v60  ;;  %v4087_v56 = vsub.f32 %v11004_v3, %v9239_v14  ;;  %v4446_v38 = vsub.f32 %v11004_v3, %v9241_v8 }
 0x295   :  { %v9275_v19 = vadd.f32 %v2627_v34, %v9091_v51  ;;  %v3373_v37 = vand.u32 2147483647, %v3369_v7  ;;  %v4805_v18 = vsub.f32 %v11004_v3, %v9254_v9  ;;  %v5164_v42 = vsub.f32 %v11004_v3, %v9256_v57  ;;  %v11006_v51 = vld [vmem:[#allocation23_spill] sm:$0xff] }
 0x296   :  { %v9282_v50 = vadd.f32 %v3014_v2, %v9098_v6  ;;  %v3732_v47 = vand.u32 2147483647, %v3728_v5  ;;  %v4091_v36 = vand.u32 2147483647, %v4087_v56  ;;  %v4450_v16 = vand.u32 2147483647, %v4446_v38 }
 0x297   :  { %v9285_v43 = vadd.f32 %v3373_v37, %v9101_v39  ;;  %v4809_v40 = vand.u32 2147483647, %v4805_v18  ;;  %v5168_v44 = vand.u32 2147483647, %v5164_v42  ;;  %v2625_v34 = vsub.f32 %v11006_v51, %v9216_v1  ;;  %v9300_v2 = vpop.f32.mrb[47].mxu1 }
 0x298   :  { %v9290_v7 = vadd.f32 %v3732_v47, %v9106_v35  ;;  %v9293_v30 = vadd.f32 %v4091_v36, %v9109_v54  ;;  %v9296_v6 = vadd.f32 %v4450_v16, %v9112_v48  ;;  %v3012_v3 = vsub.f32 %v11006_v51, %v9225_v12  ;;  %11007 = vst [vmem:[#allocation23_spill] sm:$0xff] %v9300_v2 }
 0x299   :  { %v9303_v39 = vadd.f32 %v4809_v40, %v9119_v53  ;;  %v9306_v5 = vadd.f32 %v5168_v44, %v9122_v32  ;;  %v2629_v56 = vand.u32 2147483647, %v2625_v34  ;;  %v3371_v35 = vsub.f32 %v11006_v51, %v9227_v55 }
 0x29a   :  { %v3016_v54 = vand.u32 2147483647, %v3012_v3  ;;  %v3730_v48 = vsub.f32 %v11006_v51, %v9229_v60  ;;  %v4089_v38 = vsub.f32 %v11006_v51, %v9239_v14  ;;  %v4448_v37 = vsub.f32 %v11006_v51, %v9241_v8 }
 0x29b   :  { %v9317_v53 = vadd.f32 %v2629_v56, %v9133_v29  ;;  %v3375_v18 = vand.u32 2147483647, %v3371_v35  ;;  %v4807_v32 = vsub.f32 %v11006_v51, %v9254_v9  ;;  %v5166_v44 = vsub.f32 %v11006_v51, %v9256_v57  ;;  %v11008_v29 = vld [vmem:[#allocation24_spill] sm:$0xff] }
 0x29c   :  { %v9324_v42 = vadd.f32 %v3016_v54, %v9140_v52  ;;  %v3734_v47 = vand.u32 2147483647, %v3730_v48  ;;  %v4093_v36 = vand.u32 2147483647, %v4089_v38  ;;  %v4452_v16 = vand.u32 2147483647, %v4448_v37 }
 0x29d   :  { %v9327_v40 = vadd.f32 %v3375_v18, %v9143_v0  ;;  %v4811_v34 = vand.u32 2147483647, %v4807_v32  ;;  %v5170_v3 = vand.u32 2147483647, %v5166_v44  ;;  %v2624_v56 = vsub.f32 %v11008_v29, %v9216_v1  ;;  %v9350_v38 = vpop.f32.mrb[48].mxu0  ;;  %v9358_v18 = vpop.f32.mrb[48].mxu1 }
 0x29e   :  { %v9332_v35 = vadd.f32 %v3734_v47, %v9148_v45  ;;  %v9335_v2 = vadd.f32 %v4093_v36, %v9151_v21  ;;  %v9338_v52 = vadd.f32 %v4452_v16, %v9154_v13  ;;  %v3011_v51 = vsub.f32 %v11008_v29, %v9225_v12  ;;  %11009 = vst [vmem:[#allocation24_spill] sm:$0xff] %v9350_v38 }
 0x29f   :  { %v9343_v0 = vadd.f32 %v4811_v34, %v9159_v26  ;;  %v9346_v54 = vadd.f32 %v5170_v3, %v9162_v10  ;;  %v2628_v48 = vand.u32 2147483647, %v2624_v56  ;;  %v3370_v45 = vsub.f32 %v11008_v29, %v9227_v55  ;;  %11010 = vst [vmem:[#allocation27_spill] sm:$0xff] %v9358_v18 }
 0x2a0   :  { %v3015_v21 = vand.u32 2147483647, %v3011_v51  ;;  %v3729_v13 = vsub.f32 %v11008_v29, %v9229_v60  ;;  %v4088_v37 = vsub.f32 %v11008_v29, %v9239_v14  ;;  %v4447_v26 = vsub.f32 %v11008_v29, %v9241_v8 }
 0x2a1   :  { %v9361_v10 = vadd.f32 %v2628_v48, %v9173_v22  ;;  %v3374_v32 = vand.u32 2147483647, %v3370_v45  ;;  %v4806_v44 = vsub.f32 %v11008_v29, %v9254_v9  ;;  %v5165_v47 = vsub.f32 %v11008_v29, %v9256_v57  ;;  %v11011_v22 = vld [vmem:[#allocation25_spill] sm:$0xff] }
 0x2a2   :  { %v9368_v36 = vadd.f32 %v3015_v21, %v9182_v49  ;;  %v3733_v16 = vand.u32 2147483647, %v3729_v13  ;;  %v4092_v34 = vand.u32 2147483647, %v4088_v37  ;;  %v4451_v3 = vand.u32 2147483647, %v4447_v26 }
 0x2a3   :  { %v9371_v56 = vadd.f32 %v3374_v32, %v9185_v33  ;;  %v4810_v51 = vand.u32 2147483647, %v4806_v44  ;;  %v5169_v18 = vand.u32 2147483647, %v5165_v47  ;;  %v2626_v48 = vsub.f32 %v11011_v22, %v9216_v1  ;;  %v9400_v37 = vld [vmem:[#allocation3 + $0x98] sm:$0xff]  ;;  %v9415_v32 = vpop.f32.mrb[49].mxu0 }
 0x2a4   :  { %v9376_v45 = vadd.f32 %v3733_v16, %v9190_v31  ;;  %v9379_v38 = vadd.f32 %v4092_v34, %v9193_v61  ;;  %v9382_v49 = vadd.f32 %v4451_v3, %v9196_v41  ;;  %v3013_v29 = vsub.f32 %v11011_v22, %v9225_v12  ;;  %11012 = vst [vmem:[#allocation25_spill] sm:$0xff] %v9415_v32 }
 0x2a5   :  { %v9387_v33 = vadd.f32 %v4810_v51, %v9203_v58  ;;  %v9390_v21 = vadd.f32 %v5169_v18, %v9206_v24  ;;  %v2630_v13 = vand.u32 2147483647, %v2626_v48  ;;  %v3372_v31 = vsub.f32 %v11011_v22, %v9227_v55  ;;  %v9409_v18 = vld [vmem:[#allocation3 + $0x168] sm:$0xff]  ;;  %v9425_v51 = vld [vmem:[#allocation3 + $0x3d8] sm:$0xff] }
 0x2a6   :  { %v3017_v1 = vand.u32 2147483647, %v3013_v29  ;;  %v3731_v61 = vsub.f32 %v11011_v22, %v9229_v60  ;;  %v4090_v41 = vsub.f32 %v11011_v22, %v9239_v14  ;;  %v4449_v12 = vsub.f32 %v11011_v22, %v9241_v8  ;;  %v9411_v60 = vld [vmem:[#allocation3 + $0x238] sm:$0xff]  ;;  %v9413_v14 = vld [vmem:[#allocation3 + $0x308] sm:$0xff] }
 0x2a7   :  { %v9403_v58 = vadd.f32 %v2630_v13, %v9219_v25  ;;  %v3376_v24 = vand.u32 2147483647, %v3372_v31  ;;  %v4808_v26 = vsub.f32 %v11011_v22, %v9254_v9  ;;  %v5167_v55 = vsub.f32 %v11011_v22, %v9256_v57  ;;  %v11013_v57 = vld [vmem:[#allocation9_spill] sm:$0xff]  ;;  %v9427_v22 = vld [vmem:[#allocation3 + $0x4a8] sm:$0xff]  ;;  %v9440_v13 = vld [vmem:[#allocation3 + $0x578] sm:$0xff] }
 0x2a8   :  { %v9418_v8 = vadd.f32 %v3017_v1, %v9232_v59  ;;  %v3735_v25 = vand.u32 2147483647, %v3731_v61  ;;  %v4094_v44 = vand.u32 2147483647, %v4090_v41  ;;  %v4453_v47 = vand.u32 2147483647, %v4449_v12 }
 0x2a9   :  { %v9421_v16 = vadd.f32 %v3376_v24, %v9235_v4  ;;  %v4812_v9 = vand.u32 2147483647, %v4808_v26  ;;  %v5171_v34 = vand.u32 2147483647, %v5167_v55  ;;  %v2640_v3 = vsub.f32 %v11013_v57, %v9400_v37  ;;  %v9442_v31 = vld [vmem:[#allocation3 + $0x648] sm:$0xff]  ;;  %v9458_v26 = vpop.f32.mrb[49].mxu1 }
 0x2aa   :  { %v9430_v48 = vadd.f32 %v3735_v25, %v9244_v27  ;;  %v9433_v59 = vadd.f32 %v4094_v44, %v9247_v62  ;;  %v9436_v29 = vadd.f32 %v4453_v47, %v9250_v20  ;;  %v3023_v4 = vsub.f32 %v11013_v57, %v9409_v18  ;;  %11014 = vst [vmem:[#allocation9_spill] sm:$0xff] %v9458_v26 }
 0x2ab   :  { %v9445_v1 = vadd.f32 %v4812_v9, %v9259_v46  ;;  %v9448_v61 = vadd.f32 %v5171_v34, %v9262_v15  ;;  %v2644_v27 = vand.u32 2147483647, %v2640_v3  ;;  %v3382_v62 = vsub.f32 %v11013_v57, %v9411_v60 }
 0x2ac   :  { %v3027_v41 = vand.u32 2147483647, %v3023_v4  ;;  %v3741_v20 = vsub.f32 %v11013_v57, %v9413_v14  ;;  %v4100_v12 = vsub.f32 %v11013_v57, %v9425_v51  ;;  %v4459_v24 = vsub.f32 %v11013_v57, %v9427_v22 }
 0x2ad   :  { %v9461_v46 = vadd.f32 %v2644_v27, %v9275_v19  ;;  %v3386_v15 = vand.u32 2147483647, %v3382_v62  ;;  %v4818_v55 = vsub.f32 %v11013_v57, %v9440_v13  ;;  %v5177_v25 = vsub.f32 %v11013_v57, %v9442_v31  ;;  %v11015_v19 = vld [vmem:[#allocation10_spill] sm:$0xff] }
 0x2ae   :  { %v9468_v44 = vadd.f32 %v3027_v41, %v9282_v50  ;;  %v3745_v47 = vand.u32 2147483647, %v3741_v20  ;;  %v4104_v9 = vand.u32 2147483647, %v4100_v12  ;;  %v4463_v34 = vand.u32 2147483647, %v4459_v24 }
 0x2af   :  { %v9471_v3 = vadd.f32 %v3386_v15, %v9285_v43  ;;  %v4822_v4 = vand.u32 2147483647, %v4818_v55  ;;  %v5181_v26 = vand.u32 2147483647, %v5177_v25  ;;  %v2642_v27 = vsub.f32 %v11015_v19, %v9400_v37  ;;  %v9507_v55 = vpop.f32.mrb[50].mxu0  ;;  %v9509_v25 = vpop.f32.mrb[50].mxu1 }
 0x2b0   :  { %v9476_v62 = vadd.f32 %v3745_v47, %v9290_v7  ;;  %v9479_v32 = vadd.f32 %v4104_v9, %v9293_v30  ;;  %v9482_v50 = vadd.f32 %v4463_v34, %v9296_v6  ;;  %v3025_v57 = vsub.f32 %v11015_v19, %v9409_v18  ;;  %11016 = vst [vmem:[#allocation10_spill] sm:$0xff] %v9509_v25  ;;  %v9519_v63 = vpop.f32.mrb[51].mxu0 }
 0x2b1   :  { %v9487_v43 = vadd.f32 %v4822_v4, %v9303_v39  ;;  %v9490_v41 = vadd.f32 %v5181_v26, %v9306_v5  ;;  %v2646_v20 = vand.u32 2147483647, %v2642_v27  ;;  %v3384_v7 = vsub.f32 %v11015_v19, %v9411_v60 }
 0x2b2   :  { %v3029_v12 = vand.u32 2147483647, %v3025_v57  ;;  %v3743_v30 = vsub.f32 %v11015_v19, %v9413_v14  ;;  %v4102_v6 = vsub.f32 %v11015_v19, %v9425_v51  ;;  %v4461_v24 = vsub.f32 %v11015_v19, %v9427_v22 }
 0x2b3   :  { %v9501_v39 = vadd.f32 %v2646_v20, %v9317_v53  ;;  %v3388_v15 = vand.u32 2147483647, %v3384_v7  ;;  %v4820_v5 = vsub.f32 %v11015_v19, %v9440_v13  ;;  %v5179_v26 = vsub.f32 %v11015_v19, %v9442_v31  ;;  %v11017_v20 = vld [vmem:[#allocation11_spill] sm:$0xff] }
 0x2b4   :  { %v9512_v47 = vadd.f32 %v3029_v12, %v9324_v42  ;;  %v3747_v9 = vand.u32 2147483647, %v3743_v30  ;;  %v4106_v34 = vand.u32 2147483647, %v4102_v6  ;;  %v4465_v4 = vand.u32 2147483647, %v4461_v24 }
 0x2b5   :  { %v9515_v53 = vadd.f32 %v3388_v15, %v9327_v40  ;;  %v4824_v27 = vand.u32 2147483647, %v4820_v5  ;;  %v5183_v57 = vand.u32 2147483647, %v5179_v26  ;;  %v2641_v7 = vsub.f32 %v11017_v20, %v9400_v37  ;;  %11018 = vst [vmem:[#allocation11_spill] sm:$0xff] %v9519_v63 }
 0x2b6   :  { %v9522_v19 = vadd.f32 %v3747_v9, %v9332_v35  ;;  %v9525_v25 = vadd.f32 %v4106_v34, %v9335_v2  ;;  %v9528_v42 = vadd.f32 %v4465_v4, %v9338_v52  ;;  %v3024_v40 = vsub.f32 %v11017_v20, %v9409_v18 }
 0x2b7   :  { %v9533_v12 = vadd.f32 %v4824_v27, %v9343_v0  ;;  %v9536_v30 = vadd.f32 %v5183_v57, %v9346_v54  ;;  %v2645_v6 = vand.u32 2147483647, %v2641_v7  ;;  %v3383_v35 = vsub.f32 %v11017_v20, %v9411_v60 }
 0x2b8   :  { %v3028_v24 = vand.u32 2147483647, %v3024_v40  ;;  %v3742_v2 = vsub.f32 %v11017_v20, %v9413_v14  ;;  %v4101_v52 = vsub.f32 %v11017_v20, %v9425_v51  ;;  %v4460_v15 = vsub.f32 %v11017_v20, %v9427_v22 }
 0x2b9   :  { %v9547_v0 = vadd.f32 %v2645_v6, %v9361_v10  ;;  %v3387_v5 = vand.u32 2147483647, %v3383_v35  ;;  %v4819_v54 = vsub.f32 %v11017_v20, %v9440_v13  ;;  %v5178_v26 = vsub.f32 %v11017_v20, %v9442_v31  ;;  %v11019_v10 = vld [vmem:[#allocation12_spill] sm:$0xff] }
 0x2ba   :  { %v9554_v9 = vadd.f32 %v3028_v24, %v9368_v36  ;;  %v3746_v34 = vand.u32 2147483647, %v3742_v2  ;;  %v4105_v4 = vand.u32 2147483647, %v4101_v52  ;;  %v4464_v27 = vand.u32 2147483647, %v4460_v15 }
 0x2bb   :  { %v9557_v57 = vadd.f32 %v3387_v5, %v9371_v56  ;;  %v4823_v7 = vand.u32 2147483647, %v4819_v54  ;;  %v5182_v40 = vand.u32 2147483647, %v5178_v26  ;;  %v2643_v6 = vsub.f32 %v11019_v10, %v9400_v37  ;;  %v9586_v52 = vld [vmem:[#allocation3 + $0xa0] sm:$0xff]  ;;  %v9595_v5 = vld [vmem:[#allocation3 + $0x170] sm:$0xff] }
 0x2bc   :  { %v9562_v35 = vadd.f32 %v3746_v34, %v9376_v45  ;;  %v9565_v63 = vadd.f32 %v4105_v4, %v9379_v38  ;;  %v9568_v36 = vadd.f32 %v4464_v27, %v9382_v49  ;;  %v3026_v20 = vsub.f32 %v11019_v10, %v9409_v18  ;;  %v9609_v27 = vld [vmem:[#allocation3 + $0x3e0] sm:$0xff] }
 0x2bd   :  { %v9573_v56 = vadd.f32 %v4823_v7, %v9387_v33  ;;  %v9576_v24 = vadd.f32 %v5182_v40, %v9390_v21  ;;  %v2647_v2 = vand.u32 2147483647, %v2643_v6  ;;  %v3385_v45 = vsub.f32 %v11019_v10, %v9411_v60  ;;  %v9611_v7 = vld [vmem:[#allocation3 + $0x4b0] sm:$0xff]  ;;  %v9624_v6 = vld [vmem:[#allocation3 + $0x580] sm:$0xff] }
 0x2be   :  { %v3030_v37 = vand.u32 2147483647, %v3026_v20  ;;  %v3744_v38 = vsub.f32 %v11019_v10, %v9413_v14  ;;  %v4103_v49 = vsub.f32 %v11019_v10, %v9425_v51  ;;  %v4462_v18 = vsub.f32 %v11019_v10, %v9427_v22  ;;  %v9597_v14 = vld [vmem:[#allocation3 + $0x240] sm:$0xff]  ;;  %v9599_v51 = vld [vmem:[#allocation3 + $0x310] sm:$0xff] }
 0x2bf   :  { %v9589_v33 = vadd.f32 %v2647_v2, %v9403_v58  ;;  %v3389_v21 = vand.u32 2147483647, %v3385_v45  ;;  %v4821_v15 = vsub.f32 %v11019_v10, %v9440_v13  ;;  %v5180_v60 = vsub.f32 %v11019_v10, %v9442_v31  ;;  %v9626_v20 = vld [vmem:[#allocation3 + $0x650] sm:$0xff] }
 0x2c0   :  { %v9602_v22 = vadd.f32 %v3030_v37, %v9418_v8  ;;  %v3748_v54 = vand.u32 2147483647, %v3744_v38  ;;  %v4107_v26 = vand.u32 2147483647, %v4103_v49  ;;  %v4466_v58 = vand.u32 2147483647, %v4462_v18 }
 0x2c1   :  { %v9605_v34 = vadd.f32 %v3389_v21, %v9421_v16  ;;  %v4825_v4 = vand.u32 2147483647, %v4821_v15  ;;  %v5184_v13 = vand.u32 2147483647, %v5180_v60  ;;  %v2657_v31 = vsub.f32 %v8627_v11, %v9586_v52 }
 0x2c2   :  { %v9614_v40 = vadd.f32 %v3748_v54, %v9430_v48  ;;  %v9617_v8 = vadd.f32 %v4107_v26, %v9433_v59  ;;  %v9620_v10 = vadd.f32 %v4466_v58, %v9436_v29  ;;  %v3036_v16 = vsub.f32 %v8627_v11, %v9595_v5 }
 0x2c3   :  { %v9629_v2 = vadd.f32 %v4825_v4, %v9445_v1  ;;  %v9632_v45 = vadd.f32 %v5184_v13, %v9448_v61  ;;  %v2661_v48 = vand.u32 2147483647, %v2657_v31  ;;  %v3395_v59 = vsub.f32 %v8627_v11, %v9597_v14 }
 0x2c4   :  { %v3040_v37 = vand.u32 2147483647, %v3036_v16  ;;  %v3754_v29 = vsub.f32 %v8627_v11, %v9599_v51  ;;  %v4113_v38 = vsub.f32 %v8627_v11, %v9609_v27  ;;  %v4472_v49 = vsub.f32 %v8627_v11, %v9611_v7 }
 0x2c5   :  { %v9643_v1 = vadd.f32 %v2661_v48, %v9461_v46  ;;  %v3399_v18 = vand.u32 2147483647, %v3395_v59  ;;  %v4831_v61 = vsub.f32 %v8627_v11, %v9624_v6  ;;  %v5190_v21 = vsub.f32 %v8627_v11, %v9626_v20 }
 0x2c6   :  { %v9650_v15 = vadd.f32 %v3040_v37, %v9468_v44  ;;  %v3758_v60 = vand.u32 2147483647, %v3754_v29  ;;  %v4117_v54 = vand.u32 2147483647, %v4113_v38  ;;  %v4476_v26 = vand.u32 2147483647, %v4472_v49 }
 0x2c7   :  { %v9653_v58 = vadd.f32 %v3399_v18, %v9471_v3  ;;  %v4835_v4 = vand.u32 2147483647, %v4831_v61  ;;  %v5194_v13 = vand.u32 2147483647, %v5190_v21  ;;  %v2659_v46 = vsub.f32 %v8648_v28, %v9586_v52 }
 0x2c8   :  { %v9658_v31 = vadd.f32 %v3758_v60, %v9476_v62  ;;  %v9661_v16 = vadd.f32 %v4117_v54, %v9479_v32  ;;  %v9664_v11 = vadd.f32 %v4476_v26, %v9482_v50  ;;  %v3038_v44 = vsub.f32 %v8648_v28, %v9595_v5 }
 0x2c9   :  { %v9669_v3 = vadd.f32 %v4835_v4, %v9487_v43  ;;  %v9672_v48 = vadd.f32 %v5194_v13, %v9490_v41  ;;  %v2663_v59 = vand.u32 2147483647, %v2659_v46  ;;  %v3397_v62 = vsub.f32 %v8648_v28, %v9597_v14 }
 0x2ca   :  { %v3042_v37 = vand.u32 2147483647, %v3038_v44  ;;  %v3756_v32 = vsub.f32 %v8648_v28, %v9599_v51  ;;  %v4115_v50 = vsub.f32 %v8648_v28, %v9609_v27  ;;  %v4474_v29 = vsub.f32 %v8648_v28, %v9611_v7 }
 0x2cb   :  { %v9683_v43 = vadd.f32 %v2663_v59, %v9501_v39  ;;  %v3401_v38 = vand.u32 2147483647, %v3397_v62  ;;  %v4833_v41 = vsub.f32 %v8648_v28, %v9624_v6  ;;  %v5192_v49 = vsub.f32 %v8648_v28, %v9626_v20  ;;  %v11020_v39 = vld [vmem:[#allocation13_spill] sm:$0xff] }
 0x2cc   :  { %v9690_v18 = vadd.f32 %v3042_v37, %v9512_v47  ;;  %v3760_v61 = vand.u32 2147483647, %v3756_v32  ;;  %v4119_v21 = vand.u32 2147483647, %v4115_v50  ;;  %v4478_v60 = vand.u32 2147483647, %v4474_v29 }
 0x2cd   :  { %v9693_v54 = vadd.f32 %v3401_v38, %v9515_v53  ;;  %v4837_v26 = vand.u32 2147483647, %v4833_v41  ;;  %v5196_v4 = vand.u32 2147483647, %v5192_v49  ;;  %v2658_v13 = vsub.f32 %v11020_v39, %v9586_v52 }
 0x2ce   :  { %v9698_v46 = vadd.f32 %v3760_v61, %v9522_v19  ;;  %v9701_v44 = vadd.f32 %v4119_v21, %v9525_v25  ;;  %v9704_v28 = vadd.f32 %v4478_v60, %v9528_v42  ;;  %v3037_v47 = vsub.f32 %v11020_v39, %v9595_v5 }
 0x2cf   :  { %v9709_v53 = vadd.f32 %v4837_v26, %v9533_v12  ;;  %v9712_v59 = vadd.f32 %v5196_v4, %v9536_v30  ;;  %v2662_v62 = vand.u32 2147483647, %v2658_v13  ;;  %v3396_v19 = vsub.f32 %v11020_v39, %v9597_v14 }
 0x2d0   :  { %v3041_v37 = vand.u32 2147483647, %v3037_v47  ;;  %v3755_v25 = vsub.f32 %v11020_v39, %v9599_v51  ;;  %v4114_v42 = vsub.f32 %v11020_v39, %v9609_v27  ;;  %v4473_v32 = vsub.f32 %v11020_v39, %v9611_v7 }
 0x2d1   :  { %v9723_v12 = vadd.f32 %v2662_v62, %v9547_v0  ;;  %v3400_v50 = vand.u32 2147483647, %v3396_v19  ;;  %v4832_v30 = vsub.f32 %v11020_v39, %v9624_v6  ;;  %v5191_v29 = vsub.f32 %v11020_v39, %v9626_v20  ;;  %v11021_v0 = vld [vmem:[#allocation14_spill] sm:$0xff] }
 0x2d2   :  { %v9730_v38 = vadd.f32 %v3041_v37, %v9554_v9  ;;  %v3759_v41 = vand.u32 2147483647, %v3755_v25  ;;  %v4118_v49 = vand.u32 2147483647, %v4114_v42  ;;  %v4477_v61 = vand.u32 2147483647, %v4473_v32 }
 0x2d3   :  { %v9733_v21 = vadd.f32 %v3400_v50, %v9557_v57  ;;  %v4836_v60 = vand.u32 2147483647, %v4832_v30  ;;  %v5195_v26 = vand.u32 2147483647, %v5191_v29  ;;  %v2660_v4 = vsub.f32 %v11021_v0, %v9586_v52  ;;  %v9762_v37 = vld [vmem:[#allocation3 + $0xa8] sm:$0xff]  ;;  %v9771_v42 = vld [vmem:[#allocation3 + $0x178] sm:$0xff] }
 0x2d4   :  { %v9738_v13 = vadd.f32 %v3759_v41, %v9562_v35  ;;  %v9741_v47 = vadd.f32 %v4118_v49, %v9565_v63  ;;  %v9744_v9 = vadd.f32 %v4477_v61, %v9568_v36  ;;  %v3039_v39 = vsub.f32 %v11021_v0, %v9595_v5  ;;  %v11022_v41 = vld [vmem:[#allocation15_spill] sm:$0xff]  ;;  %v9785_v49 = vld [vmem:[#allocation3 + $0x3e8] sm:$0xff]  ;;  %v9787_v61 = vld [vmem:[#allocation3 + $0x4b8] sm:$0xff] }
 0x2d5   :  { %v9749_v57 = vadd.f32 %v4836_v60, %v9573_v56  ;;  %v9752_v62 = vadd.f32 %v5195_v26, %v9576_v24  ;;  %v2664_v19 = vand.u32 2147483647, %v2660_v4  ;;  %v3398_v35 = vsub.f32 %v11021_v0, %v9597_v14  ;;  %v9802_v4 = vld [vmem:[#allocation3 + $0x658] sm:$0xff] }
 0x2d6   :  { %v3043_v52 = vand.u32 2147483647, %v3039_v39  ;;  %v3757_v63 = vsub.f32 %v11021_v0, %v9599_v51  ;;  %v4116_v36 = vsub.f32 %v11021_v0, %v9609_v27  ;;  %v4475_v5 = vsub.f32 %v11021_v0, %v9611_v7  ;;  %v9773_v51 = vld [vmem:[#allocation3 + $0x248] sm:$0xff]  ;;  %v9775_v27 = vld [vmem:[#allocation3 + $0x318] sm:$0xff] }
 0x2d7   :  { %v9765_v56 = vadd.f32 %v2664_v19, %v9589_v33  ;;  %v3402_v24 = vand.u32 2147483647, %v3398_v35  ;;  %v4834_v25 = vsub.f32 %v11021_v0, %v9624_v6  ;;  %v5193_v14 = vsub.f32 %v11021_v0, %v9626_v20  ;;  %v9800_v0 = vld [vmem:[#allocation3 + $0x588] sm:$0xff] }
 0x2d8   :  { %v9778_v7 = vadd.f32 %v3043_v52, %v9602_v22  ;;  %v3761_v32 = vand.u32 2147483647, %v3757_v63  ;;  %v4120_v50 = vand.u32 2147483647, %v4116_v36  ;;  %v4479_v33 = vand.u32 2147483647, %v4475_v5 }
 0x2d9   :  { %v9781_v30 = vadd.f32 %v3402_v24, %v9605_v34  ;;  %v4838_v29 = vand.u32 2147483647, %v4834_v25  ;;  %v5197_v6 = vand.u32 2147483647, %v5193_v14  ;;  %v2674_v20 = vsub.f32 %v11022_v41, %v9762_v37 }
 0x2da   :  { %v9790_v60 = vadd.f32 %v3761_v32, %v9614_v40  ;;  %v9793_v22 = vadd.f32 %v4120_v50, %v9617_v8  ;;  %v9796_v26 = vadd.f32 %v4479_v33, %v9620_v10  ;;  %v3049_v34 = vsub.f32 %v11022_v41, %v9771_v42 }
 0x2db   :  { %v9805_v39 = vadd.f32 %v4838_v29, %v9629_v2  ;;  %v9808_v19 = vadd.f32 %v5197_v6, %v9632_v45  ;;  %v2678_v40 = vand.u32 2147483647, %v2674_v20  ;;  %v3408_v8 = vsub.f32 %v11022_v41, %v9773_v51 }
 0x2dc   :  { %v3053_v35 = vand.u32 2147483647, %v3049_v34  ;;  %v3767_v10 = vsub.f32 %v11022_v41, %v9775_v27  ;;  %v4126_v52 = vsub.f32 %v11022_v41, %v9785_v49  ;;  %v4485_v63 = vsub.f32 %v11022_v41, %v9787_v61 }
 0x2dd   :  { %v9819_v2 = vadd.f32 %v2678_v40, %v9643_v1  ;;  %v3412_v36 = vand.u32 2147483647, %v3408_v8  ;;  %v4844_v45 = vsub.f32 %v11022_v41, %v9800_v0  ;;  %v5203_v5 = vsub.f32 %v11022_v41, %v9802_v4  ;;  %v11023_v1 = vld [vmem:[#allocation16_spill] sm:$0xff] }
 0x2de   :  { %v9826_v24 = vadd.f32 %v3053_v35, %v9650_v15  ;;  %v3771_v25 = vand.u32 2147483647, %v3767_v10  ;;  %v4130_v14 = vand.u32 2147483647, %v4126_v52  ;;  %v4489_v32 = vand.u32 2147483647, %v4485_v63 }
 0x2df   :  { %v9829_v50 = vadd.f32 %v3412_v36, %v9653_v58  ;;  %v4848_v33 = vand.u32 2147483647, %v4844_v45  ;;  %v5207_v29 = vand.u32 2147483647, %v5203_v5  ;;  %v2676_v6 = vsub.f32 %v11023_v1, %v9762_v37  ;;  %v9858_v52 = vpop.f32.mrb[51].mxu1 }
 0x2e0   :  { %v9834_v20 = vadd.f32 %v3771_v25, %v9658_v31  ;;  %v9837_v34 = vadd.f32 %v4130_v14, %v9661_v16  ;;  %v9840_v15 = vadd.f32 %v4489_v32, %v9664_v11  ;;  %v3051_v41 = vsub.f32 %v11023_v1, %v9771_v42  ;;  %11024 = vst [vmem:[#allocation12_spill] sm:$0xff] %v9858_v52 }
 0x2e1   :  { %v9845_v58 = vadd.f32 %v4848_v33, %v9669_v3  ;;  %v9848_v40 = vadd.f32 %v5207_v29, %v9672_v48  ;;  %v2680_v8 = vand.u32 2147483647, %v2676_v6  ;;  %v3410_v31 = vsub.f32 %v11023_v1, %v9773_v51 }
 0x2e2   :  { %v3055_v35 = vand.u32 2147483647, %v3051_v41  ;;  %v3769_v16 = vsub.f32 %v11023_v1, %v9775_v27  ;;  %v4128_v11 = vsub.f32 %v11023_v1, %v9785_v49  ;;  %v4487_v10 = vsub.f32 %v11023_v1, %v9787_v61 }
 0x2e3   :  { %v9861_v3 = vadd.f32 %v2680_v8, %v9683_v43  ;;  %v3414_v48 = vand.u32 2147483647, %v3410_v31  ;;  %v4846_v63 = vsub.f32 %v11023_v1, %v9800_v0  ;;  %v5205_v36 = vsub.f32 %v11023_v1, %v9802_v4  ;;  %v11025_v43 = vld [vmem:[#allocation17_spill] sm:$0xff] }
 0x2e4   :  { %v9868_v45 = vadd.f32 %v3055_v35, %v9690_v18  ;;  %v3773_v5 = vand.u32 2147483647, %v3769_v16  ;;  %v4132_v25 = vand.u32 2147483647, %v4128_v11  ;;  %v4491_v14 = vand.u32 2147483647, %v4487_v10 }
 0x2e5   :  { %v9871_v32 = vadd.f32 %v3414_v48, %v9693_v54  ;;  %v4850_v33 = vand.u32 2147483647, %v4846_v63  ;;  %v5209_v29 = vand.u32 2147483647, %v5205_v36  ;;  %v2675_v6 = vsub.f32 %v11025_v43, %v9762_v37 }
 0x2e6   :  { %v9876_v41 = vadd.f32 %v3773_v5, %v9698_v46  ;;  %v9879_v8 = vadd.f32 %v4132_v25, %v9701_v44  ;;  %v9882_v18 = vadd.f32 %v4491_v14, %v9704_v28  ;;  %v3050_v1 = vsub.f32 %v11025_v43, %v9771_v42 }
 0x2e7   :  { %v9887_v54 = vadd.f32 %v4850_v33, %v9709_v53  ;;  %v9890_v31 = vadd.f32 %v5209_v29, %v9712_v59  ;;  %v2679_v35 = vand.u32 2147483647, %v2675_v6  ;;  %v3409_v46 = vsub.f32 %v11025_v43, %v9773_v51 }
 0x2e8   :  { %v3054_v16 = vand.u32 2147483647, %v3050_v1  ;;  %v3768_v44 = vsub.f32 %v11025_v43, %v9775_v27  ;;  %v4127_v28 = vsub.f32 %v11025_v43, %v9785_v49  ;;  %v4486_v11 = vsub.f32 %v11025_v43, %v9787_v61 }
 0x2e9   :  { %v9901_v53 = vadd.f32 %v2679_v35, %v9723_v12  ;;  %v3413_v10 = vand.u32 2147483647, %v3409_v46  ;;  %v4845_v59 = vsub.f32 %v11025_v43, %v9800_v0  ;;  %v5204_v48 = vsub.f32 %v11025_v43, %v9802_v4  ;;  %v11026_v12 = vld [vmem:[#allocation18_spill] sm:$0xff] }
 0x2ea   :  { %v9908_v63 = vadd.f32 %v3054_v16, %v9730_v38  ;;  %v3772_v36 = vand.u32 2147483647, %v3768_v44  ;;  %v4131_v5 = vand.u32 2147483647, %v4127_v28  ;;  %v4490_v25 = vand.u32 2147483647, %v4486_v11 }
 0x2eb   :  { %v9911_v14 = vadd.f32 %v3413_v10, %v9733_v21  ;;  %v4849_v33 = vand.u32 2147483647, %v4845_v59  ;;  %v5208_v29 = vand.u32 2147483647, %v5204_v48  ;;  %v2677_v6 = vsub.f32 %v11026_v12, %v9762_v37  ;;  %v9940_v44 = vld [vmem:[#allocation3 + $0xb0] sm:$0xff]  ;;  %v9949_v11 = vld [vmem:[#allocation3 + $0x180] sm:$0xff] }
 0x2ec   :  { %v9916_v1 = vadd.f32 %v3772_v36, %v9738_v13  ;;  %v9919_v35 = vadd.f32 %v4131_v5, %v9741_v47  ;;  %v9922_v38 = vadd.f32 %v4490_v25, %v9744_v9  ;;  %v3052_v43 = vsub.f32 %v11026_v12, %v9771_v42  ;;  %v9963_v5 = vld [vmem:[#allocation3 + $0x3f0] sm:$0xff]  ;;  %v9965_v25 = vld [vmem:[#allocation3 + $0x4c0] sm:$0xff] }
 0x2ed   :  { %v9927_v21 = vadd.f32 %v4849_v33, %v9749_v57  ;;  %v9930_v46 = vadd.f32 %v5208_v29, %v9752_v62  ;;  %v2681_v16 = vand.u32 2147483647, %v2677_v6  ;;  %v3411_v13 = vsub.f32 %v11026_v12, %v9773_v51  ;;  %v9980_v6 = vld [vmem:[#allocation3 + $0x660] sm:$0xff] }
 0x2ee   :  { %v3056_v37 = vand.u32 2147483647, %v3052_v43  ;;  %v3770_v47 = vsub.f32 %v11026_v12, %v9775_v27  ;;  %v4129_v9 = vsub.f32 %v11026_v12, %v9785_v49  ;;  %v4488_v42 = vsub.f32 %v11026_v12, %v9787_v61  ;;  %v9951_v27 = vld [vmem:[#allocation3 + $0x250] sm:$0xff]  ;;  %v9953_v49 = vld [vmem:[#allocation3 + $0x320] sm:$0xff] }
 0x2ef   :  { %v9943_v57 = vadd.f32 %v2681_v16, %v9765_v56  ;;  %v3415_v62 = vand.u32 2147483647, %v3411_v13  ;;  %v4847_v28 = vsub.f32 %v11026_v12, %v9800_v0  ;;  %v5206_v51 = vsub.f32 %v11026_v12, %v9802_v4  ;;  %v9978_v12 = vld [vmem:[#allocation3 + $0x590] sm:$0xff] }
 0x2f0   :  { %v9956_v61 = vadd.f32 %v3056_v37, %v9778_v7  ;;  %v3774_v10 = vand.u32 2147483647, %v3770_v47  ;;  %v4133_v59 = vand.u32 2147483647, %v4129_v9  ;;  %v4492_v56 = vand.u32 2147483647, %v4488_v42 }
 0x2f1   :  { %v9959_v48 = vadd.f32 %v3415_v62, %v9781_v30  ;;  %v4851_v36 = vand.u32 2147483647, %v4847_v28  ;;  %v5210_v0 = vand.u32 2147483647, %v5206_v51  ;;  %v2691_v4 = vsub.f32 %v8995_v23, %v9940_v44 }
 0x2f2   :  { %v9968_v33 = vadd.f32 %v3774_v10, %v9790_v60  ;;  %v9971_v7 = vadd.f32 %v4133_v59, %v9793_v22  ;;  %v9974_v29 = vadd.f32 %v4492_v56, %v9796_v26  ;;  %v3062_v30 = vsub.f32 %v8995_v23, %v9949_v11 }
 0x2f3   :  { %v9983_v43 = vadd.f32 %v4851_v36, %v9805_v39  ;;  %v9986_v16 = vadd.f32 %v5210_v0, %v9808_v19  ;;  %v2695_v60 = vand.u32 2147483647, %v2691_v4  ;;  %v3421_v22 = vsub.f32 %v8995_v23, %v9951_v27 }
 0x2f4   :  { %v3066_v13 = vand.u32 2147483647, %v3062_v30  ;;  %v3780_v26 = vsub.f32 %v8995_v23, %v9953_v49  ;;  %v4139_v37 = vsub.f32 %v8995_v23, %v9963_v5  ;;  %v4498_v47 = vsub.f32 %v8995_v23, %v9965_v25 }
 0x2f5   :  { %v9997_v39 = vadd.f32 %v2695_v60, %v9819_v2  ;;  %v3425_v9 = vand.u32 2147483647, %v3421_v22  ;;  %v4857_v19 = vsub.f32 %v8995_v23, %v9978_v12  ;;  %v5216_v42 = vsub.f32 %v8995_v23, %v9980_v6 }
 0x2f6   :  { %v10004_v62 = vadd.f32 %v3066_v13, %v9826_v24  ;;  %v3784_v28 = vand.u32 2147483647, %v3780_v26  ;;  %v4143_v51 = vand.u32 2147483647, %v4139_v37  ;;  %v4502_v10 = vand.u32 2147483647, %v4498_v47 }
 0x2f7   :  { %v10007_v59 = vadd.f32 %v3425_v9, %v9829_v50  ;;  %v4861_v56 = vand.u32 2147483647, %v4857_v19  ;;  %v5220_v36 = vand.u32 2147483647, %v5216_v42  ;;  %v2693_v2 = vsub.f32 %v9016_v17, %v9940_v44 }
 0x2f8   :  { %v10012_v0 = vadd.f32 %v3784_v28, %v9834_v20  ;;  %v10015_v4 = vadd.f32 %v4143_v51, %v9837_v34  ;;  %v10018_v23 = vadd.f32 %v4502_v10, %v9840_v15  ;;  %v3064_v24 = vsub.f32 %v9016_v17, %v9949_v11 }
 0x2f9   :  { %v10023_v50 = vadd.f32 %v4861_v56, %v9845_v58  ;;  %v10026_v30 = vadd.f32 %v5220_v36, %v9848_v40  ;;  %v2697_v60 = vand.u32 2147483647, %v2693_v2  ;;  %v3423_v20 = vsub.f32 %v9016_v17, %v9951_v27 }
 0x2fa   :  { %v3068_v22 = vand.u32 2147483647, %v3064_v24  ;;  %v3782_v34 = vsub.f32 %v9016_v17, %v9953_v49  ;;  %v4141_v15 = vsub.f32 %v9016_v17, %v9963_v5  ;;  %v4500_v13 = vsub.f32 %v9016_v17, %v9965_v25 }
 0x2fb   :  { %v10037_v58 = vadd.f32 %v2697_v60, %v9861_v3  ;;  %v3427_v26 = vand.u32 2147483647, %v3423_v20  ;;  %v4859_v40 = vsub.f32 %v9016_v17, %v9978_v12  ;;  %v5218_v37 = vsub.f32 %v9016_v17, %v9980_v6  ;;  %v11027_v3 = vld [vmem:[#allocation19_spill] sm:$0xff] }
 0x2fc   :  { %v10044_v47 = vadd.f32 %v3068_v22, %v9868_v45  ;;  %v3786_v9 = vand.u32 2147483647, %v3782_v34  ;;  %v4145_v19 = vand.u32 2147483647, %v4141_v15  ;;  %v4504_v42 = vand.u32 2147483647, %v4500_v13 }
 0x2fd   :  { %v10047_v28 = vadd.f32 %v3427_v26, %v9871_v32  ;;  %v4863_v51 = vand.u32 2147483647, %v4859_v40  ;;  %v5222_v10 = vand.u32 2147483647, %v5218_v37  ;;  %v2692_v56 = vsub.f32 %v11027_v3, %v9940_v44 }
 0x2fe   :  { %v10052_v36 = vadd.f32 %v3786_v9, %v9876_v41  ;;  %v10055_v2 = vadd.f32 %v4145_v19, %v9879_v8  ;;  %v10058_v17 = vadd.f32 %v4504_v42, %v9882_v18  ;;  %v3063_v45 = vsub.f32 %v11027_v3, %v9949_v11 }
 0x2ff   :  { %v10063_v32 = vadd.f32 %v4863_v51, %v9887_v54  ;;  %v10066_v24 = vadd.f32 %v5222_v10, %v9890_v31  ;;  %v2696_v60 = vand.u32 2147483647, %v2692_v56  ;;  %v3422_v41 = vsub.f32 %v11027_v3, %v9951_v27 }
 0x300   :  { %v3067_v20 = vand.u32 2147483647, %v3063_v45  ;;  %v3781_v8 = vsub.f32 %v11027_v3, %v9953_v49  ;;  %v4140_v18 = vsub.f32 %v11027_v3, %v9963_v5  ;;  %v4499_v22 = vsub.f32 %v11027_v3, %v9965_v25 }
 0x301   :  { %v10077_v54 = vadd.f32 %v2696_v60, %v9901_v53  ;;  %v3426_v34 = vand.u32 2147483647, %v3422_v41  ;;  %v4858_v31 = vsub.f32 %v11027_v3, %v9978_v12  ;;  %v5217_v15 = vsub.f32 %v11027_v3, %v9980_v6  ;;  %v11028_v53 = vld [vmem:[#allocation20_spill] sm:$0xff] }
 0x302   :  { %v10084_v13 = vadd.f32 %v3067_v20, %v9908_v63  ;;  %v3785_v26 = vand.u32 2147483647, %v3781_v8  ;;  %v4144_v40 = vand.u32 2147483647, %v4140_v18  ;;  %v4503_v37 = vand.u32 2147483647, %v4499_v22 }
 0x303   :  { %v10087_v9 = vadd.f32 %v3426_v34, %v9911_v14  ;;  %v4862_v19 = vand.u32 2147483647, %v4858_v31  ;;  %v5221_v42 = vand.u32 2147483647, %v5217_v15  ;;  %v2694_v51 = vsub.f32 %v11028_v53, %v9940_v44  ;;  %v10116_v41 = vld [vmem:[#allocation3 + $0xb8] sm:$0xff]  ;;  %v10125_v8 = vld [vmem:[#allocation3 + $0x188] sm:$0xff] }
 0x304   :  { %v10092_v10 = vadd.f32 %v3785_v26, %v9916_v1  ;;  %v10095_v56 = vadd.f32 %v4144_v40, %v9919_v35  ;;  %v10098_v63 = vadd.f32 %v4503_v37, %v9922_v38  ;;  %v3065_v3 = vsub.f32 %v11028_v53, %v9949_v11  ;;  %v11032_v15 = vld [vmem:[#allocation21_spill] sm:$0xff]  ;;  %v10139_v26 = vld [vmem:[#allocation3 + $0x3f8] sm:$0xff]  ;;  %v10141_v40 = vld [vmem:[#allocation3 + $0x4c8] sm:$0xff] }
 0x305   :  { %v10103_v14 = vadd.f32 %v4862_v19, %v9927_v21  ;;  %v10106_v45 = vadd.f32 %v5221_v42, %v9930_v46  ;;  %v2698_v60 = vand.u32 2147483647, %v2694_v51  ;;  %v3424_v1 = vsub.f32 %v11028_v53, %v9951_v27  ;;  %v10154_v42 = vld [vmem:[#allocation3 + $0x598] sm:$0xff] }
 0x306   :  { %v3069_v44 = vand.u32 2147483647, %v3065_v3  ;;  %v3783_v35 = vsub.f32 %v11028_v53, %v9953_v49  ;;  %v4142_v38 = vsub.f32 %v11028_v53, %v9963_v5  ;;  %v4501_v11 = vsub.f32 %v11028_v53, %v9965_v25  ;;  %v10127_v49 = vld [vmem:[#allocation3 + $0x258] sm:$0xff]  ;;  %v10129_v5 = vld [vmem:[#allocation3 + $0x328] sm:$0xff] }
 0x307   :  { %v10119_v21 = vadd.f32 %v2698_v60, %v9943_v57  ;;  %v3428_v46 = vand.u32 2147483647, %v3424_v1  ;;  %v4860_v20 = vsub.f32 %v11028_v53, %v9978_v12  ;;  %v5219_v27 = vsub.f32 %v11028_v53, %v9980_v6  ;;  %v10156_v53 = vld [vmem:[#allocation3 + $0x668] sm:$0xff] }
 0x308   :  { %v10132_v25 = vadd.f32 %v3069_v44, %v9956_v61  ;;  %v3787_v18 = vand.u32 2147483647, %v3783_v35  ;;  %v4146_v22 = vand.u32 2147483647, %v4142_v38  ;;  %v4505_v57 = vand.u32 2147483647, %v4501_v11 }
 0x309   :  { %11029 = vst [vmem:[#allocation13_spill] sm:$0xff] %v10119_v21  ;;  %v10135_v34 = vadd.f32 %v3428_v46, %v9959_v48  ;;  %v4864_v31 = vand.u32 2147483647, %v4860_v20  ;;  %v5223_v12 = vand.u32 2147483647, %v5219_v27  ;;  %v2708_v6 = vsub.f32 %v11032_v15, %v10116_v41 }
 0x30a   :  { %11030 = vst [vmem:[#allocation14_spill] sm:$0xff] %v10132_v25  ;;  %v10144_v37 = vadd.f32 %v3787_v18, %v9968_v33  ;;  %v10147_v61 = vadd.f32 %v4146_v22, %v9971_v7  ;;  %v10150_v19 = vadd.f32 %v4505_v57, %v9974_v29  ;;  %v3075_v48 = vsub.f32 %v11032_v15, %v10125_v8 }
 0x30b   :  { %11031 = vst [vmem:[#allocation15_spill] sm:$0xff] %v10135_v34  ;;  %v10159_v51 = vadd.f32 %v4864_v31, %v9983_v43  ;;  %v10162_v3 = vadd.f32 %v5223_v12, %v9986_v16  ;;  %v2712_v33 = vand.u32 2147483647, %v2708_v6  ;;  %v3434_v7 = vsub.f32 %v11032_v15, %v10127_v49 }
 0x30c   :  { %11033 = vst [vmem:[#allocation16_spill] sm:$0xff] %v10144_v37  ;;  %11034 = vst [vmem:[#allocation17_spill] sm:$0xff] %v10147_v61  ;;  %v3079_v60 = vand.u32 2147483647, %v3075_v48  ;;  %v3793_v29 = vsub.f32 %v11032_v15, %v10129_v5  ;;  %v4152_v1 = vsub.f32 %v11032_v15, %v10139_v26  ;;  %v4511_v44 = vsub.f32 %v11032_v15, %v10141_v40 }
 0x30d   :  { %11035 = vst [vmem:[#allocation18_spill] sm:$0xff] %v10150_v19  ;;  %11036 = vst [vmem:[#allocation19_spill] sm:$0xff] %v10159_v51  ;;  %v10173_v43 = vadd.f32 %v2712_v33, %v9997_v39  ;;  %v3438_v35 = vand.u32 2147483647, %v3434_v7  ;;  %v4870_v16 = vsub.f32 %v11032_v15, %v10154_v42  ;;  %v5229_v38 = vsub.f32 %v11032_v15, %v10156_v53  ;;  %v11038_v39 = vld [vmem:[#allocation26_spill] sm:$0xff] }
 0x30e   :  { %11037 = vst [vmem:[#allocation20_spill] sm:$0xff] %v10162_v3  ;;  %v10180_v11 = vadd.f32 %v3079_v60, %v10004_v62  ;;  %v3797_v46 = vand.u32 2147483647, %v3793_v29  ;;  %v4156_v20 = vand.u32 2147483647, %v4152_v1  ;;  %v2710_v31 = vsub.f32 %v11038_v39, %v10116_v41  ;;  %v10314_v3 = vld [vmem:[#allocation3 + $0x5a0] sm:$0xff] }
 0x30f   :  { %v4515_v27 = vand.u32 2147483647, %v4511_v44  ;;  %v10183_v18 = vadd.f32 %v3438_v35, %v10007_v59  ;;  %v4874_v22 = vand.u32 2147483647, %v4870_v16  ;;  %v5233_v57 = vand.u32 2147483647, %v5229_v38 }
 0x310   :  { %v10188_v12 = vadd.f32 %v3797_v46, %v10012_v0  ;;  %v10191_v6 = vadd.f32 %v4156_v20, %v10015_v4  ;;  %v3077_v15 = vsub.f32 %v11038_v39, %v10125_v8  ;;  %v2714_v33 = vand.u32 2147483647, %v2710_v31 }
 0x311   :  { %v10194_v62 = vadd.f32 %v4515_v27, %v10018_v23  ;;  %v10199_v59 = vadd.f32 %v4874_v22, %v10023_v50  ;;  %v10202_v48 = vadd.f32 %v5233_v57, %v10026_v30  ;;  %v3436_v0 = vsub.f32 %v11038_v39, %v10127_v49 }
 0x312   :  { %v3081_v7 = vand.u32 2147483647, %v3077_v15  ;;  %v3795_v4 = vsub.f32 %v11038_v39, %v10129_v5  ;;  %v4154_v23 = vsub.f32 %v11038_v39, %v10139_v26  ;;  %v4513_v60 = vsub.f32 %v11038_v39, %v10141_v40 }
 0x313   :  { %v10213_v50 = vadd.f32 %v2714_v33, %v10037_v58  ;;  %v3440_v29 = vand.u32 2147483647, %v3436_v0  ;;  %v4872_v30 = vsub.f32 %v11038_v39, %v10154_v42  ;;  %v5231_v1 = vsub.f32 %v11038_v39, %v10156_v53  ;;  %v11039_v58 = vld [vmem:[#allocation22_spill] sm:$0xff] }
 0x314   :  { %v10220_v44 = vadd.f32 %v3081_v7, %v10044_v47  ;;  %v3799_v35 = vand.u32 2147483647, %v3795_v4  ;;  %v4158_v16 = vand.u32 2147483647, %v4154_v23  ;;  %v4517_v38 = vand.u32 2147483647, %v4513_v60 }
 0x315   :  { %v10223_v46 = vadd.f32 %v3440_v29, %v10047_v28  ;;  %v4876_v20 = vand.u32 2147483647, %v4872_v30  ;;  %v5235_v27 = vand.u32 2147483647, %v5231_v1  ;;  %v2709_v22 = vsub.f32 %v11039_v58, %v10116_v41  ;;  %v11040_v4 = vld [vmem:[#allocation23_spill] sm:$0xff]  ;;  %v10262_v60 = vld [vmem:[#allocation3 + $0xc0] sm:$0xff] }
 0x316   :  { %v10228_v57 = vadd.f32 %v3799_v35, %v10052_v36  ;;  %v10231_v31 = vadd.f32 %v4158_v16, %v10055_v2  ;;  %v10234_v47 = vadd.f32 %v4517_v38, %v10058_v17  ;;  %v3076_v39 = vsub.f32 %v11039_v58, %v10125_v8  ;;  %v10264_v29 = vld [vmem:[#allocation3 + $0x190] sm:$0xff] }
 0x317   :  { %v10239_v28 = vadd.f32 %v4876_v20, %v10063_v32  ;;  %v10242_v15 = vadd.f32 %v5235_v27, %v10066_v24  ;;  %v3435_v33 = vsub.f32 %v11039_v58, %v10127_v49  ;;  %v10246_v36 = vand.u32 2147483647, %v2709_v22 }
 0x318   :  { %v3794_v2 = vsub.f32 %v11039_v58, %v10129_v5  ;;  %v4153_v17 = vsub.f32 %v11039_v58, %v10139_v26  ;;  %v4512_v0 = vsub.f32 %v11039_v58, %v10141_v40  ;;  %v10254_v7 = vand.u32 2147483647, %v3076_v39 }
 0x319   :  { %v4871_v32 = vsub.f32 %v11039_v58, %v10154_v42  ;;  %v5230_v24 = vsub.f32 %v11039_v58, %v10156_v53  ;;  %v2711_v23 = vsub.f32 %v11040_v4, %v10116_v41  ;;  %v10266_v30 = vand.u32 2147483647, %v3435_v33  ;;  %v10290_v33 = vld [vmem:[#allocation3 + $0x260] sm:$0xff] }
 0x31a   :  { %v10268_v1 = vand.u32 2147483647, %v3794_v2  ;;  %v10270_v35 = vand.u32 2147483647, %v4153_v17  ;;  %v3078_v16 = vsub.f32 %v11040_v4, %v10125_v8  ;;  %v10274_v38 = vand.u32 2147483647, %v4512_v0 }
 0x31b   :  { %v10276_v20 = vand.u32 2147483647, %v4871_v32  ;;  %v10278_v27 = vand.u32 2147483647, %v5230_v24  ;;  %v3437_v41 = vsub.f32 %v11040_v4, %v10127_v49  ;;  %v10282_v58 = vand.u32 2147483647, %v2711_v23 }
 0x31c   :  { %v3796_v22 = vsub.f32 %v11040_v4, %v10129_v5  ;;  %v4155_v39 = vsub.f32 %v11040_v4, %v10139_v26  ;;  %v4514_v8 = vsub.f32 %v11040_v4, %v10141_v40  ;;  %v10292_v2 = vld [vmem:[#allocation3 + $0x330] sm:$0xff]  ;;  %v10294_v17 = vand.u32 2147483647, %v3078_v16  ;;  %v11044_v32 = vld [vmem:[#allocation24_spill] sm:$0xff]  ;;  %v10302_v24 = vld [vmem:[#allocation3 + $0x400] sm:$0xff] }
 0x31d   :  { %11041 = vst [vmem:[#allocation21_spill] sm:$0xff] %v10282_v58  ;;  %v10296_v0 = vand.u32 2147483647, %v3437_v41  ;;  %v4873_v49 = vsub.f32 %v11040_v4, %v10154_v42  ;;  %v2725_v5 = vsub.f32 %v11044_v32, %v10262_v60  ;;  %v10304_v26 = vld [vmem:[#allocation3 + $0x4d0] sm:$0xff]  ;;  %v5232_v16 = vsub.f32 %v11040_v4, %v10156_v53 }
 0x31e   :  { %11042 = vst [vmem:[#allocation26_spill] sm:$0xff] %v10294_v17  ;;  %v10306_v23 = vand.u32 2147483647, %v3796_v22  ;;  %v10308_v40 = vand.u32 2147483647, %v4155_v39  ;;  %v3088_v41 = vsub.f32 %v11044_v32, %v10264_v29  ;;  %v10316_v42 = vld [vmem:[#allocation3 + $0x670] sm:$0xff]  ;;  %v3447_v22 = vsub.f32 %v11044_v32, %v10290_v33 }
 0x31f   :  { %11043 = vst [vmem:[#allocation22_spill] sm:$0xff] %v10296_v0  ;;  %v10318_v51 = vand.u32 2147483647, %v4514_v8  ;;  %v10320_v19 = vand.u32 2147483647, %v4873_v49  ;;  %v4165_v53 = vsub.f32 %v11044_v32, %v10302_v24  ;;  %v4524_v4 = vsub.f32 %v11044_v32, %v10304_v26 }
 0x320   :  { %11045 = vst [vmem:[#allocation23_spill] sm:$0xff] %v10306_v23  ;;  %11046 = vst [vmem:[#allocation24_spill] sm:$0xff] %v10308_v40  ;;  %v2729_v61 = vand.u32 2147483647, %v2725_v5  ;;  %v3092_v39 = vand.u32 2147483647, %v3088_v41  ;;  %v3806_v40 = vsub.f32 %v11044_v32, %v10292_v2  ;;  %v4883_v49 = vsub.f32 %v11044_v32, %v10314_v3 }
 0x321   :  { %11047 = vst [vmem:[#allocation28_spill] sm:$0xff] %v10318_v51  ;;  %11048 = vst [vmem:[#allocation29_spill] sm:$0xff] %v10320_v19  ;;  %v3451_v8 = vand.u32 2147483647, %v3447_v22  ;;  %v5242_v5 = vsub.f32 %v11044_v32, %v10316_v42  ;;  %v4169_v51 = vand.u32 2147483647, %v4165_v53 }
 0x322   :  { %v10331_v23 = vadd.f32 %v2729_v61, %v10173_v43  ;;  %v10338_v41 = vadd.f32 %v3092_v39, %v10180_v11  ;;  %v3810_v19 = vand.u32 2147483647, %v3806_v40  ;;  %v4528_v37 = vand.u32 2147483647, %v4524_v4  ;;  %v11049_v61 = vld [vmem:[#allocation27_spill] sm:$0xff] }
 0x323   :  { %v10341_v0 = vadd.f32 %v3451_v8, %v10183_v18  ;;  %v4887_v34 = vand.u32 2147483647, %v4883_v49  ;;  %v5246_v17 = vand.u32 2147483647, %v5242_v5  ;;  %v2727_v43 = vsub.f32 %v11049_v61, %v10262_v60 }
 0x324   :  { %v10346_v22 = vadd.f32 %v3810_v19, %v10188_v12  ;;  %v10349_v25 = vadd.f32 %v4169_v51, %v10191_v6  ;;  %v10352_v11 = vadd.f32 %v4528_v37, %v10194_v62  ;;  %v3090_v32 = vsub.f32 %v11049_v61, %v10264_v29 }
 0x325   :  { %v10357_v18 = vadd.f32 %v4887_v34, %v10199_v59  ;;  %v10360_v40 = vadd.f32 %v5246_v17, %v10202_v48  ;;  %v2731_v39 = vand.u32 2147483647, %v2727_v43  ;;  %v3449_v19 = vsub.f32 %v11049_v61, %v10290_v33 }
 0x326   :  { %v3094_v12 = vand.u32 2147483647, %v3090_v32  ;;  %v3808_v51 = vsub.f32 %v11049_v61, %v10292_v2  ;;  %v4167_v37 = vsub.f32 %v11049_v61, %v10302_v24  ;;  %v4526_v6 = vsub.f32 %v11049_v61, %v10304_v26 }
 0x327   :  { %v10371_v34 = vadd.f32 %v2731_v39, %v10213_v50  ;;  %v3453_v62 = vand.u32 2147483647, %v3449_v19  ;;  %v4885_v59 = vsub.f32 %v11049_v61, %v10314_v3  ;;  %v5244_v48 = vsub.f32 %v11049_v61, %v10316_v42  ;;  %v11050_v50 = vld [vmem:[#allocation25_spill] sm:$0xff] }
 0x328   :  { %v10378_v17 = vadd.f32 %v3094_v12, %v10220_v44  ;;  %v3812_v53 = vand.u32 2147483647, %v3808_v51  ;;  %v4171_v4 = vand.u32 2147483647, %v4167_v37  ;;  %v4530_v8 = vand.u32 2147483647, %v4526_v6 }
 0x329   :  { %v10381_v49 = vadd.f32 %v3453_v62, %v10223_v46  ;;  %v4889_v5 = vand.u32 2147483647, %v4885_v59  ;;  %v5248_v43 = vand.u32 2147483647, %v5244_v48  ;;  %v2726_v32 = vsub.f32 %v11050_v50, %v10262_v60  ;;  %v11052_v62 = vld [vmem:[#allocation9_spill] sm:$0xff]  ;;  %v10418_v48 = vld [vmem:[#allocation3 + $0xc8] sm:$0xff] }
 0x32a   :  { %v10386_v39 = vadd.f32 %v3812_v53, %v10228_v57  ;;  %v10389_v19 = vadd.f32 %v4171_v4, %v10231_v31  ;;  %v10392_v44 = vadd.f32 %v4530_v8, %v10234_v47  ;;  %v3089_v61 = vsub.f32 %v11050_v50, %v10264_v29  ;;  %11053 = vst [vmem:[#allocation25_spill] sm:$0xff] %v10418_v48 }
 0x32b   :  { %v10396_v12 = vand.u32 2147483647, %v5232_v16  ;;  %v10399_v46 = vadd.f32 %v4889_v5, %v10239_v28  ;;  %v10402_v51 = vadd.f32 %v5248_v43, %v10242_v15  ;;  %v3448_v57 = vsub.f32 %v11050_v50, %v10290_v33 }
 0x32c   :  { %v2730_v37 = vand.u32 2147483647, %v2726_v32  ;;  %v3807_v31 = vsub.f32 %v11050_v50, %v10292_v2  ;;  %v4166_v47 = vsub.f32 %v11050_v50, %v10302_v24  ;;  %v4525_v16 = vsub.f32 %v11050_v50, %v10304_v26 }
 0x32d   :  { %11051 = vst [vmem:[#allocation27_spill] sm:$0xff] %v10396_v12  ;;  %v3093_v6 = vand.u32 2147483647, %v3089_v61  ;;  %v4884_v28 = vsub.f32 %v11050_v50, %v10314_v3  ;;  %v5243_v15 = vsub.f32 %v11050_v50, %v10316_v42  ;;  %v2728_v59 = vsub.f32 %v11052_v62, %v10262_v60  ;;  %v11062_v12 = vld [vmem:[#allocation11_spill] sm:$0xff] }
 0x32e   :  { %v3452_v53 = vand.u32 2147483647, %v3448_v57  ;;  %v10420_v4 = vand.u32 2147483647, %v3807_v31  ;;  %v10422_v8 = vand.u32 2147483647, %v4166_v47  ;;  %v3091_v5 = vsub.f32 %v11052_v62, %v10264_v29 }
 0x32f   :  { %v10426_v43 = vand.u32 2147483647, %v4525_v16  ;;  %v10428_v32 = vand.u32 2147483647, %v4884_v28  ;;  %v10430_v61 = vand.u32 2147483647, %v5243_v15  ;;  %v3450_v50 = vsub.f32 %v11052_v62, %v10290_v33 }
 0x330   :  { %v10434_v60 = vand.u32 2147483647, %v2728_v59  ;;  %v3809_v57 = vsub.f32 %v11052_v62, %v10292_v2  ;;  %v4168_v31 = vsub.f32 %v11052_v62, %v10302_v24  ;;  %v4527_v29 = vsub.f32 %v11052_v62, %v10304_v26  ;;  %v10450_v15 = vld [vmem:[#allocation3 + $0x198] sm:$0xff] }
 0x331   :  { %v10442_v47 = vand.u32 2147483647, %v3091_v5  ;;  %v10444_v16 = vand.u32 2147483647, %v3450_v50  ;;  %v4886_v28 = vsub.f32 %v11052_v62, %v10314_v3  ;;  %v2717_v33 = vadd.f32 %v10246_v36, %v10077_v54  ;;  %11057 = vst [vmem:[#allocation32_spill] sm:$0xff] %v10450_v15  ;;  %v11063_v36 = vld [vmem:[#allocation10_spill] sm:$0xff] }
 0x332   :  { %11054 = vst [vmem:[#allocation9_spill] sm:$0xff] %v10434_v60  ;;  %v10452_v59 = vand.u32 2147483647, %v3809_v57  ;;  %v10454_v2 = vand.u32 2147483647, %v4168_v31  ;;  %v5245_v24 = vsub.f32 %v11052_v62, %v10316_v42  ;;  %v2742_v26 = vsub.f32 %v9507_v55, %v10418_v48 }
 0x333   :  { %11055 = vst [vmem:[#allocation30_spill] sm:$0xff] %v10442_v47  ;;  %11056 = vst [vmem:[#allocation31_spill] sm:$0xff] %v10444_v16  ;;  %v10460_v5 = vand.u32 2147483647, %v4527_v29  ;;  %v10462_v50 = vand.u32 2147483647, %v4886_v28  ;;  %v2734_v3 = vadd.f32 %v2730_v37, %v2717_v33  ;;  %v2743_v54 = vsub.f32 %v11062_v12, %v10418_v48 }
 0x334   :  { %11058 = vst [vmem:[#allocation33_spill] sm:$0xff] %v10452_v59  ;;  %11059 = vst [vmem:[#allocation34_spill] sm:$0xff] %v10454_v2  ;;  %v2744_v57 = vsub.f32 %v11063_v36, %v10418_v48  ;;  %v2746_v59 = vand.u32 2147483647, %v2742_v26  ;;  %v3084_v31 = vadd.f32 %v10254_v7, %v10084_v13  ;;  %v3101_v42 = vsub.f32 %v9507_v55, %v10450_v15  ;;  %v10478_v33 = vld [vmem:[#allocation3 + $0x268] sm:$0xff] }
 0x335   :  { %11060 = vst [vmem:[#allocation35_spill] sm:$0xff] %v10460_v5  ;;  %11061 = vst [vmem:[#allocation36_spill] sm:$0xff] %v10462_v50  ;;  %v2747_v62 = vand.u32 2147483647, %v2743_v54  ;;  %v3102_v29 = vsub.f32 %v11062_v12, %v10450_v15  ;;  %v3103_v37 = vsub.f32 %v11063_v36, %v10450_v15  ;;  %v3443_v28 = vadd.f32 %v10266_v30, %v10087_v9 }
 0x336   :  { %11064 = vst [vmem:[#allocation11_spill] sm:$0xff] %v10478_v33  ;;  %v2748_v50 = vand.u32 2147483647, %v2744_v57  ;;  %v2750_v26 = vadd.f32 %v2746_v59, %v10331_v23  ;;  %v3097_v5 = vadd.f32 %v3093_v6, %v3084_v31  ;;  %v3105_v13 = vand.u32 2147483647, %v3101_v42 }
 0x337   :  { %v2751_v7 = vadd.f32 %v2747_v62, %v2734_v3  ;;  %v3106_v2 = vand.u32 2147483647, %v3102_v29  ;;  %v3107_v16 = vand.u32 2147483647, %v3103_v37  ;;  %v3456_v54 = vadd.f32 %v3452_v53, %v3443_v28 }
 0x338   :  { %v2752_v47 = vadd.f32 %v2748_v50, %v10371_v34  ;;  %v2754_v60 = vrot.slane %v2750_v26, 4  ;;  %v3109_v52 = vadd.f32 %v3105_v13, %v10338_v41  ;;  %v3460_v15 = vsub.f32 %v9507_v55, %v10478_v33 }
 0x339   :  { %v2760_v9 = vrot.slane %v2751_v7, 4  ;;  %v3110_v30 = vadd.f32 %v3106_v2, %v3097_v5  ;;  %v3111_v57 = vadd.f32 %v3107_v16, %v10378_v17  ;;  %v3461_v23 = vsub.f32 %v11062_v12, %v10478_v33 }
 0x33a   :  { %v2755_v6 = vadd.f32 %v2754_v60, %v2750_v26  ;;  %v2766_v59 = vrot.slane %v2752_v47, 4  ;;  %v3113_v3 = vrot.slane %v3109_v52, 4  ;;  %v3462_v53 = vsub.f32 %v11063_v36, %v10478_v33 }
 0x33b   :  { %v2761_v34 = vadd.f32 %v2760_v9, %v2751_v7  ;;  %v3119_v50 = vrot.slane %v3110_v30, 4  ;;  %v3125_v31 = vrot.slane %v3111_v57, 4  ;;  %v3464_v41 = vand.u32 2147483647, %v3460_v15 }
 0x33c   :  { %v2756_v42 = vrot.slane %v2755_v6, 2  ;;  %v2767_v62 = vadd.f32 %v2766_v59, %v2752_v47  ;;  %v3114_v29 = vadd.f32 %v3113_v3, %v3109_v52  ;;  %v3465_v37 = vand.u32 2147483647, %v3461_v23 }
 0x33d   :  { %v2762_v2 = vrot.slane %v2761_v34, 2  ;;  %v3120_v5 = vadd.f32 %v3119_v50, %v3110_v30  ;;  %v3126_v17 = vadd.f32 %v3125_v31, %v3111_v57  ;;  %v3466_v16 = vand.u32 2147483647, %v3462_v53  ;;  %v10498_v31 = vld [vmem:[#allocation3 + $0x338] sm:$0xff] }
 0x33e   :  { %v2757_v28 = vadd.f32 %v2756_v42, %v2755_v6  ;;  %v2768_v13 = vrot.slane %v2767_v62, 2  ;;  %v3115_v60 = vrot.slane %v3114_v29, 2  ;;  %v3468_v26 = vadd.f32 %v3464_v41, %v10341_v0 }
 0x33f   :  { %v2763_v48 = vadd.f32 %v2762_v2, %v2761_v34  ;;  %v3121_v58 = vrot.slane %v3120_v5, 2  ;;  %v3127_v33 = vrot.slane %v3126_v17, 2  ;;  %v3469_v7 = vadd.f32 %v3465_v37, %v3456_v54 }
 0x340   :  { %v2758_v9 = vrot.slane %v2757_v28, 1  ;;  %v2769_v21 = vadd.f32 %v2768_v13, %v2767_v62  ;;  %v3116_v15 = vadd.f32 %v3115_v60, %v3114_v29  ;;  %v3470_v47 = vadd.f32 %v3466_v16, %v10381_v49 }
 0x341   :  { %v2764_v52 = vrot.slane %v2763_v48, 1  ;;  %v3122_v23 = vadd.f32 %v3121_v58, %v3120_v5  ;;  %v3128_v59 = vadd.f32 %v3127_v33, %v3126_v17  ;;  %v3472_v30 = vrot.slane %v3468_v26, 4  ;;  %v10512_v5 = vld [vmem:[#allocation3 + $0x408] sm:$0xff] }
 0x342   :  { %v10492_v57 = vand.u32 2147483647, %v5245_v24  ;;  %v2770_v6 = vrot.slane %v2769_v21, 1  ;;  %v3117_v3 = vrot.slane %v3116_v15, 1  ;;  %v3478_v53 = vrot.slane %v3469_v7, 4 }
 0x343   :  { %v10494_v50 = vadd.f32 %v2758_v9, %v2757_v28  ;;  %v10496_v0 = vadd.f32 %v2764_v52, %v2763_v48  ;;  %v3123_v34 = vrot.slane %v3122_v23, 1  ;;  %v3473_v54 = vadd.f32 %v3472_v30, %v3468_v26 }
 0x344   :  { %v10500_v41 = vadd.f32 %v2770_v6, %v2769_v21  ;;  %v3129_v49 = vrot.slane %v3128_v59, 1  ;;  %v3479_v42 = vadd.f32 %v3478_v53, %v3469_v7  ;;  %v3484_v58 = vrot.slane %v3470_v47, 4 }
 0x345   :  { %v10502_v33 = vadd.f32 %v3117_v3, %v3116_v15  ;;  %v10504_v24 = vadd.f32 %v3123_v34, %v3122_v23  ;;  %v3474_v62 = vrot.slane %v3473_v54, 2  ;;  %v3802_v29 = vadd.f32 %v10268_v1, %v10092_v10 }
 0x346   :  { %v3480_v37 = vrot.slane %v3479_v42, 2  ;;  %v3485_v48 = vadd.f32 %v3484_v58, %v3470_v47  ;;  %v3819_v2 = vsub.f32 %v9507_v55, %v10498_v31  ;;  %v3820_v21 = vsub.f32 %v11062_v12, %v10498_v31 }
 0x347   :  { %v3475_v17 = vadd.f32 %v3474_v62, %v3473_v54  ;;  %v3815_v16 = vadd.f32 %v10420_v4, %v3802_v29  ;;  %v3821_v28 = vsub.f32 %v11063_v36, %v10498_v31  ;;  %v4161_v13 = vadd.f32 %v10270_v35, %v10095_v56 }
 0x348   :  { %v3481_v10 = vadd.f32 %v3480_v37, %v3479_v42  ;;  %v3486_v1 = vrot.slane %v3485_v48, 2  ;;  %v3823_v60 = vand.u32 2147483647, %v3819_v2  ;;  %v3824_v26 = vand.u32 2147483647, %v3820_v21 }
 0x349   :  { %v3476_v7 = vrot.slane %v3475_v17, 1  ;;  %v3825_v9 = vand.u32 2147483647, %v3821_v28  ;;  %v4174_v15 = vadd.f32 %v10422_v8, %v4161_v13  ;;  %v4178_v47 = vsub.f32 %v9507_v55, %v10512_v5 }
 0x34a   :  { %v3482_v52 = vrot.slane %v3481_v10, 1  ;;  %v3487_v23 = vadd.f32 %v3486_v1, %v3485_v48  ;;  %v3827_v4 = vadd.f32 %v3823_v60, %v10346_v22  ;;  %v3828_v30 = vadd.f32 %v3824_v26, %v3815_v16 }
 0x34b   :  { %v10523_v6 = vadd.f32 %v3129_v49, %v3128_v59  ;;  %v3829_v56 = vadd.f32 %v3825_v9, %v10386_v39  ;;  %v4179_v35 = vsub.f32 %v11062_v12, %v10512_v5  ;;  %v4180_v3 = vsub.f32 %v11063_v36, %v10512_v5  ;;  %v10536_v49 = vld [vmem:[#allocation3 + $0x4d8] sm:$0xff] }
 0x34c   :  { %v10530_v53 = vadd.f32 %v3476_v7, %v3475_v17  ;;  %v10532_v8 = vadd.f32 %v3482_v52, %v3481_v10  ;;  %v3831_v34 = vrot.slane %v3827_v4, 4  ;;  %v3837_v54 = vrot.slane %v3828_v30, 4 }
 0x34d   :  { %v3843_v42 = vrot.slane %v3829_v56, 4  ;;  %v4182_v58 = vand.u32 2147483647, %v4178_v47  ;;  %v4183_v22 = vand.u32 2147483647, %v4179_v35  ;;  %v4520_v59 = vadd.f32 %v10274_v38, %v10098_v63 }
 0x34e   :  { %v3488_v39 = vrot.slane %v3487_v23, 1  ;;  %v3832_v62 = vadd.f32 %v3831_v34, %v3827_v4  ;;  %v3838_v29 = vadd.f32 %v3837_v54, %v3828_v30  ;;  %v4184_v37 = vand.u32 2147483647, %v4180_v3 }
 0x34f   :  { %v3844_v48 = vadd.f32 %v3843_v42, %v3829_v56  ;;  %v4186_v2 = vadd.f32 %v4182_v58, %v10349_v25  ;;  %v4187_v21 = vadd.f32 %v4183_v22, %v4174_v15  ;;  %v4533_v17 = vadd.f32 %v10426_v43, %v4520_v59 }
 0x350   :  { %v3833_v16 = vrot.slane %v3832_v62, 2  ;;  %v3839_v28 = vrot.slane %v3838_v29, 2  ;;  %v4188_v13 = vadd.f32 %v4184_v37, %v10389_v19  ;;  %v4537_v10 = vsub.f32 %v9507_v55, %v10536_v49 }
 0x351   :  { %v3845_v63 = vrot.slane %v3844_v48, 2  ;;  %v4190_v38 = vrot.slane %v4186_v2, 4  ;;  %v4196_v1 = vrot.slane %v4187_v21, 4  ;;  %v4538_v60 = vsub.f32 %v11062_v12, %v10536_v49 }
 0x352   :  { %v3834_v26 = vadd.f32 %v3833_v16, %v3832_v62  ;;  %v3840_v7 = vadd.f32 %v3839_v28, %v3838_v29  ;;  %v4202_v9 = vrot.slane %v4188_v13, 4  ;;  %v4539_v25 = vsub.f32 %v11063_v36, %v10536_v49  ;;  %v10552_v62 = vld [vmem:[#allocation3 + $0x5a8] sm:$0xff] }
 0x353   :  { %v3846_v43 = vadd.f32 %v3845_v63, %v3844_v48  ;;  %v4191_v15 = vadd.f32 %v4190_v38, %v4186_v2  ;;  %v4197_v47 = vadd.f32 %v4196_v1, %v4187_v21  ;;  %v4541_v52 = vand.u32 2147483647, %v4537_v10 }
 0x354   :  { %v3835_v19 = vrot.slane %v3834_v26, 1  ;;  %v3841_v4 = vrot.slane %v3840_v7, 1  ;;  %v4203_v30 = vadd.f32 %v4202_v9, %v4188_v13  ;;  %v4542_v56 = vand.u32 2147483647, %v4538_v60 }
 0x355   :  { %v10547_v35 = vadd.f32 %v3488_v39, %v3487_v23  ;;  %v4192_v3 = vrot.slane %v4191_v15, 2  ;;  %v4198_v34 = vrot.slane %v4197_v47, 2  ;;  %v4543_v54 = vand.u32 2147483647, %v4539_v25 }
 0x356   :  { %v10549_v42 = vadd.f32 %v3835_v19, %v3834_v26  ;;  %v3847_v58 = vrot.slane %v3846_v43, 1  ;;  %v4204_v22 = vrot.slane %v4203_v30, 2  ;;  %v4545_v59 = vadd.f32 %v4541_v52, %v10352_v11 }
 0x357   :  { %v10554_v29 = vadd.f32 %v3841_v4, %v3840_v7  ;;  %v4193_v37 = vadd.f32 %v4192_v3, %v4191_v15  ;;  %v4199_v48 = vadd.f32 %v4198_v34, %v4197_v47  ;;  %v4546_v2 = vadd.f32 %v4542_v56, %v4533_v17 }
 0x358   :  { %v4205_v21 = vadd.f32 %v4204_v22, %v4203_v30  ;;  %v4547_v23 = vadd.f32 %v4543_v54, %v10392_v44  ;;  %v4549_v39 = vrot.slane %v4545_v59, 4  ;;  %v4879_v16 = vadd.f32 %v10276_v20, %v10103_v14  ;;  %v10568_v14 = vld [vmem:[#allocation3 + $0x678] sm:$0xff] }
 0x359   :  { %v4194_v28 = vrot.slane %v4193_v37, 1  ;;  %v4200_v13 = vrot.slane %v4199_v48, 1  ;;  %v4555_v10 = vrot.slane %v4546_v2, 4  ;;  %v4896_v11 = vsub.f32 %v9507_v55, %v10552_v62 }
 0x35a   :  { %v10561_v63 = vadd.f32 %v3847_v58, %v3846_v43  ;;  %v4550_v38 = vadd.f32 %v4549_v39, %v4545_v59  ;;  %v4561_v1 = vrot.slane %v4547_v23, 4  ;;  %v4892_v60 = vadd.f32 %v10428_v32, %v4879_v16 }
 0x35b   :  { %v10564_v17 = vadd.f32 %v4194_v28, %v4193_v37  ;;  %v4206_v26 = vrot.slane %v4205_v21, 1  ;;  %v4556_v44 = vadd.f32 %v4555_v10, %v4546_v2  ;;  %v4897_v7 = vsub.f32 %v11062_v12, %v10552_v62 }
 0x35c   :  { %v10570_v20 = vadd.f32 %v4200_v13, %v4199_v48  ;;  %v4551_v9 = vrot.slane %v4550_v38, 2  ;;  %v4562_v25 = vadd.f32 %v4561_v1, %v4547_v23  ;;  %v4898_v43 = vsub.f32 %v11063_v36, %v10552_v62 }
 0x35d   :  { %v4557_v15 = vrot.slane %v4556_v44, 2  ;;  %v4900_v47 = vand.u32 2147483647, %v4896_v11  ;;  %v4901_v52 = vand.u32 2147483647, %v4897_v7  ;;  %v5238_v32 = vadd.f32 %v10278_v27, %v10106_v45 }
 0x35e   :  { %v4552_v19 = vadd.f32 %v4551_v9, %v4550_v38  ;;  %v4563_v4 = vrot.slane %v4562_v25, 2  ;;  %v4902_v30 = vand.u32 2147483647, %v4898_v43  ;;  %v5255_v56 = vsub.f32 %v9507_v55, %v10568_v14 }
 0x35f   :  { %v4558_v3 = vadd.f32 %v4557_v15, %v4556_v44  ;;  %v4904_v34 = vadd.f32 %v4900_v47, %v10357_v18  ;;  %v4905_v54 = vadd.f32 %v4901_v52, %v4892_v60  ;;  %v5251_v58 = vadd.f32 %v10430_v61, %v5238_v32 }
 0x360   :  { %v4553_v22 = vrot.slane %v4552_v19, 1  ;;  %v4564_v59 = vadd.f32 %v4563_v4, %v4562_v25  ;;  %v4906_v37 = vadd.f32 %v4902_v30, %v10399_v46  ;;  %v5256_v48 = vsub.f32 %v11062_v12, %v10568_v14 }
 0x361   :  { %v4559_v45 = vrot.slane %v4558_v3, 1  ;;  %v4908_v27 = vrot.slane %v4904_v34, 4  ;;  %v4914_v2 = vrot.slane %v4905_v54, 4  ;;  %v5257_v23 = vsub.f32 %v11063_v36, %v10568_v14 }
 0x362   :  { %v10585_v55 = vadd.f32 %v4206_v26, %v4205_v21  ;;  %v10587_v39 = vadd.f32 %v4553_v22, %v4552_v19  ;;  %v4920_v18 = vrot.slane %v4906_v37, 4  ;;  %v5259_v16 = vand.u32 2147483647, %v5255_v56 }
 0x363   :  { %v4565_v61 = vrot.slane %v4564_v59, 1  ;;  %v4909_v28 = vadd.f32 %v4908_v27, %v4904_v34  ;;  %v4915_v13 = vadd.f32 %v4914_v2, %v4905_v54  ;;  %v5260_v10 = vand.u32 2147483647, %v5256_v48  ;;  %v11067_v2 = vld [vmem:[#allocation25_spill] sm:$0xff] }
 0x364   :  { %v4560_v46 = vadd.f32 %v4559_v45, %v4558_v3  ;;  %v4921_v11 = vadd.f32 %v4920_v18, %v4906_v37  ;;  %v5261_v38 = vand.u32 2147483647, %v5257_v23  ;;  %v5263_v12 = vadd.f32 %v5259_v16, %v10360_v40  ;;  %v11066_v45 = vld [vmem:[#allocation21_spill] sm:$0xff]  ;;  %v11068_v23 = vld [vmem:[#allocation12_spill] sm:$0xff] }
 0x365   :  { %v4910_v1 = vrot.slane %v4909_v28, 2  ;;  %v4916_v60 = vrot.slane %v4915_v13, 2  ;;  %v5264_v44 = vadd.f32 %v5260_v10, %v5251_v58  ;;  %v5292_v7 = vsel %vm5291_vm1, %v10494_v50, %v10502_v33 }
 0x366   :  { %v4922_v36 = vrot.slane %v4921_v11, 2  ;;  %v5265_v21 = vadd.f32 %v5261_v38, %v10402_v51  ;;  %v5267_v26 = vrot.slane %v5263_v12, 4  ;;  %v5293_v15 = vsel %vm5291_vm1, %v10496_v0, %v10504_v24 }
 0x367   :  { %v4911_v9 = vadd.f32 %v4910_v1, %v4909_v28  ;;  %v4917_v25 = vadd.f32 %v4916_v60, %v4915_v13  ;;  %v5273_v43 = vrot.slane %v5264_v44, 4  ;;  %v5294_v32 = vsel %vm5291_vm1, %v10500_v41, %v10523_v6  ;;  %v11069_v28 = vld [vmem:[#allocation14_spill] sm:$0xff] }
 0x368   :  { %v4923_v40 = vadd.f32 %v4922_v36, %v4921_v11  ;;  %v5268_v47 = vadd.f32 %v5267_v26, %v5263_v12  ;;  %v5279_v52 = vrot.slane %v5265_v21, 4  ;;  %v10602_v56 = vsel %vm5296_vm2, %v5292_v7, %v10530_v53  ;;  %v11070_v13 = vld [vmem:[#allocation26_spill] sm:$0xff]  ;;  %v11072_v12 = vld [vmem:[#allocation9_spill] sm:$0xff]  ;;  %v11074_v26 = vld [vmem:[#allocation15_spill] sm:$0xff] }
 0x369   :  { %v4912_v51 = vrot.slane %v4911_v9, 1  ;;  %v4918_v19 = vrot.slane %v4917_v25, 1  ;;  %v5274_v4 = vadd.f32 %v5273_v43, %v5264_v44  ;;  %v10604_v3 = vadd.f32 %v4565_v61, %v4564_v59  ;;  %v11073_v44 = vld [vmem:[#allocation30_spill] sm:$0xff] }
 0x36a   :  { %v4924_v30 = vrot.slane %v4923_v40, 1  ;;  %v5269_v50 = vrot.slane %v5268_v47, 2  ;;  %v5280_v33 = vadd.f32 %v5279_v52, %v5265_v21  ;;  %v5298_v34 = vsel %vm5296_vm2, %v5293_v15, %v10532_v8  ;;  %v11075_v7 = vld [vmem:[#allocation22_spill] sm:$0xff]  ;;  %v11077_v15 = vld [vmem:[#allocation16_spill] sm:$0xff] }
 0x36b   :  { %v10606_v0 = vadd.f32 %v4912_v51, %v4911_v9  ;;  %v5275_v24 = vrot.slane %v5274_v4, 2  ;;  %v4919_v41 = vadd.f32 %v4918_v19, %v4917_v25  ;;  %v10614_v58 = vsel %vm5296_vm2, %v5294_v32, %v10547_v35  ;;  %v11065_v35 = vld [vmem:[#allocation13_spill] sm:$0xff]  ;;  %v11076_v9 = vld [vmem:[#allocation11_spill] sm:$0xff]  ;;  %v11080_v51 = vld [vmem:[#allocation24_spill] sm:$0xff] }
 0x36c   :  { %v10610_v6 = vadd.f32 %v5269_v50, %v5268_v47  ;;  %v5281_v54 = vrot.slane %v5280_v33, 2  ;;  %v10618_v53 = vadd.f32 %v4924_v30, %v4923_v40  ;;  %v5303_v8 = vsel %vm5301_vm3, %v5298_v34, %v10554_v29  ;;  %v11071_v29 = vld [vmem:[#allocation32_spill] sm:$0xff]  ;;  %v11078_v40 = vld [vmem:[#allocation23_spill] sm:$0xff]  ;;  %v11079_v32 = vld [vmem:[#allocation17_spill] sm:$0xff] }
 0x36d   :  { %v10616_v22 = vadd.f32 %v5275_v24, %v5274_v4  ;;  %v5308_v48 = vsel %vm5306_vm4, %v5303_v8, %v10570_v20  ;;  %v2719_v27 = vadd.f32 %v11066_v45, %v11065_v35  ;;  %v2745_v18 = vsub.f32 %v11068_v23, %v11067_v2  ;;  %v11081_v30 = vld [vmem:[#allocation31_spill] sm:$0xff] }
 0x36e   :  { %v10620_v59 = vadd.f32 %v5281_v54, %v5280_v33  ;;  %v5271_v37 = vrot.slane %v10610_v6, 1  ;;  %v5313_v61 = vsel %vm5311_vm5, %v5308_v48, %v4560_v46  ;;  %v3086_v10 = vadd.f32 %v11070_v13, %v11069_v28  ;;  %v11083_v48 = vld [vmem:[#allocation34_spill] sm:$0xff] }
 0x36f   :  { %v5277_v16 = vrot.slane %v10616_v22, 1  ;;  %v3104_v11 = vsub.f32 %v11068_v23, %v11071_v29  ;;  %v10639_v20 = vsel %vm5316_vm6, %v5313_v61, %v4919_v41  ;;  %v2736_v1 = vadd.f32 %v11072_v12, %v2719_v27  ;;  %v11082_v41 = vld [vmem:[#allocation33_spill] sm:$0xff]  ;;  %v11086_v29 = vld [vmem:[#allocation19_spill] sm:$0xff] }
 0x370   :  { %v5283_v38 = vrot.slane %v10620_v59, 1  ;;  %v2749_v60 = vand.u32 2147483647, %v2745_v18  ;;  %v3099_v36 = vadd.f32 %v11073_v44, %v3086_v10  ;;  %v3445_v46 = vadd.f32 %v11075_v7, %v11074_v26  ;;  %v11085_v18 = vld [vmem:[#allocation28_spill] sm:$0xff]  ;;  %v11088_v44 = vld [vmem:[#allocation35_spill] sm:$0xff] }
 0x371   :  { %v3108_v21 = vand.u32 2147483647, %v3104_v11  ;;  %v3463_v25 = vsub.f32 %v11068_v23, %v11076_v9  ;;  %v3804_v47 = vadd.f32 %v11078_v40, %v11077_v15  ;;  %v3822_v52 = vsub.f32 %v11068_v23, %v10498_v31  ;;  %v11084_v31 = vld [vmem:[#allocation18_spill] sm:$0xff]  ;;  %v11087_v11 = vld [vmem:[#allocation29_spill] sm:$0xff] }
 0x372   :  { %v2753_v43 = vadd.f32 %v2749_v60, %v2736_v1  ;;  %v4163_v19 = vadd.f32 %v11080_v51, %v11079_v32  ;;  %v3458_v50 = vadd.f32 %v11081_v30, %v3445_v46  ;;  %v4181_v24 = vsub.f32 %v11068_v23, %v10512_v5  ;;  %v11089_v46 = vld [vmem:[#allocation36_spill] sm:$0xff]  ;;  %v11091_v51 = vld [vmem:[#allocation27_spill] sm:$0xff] }
 0x373   :  { %v3112_v4 = vadd.f32 %v3108_v21, %v3099_v36  ;;  %v3467_v33 = vand.u32 2147483647, %v3463_v25  ;;  %v3817_v54 = vadd.f32 %v11082_v41, %v3804_v47  ;;  %v3826_v8 = vand.u32 2147483647, %v3822_v52  ;;  %v11090_v32 = vld [vmem:[#allocation20_spill] sm:$0xff] }
 0x374   :  { %v2772_v34 = vrot.slane %v2753_v43, 4  ;;  %v4176_v35 = vadd.f32 %v11083_v48, %v4163_v19  ;;  %v4185_v2 = vand.u32 2147483647, %v4181_v24  ;;  %v4522_v61 = vadd.f32 %v11085_v18, %v11084_v31 }
 0x375   :  { %v3131_v45 = vrot.slane %v3112_v4, 4  ;;  %v3471_v27 = vadd.f32 %v3467_v33, %v3458_v50  ;;  %v3830_v13 = vadd.f32 %v3826_v8, %v3817_v54  ;;  %v4540_v10 = vsub.f32 %v11068_v23, %v10536_v49 }
 0x376   :  { %v2773_v28 = vadd.f32 %v2772_v34, %v2753_v43  ;;  %v4881_v5 = vadd.f32 %v11087_v11, %v11086_v29  ;;  %v4189_v60 = vadd.f32 %v4185_v2, %v4176_v35  ;;  %v4535_v36 = vadd.f32 %v11088_v44, %v4522_v61 }
 0x377   :  { %v3132_v12 = vadd.f32 %v3131_v45, %v3112_v4  ;;  %v3490_v1 = vrot.slane %v3471_v27, 4  ;;  %v3849_v26 = vrot.slane %v3830_v13, 4  ;;  %v4544_v7 = vand.u32 2147483647, %v4540_v10 }
 0x378   :  { %v2774_v21 = vrot.slane %v2773_v28, 2  ;;  %v4894_v9 = vadd.f32 %v11089_v46, %v4881_v5  ;;  %v4208_v43 = vrot.slane %v4189_v60, 4  ;;  %v4899_v40 = vsub.f32 %v11068_v23, %v10552_v62  ;;  %v10674_v62 = vld [vmem:[%s10809_s0] sm:$0xf] }
 0x379   :  { %v3133_v25 = vrot.slane %v3132_v12, 2  ;;  %v3491_v15 = vadd.f32 %v3490_v1, %v3471_v27  ;;  %v3850_v47 = vadd.f32 %v3849_v26, %v3830_v13  ;;  %v4548_v52 = vadd.f32 %v4544_v7, %v4535_v36 }
 0x37a   :  { %v2775_v49 = vadd.f32 %v2774_v21, %v2773_v28  ;;  %v5240_v19 = vadd.f32 %v11091_v51, %v11090_v32  ;;  %v4209_v50 = vadd.f32 %v4208_v43, %v4189_v60  ;;  %v4903_v33 = vand.u32 2147483647, %v4899_v40 }
 0x37b   :  { %v3134_v4 = vadd.f32 %v3133_v25, %v3132_v12  ;;  %v3492_v30 = vrot.slane %v3491_v15, 2  ;;  %v3851_v34 = vrot.slane %v3850_v47, 2  ;;  %v4567_v41 = vrot.slane %v4548_v52, 4 }
 0x37c   :  { %v2776_v24 = vrot.slane %v2775_v49, 1  ;;  %v5253_v54 = vadd.f32 %v10492_v57, %v5240_v19  ;;  %v4210_v35 = vrot.slane %v4209_v50, 2  ;;  %v4907_v45 = vadd.f32 %v4903_v33, %v4894_v9 }
 0x37d   :  { %v3135_v8 = vrot.slane %v3134_v4, 1  ;;  %v3493_v48 = vadd.f32 %v3492_v30, %v3491_v15  ;;  %v3852_v2 = vadd.f32 %v3851_v34, %v3850_v47  ;;  %v4568_v31 = vadd.f32 %v4567_v41, %v4548_v52 }
 0x37e   :  { %v2777_v27 = vadd.f32 %v2776_v24, %v2775_v49  ;;  %v5258_v18 = vsub.f32 %v11068_v23, %v10568_v14  ;;  %v4211_v13 = vadd.f32 %v4210_v35, %v4209_v50  ;;  %v4926_v10 = vrot.slane %v4907_v45, 4 }
 0x37f   :  { %v3136_v61 = vadd.f32 %v3135_v8, %v3134_v4  ;;  %v3494_v28 = vrot.slane %v3493_v48, 1  ;;  %v3853_v57 = vrot.slane %v3852_v2, 1  ;;  %v4569_v29 = vrot.slane %v4568_v31, 2 }
 0x380   :  { %v5262_v11 = vand.u32 2147483647, %v5258_v18  ;;  %v2303_v5 = vand.u32 2147483647, %v10674_v62  ;;  %v4212_v1 = vrot.slane %v4211_v13, 1  ;;  %v4927_v60 = vadd.f32 %v4926_v10, %v4907_v45 }
 0x381   :  { %v3495_v12 = vadd.f32 %v3494_v28, %v3493_v48  ;;  %v5295_v44 = vsel %vm5291_vm1, %v2777_v27, %v3136_v61  ;;  %v3854_v36 = vadd.f32 %v3853_v57, %v3852_v2  ;;  %v4570_v21 = vadd.f32 %v4569_v29, %v4568_v31 }
 0x382   :  { %v5266_v26 = vadd.f32 %v5262_v11, %v5253_v54  ;;  %v2304_v7 = vsub.f32 0.0, %v2303_v5  ;;  %v5278_v14 = vadd.f32 %v5277_v16, %v10616_v22  ;;  %v4213_v23 = vadd.f32 %v4212_v1, %v4211_v13 }
 0x383   :  { %v4928_v46 = vrot.slane %v4927_v60, 2  ;;  %v5300_v9 = vsel %vm5296_vm2, %v5295_v44, %v3495_v12  ;;  %v4571_v25 = vrot.slane %v4570_v21, 1  ;;  %v5272_v52 = vadd.f32 %v5271_v37, %v10610_v6 }
 0x384   :  { %v5285_v15 = vrot.slane %v5266_v26, 4  ;;  %v5305_v43 = vsel %vm5301_vm3, %v5300_v9, %v3854_v36  ;;  %v2305_v40 = vmul.f32 1.442695, %v2304_v7  ;;  %v5284_v22 = vadd.f32 %v5283_v38, %v10620_v59 }
 0x385   :  { %v4929_v49 = vadd.f32 %v4928_v46, %v4927_v60  ;;  %v5310_v47 = vsel %vm5306_vm4, %v5305_v43, %v4213_v23  ;;  %v4572_v16 = vadd.f32 %v4571_v25, %v4570_v21  ;;  %v5302_v51 = vsel %vm5301_vm3, %v10602_v56, %v10549_v42 }
 0x386   :  { %v5286_v32 = vadd.f32 %v5285_v15, %v5266_v26  ;;  %5577 = vpow2.f32 %v2305_v40  ;;  %v5304_v4 = vsel %vm5301_vm3, %v10614_v58, %v10561_v63  ;;  %v5307_v30 = vsel %vm5306_vm4, %v5302_v51, %v10564_v17 }
 0x387   :  { %v4930_v19 = vrot.slane %v4929_v49, 1  ;;  %v5315_v37 = vsel %vm5311_vm5, %v5310_v47, %v4572_v16  ;;  %v5309_v59 = vsel %vm5306_vm4, %v5304_v4, %v10585_v55  ;;  %v5312_v38 = vsel %vm5311_vm5, %v5307_v30, %v10587_v39 }
 0x388   :  { %v5287_v6 = vrot.slane %v5286_v32, 2  ;;  %v5314_v42 = vsel %vm5311_vm5, %v5309_v59, %v10604_v3  ;;  %v5317_v63 = vsel %vm5316_vm6, %v5312_v38, %v10606_v0  ;;  %v5323_v17 = vsel %vm5321_vm7, %v10639_v20, %v5278_v14 }
 0x389   :  { %v4931_v50 = vadd.f32 %v4930_v19, %v4929_v49  ;;  %v5319_v58 = vsel %vm5316_vm6, %v5314_v42, %v10618_v53  ;;  %v5322_v33 = vsel %vm5321_vm7, %v5317_v63, %v5272_v52  ;;  %v5327_v55 = vmul.f32 0.01, %v5323_v17 }
 0x38a   :  { %v5288_v56 = vadd.f32 %v5287_v6, %v5286_v32  ;;  %v5324_v39 = vsel %vm5321_vm7, %v5319_v58, %v5284_v22  ;;  %v5326_v34 = vmul.f32 0.01, %v5322_v33  ;;  %vm2309_vm8 = vcmp.ge.f32.partialorder %v10674_v62, 0.0 }
 0x38b   :  { %v5320_v24 = vsel %vm5316_vm6, %v5315_v37, %v4931_v50  ;;  %v5328_v3 = vmul.f32 0.01, %v5324_v39  ;;  %v5331_v54 = vsub.f32 1.0, %v5327_v55  ;;  %v5347_v62 = vlaneseq }
 0x38c   :  { %v5289_v41 = vrot.slane %v5288_v56, 1  ;;  %v5330_v8 = vsub.f32 1.0, %v5326_v34  ;;  %v2312_v34 = vld [vmem:[%s10810_s1] sm:$0xf]  ;;  %s5653_s1 = smov [#allocation6]  }
 0x38d   :  { %v5332_v48 = vsub.f32 1.0, %v5328_v3  ;;  %v5335_v35 = vmax.f32 %v5331_v54, 0.0  ;;  %v10733_v49 = vshrl.u32 %v5347_v62, 7  ;;  %s5381_s14 = sshll.u32 %s5653_s1, 4  ;;  %s5382_s14 = int_to_ptr.vmem [resolvable:$true] %s5381_s14 }
 0x38e   :  { %v5290_v0 = vadd.f32 %v5289_v41, %v5288_v56  ;;  %v5334_v20 = vmax.f32 %v5330_v8, 0.0  ;;  %s5623_s15 = scalar_lea.vmem %s5382_s14, 512  ;;  %p5628_p9 = scmp.lt.s32.totalorder %s5382_s14, %s5382_s14 }
 0x38f   :  { %v5336_v53 = vmax.f32 %v5332_v48, 0.0  ;;  %v10717_v2 = vmin.f32 %v5335_v35, 1.0  ;;  %v5349_v16 = vsub.s32 0, %v10733_v49  ;;  %v5353_v32 = vsub.s32 1, %v10733_v49  ;;  %p5624_p8 = scmp.ne.s32.totalorder %s5382_s14, %s5623_s15  ;;  %p5629_p10 = scmp.lt.s32.totalorder %s5623_s15, %s5623_s15 }
 0x390   :  { %v5578_v45 = vpop.eup %5577  ;;  %v5325_v27 = vsel %vm5321_vm7, %v5320_v24, %v5290_v0  ;;  %v10719_v61 = vmin.f32 %v5334_v20, 1.0  ;;  %v5357_v6 = vsub.s32 2, %v10733_v49  ;;  %v5361_v48 = vsub.s32 3, %v10733_v49 }
 0x391   :  { %v2307_v31 = vadd.f32 1.0, %v5578_v45  ;;  %v5329_v18 = vmul.f32 0.01, %v5325_v27  ;;  %v10721_v28 = vmin.f32 %v5336_v53, 1.0  ;;  %v5498_v57 = vand.u32 2147483647, %v10717_v2  ;;  %p5630_p11 = por %p5629_p10, %p5628_p9 }
 0x392   :  { %v5472_v10 = vand.u32 2147483647, %v10719_v61  ;;  %vm5476_vm9 = vcmp.lt.f32.partialorder %v10719_v61, 0  ;;  %vm5502_vm10 = vcmp.lt.f32.partialorder %v10717_v2, 0  ;;  %vm5477_vm14 = vcmp.eq.f32.partialorder %v10719_v61, 0 }
 0x393   :  { %5579 = vrcp.f32 %v2307_v31  ;;  %v5333_v13 = vsub.f32 1.0, %v5329_v18  ;;  %v5524_v11 = vand.u32 2147483647, %v10721_v28  ;;  %vm5528_vm11 = vcmp.lt.f32.partialorder %v10721_v28, 0  ;;  %p5631_p12 = pnand %p5630_p11, %p5624_p8 }
 0x394   :  { %5581 = vlog2.f32 %v5472_v10  ;;  %vm10744_vm15 = vcmp.eq.f32.partialorder %v5472_v10, 2139095040  ;;  %vm5503_vm0 = vcmp.eq.f32.partialorder %v10717_v2, 0  ;;  %vm5529_vm2 = vcmp.eq.f32.partialorder %v10721_v28, 0 }
 0x395   :  { %v5337_v29 = vmax.f32 %v5333_v13, 0.0  ;;  %5583 = vlog2.f32 %v5498_v57  ;;  %vm10758_vm6 = vcmp.eq.f32.partialorder %v5498_v57, 2139095040  ;;  %vm10762_vm7 = vcmp.eq.f32.partialorder %v5524_v11, 2139095040 }
 0x396   :  { %5585 = vlog2.f32 %v5524_v11 }
 0x397   :  { %v10726_v5 = vmin.f32 %v5337_v29, 1.0 }
 0x399   :  { %v5550_v12 = vand.u32 2147483647, %v10726_v5  ;;  %vm5554_vm12 = vcmp.lt.f32.partialorder %v10726_v5, 0  ;;  %vm5555_vm3 = vcmp.eq.f32.partialorder %v10726_v5, 0 }
 0x39b   :  { %5587 = vlog2.f32 %v5550_v12 }
 0x39d   :  { %v5580_v1 = vpop.eup %5579 }
 0x39e   :  { %v2310_v60 = vmul.f32 %v5580_v1, %v5578_v45  ;;  %v5582_v44 = vpop.eup %5581 }
 0x39f   :  { %v5584_v21 = vpop.eup %5583  ;;  %v5474_v14 = vmul.f32 0.8, %v5582_v44 }
 0x3a0   :  { %v10730_v36 = vsel %vm2309_vm8, %v5580_v1, %v2310_v60  ;;  %v5586_v7 = vpop.eup %5585  ;;  %v5500_v23 = vmul.f32 0.8, %v5584_v21 }
 0x3a1   :  { %v5446_v26 = vand.u32 2147483647, %v10730_v36  ;;  %v5526_v9 = vmul.f32 0.8, %v5586_v7  ;;  %vm5450_vm13 = vcmp.lt.f32.partialorder %v10730_v36, 0  ;;  %vm5451_vm1 = vcmp.eq.f32.partialorder %v10730_v36, 0 }
 0x3a2   :  { %vm5463_vm5 = vcmp.ne.f32.partialorder %v10730_v36, %v10730_v36  ;;  %vm5452_vm8 = vcmp.eq.f32.partialorder %v10730_v36, 1065353216 }
 0x3a3   :  { %5589 = vlog2.f32 %v5446_v26  ;;  %vm10752_vm4 = vcmp.eq.f32.partialorder %v5446_v26, 2139095040 }
 0x3a4   :  { %5591 = vpow2.f32 %v5474_v14 }
 0x3a5   :  { %v5588_v46 = vpop.eup %5587  ;;  %5593 = vpow2.f32 %v5500_v23 }
 0x3a6   :  { %v5552_v25 = vmul.f32 0.8, %v5588_v46  ;;  %5595 = vpow2.f32 %v5526_v9 }
 0x3a8   :  { %5597 = vpow2.f32 %v5552_v25 }
 0x3ad   :  { %v5590_v15 = vpop.eup %5589 }
 0x3ae   :  { %v5448_v43 = vmul.f32 0.2, %v5590_v15  ;;  %v5592_v40 = vpop.eup %5591 }
 0x3af   :  { %v5594_v47 = vpop.eup %5593  ;;  %v5482_v51 = vsel %vm5476_vm9, 2143289344, %v5592_v40  ;;  %vm10769_vm9 = vcmp.eq.f32.partialorder %v5550_v12, 2139095040 }
 0x3b0   :  { %5599 = vpow2.f32 %v5448_v43  ;;  %v5596_v52 = vpop.eup %5595  ;;  %v5508_v19 = vsel %vm5502_vm10, 2143289344, %v5594_v47  ;;  %v5483_v59 = vsel %vm5477_vm14, 0, %v5482_v51  ;;  %vm5489_vm10 = vcmp.ne.f32.partialorder %v10719_v61, %v10719_v61 }
 0x3b1   :  { %v5534_v4 = vsel %vm5528_vm11, 2143289344, %v5596_v52  ;;  %v5509_v42 = vsel %vm5503_vm0, 0, %v5508_v19  ;;  %v5488_v24 = vsel %vm10744_vm15, 2139095040, %v5483_v59  ;;  %vm5515_vm11 = vcmp.ne.f32.partialorder %v10717_v2, %v10717_v2 }
 0x3b2   :  { %v5598_v22 = vpop.eup %5597  ;;  %v5535_v63 = vsel %vm5529_vm2, 0, %v5534_v4  ;;  %v5514_v3 = vsel %vm10758_vm6, 2139095040, %v5509_v42  ;;  %v5492_v20 = vsel %vm5489_vm10, 2143289344, %v5488_v24  ;;  %vm5478_vm14 = vcmp.eq.f32.partialorder %v10719_v61, 1065353216 }
 0x3b3   :  { %v5560_v30 = vsel %vm5554_vm12, 2143289344, %v5598_v22  ;;  %v5540_v54 = vsel %vm10762_vm7, 2139095040, %v5535_v63  ;;  %vm5541_vm12 = vcmp.ne.f32.partialorder %v10721_v28, %v10721_v28  ;;  %v5518_v27 = vsel %vm5515_vm11, 2143289344, %v5514_v3 }
 0x3b4   :  { %v5561_v17 = vsel %vm5555_vm3, 0, %v5560_v30  ;;  %v5544_v53 = vsel %vm5541_vm12, 2143289344, %v5540_v54  ;;  %vm5504_vm15 = vcmp.eq.f32.partialorder %v10717_v2, 1065353216  ;;  %vm5530_vm0 = vcmp.eq.f32.partialorder %v10721_v28, 1065353216 }
 0x3b5   :  { %v5566_v8 = vsel %vm10769_vm9, 2139095040, %v5561_v17  ;;  %v5493_v13 = vsel %vm5478_vm14, 1065353216, %v5492_v20  ;;  %v5519_v10 = vsel %vm5504_vm15, 1065353216, %v5518_v27  ;;  %v5545_v57 = vsel %vm5530_vm0, 1065353216, %v5544_v53 }
 0x3ba   :  { %v5600_v38 = vpop.eup %5599 }
 0x3bb   :  { %v5456_v56 = vsel %vm5450_vm13, 2143289344, %v5600_v38  ;;  %vm5567_vm13 = vcmp.ne.f32.partialorder %v10726_v5, %v10726_v5 }
 0x3bc   :  { %v5457_v55 = vsel %vm5451_vm1, 0, %v5456_v56  ;;  %v5570_v31 = vsel %vm5567_vm13, 2143289344, %v5566_v8  ;;  %vm5556_vm1 = vcmp.eq.f32.partialorder %v10726_v5, 1065353216 }
 0x3bd   :  { %v5462_v41 = vsel %vm10752_vm4, 2139095040, %v5457_v55  ;;  %v5571_v29 = vsel %vm5556_vm1, 1065353216, %v5570_v31 }
 0x3be   :  { %v5466_v0 = vsel %vm5463_vm5, 2143289344, %v5462_v41 }
 0x3bf   :  { %v5467_v35 = vsel %vm5452_vm8, 1065353216, %v5466_v0 }
 0x3c0   :  { %v2314_v45 = vmul.f32 %v5467_v35, %v2312_v34 }
 0x3c2   :  { %v2315_v18 = vsub.f32 0.0, %v2314_v45 }
 0x3c4   :  { %v5350_v11 = vrot.slane %v2315_v18, %v5349_v16  ;;  %v5354_v12 = vrot.slane %v2315_v18, %v5353_v32  ;;  %v5358_v1 = vrot.slane %v2315_v18, %v5357_v6  ;;  %v5362_v60 = vrot.slane %v2315_v18, %v5361_v48 }
 0x3c6   :  { %v5367_v44 = vmul.f32 %v5493_v13, %v5350_v11  ;;  %v5368_v36 = vmul.f32 %v5519_v10, %v5354_v12  ;;  %v5369_v61 = vmul.f32 %v5545_v57, %v5358_v1  ;;  %v5370_v21 = vmul.f32 %v5571_v29, %v5362_v60 }
 0x3c8   :  { %5371 = vst [vmem:[#allocation6] sm:$0xff] %v5367_v44  ;;  %5372 = vst [vmem:[#allocation6 + $0x8] sm:$0xff] %v5368_v36 }
 0x3c9   :  { %5373 = vst [vmem:[#allocation6 + $0x10] sm:$0xff] %v5369_v61  ;;  %5374 = vst [vmem:[#allocation6 + $0x18] sm:$0xff] %v5370_v21 }
 0x3ca   :  { %5634 = shalt.err (!%p5631_p12)
}
 0x3cb   :  { %s5635_s2 = scalar_lea.hbm %s10814_s5, 512 }
 0x3cc   :  { %p5636_p13 = scmp.ne.s32.totalorder %s10814_s5, %s5635_s2  ;;  %p5639_p0 = scmp.lt.u32.totalorder %s5635_s2, %s10814_s5 }
 0x3ce   :  { %p5641_p1 = pnand %p5639_p0, %p5636_p13 }
 0x3d0   :  { %5644 = shalt.err (!%p5641_p1)
}
 0x3d1   :  { %5384 = dma.vmem_to_hbm [thread:$0]  %s5382_s14, 512, %s10814_s5, [#allocation5]  }
 0x3d2   :  { %5647 = dma.done.wait [#allocation5], 512  }
 0x3d3   :  { %5648 = vsyncadd [#allocation5], 4294966784 }
 0x3d4   :  { %5388 = vsyncpa [#allocation4], 1 }
 0x3d5   :  { %5389 = vsyncpa [#allocation5], 1 }

</bundles_post_ra>
